<compile_context>
chip_gen: v5e
topology: v5e:2x2
jax: 0.10.0
libtpu: 0.0.40
codegen_flags: <defaults>
</compile_context>

<pallas_src>
import functools
import numpy as np
import jax
import jax.numpy as jnp
from jax.experimental import pallas as pl
from jax.experimental.pallas import tpu as pltpu  # noqa: F401  (TPU backend)

F32 = jnp.float32
HI = jax.lax.Precision.HIGHEST


# ---------------------------------------------------------------- static DFT matrices
def rfft_mats(n, m):
    """x (.., n) @ (Fr, Fi) -> first m bins of rfft(x) (real, imag)."""
    t = np.arange(n)[:, None]
    k = np.arange(m)[None, :]
    ang = 2.0 * np.pi * t * k / n
    return jnp.asarray(np.cos(ang), F32), jnp.asarray(-np.sin(ang), F32)


def irfft_mats(m, n):
    """irfft of an (n//2+1)-bin spectrum whose only nonzero bins are 0..m-1 (m <= n//2)."""
    assert m <= n // 2, "irfft operator assumes no Nyquist bin (m <= n//2)"
    k = np.arange(m)[:, None]
    t = np.arange(n)[None, :]
    ang = 2.0 * np.pi * k * t / n
    scale = np.full((m, 1), 2.0 / n)
    scale[0, 0] = 1.0 / n
    Cr = scale * np.cos(ang)
    Ci = -scale * np.sin(ang)
    Ci[0, :] = 0.0  # imaginary part of DC bin is ignored by C2R transforms
    return jnp.asarray(Cr, F32), jnp.asarray(Ci, F32)


# --------------------------------------------------------------------- Pallas kernels
def _linear_kernel(x_ref, w_ref, b_ref, o_ref):
    o_ref[...] = (jnp.dot(x_ref[...], w_ref[...], preferred_element_type=jnp.float32)
                  + b_ref[...])


def linear(x, w, b):
    """y = x @ w + b, whole problem in VMEM (no grid)."""
    M = x.shape[0]
    N = w.shape[1]
    return pl.pallas_call(
        _linear_kernel,
        out_shape=jax.ShapeDtypeStruct((M, N), F32),
    )(x, w, b.reshape(1, N))


def _dual_kernel(a_ref, ka_ref, b_ref, kb_ref, oa_ref, ob_ref):
    # Two independent GEMMs (y-branch and x-branch of a spectral layer) in one call.
    oa_ref[...] = jnp.dot(a_ref[...], ka_ref[...], preferred_element_type=jnp.float32)
    ob_ref[...] = jnp.dot(b_ref[...], kb_ref[...], preferred_element_type=jnp.float32)


def dual_matmul(a, ka, b, kb):
    return pl.pallas_call(
        _dual_kernel,
        out_shape=(jax.ShapeDtypeStruct((a.shape[0], ka.shape[1]), F32),
                   jax.ShapeDtypeStruct((b.shape[0], kb.shape[1]), F32)),
    )(a, ka, b, kb)


def _bmm_kernel(a_ref, b_ref, o_ref, *, batch):
    for i in range(batch):                       # static unroll (batch is tiny)
        o_ref[i] = jnp.dot(a_ref[i], b_ref[i], preferred_element_type=jnp.float32)


def batched_matmul(a, b):
    """(B,M,K) x (B,K,N) -> (B,M,N); batch unrolled inside one kernel (no grid)."""
    B, M, _ = a.shape
    N = b.shape[2]
    return pl.pallas_call(
        functools.partial(_bmm_kernel, batch=B),
        out_shape=jax.ShapeDtypeStruct((B, M, N), F32),
    )(a, b)


def _ff_kernel(*refs, add_residual):
    if add_residual:
        z_ref, res_ref, uc3_ref, w1_ref, b1_ref, w2_ref, b2_ref, o_ref = refs
    else:
        z_ref, uc3_ref, w1_ref, b1_ref, w2_ref, b2_ref, o_ref = refs
    h = jnp.dot(z_ref[...], w1_ref[...], preferred_element_type=jnp.float32) + b1_ref[...]
    h = jnp.maximum(h, 0.0)
    y = (jnp.dot(h, w2_ref[...], preferred_element_type=jnp.float32)
         + b2_ref[...] + uc3_ref[...])
    if add_residual:
        y = y + res_ref[...]
    o_ref[...] = y


def ff_fused(z, uc3, w1, b1, w2, b2, resid=None):
    """out = [resid +] Linear2(ReLU(Linear1(z))) + uc3, fully fused (hidden stays in VMEM)."""
    M, C = z.shape
    add_res = resid is not None
    args = (z,) + ((resid,) if add_res else ()) + (uc3, w1, b1.reshape(1, -1),
                                                   w2, b2.reshape(1, -1))
    return pl.pallas_call(
        functools.partial(_ff_kernel, add_residual=add_res),
        out_shape=jax.ShapeDtypeStruct((M, C), F32),
    )(*args)


def _head_kernel(e_ref, s_ref, c_ref, w1d_ref, b1d_ref, fw_ref, fb_ref, o_ref, *, batch):
    # Per batch: mesh evaluation of the spectral coefficients + 1x1 Conv1d bias + fc1.
    for i in range(batch):
        ut = (jnp.dot(e_ref[i], s_ref[i], preferred_element_type=jnp.float32)
              + jnp.dot(c_ref[i], w1d_ref[...], preferred_element_type=jnp.float32)
              + b1d_ref[...])
        o_ref[i] = jnp.dot(ut, fw_ref[...], preferred_element_type=jnp.float32) + fb_ref[...]


def head(bases, scat, coords, w1d, b1d, fc1_w, fc1_b):
    B, N, _ = bases.shape
    H = fc1_w.shape[1]
    return pl.pallas_call(
        functools.partial(_head_kernel, batch=B),
        out_shape=jax.ShapeDtypeStruct((B, N, H), F32),
    )(bases, scat, coords, w1d, b1d.reshape(1, -1), fc1_w, fc1_b.reshape(1, -1))


# -------------------------------------------- fused spectral operators (trace-time einsums)
def uniform_ops(p, m1, m2, s1, s2, width):
    """K_y:(s2*C, s1*C), K_x:(s1*C, s2*C): fused rfft->mode-mix->irfft, channel-last flat.

    Input rows flattened as (spatial, channel), output cols flattened as (spatial, channel).
    """
    Fry, Fiy = rfft_mats(s2, m2)
    Cry, Ciy = irfft_mats(m2, s1)   # reference irfft uses n=s1 on the y-branch
    Frx, Fix = rfft_mats(s1, m1)
    Crx, Cix = irfft_mats(m1, s2)   # and n=s2 on the x-branch (s1 == s2)

    def branch(Fr, Fi, Wr, Wi, Cr, Ci, n_in, n_out):
        Pr = (jnp.einsum('wm,iom->wmio', Fr, Wr, precision=HI)
              - jnp.einsum('wm,iom->wmio', Fi, Wi, precision=HI))
        Pi = (jnp.einsum('wm,iom->wmio', Fr, Wi, precision=HI)
              + jnp.einsum('wm,iom->wmio', Fi, Wr, precision=HI))
        K = (jnp.einsum('wmio,mt->wito', Pr, Cr, precision=HI)
             + jnp.einsum('wmio,mt->wito', Pi, Ci, precision=HI))
        return K.reshape(n_in * width, n_out * width)

    K_y = branch(Fry, Fiy, p["w0r"], p["w0i"], Cry, Ciy, s2, s1)
    K_x = branch(Frx, Fix, p["w1r"], p["w1i"], Crx, Cix, s1, s2)
    return K_y, K_x


def layer0_ops(p, m1, m2, s1, s2, width):
    """G_y:(2*C*m2, s1*C), G_x:(2*C*m1, s2*C): mesh Fourier coeffs [re|im] -> grid rows."""
    Cry, Ciy = irfft_mats(m2, s1)
    Crx, Cix = irfft_mats(m1, s2)

    def branch(Wr, Wi, Cr, Ci, m, n_out):
        Gr = (jnp.einsum('iom,mt->imto', Wr, Cr, precision=HI)
              + jnp.einsum('iom,mt->imto', Wi, Ci, precision=HI))
        Gi = (jnp.einsum('iom,mt->imto', Wr, Ci, precision=HI)
              - jnp.einsum('iom,mt->imto', Wi, Cr, precision=HI))
        return jnp.concatenate([Gr.reshape(width * m, n_out * width),
                                Gi.reshape(width * m, n_out * width)], axis=0)

    G_y = branch(p["w0r"], p["w0i"], Cry, Ciy, m2, s1)
    G_x = branch(p["w1r"], p["w1i"], Crx, Cix, m1, s2)
    return G_y, G_x


def final_ops(p, m1, m2, s1, s2, width):
    """Q_y:(s2*C, 2*m2*C), Q_x:(s1*C, 2*m1*C): grid (summed over the other axis) -> coeffs.

    Output cols flattened as (part{re,im}, mode, channel) to line up with the mesh bases.
    """
    Fry, Fiy = rfft_mats(s2, m2)
    Frx, Fix = rfft_mats(s1, m1)

    def branch(Fr, Fi, Wr, Wi, m, n_in):
        Qr = (jnp.einsum('wm,iom->wimo', Fr, Wr, precision=HI)
              - jnp.einsum('wm,iom->wimo', Fi, Wi, precision=HI))
        Qi = (jnp.einsum('wm,iom->wimo', Fr, Wi, precision=HI)
              + jnp.einsum('wm,iom->wimo', Fi, Wr, precision=HI))
        return jnp.stack([Qr, Qi], axis=2).reshape(n_in * width, 2 * m * width)

    Q_y = branch(Fry, Fiy, p["w0r"], p["w0i"], m2, s2)
    Q_x = branch(Frx, Fix, p["w1r"], p["w1i"], m1, s1)
    return Q_y, Q_x


def mesh_bases(coords, m1, m2):
    """Columns: [cos(2pi c0 k2), -sin(2pi c0 k2), cos(2pi c1 k1), -sin(2pi c1 k1)].

    Serves both the forward transform of layer 0 (exp(-i*theta): re=cos, im=-sin) and
    the inverse evaluation of the final layer (Re(S * exp(+i*theta)) = Sr*cos - Si*sin).
    """
    k2 = jnp.arange(m2, dtype=F32)
    k1 = jnp.arange(m1, dtype=F32)
    ay = 2.0 * jnp.pi * coords[..., 0:1] * k2
    ax = 2.0 * jnp.pi * coords[..., 1:2] * k1
    return jnp.concatenate([jnp.cos(ay), -jnp.sin(ay), jnp.cos(ax), -jnp.sin(ax)], axis=-1)


# ------------------------------------------------------------------------ full forward
def fno_forward(params, u, *, s1, s2, m1, m2, n_layers):
    assert s1 == s2, "reference irfft calls require s1 == s2"
    B, N, in_ch = u.shape
    width = params["fc0_w"].shape[1]
    coords = u                     # iphi = identity, is_mesh=True -> x_in = x_out = u

    # Fused spectral operators (cheap einsums over constant DFT mats + learned weights).
    G_y0, G_x0 = layer0_ops(params["convs"][0], m1, m2, s1, s2, width)
    Ks = [uniform_ops(params["convs"][i], m1, m2, s1, s2, width)
          for i in range(1, n_layers)]
    Q_y, Q_x = final_ops(params["convs"][n_layers], m1, m2, s1, s2, width)

    # grid bias uc3 (channel-last flat), computed once and reused for every layer
    gx = jnp.linspace(0.0, 1.0, s1).astype(F32)
    gy = jnp.linspace(0.0, 1.0, s2).astype(F32)
    grid = jnp.stack([jnp.broadcast_to(gx[:, None], (s1, s2)),
                      jnp.broadcast_to(gy[None, :], (s1, s2))], axis=-1)
    grid = jnp.broadcast_to(grid[None], (B, s1, s2, 2)).reshape(B * s1 * s2, 2)
    uc3 = linear(grid, params["bs2d_w"], params["bs2d_b"])            # (B*s1*s2, C)

    # fc0 lift + non-uniform Fourier coefficients of the lifted input (one batched kernel)
    u0 = linear(u.reshape(B * N, in_ch), params["fc0_w"], params["fc0_b"])
    u0 = jnp.transpose(u0.reshape(B, N, width), (0, 2, 1))            # (B, C, N)
    bases = mesh_bases(coords, m1, m2)                                # (B, N, 2*(m2+m1))
    ft = batched_matmul(u0, bases)                                    # (B, C, 2*(m2+m1))
    ftyr, ftyi = ft[:, :, :m2], ft[:, :, m2:2 * m2]
    ftxr, ftxi = ft[:, :, 2 * m2:2 * m2 + m1], ft[:, :, 2 * m2 + m1:]
    a_y0 = jnp.concatenate([ftyr.reshape(B, width * m2), ftyi.reshape(B, width * m2)], axis=1)
    a_x0 = jnp.concatenate([ftxr.reshape(B, width * m1), ftxi.reshape(B, width * m1)], axis=1)

    # ----- layer 0: mesh -> uniform grid (fused mode-mix + irfft), FF + grid bias
    oy0, ox0 = dual_matmul(a_y0, G_y0, a_x0, G_x0)                    # (B,s1*C), (B,s2*C)
    xx0 = ox0.reshape(B, s2, width)        # length-s2 irfft, broadcast along W (s1==s2)
    xy0 = oy0.reshape(B, s1, width)        # length-s1 irfft, broadcast along H (s1==s2)
    z0 = (xx0[:, :, None, :] + xy0[:, None, :, :]).reshape(B * s1 * s2, width)
    p0 = params["convs"][0]
    uc = ff_fused(z0, uc3, p0["ff_w1"], p0["ff_b1"], p0["ff_w2"], p0["ff_b2"])

    # ----- middle layers: uniform spectral conv (one dual GEMM) + fused FF/residual/bias
    for li in range(1, n_layers):
        K_y, K_x = Ks[li - 1]
        ucg = uc.reshape(B, s1, s2, width)
        a_y = ucg.reshape(B * s1, s2 * width)
        a_x = jnp.transpose(ucg, (0, 2, 1, 3)).reshape(B * s2, s1 * width)
        o_y, o_x = dual_matmul(a_y, K_y, a_x, K_x)                    # lane-dense (.., s*C)
        xy = o_y.reshape(B, s1, s1, width)                            # (b, h, t->w, o)
        xx = jnp.transpose(o_x.reshape(B, s2, s2, width), (0, 2, 1, 3))   # (b, t->h, y, o)
        z = (xy + xx).reshape(B * s1 * s2, width)
        pi = params["convs"][li]
        uc = ff_fused(z, uc3, pi["ff_w1"], pi["ff_b1"], pi["ff_w2"], pi["ff_b2"], resid=uc)

    # ----- final layer: uniform grid -> mesh (summed spectrum), + Conv1d bias + fc1 fused
    ucg = uc.reshape(B, s1, s2, width)
    ucsum_y = ucg.sum(axis=1).reshape(B, s2 * width)   # sum over H, flat (w, i)
    ucsum_x = ucg.sum(axis=2).reshape(B, s1 * width)   # sum over W, flat (h, i)
    Sy, Sx = dual_matmul(ucsum_y, Q_y, ucsum_x, Q_x)   # (B, 2*m2*C), (B, 2*m1*C)
    Scat = jnp.concatenate([Sy.reshape(B, 2 * m2, width),
                            Sx.reshape(B, 2 * m1, width)], axis=1)    # (B, 2*(m2+m1), C)
    h = head(bases, Scat, coords, params["bs1d_w"], params["bs1d_b"],
             params["fc1_w"], params["fc1_b"])                        # (B, N, 128)

    # TODO(synk): exact-erf GELU kept in XLA (Mosaic erf lowering not guaranteed); matches
    #             torch F.gelu default numerics.
    h = jax.nn.gelu(h, approximate=False)
    y = linear(h.reshape(B * N, -1), params["fc2_w"], params["fc2_b"])
    return y.reshape(B, N, -1)


# ----------------------------------------------------------------------- parameter init
def init_params(key, in_ch, out_ch, width, m1, m2, n_layers):
    n_keys = 10 + 8 * (n_layers + 1)
    kit = iter(jax.random.split(key, n_keys))

    def nrm(shape, scale):
        return (scale * jax.random.normal(next(kit), shape)).astype(F32)

    params = {
        "fc0_w": nrm((in_ch, width), 1.0 / np.sqrt(in_ch)),
        "fc0_b": nrm((width,), 0.02),
        "bs2d_w": nrm((2, width), 1.0 / np.sqrt(2.0)),
        "bs2d_b": nrm((width,), 0.02),
        "bs1d_w": nrm((2, width), 1.0 / np.sqrt(2.0)),
        "bs1d_b": nrm((width,), 0.02),
        "fc1_w": nrm((width, 128), 1.0 / np.sqrt(width)),
        "fc1_b": nrm((128,), 0.02),
        "fc2_w": nrm((128, out_ch), 1.0 / np.sqrt(128.0)),
        "fc2_b": nrm((out_ch,), 0.02),
        "convs": [],
    }
    xav2 = np.sqrt(2.0 / ((width + width) * m2 * 2))   # xavier_normal_ on (in,out,m,2)
    xav1 = np.sqrt(2.0 / ((width + width) * m1 * 2))
    for _ in range(n_layers + 1):
        params["convs"].append({
            "w0r": nrm((width, width, m2), xav2),
            "w0i": nrm((width, width, m2), xav2),
            "w1r": nrm((width, width, m1), xav1),
            "w1i": nrm((width, width, m1), xav1),
            "ff_w1": nrm((width, 2 * width), 1.0 / np.sqrt(width)),
            "ff_b1": nrm((2 * width,), 0.02),
            "ff_w2": nrm((2 * width, width), 1.0 / np.sqrt(2.0 * width)),
            "ff_b2": nrm((width,), 0.02),
        })
    return params


# ------------------------------------------------------------------------------- main
if __name__ == "__main__":
    B, N_PTS = 2, 8
    IN_CH, OUT_CH = 2, 1
    WIDTH = 32
    MODES1 = MODES2 = 6
    S1 = S2 = 16
    N_LAYERS = 4

    key = jax.random.PRNGKey(0)
    pkey, ukey = jax.random.split(key)
    params = init_params(pkey, IN_CH, OUT_CH, WIDTH, MODES1, MODES2, N_LAYERS)
    # u doubles as the mesh coordinates (is_mesh=True), keep them in [0, 1]
    u = jax.random.uniform(ukey, (B, N_PTS, IN_CH), dtype=F32)

    fwd = jax.jit(functools.partial(fno_forward, s1=S1, s2=S2,
                                    m1=MODES1, m2=MODES2, n_layers=N_LAYERS))
    out = fwd(params, u)
    jax.block_until_ready(out)
    assert out.shape == (B, N_PTS, OUT_CH) and out.dtype == F32
    print("KERNEL_OK")
</pallas_src>

<mosaic_0001>
module attributes {stable_mosaic.version = 11 : i64} {
  func.func @_bmm_kernel(%arg0: memref<2x32x8xf32, #tpu.memory_space<vmem>>, %arg1: memref<2x8x24xf32, #tpu.memory_space<vmem>>, %arg2: memref<2x32x24xf32, #tpu.memory_space<vmem>>) attributes {dimension_semantics = [], scalar_prefetch = 0 : i64, scratch_operands = 0 : i64, tpu.core_type = #tpu.core_type<tc>} {
    %c0 = arith.constant 0 : index
    %c0_0 = arith.constant 0 : index
    %c0_1 = arith.constant 0 : index
    %0 = vector.load %arg0[%c0, %c0_0, %c0_1] : memref<2x32x8xf32, #tpu.memory_space<vmem>>, vector<1x32x8xf32>
    %1 = vector.shape_cast %0 : vector<1x32x8xf32> to vector<32x8xf32>
    %c0_2 = arith.constant 0 : index
    %c0_3 = arith.constant 0 : index
    %c0_4 = arith.constant 0 : index
    %2 = vector.load %arg1[%c0_2, %c0_3, %c0_4] : memref<2x8x24xf32, #tpu.memory_space<vmem>>, vector<1x8x24xf32>
    %3 = vector.shape_cast %2 : vector<1x8x24xf32> to vector<8x24xf32>
    %cst = arith.constant dense<0.000000e+00> : vector<32x24xf32>
    %4 = tpu.matmul %1, %3, %cst {dimension_numbers = #tpu.dot_dimension_numbers<[1], [0], [0], [1], [0, 0, 1, 1], [], []>} : vector<32x8xf32>, vector<8x24xf32>, vector<32x24xf32> -> vector<32x24xf32>
    %c0_5 = arith.constant 0 : index
    %c0_6 = arith.constant 0 : index
    %c0_7 = arith.constant 0 : index
    %5 = vector.load %arg2[%c0_5, %c0_6, %c0_7] : memref<2x32x24xf32, #tpu.memory_space<vmem>>, vector<1x32x24xf32>
    %6 = vector.shape_cast %5 : vector<1x32x24xf32> to vector<32x24xf32>
    %7 = vector.shape_cast %4 : vector<32x24xf32> to vector<1x32x24xf32>
    tpu.vector_store %arg2[%c0_5, %c0_6, %c0_7], %7 {strides = array<i32>} : memref<2x32x24xf32, #tpu.memory_space<vmem>>, vector<1x32x24xf32>,
    %c1 = arith.constant 1 : index
    %c0_8 = arith.constant 0 : index
    %c0_9 = arith.constant 0 : index
    %8 = vector.load %arg0[%c1, %c0_8, %c0_9] : memref<2x32x8xf32, #tpu.memory_space<vmem>>, vector<1x32x8xf32>
    %9 = vector.shape_cast %8 : vector<1x32x8xf32> to vector<32x8xf32>
    %c1_10 = arith.constant 1 : index
    %c0_11 = arith.constant 0 : index
    %c0_12 = arith.constant 0 : index
    %10 = vector.load %arg1[%c1_10, %c0_11, %c0_12] : memref<2x8x24xf32, #tpu.memory_space<vmem>>, vector<1x8x24xf32>
    %11 = vector.shape_cast %10 : vector<1x8x24xf32> to vector<8x24xf32>
    %cst_13 = arith.constant dense<0.000000e+00> : vector<32x24xf32>
    %12 = tpu.matmul %9, %11, %cst_13 {dimension_numbers = #tpu.dot_dimension_numbers<[1], [0], [0], [1], [0, 0, 1, 1], [], []>} : vector<32x8xf32>, vector<8x24xf32>, vector<32x24xf32> -> vector<32x24xf32>
    %c1_14 = arith.constant 1 : index
    %c0_15 = arith.constant 0 : index
    %c0_16 = arith.constant 0 : index
    %13 = vector.load %arg2[%c1_14, %c0_15, %c0_16] : memref<2x32x24xf32, #tpu.memory_space<vmem>>, vector<1x32x24xf32>
    %14 = vector.shape_cast %13 : vector<1x32x24xf32> to vector<32x24xf32>
    %15 = vector.shape_cast %12 : vector<32x24xf32> to vector<1x32x24xf32>
    tpu.vector_store %arg2[%c1_14, %c0_15, %c0_16], %15 {strides = array<i32>} : memref<2x32x24xf32, #tpu.memory_space<vmem>>, vector<1x32x24xf32>,
    return
  }
}

module attributes {stable_mosaic.version = 11 : i64} {
  func.func @_linear_kernel(%arg0: memref<16x2xf32, #tpu.memory_space<vmem>>, %arg1: memref<2x32xf32, #tpu.memory_space<vmem>>, %arg2: memref<1x32xf32, #tpu.memory_space<vmem>>, %arg3: memref<16x32xf32, #tpu.memory_space<vmem>>) attributes {dimension_semantics = [], scalar_prefetch = 0 : i64, scratch_operands = 0 : i64, tpu.core_type = #tpu.core_type<tc>} {
    %c0 = arith.constant 0 : index
    %c0_0 = arith.constant 0 : index
    %0 = vector.load %arg0[%c0, %c0_0] : memref<16x2xf32, #tpu.memory_space<vmem>>, vector<16x2xf32>
    %c0_1 = arith.constant 0 : index
    %c0_2 = arith.constant 0 : index
    %1 = vector.load %arg1[%c0_1, %c0_2] : memref<2x32xf32, #tpu.memory_space<vmem>>, vector<2x32xf32>
    %cst = arith.constant dense<0.000000e+00> : vector<16x32xf32>
    %2 = tpu.matmul %0, %1, %cst {dimension_numbers = #tpu.dot_dimension_numbers<[1], [0], [0], [1], [0, 0, 1, 1], [], []>} : vector<16x2xf32>, vector<2x32xf32>, vector<16x32xf32> -> vector<16x32xf32>
    %c0_3 = arith.constant 0 : index
    %c0_4 = arith.constant 0 : index
    %3 = vector.load %arg2[%c0_3, %c0_4] : memref<1x32xf32, #tpu.memory_space<vmem>>, vector<1x32xf32>
    %4 = vector.broadcast %3 : vector<1x32xf32> to vector<16x32xf32>
    %5 = arith.addf %2, %4 : vector<16x32xf32>
    %c0_5 = arith.constant 0 : index
    %c0_6 = arith.constant 0 : index
    %6 = vector.load %arg3[%c0_5, %c0_6] : memref<16x32xf32, #tpu.memory_space<vmem>>, vector<16x32xf32>
    tpu.vector_store %arg3[%c0_5, %c0_6], %5 {strides = array<i32>} : memref<16x32xf32, #tpu.memory_space<vmem>>, vector<16x32xf32>,
    return
  }
}

module attributes {stable_mosaic.version = 11 : i64} {
  func.func @_linear_kernel(%arg0: memref<512x2xf32, #tpu.memory_space<vmem>>, %arg1: memref<2x32xf32, #tpu.memory_space<vmem>>, %arg2: memref<1x32xf32, #tpu.memory_space<vmem>>, %arg3: memref<512x32xf32, #tpu.memory_space<vmem>>) attributes {dimension_semantics = [], scalar_prefetch = 0 : i64, scratch_operands = 0 : i64, tpu.core_type = #tpu.core_type<tc>} {
    %c0 = arith.constant 0 : index
    %c0_0 = arith.constant 0 : index
    %0 = vector.load %arg0[%c0, %c0_0] : memref<512x2xf32, #tpu.memory_space<vmem>>, vector<512x2xf32>
    %c0_1 = arith.constant 0 : index
    %c0_2 = arith.constant 0 : index
    %1 = vector.load %arg1[%c0_1, %c0_2] : memref<2x32xf32, #tpu.memory_space<vmem>>, vector<2x32xf32>
    %cst = arith.constant dense<0.000000e+00> : vector<512x32xf32>
    %2 = tpu.matmul %0, %1, %cst {dimension_numbers = #tpu.dot_dimension_numbers<[1], [0], [0], [1], [0, 0, 1, 1], [], []>} : vector<512x2xf32>, vector<2x32xf32>, vector<512x32xf32> -> vector<512x32xf32>
    %c0_3 = arith.constant 0 : index
    %c0_4 = arith.constant 0 : index
    %3 = vector.load %arg2[%c0_3, %c0_4] : memref<1x32xf32, #tpu.memory_space<vmem>>, vector<1x32xf32>
    %4 = vector.broadcast %3 : vector<1x32xf32> to vector<512x32xf32>
    %5 = arith.addf %2, %4 : vector<512x32xf32>
    %c0_5 = arith.constant 0 : index
    %c0_6 = arith.constant 0 : index
    %6 = vector.load %arg3[%c0_5, %c0_6] : memref<512x32xf32, #tpu.memory_space<vmem>>, vector<512x32xf32>
    tpu.vector_store %arg3[%c0_5, %c0_6], %5 {strides = array<i32>} : memref<512x32xf32, #tpu.memory_space<vmem>>, vector<512x32xf32>,
    return
  }
}

module attributes {stable_mosaic.version = 11 : i64} {
  func.func @_dual_kernel(%arg0: memref<2x384xf32, #tpu.memory_space<vmem>>, %arg1: memref<384x512xf32, #tpu.memory_space<vmem>>, %arg2: memref<2x384xf32, #tpu.memory_space<vmem>>, %arg3: memref<384x512xf32, #tpu.memory_space<vmem>>, %arg4: memref<2x512xf32, #tpu.memory_space<vmem>>, %arg5: memref<2x512xf32, #tpu.memory_space<vmem>>) attributes {dimension_semantics = [], scalar_prefetch = 0 : i64, scratch_operands = 0 : i64, tpu.core_type = #tpu.core_type<tc>} {
    %c0 = arith.constant 0 : index
    %c0_0 = arith.constant 0 : index
    %0 = vector.load %arg0[%c0, %c0_0] : memref<2x384xf32, #tpu.memory_space<vmem>>, vector<2x384xf32>
    %c0_1 = arith.constant 0 : index
    %c0_2 = arith.constant 0 : index
    %1 = vector.load %arg1[%c0_1, %c0_2] : memref<384x512xf32, #tpu.memory_space<vmem>>, vector<384x512xf32>
    %cst = arith.constant dense<0.000000e+00> : vector<2x512xf32>
    %2 = tpu.matmul %0, %1, %cst {dimension_numbers = #tpu.dot_dimension_numbers<[1], [0], [0], [1], [0, 0, 1, 1], [], []>} : vector<2x384xf32>, vector<384x512xf32>, vector<2x512xf32> -> vector<2x512xf32>
    %c0_3 = arith.constant 0 : index
    %c0_4 = arith.constant 0 : index
    %3 = vector.load %arg4[%c0_3, %c0_4] : memref<2x512xf32, #tpu.memory_space<vmem>>, vector<2x512xf32>
    tpu.vector_store %arg4[%c0_3, %c0_4], %2 {strides = array<i32>} : memref<2x512xf32, #tpu.memory_space<vmem>>, vector<2x512xf32>,
    %c0_5 = arith.constant 0 : index
    %c0_6 = arith.constant 0 : index
    %4 = vector.load %arg2[%c0_5, %c0_6] : memref<2x384xf32, #tpu.memory_space<vmem>>, vector<2x384xf32>
    %c0_7 = arith.constant 0 : index
    %c0_8 = arith.constant 0 : index
    %5 = vector.load %arg3[%c0_7, %c0_8] : memref<384x512xf32, #tpu.memory_space<vmem>>, vector<384x512xf32>
    %cst_9 = arith.constant dense<0.000000e+00> : vector<2x512xf32>
    %6 = tpu.matmul %4, %5, %cst_9 {dimension_numbers = #tpu.dot_dimension_numbers<[1], [0], [0], [1], [0, 0, 1, 1], [], []>} : vector<2x384xf32>, vector<384x512xf32>, vector<2x512xf32> -> vector<2x512xf32>
    %c0_10 = arith.constant 0 : index
    %c0_11 = arith.constant 0 : index
    %7 = vector.load %arg5[%c0_10, %c0_11] : memref<2x512xf32, #tpu.memory_space<vmem>>, vector<2x512xf32>
    tpu.vector_store %arg5[%c0_10, %c0_11], %6 {strides = array<i32>} : memref<2x512xf32, #tpu.memory_space<vmem>>, vector<2x512xf32>,
    return
  }
}

module attributes {stable_mosaic.version = 11 : i64} {
  func.func @_ff_kernel(%arg0: memref<512x32xf32, #tpu.memory_space<vmem>>, %arg1: memref<512x32xf32, #tpu.memory_space<vmem>>, %arg2: memref<32x64xf32, #tpu.memory_space<vmem>>, %arg3: memref<1x64xf32, #tpu.memory_space<vmem>>, %arg4: memref<64x32xf32, #tpu.memory_space<vmem>>, %arg5: memref<1x32xf32, #tpu.memory_space<vmem>>, %arg6: memref<512x32xf32, #tpu.memory_space<vmem>>) attributes {dimension_semantics = [], scalar_prefetch = 0 : i64, scratch_operands = 0 : i64, tpu.core_type = #tpu.core_type<tc>} {
    %c0 = arith.constant 0 : index
    %c0_0 = arith.constant 0 : index
    %0 = vector.load %arg0[%c0, %c0_0] : memref<512x32xf32, #tpu.memory_space<vmem>>, vector<512x32xf32>
    %c0_1 = arith.constant 0 : index
    %c0_2 = arith.constant 0 : index
    %1 = vector.load %arg2[%c0_1, %c0_2] : memref<32x64xf32, #tpu.memory_space<vmem>>, vector<32x64xf32>
    %cst = arith.constant dense<0.000000e+00> : vector<512x64xf32>
    %2 = tpu.matmul %0, %1, %cst {dimension_numbers = #tpu.dot_dimension_numbers<[1], [0], [0], [1], [0, 0, 1, 1], [], []>} : vector<512x32xf32>, vector<32x64xf32>, vector<512x64xf32> -> vector<512x64xf32>
    %c0_3 = arith.constant 0 : index
    %c0_4 = arith.constant 0 : index
    %3 = vector.load %arg3[%c0_3, %c0_4] : memref<1x64xf32, #tpu.memory_space<vmem>>, vector<1x64xf32>
    %4 = vector.broadcast %3 : vector<1x64xf32> to vector<512x64xf32>
    %5 = arith.addf %2, %4 : vector<512x64xf32>
    %cst_5 = arith.constant 0.000000e+00 : f32
    %6 = vector.broadcast %cst_5 : f32 to vector<512x64xf32>
    %7 = arith.maximumf %5, %6 : vector<512x64xf32>
    %c0_6 = arith.constant 0 : index
    %c0_7 = arith.constant 0 : index
    %8 = vector.load %arg4[%c0_6, %c0_7] : memref<64x32xf32, #tpu.memory_space<vmem>>, vector<64x32xf32>
    %cst_8 = arith.constant dense<0.000000e+00> : vector<512x32xf32>
    %9 = tpu.matmul %7, %8, %cst_8 {dimension_numbers = #tpu.dot_dimension_numbers<[1], [0], [0], [1], [0, 0, 1, 1], [], []>} : vector<512x64xf32>, vector<64x32xf32>, vector<512x32xf32> -> vector<512x32xf32>
    %c0_9 = arith.constant 0 : index
    %c0_10 = arith.constant 0 : index
    %10 = vector.load %arg5[%c0_9, %c0_10] : memref<1x32xf32, #tpu.memory_space<vmem>>, vector<1x32xf32>
    %11 = vector.broadcast %10 : vector<1x32xf32> to vector<512x32xf32>
    %12 = arith.addf %9, %11 : vector<512x32xf32>
    %c0_11 = arith.constant 0 : index
    %c0_12 = arith.constant 0 : index
    %13 = vector.load %arg1[%c0_11, %c0_12] : memref<512x32xf32, #tpu.memory_space<vmem>>, vector<512x32xf32>
    %14 = arith.addf %12, %13 : vector<512x32xf32>
    %c0_13 = arith.constant 0 : index
    %c0_14 = arith.constant 0 : index
    %15 = vector.load %arg6[%c0_13, %c0_14] : memref<512x32xf32, #tpu.memory_space<vmem>>, vector<512x32xf32>
    tpu.vector_store %arg6[%c0_13, %c0_14], %14 {strides = array<i32>} : memref<512x32xf32, #tpu.memory_space<vmem>>, vector<512x32xf32>,
    return
  }
}

module attributes {stable_mosaic.version = 11 : i64} {
  func.func @_dual_kernel(%arg0: memref<32x512xf32, #tpu.memory_space<vmem>>, %arg1: memref<512x512xf32, #tpu.memory_space<vmem>>, %arg2: memref<32x512xf32, #tpu.memory_space<vmem>>, %arg3: memref<512x512xf32, #tpu.memory_space<vmem>>, %arg4: memref<32x512xf32, #tpu.memory_space<vmem>>, %arg5: memref<32x512xf32, #tpu.memory_space<vmem>>) attributes {dimension_semantics = [], scalar_prefetch = 0 : i64, scratch_operands = 0 : i64, tpu.core_type = #tpu.core_type<tc>} {
    %c0 = arith.constant 0 : index
    %c0_0 = arith.constant 0 : index
    %0 = vector.load %arg0[%c0, %c0_0] : memref<32x512xf32, #tpu.memory_space<vmem>>, vector<32x512xf32>
    %c0_1 = arith.constant 0 : index
    %c0_2 = arith.constant 0 : index
    %1 = vector.load %arg1[%c0_1, %c0_2] : memref<512x512xf32, #tpu.memory_space<vmem>>, vector<512x512xf32>
    %cst = arith.constant dense<0.000000e+00> : vector<32x512xf32>
    %2 = tpu.matmul %0, %1, %cst {dimension_numbers = #tpu.dot_dimension_numbers<[1], [0], [0], [1], [0, 0, 1, 1], [], []>} : vector<32x512xf32>, vector<512x512xf32>, vector<32x512xf32> -> vector<32x512xf32>
    %c0_3 = arith.constant 0 : index
    %c0_4 = arith.constant 0 : index
    %3 = vector.load %arg4[%c0_3, %c0_4] : memref<32x512xf32, #tpu.memory_space<vmem>>, vector<32x512xf32>
    tpu.vector_store %arg4[%c0_3, %c0_4], %2 {strides = array<i32>} : memref<32x512xf32, #tpu.memory_space<vmem>>, vector<32x512xf32>,
    %c0_5 = arith.constant 0 : index
    %c0_6 = arith.constant 0 : index
    %4 = vector.load %arg2[%c0_5, %c0_6] : memref<32x512xf32, #tpu.memory_space<vmem>>, vector<32x512xf32>
    %c0_7 = arith.constant 0 : index
    %c0_8 = arith.constant 0 : index
    %5 = vector.load %arg3[%c0_7, %c0_8] : memref<512x512xf32, #tpu.memory_space<vmem>>, vector<512x512xf32>
    %cst_9 = arith.constant dense<0.000000e+00> : vector<32x512xf32>
    %6 = tpu.matmul %4, %5, %cst_9 {dimension_numbers = #tpu.dot_dimension_numbers<[1], [0], [0], [1], [0, 0, 1, 1], [], []>} : vector<32x512xf32>, vector<512x512xf32>, vector<32x512xf32> -> vector<32x512xf32>
    %c0_10 = arith.constant 0 : index
    %c0_11 = arith.constant 0 : index
    %7 = vector.load %arg5[%c0_10, %c0_11] : memref<32x512xf32, #tpu.memory_space<vmem>>, vector<32x512xf32>
    tpu.vector_store %arg5[%c0_10, %c0_11], %6 {strides = array<i32>} : memref<32x512xf32, #tpu.memory_space<vmem>>, vector<32x512xf32>,
    return
  }
}

module attributes {stable_mosaic.version = 11 : i64} {
  func.func @_ff_kernel(%arg0: memref<512x32xf32, #tpu.memory_space<vmem>>, %arg1: memref<512x32xf32, #tpu.memory_space<vmem>>, %arg2: memref<512x32xf32, #tpu.memory_space<vmem>>, %arg3: memref<32x64xf32, #tpu.memory_space<vmem>>, %arg4: memref<1x64xf32, #tpu.memory_space<vmem>>, %arg5: memref<64x32xf32, #tpu.memory_space<vmem>>, %arg6: memref<1x32xf32, #tpu.memory_space<vmem>>, %arg7: memref<512x32xf32, #tpu.memory_space<vmem>>) attributes {dimension_semantics = [], scalar_prefetch = 0 : i64, scratch_operands = 0 : i64, tpu.core_type = #tpu.core_type<tc>} {
    %c0 = arith.constant 0 : index
    %c0_0 = arith.constant 0 : index
    %0 = vector.load %arg0[%c0, %c0_0] : memref<512x32xf32, #tpu.memory_space<vmem>>, vector<512x32xf32>
    %c0_1 = arith.constant 0 : index
    %c0_2 = arith.constant 0 : index
    %1 = vector.load %arg3[%c0_1, %c0_2] : memref<32x64xf32, #tpu.memory_space<vmem>>, vector<32x64xf32>
    %cst = arith.constant dense<0.000000e+00> : vector<512x64xf32>
    %2 = tpu.matmul %0, %1, %cst {dimension_numbers = #tpu.dot_dimension_numbers<[1], [0], [0], [1], [0, 0, 1, 1], [], []>} : vector<512x32xf32>, vector<32x64xf32>, vector<512x64xf32> -> vector<512x64xf32>
    %c0_3 = arith.constant 0 : index
    %c0_4 = arith.constant 0 : index
    %3 = vector.load %arg4[%c0_3, %c0_4] : memref<1x64xf32, #tpu.memory_space<vmem>>, vector<1x64xf32>
    %4 = vector.broadcast %3 : vector<1x64xf32> to vector<512x64xf32>
    %5 = arith.addf %2, %4 : vector<512x64xf32>
    %cst_5 = arith.constant 0.000000e+00 : f32
    %6 = vector.broadcast %cst_5 : f32 to vector<512x64xf32>
    %7 = arith.maximumf %5, %6 : vector<512x64xf32>
    %c0_6 = arith.constant 0 : index
    %c0_7 = arith.constant 0 : index
    %8 = vector.load %arg5[%c0_6, %c0_7] : memref<64x32xf32, #tpu.memory_space<vmem>>, vector<64x32xf32>
    %cst_8 = arith.constant dense<0.000000e+00> : vector<512x32xf32>
    %9 = tpu.matmul %7, %8, %cst_8 {dimension_numbers = #tpu.dot_dimension_numbers<[1], [0], [0], [1], [0, 0, 1, 1], [], []>} : vector<512x64xf32>, vector<64x32xf32>, vector<512x32xf32> -> vector<512x32xf32>
    %c0_9 = arith.constant 0 : index
    %c0_10 = arith.constant 0 : index
    %10 = vector.load %arg6[%c0_9, %c0_10] : memref<1x32xf32, #tpu.memory_space<vmem>>, vector<1x32xf32>
    %11 = vector.broadcast %10 : vector<1x32xf32> to vector<512x32xf32>
    %12 = arith.addf %9, %11 : vector<512x32xf32>
    %c0_11 = arith.constant 0 : index
    %c0_12 = arith.constant 0 : index
    %13 = vector.load %arg2[%c0_11, %c0_12] : memref<512x32xf32, #tpu.memory_space<vmem>>, vector<512x32xf32>
    %14 = arith.addf %12, %13 : vector<512x32xf32>
    %c0_13 = arith.constant 0 : index
    %c0_14 = arith.constant 0 : index
    %15 = vector.load %arg1[%c0_13, %c0_14] : memref<512x32xf32, #tpu.memory_space<vmem>>, vector<512x32xf32>
    %16 = arith.addf %14, %15 : vector<512x32xf32>
    %c0_15 = arith.constant 0 : index
    %c0_16 = arith.constant 0 : index
    %17 = vector.load %arg7[%c0_15, %c0_16] : memref<512x32xf32, #tpu.memory_space<vmem>>, vector<512x32xf32>
    tpu.vector_store %arg7[%c0_15, %c0_16], %16 {strides = array<i32>} : memref<512x32xf32, #tpu.memory_space<vmem>>, vector<512x32xf32>,
    return
  }
}

module attributes {stable_mosaic.version = 11 : i64} {
  func.func @_dual_kernel(%arg0: memref<2x512xf32, #tpu.memory_space<vmem>>, %arg1: memref<512x384xf32, #tpu.memory_space<vmem>>, %arg2: memref<2x512xf32, #tpu.memory_space<vmem>>, %arg3: memref<512x384xf32, #tpu.memory_space<vmem>>, %arg4: memref<2x384xf32, #tpu.memory_space<vmem>>, %arg5: memref<2x384xf32, #tpu.memory_space<vmem>>) attributes {dimension_semantics = [], scalar_prefetch = 0 : i64, scratch_operands = 0 : i64, tpu.core_type = #tpu.core_type<tc>} {
    %c0 = arith.constant 0 : index
    %c0_0 = arith.constant 0 : index
    %0 = vector.load %arg0[%c0, %c0_0] : memref<2x512xf32, #tpu.memory_space<vmem>>, vector<2x512xf32>
    %c0_1 = arith.constant 0 : index
    %c0_2 = arith.constant 0 : index
    %1 = vector.load %arg1[%c0_1, %c0_2] : memref<512x384xf32, #tpu.memory_space<vmem>>, vector<512x384xf32>
    %cst = arith.constant dense<0.000000e+00> : vector<2x384xf32>
    %2 = tpu.matmul %0, %1, %cst {dimension_numbers = #tpu.dot_dimension_numbers<[1], [0], [0], [1], [0, 0, 1, 1], [], []>} : vector<2x512xf32>, vector<512x384xf32>, vector<2x384xf32> -> vector<2x384xf32>
    %c0_3 = arith.constant 0 : index
    %c0_4 = arith.constant 0 : index
    %3 = vector.load %arg4[%c0_3, %c0_4] : memref<2x384xf32, #tpu.memory_space<vmem>>, vector<2x384xf32>
    tpu.vector_store %arg4[%c0_3, %c0_4], %2 {strides = array<i32>} : memref<2x384xf32, #tpu.memory_space<vmem>>, vector<2x384xf32>,
    %c0_5 = arith.constant 0 : index
    %c0_6 = arith.constant 0 : index
    %4 = vector.load %arg2[%c0_5, %c0_6] : memref<2x512xf32, #tpu.memory_space<vmem>>, vector<2x512xf32>
    %c0_7 = arith.constant 0 : index
    %c0_8 = arith.constant 0 : index
    %5 = vector.load %arg3[%c0_7, %c0_8] : memref<512x384xf32, #tpu.memory_space<vmem>>, vector<512x384xf32>
    %cst_9 = arith.constant dense<0.000000e+00> : vector<2x384xf32>
    %6 = tpu.matmul %4, %5, %cst_9 {dimension_numbers = #tpu.dot_dimension_numbers<[1], [0], [0], [1], [0, 0, 1, 1], [], []>} : vector<2x512xf32>, vector<512x384xf32>, vector<2x384xf32> -> vector<2x384xf32>
    %c0_10 = arith.constant 0 : index
    %c0_11 = arith.constant 0 : index
    %7 = vector.load %arg5[%c0_10, %c0_11] : memref<2x384xf32, #tpu.memory_space<vmem>>, vector<2x384xf32>
    tpu.vector_store %arg5[%c0_10, %c0_11], %6 {strides = array<i32>} : memref<2x384xf32, #tpu.memory_space<vmem>>, vector<2x384xf32>,
    return
  }
}

module attributes {stable_mosaic.version = 11 : i64} {
  func.func @_head_kernel(%arg0: memref<2x8x24xf32, #tpu.memory_space<vmem>>, %arg1: memref<2x24x32xf32, #tpu.memory_space<vmem>>, %arg2: memref<2x8x2xf32, #tpu.memory_space<vmem>>, %arg3: memref<2x32xf32, #tpu.memory_space<vmem>>, %arg4: memref<1x32xf32, #tpu.memory_space<vmem>>, %arg5: memref<32x128xf32, #tpu.memory_space<vmem>>, %arg6: memref<1x128xf32, #tpu.memory_space<vmem>>, %arg7: memref<2x8x128xf32, #tpu.memory_space<vmem>>) attributes {dimension_semantics = [], scalar_prefetch = 0 : i64, scratch_operands = 0 : i64, tpu.core_type = #tpu.core_type<tc>} {
    %c0 = arith.constant 0 : index
    %c0_0 = arith.constant 0 : index
    %c0_1 = arith.constant 0 : index
    %0 = vector.load %arg0[%c0, %c0_0, %c0_1] : memref<2x8x24xf32, #tpu.memory_space<vmem>>, vector<1x8x24xf32>
    %1 = vector.shape_cast %0 : vector<1x8x24xf32> to vector<8x24xf32>
    %c0_2 = arith.constant 0 : index
    %c0_3 = arith.constant 0 : index
    %c0_4 = arith.constant 0 : index
    %2 = vector.load %arg1[%c0_2, %c0_3, %c0_4] : memref<2x24x32xf32, #tpu.memory_space<vmem>>, vector<1x24x32xf32>
    %3 = vector.shape_cast %2 : vector<1x24x32xf32> to vector<24x32xf32>
    %cst = arith.constant dense<0.000000e+00> : vector<8x32xf32>
    %4 = tpu.matmul %1, %3, %cst {dimension_numbers = #tpu.dot_dimension_numbers<[1], [0], [0], [1], [0, 0, 1, 1], [], []>} : vector<8x24xf32>, vector<24x32xf32>, vector<8x32xf32> -> vector<8x32xf32>
    %c0_5 = arith.constant 0 : index
    %c0_6 = arith.constant 0 : index
    %c0_7 = arith.constant 0 : index
    %5 = vector.load %arg2[%c0_5, %c0_6, %c0_7] : memref<2x8x2xf32, #tpu.memory_space<vmem>>, vector<1x8x2xf32>
    %6 = vector.shape_cast %5 : vector<1x8x2xf32> to vector<8x2xf32>
    %c0_8 = arith.constant 0 : index
    %c0_9 = arith.constant 0 : index
    %7 = vector.load %arg3[%c0_8, %c0_9] : memref<2x32xf32, #tpu.memory_space<vmem>>, vector<2x32xf32>
    %cst_10 = arith.constant dense<0.000000e+00> : vector<8x32xf32>
    %8 = tpu.matmul %6, %7, %cst_10 {dimension_numbers = #tpu.dot_dimension_numbers<[1], [0], [0], [1], [0, 0, 1, 1], [], []>} : vector<8x2xf32>, vector<2x32xf32>, vector<8x32xf32> -> vector<8x32xf32>
    %9 = arith.addf %4, %8 : vector<8x32xf32>
    %c0_11 = arith.constant 0 : index
    %c0_12 = arith.constant 0 : index
    %10 = vector.load %arg4[%c0_11, %c0_12] : memref<1x32xf32, #tpu.memory_space<vmem>>, vector<1x32xf32>
    %11 = vector.broadcast %10 : vector<1x32xf32> to vector<8x32xf32>
    %12 = arith.addf %9, %11 : vector<8x32xf32>
    %c0_13 = arith.constant 0 : index
    %c0_14 = arith.constant 0 : index
    %13 = vector.load %arg5[%c0_13, %c0_14] : memref<32x128xf32, #tpu.memory_space<vmem>>, vector<32x128xf32>
    %cst_15 = arith.constant dense<0.000000e+00> : vector<8x128xf32>
    %14 = tpu.matmul %12, %13, %cst_15 {dimension_numbers = #tpu.dot_dimension_numbers<[1], [0], [0], [1], [0, 0, 1, 1], [], []>} : vector<8x32xf32>, vector<32x128xf32>, vector<8x128xf32> -> vector<8x128xf32>
    %c0_16 = arith.constant 0 : index
    %c0_17 = arith.constant 0 : index
    %15 = vector.load %arg6[%c0_16, %c0_17] : memref<1x128xf32, #tpu.memory_space<vmem>>, vector<1x128xf32>
    %16 = vector.broadcast %15 : vector<1x128xf32> to vector<8x128xf32>
    %17 = arith.addf %14, %16 : vector<8x128xf32>
    %c0_18 = arith.constant 0 : index
    %c0_19 = arith.constant 0 : index
    %c0_20 = arith.constant 0 : index
    %18 = vector.load %arg7[%c0_18, %c0_19, %c0_20] : memref<2x8x128xf32, #tpu.memory_space<vmem>>, vector<1x8x128xf32>
    %19 = vector.shape_cast %18 : vector<1x8x128xf32> to vector<8x128xf32>
    %20 = vector.shape_cast %17 : vector<8x128xf32> to vector<1x8x128xf32>
    tpu.vector_store %arg7[%c0_18, %c0_19, %c0_20], %20 {strides = array<i32>} : memref<2x8x128xf32, #tpu.memory_space<vmem>>, vector<1x8x128xf32>,
    %c1 = arith.constant 1 : index
    %c0_21 = arith.constant 0 : index
    %c0_22 = arith.constant 0 : index
    %21 = vector.load %arg0[%c1, %c0_21, %c0_22] : memref<2x8x24xf32, #tpu.memory_space<vmem>>, vector<1x8x24xf32>
    %22 = vector.shape_cast %21 : vector<1x8x24xf32> to vector<8x24xf32>
    %c1_23 = arith.constant 1 : index
    %c0_24 = arith.constant 0 : index
    %c0_25 = arith.constant 0 : index
    %23 = vector.load %arg1[%c1_23, %c0_24, %c0_25] : memref<2x24x32xf32, #tpu.memory_space<vmem>>, vector<1x24x32xf32>
    %24 = vector.shape_cast %23 : vector<1x24x32xf32> to vector<24x32xf32>
    %cst_26 = arith.constant dense<0.000000e+00> : vector<8x32xf32>
    %25 = tpu.matmul %22, %24, %cst_26 {dimension_numbers = #tpu.dot_dimension_numbers<[1], [0], [0], [1], [0, 0, 1, 1], [], []>} : vector<8x24xf32>, vector<24x32xf32>, vector<8x32xf32> -> vector<8x32xf32>
    %c1_27 = arith.constant 1 : index
    %c0_28 = arith.constant 0 : index
    %c0_29 = arith.constant 0 : index
    %26 = vector.load %arg2[%c1_27, %c0_28, %c0_29] : memref<2x8x2xf32, #tpu.memory_space<vmem>>, vector<1x8x2xf32>
    %27 = vector.shape_cast %26 : vector<1x8x2xf32> to vector<8x2xf32>
    %c0_30 = arith.constant 0 : index
    %c0_31 = arith.constant 0 : index
    %28 = vector.load %arg3[%c0_30, %c0_31] : memref<2x32xf32, #tpu.memory_space<vmem>>, vector<2x32xf32>
    %cst_32 = arith.constant dense<0.000000e+00> : vector<8x32xf32>
    %29 = tpu.matmul %27, %28, %cst_32 {dimension_numbers = #tpu.dot_dimension_numbers<[1], [0], [0], [1], [0, 0, 1, 1], [], []>} : vector<8x2xf32>, vector<2x32xf32>, vector<8x32xf32> -> vector<8x32xf32>
    %30 = arith.addf %25, %29 : vector<8x32xf32>
    %c0_33 = arith.constant 0 : index
    %c0_34 = arith.constant 0 : index
    %31 = vector.load %arg4[%c0_33, %c0_34] : memref<1x32xf32, #tpu.memory_space<vmem>>, vector<1x32xf32>
    %32 = vector.broadcast %31 : vector<1x32xf32> to vector<8x32xf32>
    %33 = arith.addf %30, %32 : vector<8x32xf32>
    %c0_35 = arith.constant 0 : index
    %c0_36 = arith.constant 0 : index
    %34 = vector.load %arg5[%c0_35, %c0_36] : memref<32x128xf32, #tpu.memory_space<vmem>>, vector<32x128xf32>
    %cst_37 = arith.constant dense<0.000000e+00> : vector<8x128xf32>
    %35 = tpu.matmul %33, %34, %cst_37 {dimension_numbers = #tpu.dot_dimension_numbers<[1], [0], [0], [1], [0, 0, 1, 1], [], []>} : vector<8x32xf32>, vector<32x128xf32>, vector<8x128xf32> -> vector<8x128xf32>
    %c0_38 = arith.constant 0 : index
    %c0_39 = arith.constant 0 : index
    %36 = vector.load %arg6[%c0_38, %c0_39] : memref<1x128xf32, #tpu.memory_space<vmem>>, vector<1x128xf32>
    %37 = vector.broadcast %36 : vector<1x128xf32> to vector<8x128xf32>
    %38 = arith.addf %35, %37 : vector<8x128xf32>
    %c1_40 = arith.constant 1 : index
    %c0_41 = arith.constant 0 : index
    %c0_42 = arith.constant 0 : index
    %39 = vector.load %arg7[%c1_40, %c0_41, %c0_42] : memref<2x8x128xf32, #tpu.memory_space<vmem>>, vector<1x8x128xf32>
    %40 = vector.shape_cast %39 : vector<1x8x128xf32> to vector<8x128xf32>
    %41 = vector.shape_cast %38 : vector<8x128xf32> to vector<1x8x128xf32>
    tpu.vector_store %arg7[%c1_40, %c0_41, %c0_42], %41 {strides = array<i32>} : memref<2x8x128xf32, #tpu.memory_space<vmem>>, vector<1x8x128xf32>,
    return
  }
}

module attributes {stable_mosaic.version = 11 : i64} {
  func.func @_linear_kernel(%arg0: memref<16x128xf32, #tpu.memory_space<vmem>>, %arg1: memref<128x1xf32, #tpu.memory_space<vmem>>, %arg2: memref<1x1xf32, #tpu.memory_space<vmem>>, %arg3: memref<16x1xf32, #tpu.memory_space<vmem>>) attributes {dimension_semantics = [], scalar_prefetch = 0 : i64, scratch_operands = 0 : i64, tpu.core_type = #tpu.core_type<tc>} {
    %c0 = arith.constant 0 : index
    %c0_0 = arith.constant 0 : index
    %0 = vector.load %arg0[%c0, %c0_0] : memref<16x128xf32, #tpu.memory_space<vmem>>, vector<16x128xf32>
    %c0_1 = arith.constant 0 : index
    %c0_2 = arith.constant 0 : index
    %1 = vector.load %arg1[%c0_1, %c0_2] : memref<128x1xf32, #tpu.memory_space<vmem>>, vector<128x1xf32>
    %cst = arith.constant dense<0.000000e+00> : vector<16x1xf32>
    %2 = tpu.matmul %0, %1, %cst {dimension_numbers = #tpu.dot_dimension_numbers<[1], [0], [0], [1], [0, 0, 1, 1], [], []>} : vector<16x128xf32>, vector<128x1xf32>, vector<16x1xf32> -> vector<16x1xf32>
    %c0_3 = arith.constant 0 : index
    %c0_4 = arith.constant 0 : index
    %3 = vector.load %arg2[%c0_3, %c0_4] : memref<1x1xf32, #tpu.memory_space<vmem>>, vector<1x1xf32>
    %4 = vector.broadcast %3 : vector<1x1xf32> to vector<16x1xf32>
    %5 = arith.addf %2, %4 : vector<16x1xf32>
    %c0_5 = arith.constant 0 : index
    %c0_6 = arith.constant 0 : index
    %6 = vector.load %arg3[%c0_5, %c0_6] : memref<16x1xf32, #tpu.memory_space<vmem>>, vector<16x1xf32>
    tpu.vector_store %arg3[%c0_5, %c0_6], %5 {strides = array<i32>} : memref<16x1xf32, #tpu.memory_space<vmem>>, vector<16x1xf32>,
    return
  }
}

</mosaic_0001>

<bundles_post_ra>
// kernel: fno_forward.15
= control target key start
LH: loop header
LB: loop body
LE: loop exit
PB: predicated region body
PF: predicated region fallthrough
CT: control target
= control target key end

     0   :  { %8 = vsyncpa [#allocation3], 0  ;;  %s191_s0 = inlined_call_operand.vmem [shape: f32[16,2], index: 0, kind: input, shape index: {}]   ;;  %s192_s1 = inlined_call_operand.hbm [shape: f32[2,32], index: 1, kind: input, shape index: {}]   ;;  %s193_s2 = inlined_call_operand.hbm [shape: f32[1,32], index: 2, kind: input, shape index: {}]   ;;  %s194_s3 = inlined_call_operand.vmem [shape: f32[16,32], index: 3, kind: output, shape index: {}]  }
   0x1   :  { %s17_s14 = sshll.u32 %s192_s1, 4  ;;  %s18_s14 = int_to_ptr.hbm [resolvable:$true] %s17_s14 }
   0x2   :  { %9 = vsyncpa [#allocation5], 0  ;;  %s151_s15 = smov [#allocation2]   ;;  %s28_s19 = sshll.u32 %s193_s2, 4  ;;  %s29_s19 = int_to_ptr.hbm [resolvable:$true] %s28_s19 }
   0x3   :  { %s19_s16 = sshll.u32 %s151_s15, 4  ;;  %s152_s20 = smov [#allocation4]   ;;  %s20_s16 = int_to_ptr.vmem [resolvable:$true] %s19_s16 }
   0x4   :  { %22 = dma.hbm_to_vmem [thread:$0]  %s18_s14, 32, %s20_s16, [#allocation3]  }
   0x5   :  { %s30_s21 = sshll.u32 %s152_s20, 4  ;;  %s31_s21 = int_to_ptr.vmem [resolvable:$true] %s30_s21 }
   0x6   :  { %33 = dma.hbm_to_vmem [thread:$0]  %s29_s19, 16, %s31_s21, [#allocation5]  }
   0x7   :  { %147 = dma.done.wait [#allocation3], 32  }
   0x8   :  { %148 = vsyncadd [#allocation3], 4294967264 }
   0x9   :  { %149 = dma.done.wait [#allocation5], 16  }
   0xa   :  { %150 = vsyncadd [#allocation5], 4294967280  ;;  %vm56_vm0 = vcmask 1041408   ;;  %vm49_vm1 = vcmask 15360   ;;  %v44_v0 = vld [vmem:[#allocation2] sm:$0x3] }
   0xb   :  { %v42_v1 = vld [vmem:[%s191_s0] sm:$0xff]  ;;  %v43_v2 = vld [vmem:[%s191_s0 + $0x8] sm:$0xff]  ;;  %92 = vmatpush.msk.msra.mxu0 %vm56_vm0, %v44_v0  ;;  %95 = vmatpush.msk.msra.mxu1 %vm56_vm0, %v44_v0  ;;  %vm83_vm2 = vcmask 261120  }
   0xc   :  { %93 = vmatmul.msk.f32.vlgmr.msra.gmra.mxu0 %vm49_vm1, %v42_v1  ;;  %94 = vmatmul.msk.f32.vlgmr.msra.gmra.mxu1 %vm49_vm1, %v43_v2  ;;  %v98_v3 = vld [vmem:[#allocation4] ss:$0 sm:$0xff] }
  0x89   :  { %v77_v4 = vpop.f32.mrf.mxu0  ;;  %v80_v5 = vpop.f32.mrf.mxu1 }
  0x8a   :  { %v78_v6 = vadd.f32 %v98_v3, %v77_v4  ;;  %v81_v7 = vadd.f32 %v98_v3, %v80_v5 }
  0x8c   :  { %84 = vst.msk [vmem:[%s194_s3] sm:$0xff] %vm83_vm2, %v78_v6 }
  0x8d   :  { %85 = vst.msk [vmem:[%s194_s3 + $0x8] sm:$0xff] %vm83_vm2, %v81_v7 }
  0x8e   :  { %90 = vsyncpa [#allocation3], 1 }
  0x8f   :  { %91 = vsyncpa [#allocation5], 1 }

// kernel: fno_forward.16
= control target key start
LH: loop header
LB: loop body
LE: loop exit
PB: predicated region body
PF: predicated region fallthrough
CT: control target
= control target key end

     0   :  { %vm16_vm0 = vcmask 64512   ;;  %vm58_vm1 = vcmask 195584   ;;  %s224_s1 = inlined_call_operand.vmem [shape: f32[2,8,24], index: 1, kind: input, shape index: {}]   ;;  %s225_s0 = inlined_call_operand.vmem [shape: f32[2,32,8], index: 0, kind: input, shape index: {}]   ;;  %s226_s2 = inlined_call_operand.vmem [shape: f32[2,32,24], index: 2, kind: output, shape index: {}]  }
   0x1   :  { %v15_v0 = vld [vmem:[%s224_s1] sm:$0xff]  ;;  %v128_v1 = vld [vmem:[%s224_s1 + $0x8] sm:$0xff]  ;;  %v13_v2 = vld [vmem:[%s225_s0 + $0x10] sm:$0xff] }
   0x2   :  { %137 = vmatpush.msra.mxu2 %v15_v0  ;;  %138 = vmatpush.msra.mxu3 %v128_v1  ;;  %v126_v3 = vld [vmem:[%s225_s0 + $0x30] sm:$0xff]  ;;  %v11_v4 = vld [vmem:[%s225_s0] sm:$0xff]  ;;  %v14_v6 = vld [vmem:[%s225_s0 + $0x18] sm:$0xff] }
   0x3   :  { %v124_v5 = vld [vmem:[%s225_s0 + $0x20] sm:$0xff]  ;;  %122 = vmatmul.msk.f32.vlgmr.msra.gmra.mxu2 %vm16_vm0, %v13_v2  ;;  %131 = vmatmul.msk.f32.vlgmr.msra.gmra.mxu3 %vm16_vm0, %v126_v3  ;;  %v127_v7 = vld [vmem:[%s225_s0 + $0x38] sm:$0xff]  ;;  %v12_v8 = vld [vmem:[%s225_s0 + $0x8] sm:$0xff] }
   0x4   :  { %44 = vmatpush.msra.mxu0 %v15_v0  ;;  %97 = vmatpush.msra.mxu1 %v128_v1  ;;  %v125_v9 = vld [vmem:[%s225_s0 + $0x28] sm:$0xff] }
   0x5   :  { %120 = vmatmul.msk.f32.vlgmr.msra.gmra.mxu0 %vm16_vm0, %v11_v4  ;;  %129 = vmatmul.msk.f32.vlgmr.msra.gmra.mxu1 %vm16_vm0, %v124_v5 }
   0xb   :  { %123 = vmatmul.msk.f32.gmra.mxu2 %vm16_vm0, %v14_v6  ;;  %132 = vmatmul.msk.f32.gmra.mxu3 %vm16_vm0, %v127_v7 }
   0xd   :  { %121 = vmatmul.msk.f32.gmra.mxu0 %vm16_vm0, %v12_v8  ;;  %130 = vmatmul.msk.f32.gmra.mxu1 %vm16_vm0, %v125_v9 }
  0x82   :  { %v46_v10 = vpop.f32.mrf.mxu0  ;;  %v99_v11 = vpop.f32.mrf.mxu1 }
  0x83   :  { %59 = vst.msk [vmem:[%s226_s2] sm:$0xff] %vm58_vm1, %v46_v10 }
  0x84   :  { %133 = vst.msk [vmem:[%s226_s2 + $0x20] sm:$0xff] %vm58_vm1, %v99_v11 }
  0x86   :  { %v52_v12 = vpop.f32.mrf.mxu2  ;;  %v105_v13 = vpop.f32.mrf.mxu3 }
  0x87   :  { %61 = vst.msk [vmem:[%s226_s2 + $0x10] sm:$0xff] %vm58_vm1, %v52_v12 }
  0x88   :  { %135 = vst.msk [vmem:[%s226_s2 + $0x30] sm:$0xff] %vm58_vm1, %v105_v13 }
  0x8a   :  { %v49_v14 = vpop.f32.mrf.mxu0  ;;  %v102_v15 = vpop.f32.mrf.mxu1 }
  0x8b   :  { %60 = vst.msk [vmem:[%s226_s2 + $0x8] sm:$0xff] %vm58_vm1, %v49_v14 }
  0x8c   :  { %134 = vst.msk [vmem:[%s226_s2 + $0x28] sm:$0xff] %vm58_vm1, %v102_v15 }
  0x8e   :  { %v55_v16 = vpop.f32.mrf.mxu2  ;;  %v108_v17 = vpop.f32.mrf.mxu3 }
  0x8f   :  { %62 = vst.msk [vmem:[%s226_s2 + $0x18] sm:$0xff] %vm58_vm1, %v55_v16 }
  0x90   :  { %136 = vst.msk [vmem:[%s226_s2 + $0x38] sm:$0xff] %vm58_vm1, %v108_v17 }

// kernel: fno_forward.14
= control target key start
LH: loop header
LB: loop body
LE: loop exit
PB: predicated region body
PF: predicated region fallthrough
CT: control target
= control target key end

     0   :  { %vm276_vm0 = vcmask 1041408   ;;  %vm83_vm1 = vcmask 15360   ;;  %vm489_vm2 = vcmask 261120   ;;  %s1231_s1 = inlined_call_operand.vmem [shape: f32[2,32], index: 1, kind: input, shape index: {}]   ;;  %s1232_s0 = inlined_call_operand.vmem [shape: f32[512,2], index: 0, kind: input, shape index: {}]   ;;  %s1233_s2 = inlined_call_operand.vmem [shape: f32[1,32], index: 2, kind: input, shape index: {}]   ;;  %s1234_s3 = inlined_call_operand.vmem [shape: f32[512,32], index: 3, kind: output, shape index: {}]  }
   0x1   :  { %v78_v0 = vld [vmem:[%s1231_s1] sm:$0x3]  ;;  %v47_v5 = vld [vmem:[%s1232_s0 + $0x108] sm:$0xff]  ;;  %v48_v9 = vld [vmem:[%s1232_s0 + $0x110] sm:$0xff] }
   0x2   :  { %v46_v1 = vld [vmem:[%s1232_s0 + $0x100] sm:$0xff]  ;;  %624 = vmatpush.msk.msra.mxu2 %vm276_vm0, %v78_v0  ;;  %625 = vmatpush.msk.msra.mxu3 %vm276_vm0, %v78_v0  ;;  %v63_v6 = vld [vmem:[%s1232_s0 + $0x188] sm:$0xff]  ;;  %v64_v10 = vld [vmem:[%s1232_s0 + $0x190] sm:$0xff] }
   0x3   :  { %v62_v2 = vld [vmem:[%s1232_s0 + $0x180] sm:$0xff]  ;;  %591 = vmatmul.msk.f32.vlgmr.msra.gmra.mxu2 %vm83_vm1, %v46_v1  ;;  %558 = vmatpush.msk.msra.mxu0 %vm276_vm0, %v78_v0  ;;  %v15_v7 = vld [vmem:[%s1232_s0 + $0x8] sm:$0xff]  ;;  %v16_v11 = vld [vmem:[%s1232_s0 + $0x10] sm:$0xff] }
   0x4   :  { %v14_v3 = vld [vmem:[%s1232_s0] sm:$0xff]  ;;  %607 = vmatmul.msk.f32.vlgmr.msra.gmra.mxu3 %vm83_vm1, %v62_v2  ;;  %623 = vmatpush.msk.msra.mxu1 %vm276_vm0, %v78_v0  ;;  %v31_v8 = vld [vmem:[%s1232_s0 + $0x88] sm:$0xff]  ;;  %v32_v12 = vld [vmem:[%s1232_s0 + $0x90] sm:$0xff] }
   0x5   :  { %v30_v4 = vld [vmem:[%s1232_s0 + $0x80] sm:$0xff]  ;;  %559 = vmatmul.msk.f32.vlgmr.msra.gmra.mxu0 %vm83_vm1, %v14_v3  ;;  %v49_v13 = vld [vmem:[%s1232_s0 + $0x118] sm:$0xff]  ;;  %v51_v21 = vld [vmem:[%s1232_s0 + $0x128] sm:$0xff] }
   0x6   :  { %575 = vmatmul.msk.f32.vlgmr.msra.gmra.mxu1 %vm83_vm1, %v30_v4  ;;  %v65_v14 = vld [vmem:[%s1232_s0 + $0x198] sm:$0xff]  ;;  %v50_v17 = vld [vmem:[%s1232_s0 + $0x120] sm:$0xff]  ;;  %v67_v22 = vld [vmem:[%s1232_s0 + $0x1a8] sm:$0xff] }
   0x7   :  { %v17_v15 = vld [vmem:[%s1232_s0 + $0x18] sm:$0xff]  ;;  %v66_v18 = vld [vmem:[%s1232_s0 + $0x1a0] sm:$0xff]  ;;  %v19_v23 = vld [vmem:[%s1232_s0 + $0x28] sm:$0xff] }
   0x8   :  { %v33_v16 = vld [vmem:[%s1232_s0 + $0x98] sm:$0xff]  ;;  %v18_v19 = vld [vmem:[%s1232_s0 + $0x20] sm:$0xff]  ;;  %v35_v24 = vld [vmem:[%s1232_s0 + $0xa8] sm:$0xff] }
   0x9   :  { %v34_v20 = vld [vmem:[%s1232_s0 + $0xa0] sm:$0xff]  ;;  %v52_v25 = vld [vmem:[%s1232_s0 + $0x130] sm:$0xff]  ;;  %v53_v29 = vld [vmem:[%s1232_s0 + $0x138] sm:$0xff] }
   0xa   :  { %v68_v26 = vld [vmem:[%s1232_s0 + $0x1b0] sm:$0xff]  ;;  %v69_v30 = vld [vmem:[%s1232_s0 + $0x1b8] sm:$0xff]  ;;  %v54_v33 = vld [vmem:[%s1232_s0 + $0x140] sm:$0xff] }
   0xb   :  { %592 = vmatmul.msk.f32.gmra.mxu2 %vm83_vm1, %v47_v5  ;;  %v20_v27 = vld [vmem:[%s1232_s0 + $0x30] sm:$0xff]  ;;  %v21_v31 = vld [vmem:[%s1232_s0 + $0x38] sm:$0xff]  ;;  %v70_v34 = vld [vmem:[%s1232_s0 + $0x1c0] sm:$0xff] }
   0xc   :  { %608 = vmatmul.msk.f32.gmra.mxu3 %vm83_vm1, %v63_v6  ;;  %v36_v28 = vld [vmem:[%s1232_s0 + $0xb0] sm:$0xff]  ;;  %v37_v32 = vld [vmem:[%s1232_s0 + $0xb8] sm:$0xff]  ;;  %v22_v35 = vld [vmem:[%s1232_s0 + $0x40] sm:$0xff] }
   0xd   :  { %560 = vmatmul.msk.f32.gmra.mxu0 %vm83_vm1, %v15_v7  ;;  %v38_v36 = vld [vmem:[%s1232_s0 + $0xc0] sm:$0xff]  ;;  %v55_v37 = vld [vmem:[%s1232_s0 + $0x148] sm:$0xff]  ;;  %v56_v41 = vld [vmem:[%s1232_s0 + $0x150] sm:$0xff] }
   0xe   :  { %576 = vmatmul.msk.f32.gmra.mxu1 %vm83_vm1, %v31_v8  ;;  %v71_v38 = vld [vmem:[%s1232_s0 + $0x1c8] sm:$0xff]  ;;  %v72_v42 = vld [vmem:[%s1232_s0 + $0x1d0] sm:$0xff]  ;;  %v57_v45 = vld [vmem:[%s1232_s0 + $0x158] sm:$0xff] }
   0xf   :  { %v23_v39 = vld [vmem:[%s1232_s0 + $0x48] sm:$0xff]  ;;  %v24_v43 = vld [vmem:[%s1232_s0 + $0x50] sm:$0xff]  ;;  %v73_v46 = vld [vmem:[%s1232_s0 + $0x1d8] sm:$0xff] }
  0x10   :  { %v39_v40 = vld [vmem:[%s1232_s0 + $0xc8] sm:$0xff]  ;;  %v40_v44 = vld [vmem:[%s1232_s0 + $0xd0] sm:$0xff]  ;;  %v25_v47 = vld [vmem:[%s1232_s0 + $0x58] sm:$0xff] }
  0x11   :  { %v41_v48 = vld [vmem:[%s1232_s0 + $0xd8] sm:$0xff]  ;;  %v58_v49 = vld [vmem:[%s1232_s0 + $0x160] sm:$0xff]  ;;  %v59_v53 = vld [vmem:[%s1232_s0 + $0x168] sm:$0xff] }
  0x12   :  { %v74_v50 = vld [vmem:[%s1232_s0 + $0x1e0] sm:$0xff]  ;;  %v75_v54 = vld [vmem:[%s1232_s0 + $0x1e8] sm:$0xff]  ;;  %v60_v57 = vld [vmem:[%s1232_s0 + $0x170] sm:$0xff] }
  0x13   :  { %593 = vmatmul.msk.f32.gmra.mxu2 %vm83_vm1, %v48_v9  ;;  %v26_v51 = vld [vmem:[%s1232_s0 + $0x60] sm:$0xff]  ;;  %v27_v55 = vld [vmem:[%s1232_s0 + $0x68] sm:$0xff]  ;;  %v76_v58 = vld [vmem:[%s1232_s0 + $0x1f0] sm:$0xff] }
  0x14   :  { %609 = vmatmul.msk.f32.gmra.mxu3 %vm83_vm1, %v64_v10  ;;  %v42_v52 = vld [vmem:[%s1232_s0 + $0xe0] sm:$0xff]  ;;  %v43_v56 = vld [vmem:[%s1232_s0 + $0xe8] sm:$0xff]  ;;  %v28_v59 = vld [vmem:[%s1232_s0 + $0x70] sm:$0xff] }
  0x15   :  { %561 = vmatmul.msk.f32.gmra.mxu0 %vm83_vm1, %v16_v11  ;;  %v44_v60 = vld [vmem:[%s1232_s0 + $0xf0] sm:$0xff]  ;;  %v61_v61 = vld [vmem:[%s1232_s0 + $0x178] sm:$0xff]  ;;  %v909_v1 = vld [vmem:[%s1233_s2] ss:$0 sm:$0xff] }
  0x16   :  { %577 = vmatmul.msk.f32.gmra.mxu1 %vm83_vm1, %v32_v12  ;;  %v77_v62 = vld [vmem:[%s1232_s0 + $0x1f8] sm:$0xff] }
  0x17   :  { %v29_v63 = vld [vmem:[%s1232_s0 + $0x78] sm:$0xff] }
  0x18   :  { %v45_v0 = vld [vmem:[%s1232_s0 + $0xf8] sm:$0xff] }
  0x1b   :  { %594 = vmatmul.msk.f32.gmra.mxu2 %vm83_vm1, %v49_v13 }
  0x1c   :  { %610 = vmatmul.msk.f32.gmra.mxu3 %vm83_vm1, %v65_v14 }
  0x1d   :  { %562 = vmatmul.msk.f32.gmra.mxu0 %vm83_vm1, %v17_v15 }
  0x1e   :  { %578 = vmatmul.msk.f32.gmra.mxu1 %vm83_vm1, %v33_v16 }
  0x23   :  { %595 = vmatmul.msk.f32.gmra.mxu2 %vm83_vm1, %v50_v17 }
  0x24   :  { %611 = vmatmul.msk.f32.gmra.mxu3 %vm83_vm1, %v66_v18 }
  0x25   :  { %563 = vmatmul.msk.f32.gmra.mxu0 %vm83_vm1, %v18_v19 }
  0x26   :  { %579 = vmatmul.msk.f32.gmra.mxu1 %vm83_vm1, %v34_v20 }
  0x2b   :  { %596 = vmatmul.msk.f32.gmra.mxu2 %vm83_vm1, %v51_v21 }
  0x2c   :  { %612 = vmatmul.msk.f32.gmra.mxu3 %vm83_vm1, %v67_v22 }
  0x2d   :  { %564 = vmatmul.msk.f32.gmra.mxu0 %vm83_vm1, %v19_v23 }
  0x2e   :  { %580 = vmatmul.msk.f32.gmra.mxu1 %vm83_vm1, %v35_v24 }
  0x33   :  { %597 = vmatmul.msk.f32.gmra.mxu2 %vm83_vm1, %v52_v25 }
  0x34   :  { %613 = vmatmul.msk.f32.gmra.mxu3 %vm83_vm1, %v68_v26 }
  0x35   :  { %565 = vmatmul.msk.f32.gmra.mxu0 %vm83_vm1, %v20_v27 }
  0x36   :  { %581 = vmatmul.msk.f32.gmra.mxu1 %vm83_vm1, %v36_v28 }
  0x3b   :  { %598 = vmatmul.msk.f32.gmra.mxu2 %vm83_vm1, %v53_v29 }
  0x3c   :  { %614 = vmatmul.msk.f32.gmra.mxu3 %vm83_vm1, %v69_v30 }
  0x3d   :  { %566 = vmatmul.msk.f32.gmra.mxu0 %vm83_vm1, %v21_v31 }
  0x3e   :  { %582 = vmatmul.msk.f32.gmra.mxu1 %vm83_vm1, %v37_v32 }
  0x43   :  { %599 = vmatmul.msk.f32.gmra.mxu2 %vm83_vm1, %v54_v33 }
  0x44   :  { %615 = vmatmul.msk.f32.gmra.mxu3 %vm83_vm1, %v70_v34 }
  0x45   :  { %567 = vmatmul.msk.f32.gmra.mxu0 %vm83_vm1, %v22_v35 }
  0x46   :  { %583 = vmatmul.msk.f32.gmra.mxu1 %vm83_vm1, %v38_v36 }
  0x4b   :  { %600 = vmatmul.msk.f32.gmra.mxu2 %vm83_vm1, %v55_v37 }
  0x4c   :  { %616 = vmatmul.msk.f32.gmra.mxu3 %vm83_vm1, %v71_v38 }
  0x4d   :  { %568 = vmatmul.msk.f32.gmra.mxu0 %vm83_vm1, %v23_v39 }
  0x4e   :  { %584 = vmatmul.msk.f32.gmra.mxu1 %vm83_vm1, %v39_v40 }
  0x53   :  { %601 = vmatmul.msk.f32.gmra.mxu2 %vm83_vm1, %v56_v41 }
  0x54   :  { %617 = vmatmul.msk.f32.gmra.mxu3 %vm83_vm1, %v72_v42 }
  0x55   :  { %569 = vmatmul.msk.f32.gmra.mxu0 %vm83_vm1, %v24_v43 }
  0x56   :  { %585 = vmatmul.msk.f32.gmra.mxu1 %vm83_vm1, %v40_v44 }
  0x5b   :  { %602 = vmatmul.msk.f32.gmra.mxu2 %vm83_vm1, %v57_v45 }
  0x5c   :  { %618 = vmatmul.msk.f32.gmra.mxu3 %vm83_vm1, %v73_v46 }
  0x5d   :  { %570 = vmatmul.msk.f32.gmra.mxu0 %vm83_vm1, %v25_v47 }
  0x5e   :  { %586 = vmatmul.msk.f32.gmra.mxu1 %vm83_vm1, %v41_v48 }
  0x63   :  { %603 = vmatmul.msk.f32.gmra.mxu2 %vm83_vm1, %v58_v49 }
  0x64   :  { %619 = vmatmul.msk.f32.gmra.mxu3 %vm83_vm1, %v74_v50 }
  0x65   :  { %571 = vmatmul.msk.f32.gmra.mxu0 %vm83_vm1, %v26_v51 }
  0x66   :  { %587 = vmatmul.msk.f32.gmra.mxu1 %vm83_vm1, %v42_v52 }
  0x6b   :  { %604 = vmatmul.msk.f32.gmra.mxu2 %vm83_vm1, %v59_v53 }
  0x6c   :  { %620 = vmatmul.msk.f32.gmra.mxu3 %vm83_vm1, %v75_v54 }
  0x6d   :  { %572 = vmatmul.msk.f32.gmra.mxu0 %vm83_vm1, %v27_v55 }
  0x6e   :  { %588 = vmatmul.msk.f32.gmra.mxu1 %vm83_vm1, %v43_v56 }
  0x73   :  { %605 = vmatmul.msk.f32.gmra.mxu2 %vm83_vm1, %v60_v57 }
  0x74   :  { %621 = vmatmul.msk.f32.gmra.mxu3 %vm83_vm1, %v76_v58 }
  0x75   :  { %573 = vmatmul.msk.f32.gmra.mxu0 %vm83_vm1, %v28_v59 }
  0x76   :  { %589 = vmatmul.msk.f32.gmra.mxu1 %vm83_vm1, %v44_v60 }
  0x7b   :  { %606 = vmatmul.msk.f32.gmra.mxu2 %vm83_vm1, %v61_v61 }
  0x7c   :  { %622 = vmatmul.msk.f32.gmra.mxu3 %vm83_vm1, %v77_v62 }
  0x7d   :  { %574 = vmatmul.msk.f32.gmra.mxu0 %vm83_vm1, %v29_v63 }
  0x7e   :  { %590 = vmatmul.msk.f32.gmra.mxu1 %vm83_vm1, %v45_v0 }
  0x82   :  { %v297_v2 = vpop.f32.mrf.mxu0 }
  0x83   :  { %v345_v3 = vpop.f32.mrf.mxu1  ;;  %v298_v4 = vadd.f32 %v909_v1, %v297_v2 }
  0x84   :  { %v346_v5 = vadd.f32 %v909_v1, %v345_v3 }
  0x85   :  { %490 = vst.msk [vmem:[%s1234_s3] sm:$0xff] %vm489_vm2, %v298_v4 }
  0x86   :  { %506 = vst.msk [vmem:[%s1234_s3 + $0x80] sm:$0xff] %vm489_vm2, %v346_v5  ;;  %v393_v6 = vpop.f32.mrf.mxu2 }
  0x87   :  { %v441_v7 = vpop.f32.mrf.mxu3  ;;  %v394_v8 = vadd.f32 %v909_v1, %v393_v6 }
  0x88   :  { %v442_v9 = vadd.f32 %v909_v1, %v441_v7 }
  0x89   :  { %522 = vst.msk [vmem:[%s1234_s3 + $0x100] sm:$0xff] %vm489_vm2, %v394_v8 }
  0x8a   :  { %538 = vst.msk [vmem:[%s1234_s3 + $0x180] sm:$0xff] %vm489_vm2, %v442_v9  ;;  %v300_v10 = vpop.f32.mrf.mxu0 }
  0x8b   :  { %v348_v11 = vpop.f32.mrf.mxu1  ;;  %v301_v12 = vadd.f32 %v909_v1, %v300_v10 }
  0x8c   :  { %v349_v13 = vadd.f32 %v909_v1, %v348_v11 }
  0x8d   :  { %491 = vst.msk [vmem:[%s1234_s3 + $0x8] sm:$0xff] %vm489_vm2, %v301_v12 }
  0x8e   :  { %507 = vst.msk [vmem:[%s1234_s3 + $0x88] sm:$0xff] %vm489_vm2, %v349_v13  ;;  %v396_v14 = vpop.f32.mrf.mxu2 }
  0x8f   :  { %v444_v15 = vpop.f32.mrf.mxu3  ;;  %v397_v16 = vadd.f32 %v909_v1, %v396_v14 }
  0x90   :  { %v445_v17 = vadd.f32 %v909_v1, %v444_v15 }
  0x91   :  { %523 = vst.msk [vmem:[%s1234_s3 + $0x108] sm:$0xff] %vm489_vm2, %v397_v16 }
  0x92   :  { %539 = vst.msk [vmem:[%s1234_s3 + $0x188] sm:$0xff] %vm489_vm2, %v445_v17  ;;  %v303_v18 = vpop.f32.mrf.mxu0 }
  0x93   :  { %v351_v19 = vpop.f32.mrf.mxu1  ;;  %v304_v20 = vadd.f32 %v909_v1, %v303_v18 }
  0x94   :  { %v352_v21 = vadd.f32 %v909_v1, %v351_v19 }
  0x95   :  { %492 = vst.msk [vmem:[%s1234_s3 + $0x10] sm:$0xff] %vm489_vm2, %v304_v20 }
  0x96   :  { %508 = vst.msk [vmem:[%s1234_s3 + $0x90] sm:$0xff] %vm489_vm2, %v352_v21  ;;  %v399_v22 = vpop.f32.mrf.mxu2 }
  0x97   :  { %v447_v23 = vpop.f32.mrf.mxu3  ;;  %v400_v24 = vadd.f32 %v909_v1, %v399_v22 }
  0x98   :  { %v448_v25 = vadd.f32 %v909_v1, %v447_v23 }
  0x99   :  { %524 = vst.msk [vmem:[%s1234_s3 + $0x110] sm:$0xff] %vm489_vm2, %v400_v24 }
  0x9a   :  { %540 = vst.msk [vmem:[%s1234_s3 + $0x190] sm:$0xff] %vm489_vm2, %v448_v25  ;;  %v306_v26 = vpop.f32.mrf.mxu0 }
  0x9b   :  { %v354_v27 = vpop.f32.mrf.mxu1  ;;  %v307_v28 = vadd.f32 %v909_v1, %v306_v26 }
  0x9c   :  { %v355_v29 = vadd.f32 %v909_v1, %v354_v27 }
  0x9d   :  { %493 = vst.msk [vmem:[%s1234_s3 + $0x18] sm:$0xff] %vm489_vm2, %v307_v28 }
  0x9e   :  { %509 = vst.msk [vmem:[%s1234_s3 + $0x98] sm:$0xff] %vm489_vm2, %v355_v29  ;;  %v402_v30 = vpop.f32.mrf.mxu2 }
  0x9f   :  { %v450_v31 = vpop.f32.mrf.mxu3  ;;  %v403_v32 = vadd.f32 %v909_v1, %v402_v30 }
  0xa0   :  { %v451_v33 = vadd.f32 %v909_v1, %v450_v31 }
  0xa1   :  { %525 = vst.msk [vmem:[%s1234_s3 + $0x118] sm:$0xff] %vm489_vm2, %v403_v32 }
  0xa2   :  { %541 = vst.msk [vmem:[%s1234_s3 + $0x198] sm:$0xff] %vm489_vm2, %v451_v33  ;;  %v309_v34 = vpop.f32.mrf.mxu0 }
  0xa3   :  { %v357_v35 = vpop.f32.mrf.mxu1  ;;  %v310_v36 = vadd.f32 %v909_v1, %v309_v34 }
  0xa4   :  { %v358_v37 = vadd.f32 %v909_v1, %v357_v35 }
  0xa5   :  { %494 = vst.msk [vmem:[%s1234_s3 + $0x20] sm:$0xff] %vm489_vm2, %v310_v36 }
  0xa6   :  { %510 = vst.msk [vmem:[%s1234_s3 + $0xa0] sm:$0xff] %vm489_vm2, %v358_v37  ;;  %v405_v38 = vpop.f32.mrf.mxu2 }
  0xa7   :  { %v453_v39 = vpop.f32.mrf.mxu3  ;;  %v406_v40 = vadd.f32 %v909_v1, %v405_v38 }
  0xa8   :  { %v454_v41 = vadd.f32 %v909_v1, %v453_v39 }
  0xa9   :  { %526 = vst.msk [vmem:[%s1234_s3 + $0x120] sm:$0xff] %vm489_vm2, %v406_v40 }
  0xaa   :  { %542 = vst.msk [vmem:[%s1234_s3 + $0x1a0] sm:$0xff] %vm489_vm2, %v454_v41  ;;  %v312_v42 = vpop.f32.mrf.mxu0 }
  0xab   :  { %v360_v43 = vpop.f32.mrf.mxu1  ;;  %v313_v44 = vadd.f32 %v909_v1, %v312_v42 }
  0xac   :  { %v361_v45 = vadd.f32 %v909_v1, %v360_v43 }
  0xad   :  { %495 = vst.msk [vmem:[%s1234_s3 + $0x28] sm:$0xff] %vm489_vm2, %v313_v44 }
  0xae   :  { %511 = vst.msk [vmem:[%s1234_s3 + $0xa8] sm:$0xff] %vm489_vm2, %v361_v45  ;;  %v408_v46 = vpop.f32.mrf.mxu2 }
  0xaf   :  { %v456_v47 = vpop.f32.mrf.mxu3  ;;  %v409_v48 = vadd.f32 %v909_v1, %v408_v46 }
  0xb0   :  { %v457_v49 = vadd.f32 %v909_v1, %v456_v47 }
  0xb1   :  { %527 = vst.msk [vmem:[%s1234_s3 + $0x128] sm:$0xff] %vm489_vm2, %v409_v48 }
  0xb2   :  { %543 = vst.msk [vmem:[%s1234_s3 + $0x1a8] sm:$0xff] %vm489_vm2, %v457_v49  ;;  %v315_v50 = vpop.f32.mrf.mxu0 }
  0xb3   :  { %v363_v51 = vpop.f32.mrf.mxu1  ;;  %v316_v52 = vadd.f32 %v909_v1, %v315_v50 }
  0xb4   :  { %v364_v53 = vadd.f32 %v909_v1, %v363_v51 }
  0xb5   :  { %496 = vst.msk [vmem:[%s1234_s3 + $0x30] sm:$0xff] %vm489_vm2, %v316_v52 }
  0xb6   :  { %512 = vst.msk [vmem:[%s1234_s3 + $0xb0] sm:$0xff] %vm489_vm2, %v364_v53  ;;  %v411_v54 = vpop.f32.mrf.mxu2 }
  0xb7   :  { %v459_v55 = vpop.f32.mrf.mxu3  ;;  %v412_v56 = vadd.f32 %v909_v1, %v411_v54 }
  0xb8   :  { %v460_v57 = vadd.f32 %v909_v1, %v459_v55 }
  0xb9   :  { %528 = vst.msk [vmem:[%s1234_s3 + $0x130] sm:$0xff] %vm489_vm2, %v412_v56 }
  0xba   :  { %544 = vst.msk [vmem:[%s1234_s3 + $0x1b0] sm:$0xff] %vm489_vm2, %v460_v57  ;;  %v318_v58 = vpop.f32.mrf.mxu0 }
  0xbb   :  { %v366_v59 = vpop.f32.mrf.mxu1  ;;  %v319_v60 = vadd.f32 %v909_v1, %v318_v58 }
  0xbc   :  { %v367_v61 = vadd.f32 %v909_v1, %v366_v59 }
  0xbd   :  { %497 = vst.msk [vmem:[%s1234_s3 + $0x38] sm:$0xff] %vm489_vm2, %v319_v60 }
  0xbe   :  { %513 = vst.msk [vmem:[%s1234_s3 + $0xb8] sm:$0xff] %vm489_vm2, %v367_v61  ;;  %v414_v62 = vpop.f32.mrf.mxu2 }
  0xbf   :  { %v462_v63 = vpop.f32.mrf.mxu3  ;;  %v415_v0 = vadd.f32 %v909_v1, %v414_v62 }
  0xc0   :  { %v463_v2 = vadd.f32 %v909_v1, %v462_v63 }
  0xc1   :  { %529 = vst.msk [vmem:[%s1234_s3 + $0x138] sm:$0xff] %vm489_vm2, %v415_v0 }
  0xc2   :  { %545 = vst.msk [vmem:[%s1234_s3 + $0x1b8] sm:$0xff] %vm489_vm2, %v463_v2  ;;  %v321_v3 = vpop.f32.mrf.mxu0 }
  0xc3   :  { %v369_v4 = vpop.f32.mrf.mxu1  ;;  %v322_v5 = vadd.f32 %v909_v1, %v321_v3 }
  0xc4   :  { %v370_v6 = vadd.f32 %v909_v1, %v369_v4 }
  0xc5   :  { %498 = vst.msk [vmem:[%s1234_s3 + $0x40] sm:$0xff] %vm489_vm2, %v322_v5 }
  0xc6   :  { %514 = vst.msk [vmem:[%s1234_s3 + $0xc0] sm:$0xff] %vm489_vm2, %v370_v6  ;;  %v417_v7 = vpop.f32.mrf.mxu2 }
  0xc7   :  { %v465_v8 = vpop.f32.mrf.mxu3  ;;  %v418_v9 = vadd.f32 %v909_v1, %v417_v7 }
  0xc8   :  { %v466_v10 = vadd.f32 %v909_v1, %v465_v8 }
  0xc9   :  { %530 = vst.msk [vmem:[%s1234_s3 + $0x140] sm:$0xff] %vm489_vm2, %v418_v9 }
  0xca   :  { %546 = vst.msk [vmem:[%s1234_s3 + $0x1c0] sm:$0xff] %vm489_vm2, %v466_v10  ;;  %v324_v11 = vpop.f32.mrf.mxu0 }
  0xcb   :  { %v372_v12 = vpop.f32.mrf.mxu1  ;;  %v325_v13 = vadd.f32 %v909_v1, %v324_v11 }
  0xcc   :  { %v373_v14 = vadd.f32 %v909_v1, %v372_v12 }
  0xcd   :  { %499 = vst.msk [vmem:[%s1234_s3 + $0x48] sm:$0xff] %vm489_vm2, %v325_v13 }
  0xce   :  { %515 = vst.msk [vmem:[%s1234_s3 + $0xc8] sm:$0xff] %vm489_vm2, %v373_v14  ;;  %v420_v15 = vpop.f32.mrf.mxu2 }
  0xcf   :  { %v468_v16 = vpop.f32.mrf.mxu3  ;;  %v421_v17 = vadd.f32 %v909_v1, %v420_v15 }
  0xd0   :  { %v469_v18 = vadd.f32 %v909_v1, %v468_v16 }
  0xd1   :  { %531 = vst.msk [vmem:[%s1234_s3 + $0x148] sm:$0xff] %vm489_vm2, %v421_v17 }
  0xd2   :  { %547 = vst.msk [vmem:[%s1234_s3 + $0x1c8] sm:$0xff] %vm489_vm2, %v469_v18  ;;  %v327_v19 = vpop.f32.mrf.mxu0 }
  0xd3   :  { %v375_v20 = vpop.f32.mrf.mxu1  ;;  %v328_v21 = vadd.f32 %v909_v1, %v327_v19 }
  0xd4   :  { %v376_v22 = vadd.f32 %v909_v1, %v375_v20 }
  0xd5   :  { %500 = vst.msk [vmem:[%s1234_s3 + $0x50] sm:$0xff] %vm489_vm2, %v328_v21 }
  0xd6   :  { %516 = vst.msk [vmem:[%s1234_s3 + $0xd0] sm:$0xff] %vm489_vm2, %v376_v22  ;;  %v423_v23 = vpop.f32.mrf.mxu2 }
  0xd7   :  { %v471_v24 = vpop.f32.mrf.mxu3  ;;  %v424_v25 = vadd.f32 %v909_v1, %v423_v23 }
  0xd8   :  { %v472_v26 = vadd.f32 %v909_v1, %v471_v24 }
  0xd9   :  { %532 = vst.msk [vmem:[%s1234_s3 + $0x150] sm:$0xff] %vm489_vm2, %v424_v25 }
  0xda   :  { %548 = vst.msk [vmem:[%s1234_s3 + $0x1d0] sm:$0xff] %vm489_vm2, %v472_v26  ;;  %v330_v27 = vpop.f32.mrf.mxu0 }
  0xdb   :  { %v378_v28 = vpop.f32.mrf.mxu1  ;;  %v331_v29 = vadd.f32 %v909_v1, %v330_v27 }
  0xdc   :  { %v379_v30 = vadd.f32 %v909_v1, %v378_v28 }
  0xdd   :  { %501 = vst.msk [vmem:[%s1234_s3 + $0x58] sm:$0xff] %vm489_vm2, %v331_v29 }
  0xde   :  { %517 = vst.msk [vmem:[%s1234_s3 + $0xd8] sm:$0xff] %vm489_vm2, %v379_v30  ;;  %v426_v31 = vpop.f32.mrf.mxu2 }
  0xdf   :  { %v474_v32 = vpop.f32.mrf.mxu3  ;;  %v427_v33 = vadd.f32 %v909_v1, %v426_v31 }
  0xe0   :  { %v475_v34 = vadd.f32 %v909_v1, %v474_v32 }
  0xe1   :  { %533 = vst.msk [vmem:[%s1234_s3 + $0x158] sm:$0xff] %vm489_vm2, %v427_v33 }
  0xe2   :  { %549 = vst.msk [vmem:[%s1234_s3 + $0x1d8] sm:$0xff] %vm489_vm2, %v475_v34  ;;  %v333_v35 = vpop.f32.mrf.mxu0 }
  0xe3   :  { %v381_v36 = vpop.f32.mrf.mxu1  ;;  %v334_v37 = vadd.f32 %v909_v1, %v333_v35 }
  0xe4   :  { %v382_v38 = vadd.f32 %v909_v1, %v381_v36 }
  0xe5   :  { %502 = vst.msk [vmem:[%s1234_s3 + $0x60] sm:$0xff] %vm489_vm2, %v334_v37 }
  0xe6   :  { %518 = vst.msk [vmem:[%s1234_s3 + $0xe0] sm:$0xff] %vm489_vm2, %v382_v38  ;;  %v429_v39 = vpop.f32.mrf.mxu2 }
  0xe7   :  { %v477_v40 = vpop.f32.mrf.mxu3  ;;  %v430_v41 = vadd.f32 %v909_v1, %v429_v39 }
  0xe8   :  { %v478_v42 = vadd.f32 %v909_v1, %v477_v40 }
  0xe9   :  { %534 = vst.msk [vmem:[%s1234_s3 + $0x160] sm:$0xff] %vm489_vm2, %v430_v41 }
  0xea   :  { %550 = vst.msk [vmem:[%s1234_s3 + $0x1e0] sm:$0xff] %vm489_vm2, %v478_v42  ;;  %v336_v43 = vpop.f32.mrf.mxu0 }
  0xeb   :  { %v384_v44 = vpop.f32.mrf.mxu1  ;;  %v337_v45 = vadd.f32 %v909_v1, %v336_v43 }
  0xec   :  { %v385_v46 = vadd.f32 %v909_v1, %v384_v44 }
  0xed   :  { %503 = vst.msk [vmem:[%s1234_s3 + $0x68] sm:$0xff] %vm489_vm2, %v337_v45 }
  0xee   :  { %519 = vst.msk [vmem:[%s1234_s3 + $0xe8] sm:$0xff] %vm489_vm2, %v385_v46  ;;  %v432_v47 = vpop.f32.mrf.mxu2 }
  0xef   :  { %v480_v48 = vpop.f32.mrf.mxu3  ;;  %v433_v49 = vadd.f32 %v909_v1, %v432_v47 }
  0xf0   :  { %v481_v50 = vadd.f32 %v909_v1, %v480_v48 }
  0xf1   :  { %535 = vst.msk [vmem:[%s1234_s3 + $0x168] sm:$0xff] %vm489_vm2, %v433_v49 }
  0xf2   :  { %551 = vst.msk [vmem:[%s1234_s3 + $0x1e8] sm:$0xff] %vm489_vm2, %v481_v50  ;;  %v339_v51 = vpop.f32.mrf.mxu0 }
  0xf3   :  { %v387_v52 = vpop.f32.mrf.mxu1  ;;  %v340_v53 = vadd.f32 %v909_v1, %v339_v51 }
  0xf4   :  { %v388_v54 = vadd.f32 %v909_v1, %v387_v52 }
  0xf5   :  { %504 = vst.msk [vmem:[%s1234_s3 + $0x70] sm:$0xff] %vm489_vm2, %v340_v53 }
  0xf6   :  { %520 = vst.msk [vmem:[%s1234_s3 + $0xf0] sm:$0xff] %vm489_vm2, %v388_v54  ;;  %v435_v55 = vpop.f32.mrf.mxu2 }
  0xf7   :  { %v483_v56 = vpop.f32.mrf.mxu3  ;;  %v436_v57 = vadd.f32 %v909_v1, %v435_v55 }
  0xf8   :  { %v484_v58 = vadd.f32 %v909_v1, %v483_v56 }
  0xf9   :  { %536 = vst.msk [vmem:[%s1234_s3 + $0x170] sm:$0xff] %vm489_vm2, %v436_v57 }
  0xfa   :  { %552 = vst.msk [vmem:[%s1234_s3 + $0x1f0] sm:$0xff] %vm489_vm2, %v484_v58  ;;  %v342_v59 = vpop.f32.mrf.mxu0 }
  0xfb   :  { %v390_v60 = vpop.f32.mrf.mxu1  ;;  %v343_v61 = vadd.f32 %v909_v1, %v342_v59 }
  0xfc   :  { %v391_v62 = vadd.f32 %v909_v1, %v390_v60 }
  0xfd   :  { %505 = vst.msk [vmem:[%s1234_s3 + $0x78] sm:$0xff] %vm489_vm2, %v343_v61 }
  0xfe   :  { %521 = vst.msk [vmem:[%s1234_s3 + $0xf8] sm:$0xff] %vm489_vm2, %v391_v62  ;;  %v438_v63 = vpop.f32.mrf.mxu2 }
  0xff   :  { %v486_v0 = vpop.f32.mrf.mxu3  ;;  %v439_v2 = vadd.f32 %v909_v1, %v438_v63 }
 0x100   :  { %v487_v3 = vadd.f32 %v909_v1, %v486_v0 }
 0x101   :  { %537 = vst.msk [vmem:[%s1234_s3 + $0x178] sm:$0xff] %vm489_vm2, %v439_v2 }
 0x102   :  { %553 = vst.msk [vmem:[%s1234_s3 + $0x1f8] sm:$0xff] %vm489_vm2, %v487_v3 }

// kernel: fno_forward.17
= control target key start
LH: loop header
LB: loop body
LE: loop exit
PB: predicated region body
PF: predicated region fallthrough
CT: control target
= control target key end

     0   :  { %vm467_vm0 = vcmask 1041408   ;;  %vm469_vm1 = vcmask 1045508   ;;  %vm471_vm2 = vcmask 1043456   ;;  %s2172_s1 = inlined_call_operand.vmem [shape: f32[384,512], index: 1, kind: input, shape index: {}]   ;;  %s2173_s0 = inlined_call_operand.vmem [shape: f32[2,384], index: 0, kind: input, shape index: {}]   ;;  %s2174_s2 = inlined_call_operand.vmem [shape: f32[2,384], index: 2, kind: input, shape index: {}]   ;;  %s2175_s3 = inlined_call_operand.vmem [shape: f32[384,512], index: 3, kind: input, shape index: {}]   ;;  %s2176_s4 = inlined_call_operand.vmem [shape: f32[2,512], index: 4, kind: output, shape index: {0}]   ;;  %s2177_s5 = inlined_call_operand.vmem [shape: f32[2,512], index: 5, kind: output, shape index: {1}]  }
   0x1   :  { %v80_v0 = vld [vmem:[%s2172_s1 + $0x1e0] sm:$0xff]  ;;  %v81_v4 = vld [vmem:[%s2172_s1 + $0x1e8] sm:$0xff]  ;;  %v82_v62 = vld [vmem:[%s2172_s1 + $0x1f0] sm:$0xff] }
   0x2   :  { %v208_v1 = vld [vmem:[%s2172_s1 + $0x5e0] sm:$0xff]  ;;  %220 = vmatpush.msra.mxu0 %v80_v0  ;;  %280 = vmatpush.msra.mxu3 %v81_v4  ;;  %v77_v8 = vld [vmem:[%s2172_s1 + $0x1c8] sm:$0xff] }
   0x3   :  { %v76_v2 = vld [vmem:[%s2172_s1 + $0x1c0] sm:$0xff]  ;;  %260 = vmatpush.msra.mxu2 %v208_v1  ;;  %v73_v12 = vld [vmem:[%s2172_s1 + $0x1a8] sm:$0xff] }
   0x4   :  { %v204_v3 = vld [vmem:[%s2172_s1 + $0x5c0] sm:$0xff]  ;;  %221 = vmatpush.msra.mxu0 %v76_v2  ;;  %281 = vmatpush.msra.mxu3 %v77_v8  ;;  %v69_v14 = vld [vmem:[%s2172_s1 + $0x188] sm:$0xff]  ;;  %v78_v2 = vld [vmem:[%s2172_s1 + $0x1d0] sm:$0xff] }
   0x5   :  { %v72_v5 = vld [vmem:[%s2172_s1 + $0x1a0] sm:$0xff]  ;;  %261 = vmatpush.msra.mxu2 %v204_v3  ;;  %v65_v18 = vld [vmem:[%s2172_s1 + $0x168] sm:$0xff]  ;;  %v146_v3 = vld [vmem:[%s2172_s1 + $0x3f0] sm:$0xff] }
   0x6   :  { %v144_v6 = vld [vmem:[%s2172_s1 + $0x3e0] sm:$0xff]  ;;  %222 = vmatpush.msra.mxu0 %v72_v5  ;;  %282 = vmatpush.msra.mxu3 %v73_v12  ;;  %v61_v22 = vld [vmem:[%s2172_s1 + $0x148] sm:$0xff]  ;;  %v142_v8 = vld [vmem:[%s2172_s1 + $0x3d0] sm:$0xff] }
   0x7   :  { %v200_v7 = vld [vmem:[%s2172_s1 + $0x5a0] sm:$0xff]  ;;  %240 = vmatpush.msra.mxu1 %v144_v6  ;;  %v57_v26 = vld [vmem:[%s2172_s1 + $0x128] sm:$0xff]  ;;  %v138_v12 = vld [vmem:[%s2172_s1 + $0x3b0] sm:$0xff] }
   0x8   :  { %v140_v9 = vld [vmem:[%s2172_s1 + $0x3c0] sm:$0xff]  ;;  %262 = vmatpush.msra.mxu2 %v200_v7  ;;  %283 = vmatpush.msra.mxu3 %v69_v14  ;;  %v53_v30 = vld [vmem:[%s2172_s1 + $0x108] sm:$0xff]  ;;  %v74_v7 = vld [vmem:[%s2172_s1 + $0x1b0] sm:$0xff] }
   0x9   :  { %v68_v10 = vld [vmem:[%s2172_s1 + $0x180] sm:$0xff]  ;;  %241 = vmatpush.msra.mxu1 %v140_v9  ;;  %v49_v34 = vld [vmem:[%s2172_s1 + $0xe8] sm:$0xff] }
   0xa   :  { %v196_v11 = vld [vmem:[%s2172_s1 + $0x580] sm:$0xff]  ;;  %223 = vmatpush.msra.mxu0 %v68_v10  ;;  %284 = vmatpush.msra.mxu3 %v65_v18  ;;  %v45_v38 = vld [vmem:[%s2172_s1 + $0xc8] sm:$0xff] }
   0xb   :  { %v136_v13 = vld [vmem:[%s2172_s1 + $0x3a0] sm:$0xff]  ;;  %263 = vmatpush.msra.mxu2 %v196_v11  ;;  %v41_v42 = vld [vmem:[%s2172_s1 + $0xa8] sm:$0xff]  ;;  %v70_v11 = vld [vmem:[%s2172_s1 + $0x190] sm:$0xff] }
   0xc   :  { %v64_v15 = vld [vmem:[%s2172_s1 + $0x160] sm:$0xff]  ;;  %242 = vmatpush.msra.mxu1 %v136_v13  ;;  %285 = vmatpush.msra.mxu3 %v61_v22  ;;  %v37_v46 = vld [vmem:[%s2172_s1 + $0x88] sm:$0xff] }
   0xd   :  { %v192_v16 = vld [vmem:[%s2172_s1 + $0x560] sm:$0xff]  ;;  %224 = vmatpush.msra.mxu0 %v64_v15  ;;  %v33_v50 = vld [vmem:[%s2172_s1 + $0x68] sm:$0xff] }
   0xe   :  { %v132_v17 = vld [vmem:[%s2172_s1 + $0x380] sm:$0xff]  ;;  %264 = vmatpush.msra.mxu2 %v192_v16  ;;  %286 = vmatpush.msra.mxu3 %v57_v26  ;;  %v29_v54 = vld [vmem:[%s2172_s1 + $0x48] sm:$0xff]  ;;  %v66_v16 = vld [vmem:[%s2172_s1 + $0x170] sm:$0xff] }
   0xf   :  { %v60_v19 = vld [vmem:[%s2172_s1 + $0x140] sm:$0xff]  ;;  %243 = vmatpush.msra.mxu1 %v132_v17  ;;  %v25_v58 = vld [vmem:[%s2172_s1 + $0x28] sm:$0xff]  ;;  %v134_v17 = vld [vmem:[%s2172_s1 + $0x390] sm:$0xff] }
  0x10   :  { %v188_v20 = vld [vmem:[%s2172_s1 + $0x540] sm:$0xff]  ;;  %225 = vmatpush.msra.mxu0 %v60_v19  ;;  %287 = vmatpush.msra.mxu3 %v53_v30  ;;  %v145_v61 = vld [vmem:[%s2172_s1 + $0x3e8] sm:$0xff] }
  0x11   :  { %v128_v21 = vld [vmem:[%s2172_s1 + $0x360] sm:$0xff]  ;;  %265 = vmatpush.msra.mxu2 %v188_v20  ;;  %v21_v0 = vld [vmem:[%s2172_s1 + $0x8] sm:$0xff]  ;;  %v62_v20 = vld [vmem:[%s2172_s1 + $0x150] sm:$0xff] }
  0x12   :  { %v56_v23 = vld [vmem:[%s2172_s1 + $0x120] sm:$0xff]  ;;  %244 = vmatpush.msra.mxu1 %v128_v21  ;;  %288 = vmatpush.msra.mxu3 %v49_v34  ;;  %v141_v1 = vld [vmem:[%s2172_s1 + $0x3c8] sm:$0xff]  ;;  %v130_v21 = vld [vmem:[%s2172_s1 + $0x370] sm:$0xff] }
  0x13   :  { %v184_v24 = vld [vmem:[%s2172_s1 + $0x520] sm:$0xff]  ;;  %226 = vmatpush.msra.mxu0 %v56_v23  ;;  %v137_v5 = vld [vmem:[%s2172_s1 + $0x3a8] sm:$0xff]  ;;  %v118_v34 = vld [vmem:[%s2172_s1 + $0x310] sm:$0xff] }
  0x14   :  { %v124_v25 = vld [vmem:[%s2172_s1 + $0x340] sm:$0xff]  ;;  %266 = vmatpush.msra.mxu2 %v184_v24  ;;  %289 = vmatpush.msra.mxu3 %v45_v38  ;;  %v209_v6 = vld [vmem:[%s2172_s1 + $0x5e8] sm:$0xff]  ;;  %v58_v24 = vld [vmem:[%s2172_s1 + $0x130] sm:$0xff] }
  0x15   :  { %v52_v27 = vld [vmem:[%s2172_s1 + $0x100] sm:$0xff]  ;;  %245 = vmatpush.msra.mxu1 %v124_v25  ;;  %v133_v9 = vld [vmem:[%s2172_s1 + $0x388] sm:$0xff]  ;;  %v126_v25 = vld [vmem:[%s2172_s1 + $0x350] sm:$0xff] }
  0x16   :  { %v180_v28 = vld [vmem:[%s2172_s1 + $0x500] sm:$0xff]  ;;  %227 = vmatpush.msra.mxu0 %v52_v27  ;;  %290 = vmatpush.msra.mxu3 %v41_v42  ;;  %v205_v10 = vld [vmem:[%s2172_s1 + $0x5c8] sm:$0xff] }
  0x17   :  { %v120_v29 = vld [vmem:[%s2172_s1 + $0x320] sm:$0xff]  ;;  %267 = vmatpush.msra.mxu2 %v180_v28  ;;  %v129_v13 = vld [vmem:[%s2172_s1 + $0x368] sm:$0xff]  ;;  %v54_v28 = vld [vmem:[%s2172_s1 + $0x110] sm:$0xff] }
  0x18   :  { %v48_v31 = vld [vmem:[%s2172_s1 + $0xe0] sm:$0xff]  ;;  %246 = vmatpush.msra.mxu1 %v120_v29  ;;  %291 = vmatpush.msra.mxu3 %v37_v46  ;;  %v201_v14 = vld [vmem:[%s2172_s1 + $0x5a8] sm:$0xff]  ;;  %v122_v29 = vld [vmem:[%s2172_s1 + $0x330] sm:$0xff] }
  0x19   :  { %v176_v32 = vld [vmem:[%s2172_s1 + $0x4e0] sm:$0xff]  ;;  %228 = vmatpush.msra.mxu0 %v48_v31  ;;  %v125_v18 = vld [vmem:[%s2172_s1 + $0x348] sm:$0xff] }
  0x1a   :  { %v116_v33 = vld [vmem:[%s2172_s1 + $0x300] sm:$0xff]  ;;  %268 = vmatpush.msra.mxu2 %v176_v32  ;;  %292 = vmatpush.msra.mxu3 %v33_v50  ;;  %v197_v19 = vld [vmem:[%s2172_s1 + $0x588] sm:$0xff] }
  0x1b   :  { %v44_v35 = vld [vmem:[%s2172_s1 + $0xc0] sm:$0xff]  ;;  %247 = vmatpush.msra.mxu1 %v116_v33  ;;  %v121_v22 = vld [vmem:[%s2172_s1 + $0x328] sm:$0xff]  ;;  %v50_v33 = vld [vmem:[%s2172_s1 + $0xf0] sm:$0xff] }
  0x1c   :  { %v172_v36 = vld [vmem:[%s2172_s1 + $0x4c0] sm:$0xff]  ;;  %229 = vmatpush.msra.mxu0 %v44_v35  ;;  %293 = vmatpush.msra.mxu3 %v29_v54  ;;  %v193_v23 = vld [vmem:[%s2172_s1 + $0x568] sm:$0xff] }
  0x1d   :  { %v112_v37 = vld [vmem:[%s2172_s1 + $0x2e0] sm:$0xff]  ;;  %269 = vmatpush.msra.mxu2 %v172_v36  ;;  %v117_v26 = vld [vmem:[%s2172_s1 + $0x308] sm:$0xff] }
  0x1e   :  { %v40_v39 = vld [vmem:[%s2172_s1 + $0xa0] sm:$0xff]  ;;  %248 = vmatpush.msra.mxu1 %v112_v37  ;;  %294 = vmatpush.msra.mxu3 %v25_v58  ;;  %v189_v27 = vld [vmem:[%s2172_s1 + $0x548] sm:$0xff] }
  0x1f   :  { %v168_v40 = vld [vmem:[%s2172_s1 + $0x4a0] sm:$0xff]  ;;  %230 = vmatpush.msra.mxu0 %v40_v39  ;;  %v113_v30 = vld [vmem:[%s2172_s1 + $0x2e8] sm:$0xff] }
  0x20   :  { %v108_v41 = vld [vmem:[%s2172_s1 + $0x2c0] sm:$0xff]  ;;  %270 = vmatpush.msra.mxu2 %v168_v40  ;;  %295 = vmatpush.msra.mxu3 %v21_v0  ;;  %v185_v31 = vld [vmem:[%s2172_s1 + $0x528] sm:$0xff]  ;;  %v46_v40 = vld [vmem:[%s2172_s1 + $0xd0] sm:$0xff] }
  0x21   :  { %v36_v43 = vld [vmem:[%s2172_s1 + $0x80] sm:$0xff]  ;;  %249 = vmatpush.msra.mxu1 %v108_v41  ;;  %v109_v38 = vld [vmem:[%s2172_s1 + $0x2c8] sm:$0xff]  ;;  %v114_v41 = vld [vmem:[%s2172_s1 + $0x2f0] sm:$0xff] }
  0x22   :  { %v164_v44 = vld [vmem:[%s2172_s1 + $0x480] sm:$0xff]  ;;  %231 = vmatpush.msra.mxu0 %v36_v43  ;;  %360 = vmatpush.msrb.mxu3 %v146_v3  ;;  %v181_v39 = vld [vmem:[%s2172_s1 + $0x508] sm:$0xff]  ;;  %v22_v0 = vld [vmem:[%s2172_s1 + $0x10] sm:$0xff] }
  0x23   :  { %v104_v45 = vld [vmem:[%s2172_s1 + $0x2a0] sm:$0xff]  ;;  %271 = vmatpush.msra.mxu2 %v164_v44  ;;  %v105_v42 = vld [vmem:[%s2172_s1 + $0x2a8] sm:$0xff]  ;;  %v42_v44 = vld [vmem:[%s2172_s1 + $0xb0] sm:$0xff] }
  0x24   :  { %v32_v47 = vld [vmem:[%s2172_s1 + $0x60] sm:$0xff]  ;;  %250 = vmatpush.msra.mxu1 %v104_v45  ;;  %361 = vmatpush.msrb.mxu3 %v142_v8  ;;  %v177_v43 = vld [vmem:[%s2172_s1 + $0x4e8] sm:$0xff]  ;;  %v110_v45 = vld [vmem:[%s2172_s1 + $0x2d0] sm:$0xff] }
  0x25   :  { %v160_v48 = vld [vmem:[%s2172_s1 + $0x460] sm:$0xff]  ;;  %232 = vmatpush.msra.mxu0 %v32_v47  ;;  %v101_v46 = vld [vmem:[%s2172_s1 + $0x288] sm:$0xff]  ;;  %v147_v3 = vld [vmem:[%s2172_s1 + $0x3f8] sm:$0xff] }
  0x26   :  { %v100_v49 = vld [vmem:[%s2172_s1 + $0x280] sm:$0xff]  ;;  %272 = vmatpush.msra.mxu2 %v160_v48  ;;  %362 = vmatpush.msrb.mxu3 %v138_v12  ;;  %v173_v47 = vld [vmem:[%s2172_s1 + $0x4c8] sm:$0xff]  ;;  %v38_v48 = vld [vmem:[%s2172_s1 + $0x90] sm:$0xff] }
  0x27   :  { %v28_v51 = vld [vmem:[%s2172_s1 + $0x40] sm:$0xff]  ;;  %251 = vmatpush.msra.mxu1 %v100_v49  ;;  %v106_v49 = vld [vmem:[%s2172_s1 + $0x2b0] sm:$0xff]  ;;  %v97_v50 = vld [vmem:[%s2172_s1 + $0x268] sm:$0xff] }
  0x28   :  { %v156_v52 = vld [vmem:[%s2172_s1 + $0x440] sm:$0xff]  ;;  %233 = vmatpush.msra.mxu0 %v28_v51  ;;  %363 = vmatpush.msrb.mxu3 %v134_v17  ;;  %v169_v51 = vld [vmem:[%s2172_s1 + $0x4a8] sm:$0xff]  ;;  %v211_v8 = vld [vmem:[%s2172_s1 + $0x5f8] sm:$0xff] }
  0x29   :  { %v96_v53 = vld [vmem:[%s2172_s1 + $0x260] sm:$0xff]  ;;  %273 = vmatpush.msra.mxu2 %v156_v52  ;;  %v34_v52 = vld [vmem:[%s2172_s1 + $0x70] sm:$0xff]  ;;  %v165_v54 = vld [vmem:[%s2172_s1 + $0x488] sm:$0xff] }
  0x2a   :  { %v24_v55 = vld [vmem:[%s2172_s1 + $0x20] sm:$0xff]  ;;  %252 = vmatpush.msra.mxu1 %v96_v53  ;;  %364 = vmatpush.msrb.mxu3 %v130_v21  ;;  %v102_v53 = vld [vmem:[%s2172_s1 + $0x290] sm:$0xff]  ;;  %v89_v58 = vld [vmem:[%s2172_s1 + $0x228] sm:$0xff] }
  0x2b   :  { %v152_v56 = vld [vmem:[%s2172_s1 + $0x420] sm:$0xff]  ;;  %234 = vmatpush.msra.mxu0 %v24_v55  ;;  %v93_v55 = vld [vmem:[%s2172_s1 + $0x248] sm:$0xff]  ;;  %v83_v12 = vld [vmem:[%s2172_s1 + $0x1f8] sm:$0xff] }
  0x2c   :  { %v92_v57 = vld [vmem:[%s2172_s1 + $0x240] sm:$0xff]  ;;  %274 = vmatpush.msra.mxu2 %v152_v56  ;;  %365 = vmatpush.msrb.mxu3 %v126_v25  ;;  %v30_v56 = vld [vmem:[%s2172_s1 + $0x50] sm:$0xff]  ;;  %v203_v17 = vld [vmem:[%s2172_s1 + $0x5b8] sm:$0xff] }
  0x2d   :  { %v20_v59 = vld [vmem:[%s2172_s1] sm:$0xff]  ;;  %253 = vmatpush.msra.mxu1 %v92_v57  ;;  %v98_v57 = vld [vmem:[%s2172_s1 + $0x270] sm:$0xff]  ;;  %v199_v21 = vld [vmem:[%s2172_s1 + $0x598] sm:$0xff] }
  0x2e   :  { %v148_v60 = vld [vmem:[%s2172_s1 + $0x400] sm:$0xff]  ;;  %235 = vmatpush.msra.mxu0 %v20_v59  ;;  %366 = vmatpush.msrb.mxu3 %v122_v29  ;;  %v161_v59 = vld [vmem:[%s2172_s1 + $0x468] sm:$0xff]  ;;  %v195_v25 = vld [vmem:[%s2172_s1 + $0x578] sm:$0xff] }
  0x2f   :  { %v88_v63 = vld [vmem:[%s2172_s1 + $0x220] sm:$0xff]  ;;  %275 = vmatpush.msra.mxu2 %v148_v60  ;;  %v26_v60 = vld [vmem:[%s2172_s1 + $0x30] sm:$0xff]  ;;  %v191_v29 = vld [vmem:[%s2172_s1 + $0x558] sm:$0xff] }
  0x30   :  { %300 = vmatpush.msrb.mxu0 %v145_v61  ;;  %v84_v4 = vld [vmem:[%s2172_s1 + $0x200] sm:$0xff]  ;;  %254 = vmatpush.msra.mxu1 %v88_v63  ;;  %v94_v61 = vld [vmem:[%s2172_s1 + $0x250] sm:$0xff]  ;;  %v157_v63 = vld [vmem:[%s2172_s1 + $0x448] sm:$0xff] }
  0x31   :  { %340 = vmatpush.msrb.mxu2 %v82_v62  ;;  %v19_v15 = vld [vmem:[%s2173_s0] sm:$0x3f]  ;;  %367 = vmatpush.msrb.mxu3 %v118_v34  ;;  %v85_v62 = vld [vmem:[%s2172_s1 + $0x208] sm:$0xff]  ;;  %v178_v34 = vld [vmem:[%s2172_s1 + $0x4f0] sm:$0xff] }
  0x32   :  { %301 = vmatpush.msrb.mxu0 %v141_v1  ;;  %255 = vmatpush.msra.mxu1 %v84_v4  ;;  %213 = vst [vmem:[#allocation1] ss:$4 sm:$0xff] %v19_v15  ;;  %v475_v32 = vld [vmem:[%s2174_s2] sm:$0x3f]  ;;  %v90_v1 = vld [vmem:[%s2172_s1 + $0x230] sm:$0xff]  ;;  %v153_v4 = vld [vmem:[%s2172_s1 + $0x428] sm:$0xff] }
  0x33   :  { %341 = vmatpush.msrb.mxu2 %v78_v2  ;;  %368 = vmatpush.msrb.mxu3 %v114_v41  ;;  %v210_v2 = vld [vmem:[%s2172_s1 + $0x5f0] sm:$0xff]  ;;  %v135_v15 = vld [vmem:[%s2172_s1 + $0x398] sm:$0xff] }
  0x34   :  { %302 = vmatpush.msrb.mxu0 %v137_v5  ;;  %320 = vmatpush.msrb.mxu1 %v209_v6  ;;  %v86_v5 = vld [vmem:[%s2172_s1 + $0x210] sm:$0xff]  ;;  %v143_v6 = vld [vmem:[%s2172_s1 + $0x3d8] sm:$0xff] }
  0x35   :  { %342 = vmatpush.msrb.mxu2 %v74_v7  ;;  %369 = vmatpush.msrb.mxu3 %v110_v45  ;;  %v206_v7 = vld [vmem:[%s2172_s1 + $0x5d0] sm:$0xff] }
  0x36   :  { %303 = vmatpush.msrb.mxu0 %v133_v9  ;;  %321 = vmatpush.msrb.mxu1 %v205_v10  ;;  %v149_v9 = vld [vmem:[%s2172_s1 + $0x408] sm:$0xff]  ;;  %v139_v10 = vld [vmem:[%s2172_s1 + $0x3b8] sm:$0xff]  ;;  %v174_v41 = vld [vmem:[%s2172_s1 + $0x4d0] sm:$0xff] }
  0x37   :  { %343 = vmatpush.msrb.mxu2 %v70_v11  ;;  %370 = vmatpush.msrb.mxu3 %v106_v49  ;;  %v202_v11 = vld [vmem:[%s2172_s1 + $0x5b0] sm:$0xff] }
  0x38   :  { %304 = vmatpush.msrb.mxu0 %v129_v13  ;;  %322 = vmatpush.msrb.mxu1 %v201_v14  ;;  %v207_v13 = vld [vmem:[%s2172_s1 + $0x5d8] sm:$0xff]  ;;  %v198_v14 = vld [vmem:[%s2172_s1 + $0x590] sm:$0xff] }
  0x39   :  { %344 = vmatpush.msrb.mxu2 %v66_v16  ;;  %v1263_v35 = vld.sshfl [vmem:[#allocation1] sm:$0xff pattern:$0x73625140]  ;;  %v1265_v36 = vld.sshfl [vmem:[#allocation1 + $0x8] sm:$0xff pattern:$0x73625140]  ;;  %371 = vmatpush.msrb.mxu3 %v102_v53 }
  0x3a   :  { %305 = vmatpush.msrb.mxu0 %v125_v18  ;;  %323 = vmatpush.msrb.mxu1 %v197_v19  ;;  %v1267_v37 = vld.sshfl [vmem:[#allocation1 + $0x10] sm:$0xff pattern:$0x73625140]  ;;  %v79_v16 = vld [vmem:[%s2172_s1 + $0x1d8] sm:$0xff] }
  0x3b   :  { %345 = vmatpush.msrb.mxu2 %v62_v20  ;;  %669 = vst [vmem:[#allocation1] ss:$4 sm:$0xff] %v475_v32  ;;  %236 = vmatmul.f32.vlgmr.msra.gmra.mxu0 %v1263_v35  ;;  %v194_v18 = vld [vmem:[%s2172_s1 + $0x570] sm:$0xff]  ;;  %v131_v19 = vld [vmem:[%s2172_s1 + $0x378] sm:$0xff] }
  0x3c   :  { %306 = vmatpush.msrb.mxu0 %v121_v22  ;;  %324 = vmatpush.msrb.mxu1 %v193_v23  ;;  %v75_v20 = vld [vmem:[%s2172_s1 + $0x1b8] sm:$0xff]  ;;  %v190_v22 = vld [vmem:[%s2172_s1 + $0x550] sm:$0xff] }
  0x3d   :  { %346 = vmatpush.msrb.mxu2 %v58_v24  ;;  %372 = vmatpush.msrb.mxu3 %v98_v57  ;;  %v127_v23 = vld [vmem:[%s2172_s1 + $0x358] sm:$0xff]  ;;  %v170_v45 = vld [vmem:[%s2172_s1 + $0x4b0] sm:$0xff] }
  0x3e   :  { %307 = vmatpush.msrb.mxu0 %v117_v26  ;;  %325 = vmatpush.msrb.mxu1 %v189_v27  ;;  %v71_v24 = vld [vmem:[%s2172_s1 + $0x198] sm:$0xff]  ;;  %v186_v26 = vld [vmem:[%s2172_s1 + $0x530] sm:$0xff] }
  0x3f   :  { %347 = vmatpush.msrb.mxu2 %v54_v28  ;;  %256 = vmatmul.f32.vlgmr.msra.gmra.mxu1 %v1265_v36  ;;  %v123_v27 = vld [vmem:[%s2172_s1 + $0x338] sm:$0xff]  ;;  %v166_v49 = vld [vmem:[%s2172_s1 + $0x490] sm:$0xff] }
  0x40   :  { %308 = vmatpush.msrb.mxu0 %v113_v30  ;;  %326 = vmatpush.msrb.mxu1 %v185_v31  ;;  %v67_v28 = vld [vmem:[%s2172_s1 + $0x178] sm:$0xff]  ;;  %v182_v30 = vld [vmem:[%s2172_s1 + $0x510] sm:$0xff] }
  0x41   :  { %348 = vmatpush.msrb.mxu2 %v50_v33  ;;  %296 = vmatmul.f32.vlgmr.msra.gmra.mxu3 %v1263_v35  ;;  %v119_v31 = vld [vmem:[%s2172_s1 + $0x318] sm:$0xff]  ;;  %v162_v53 = vld [vmem:[%s2172_s1 + $0x470] sm:$0xff] }
  0x42   :  { %309 = vmatpush.msrb.mxu0 %v109_v38  ;;  %327 = vmatpush.msrb.mxu1 %v181_v39  ;;  %v63_v32 = vld [vmem:[%s2172_s1 + $0x158] sm:$0xff]  ;;  %v158_v57 = vld [vmem:[%s2172_s1 + $0x450] sm:$0xff] }
  0x43   :  { %349 = vmatpush.msrb.mxu2 %v46_v40  ;;  %373 = vmatpush.msrb.mxu3 %v94_v61  ;;  %v187_v33 = vld [vmem:[%s2172_s1 + $0x538] sm:$0xff]  ;;  %v154_v61 = vld [vmem:[%s2172_s1 + $0x430] sm:$0xff] }
  0x44   :  { %310 = vmatpush.msrb.mxu0 %v105_v42  ;;  %328 = vmatpush.msrb.mxu1 %v177_v43  ;;  %v115_v38 = vld [vmem:[%s2172_s1 + $0x2f8] sm:$0xff] }
  0x45   :  { %350 = vmatpush.msrb.mxu2 %v42_v44  ;;  %374 = vmatpush.msrb.mxu3 %v90_v1  ;;  %v59_v39 = vld [vmem:[%s2172_s1 + $0x138] sm:$0xff]  ;;  %v150_v1 = vld [vmem:[%s2172_s1 + $0x410] sm:$0xff] }
  0x46   :  { %311 = vmatpush.msrb.mxu0 %v101_v46  ;;  %329 = vmatpush.msrb.mxu1 %v173_v47  ;;  %v183_v40 = vld [vmem:[%s2172_s1 + $0x518] sm:$0xff] }
  0x47   :  { %351 = vmatpush.msrb.mxu2 %v38_v48  ;;  %375 = vmatpush.msrb.mxu3 %v86_v5  ;;  %v111_v42 = vld [vmem:[%s2172_s1 + $0x2d8] sm:$0xff]  ;;  %v536_v5 = vld [vmem:[%s2175_s3 + $0x1e0] sm:$0xff] }
  0x48   :  { %312 = vmatpush.msrb.mxu0 %v97_v50  ;;  %330 = vmatpush.msrb.mxu1 %v169_v51  ;;  %v55_v43 = vld [vmem:[%s2172_s1 + $0x118] sm:$0xff] }
  0x49   :  { %352 = vmatpush.msrb.mxu2 %v34_v52  ;;  %440 = vmatpush.msra.mxu3 %v211_v8  ;;  %v179_v44 = vld [vmem:[%s2172_s1 + $0x4f8] sm:$0xff] }
  0x4a   :  { %331 = vmatpush.msrb.mxu1 %v165_v54  ;;  %313 = vmatpush.msrb.mxu0 %v93_v55  ;;  %v107_v46 = vld [vmem:[%s2172_s1 + $0x2b8] sm:$0xff] }
  0x4b   :  { %353 = vmatpush.msrb.mxu2 %v30_v56  ;;  %441 = vmatpush.msra.mxu3 %v207_v13  ;;  %v51_v47 = vld [vmem:[%s2172_s1 + $0xf8] sm:$0xff]  ;;  %v600_v13 = vld [vmem:[%s2175_s3 + $0x3e0] sm:$0xff] }
  0x4c   :  { %314 = vmatpush.msrb.mxu0 %v89_v58  ;;  %332 = vmatpush.msrb.mxu1 %v161_v59  ;;  %v175_v48 = vld [vmem:[%s2172_s1 + $0x4d8] sm:$0xff] }
  0x4d   :  { %354 = vmatpush.msrb.mxu2 %v26_v60  ;;  %442 = vmatpush.msra.mxu3 %v203_v17  ;;  %v103_v50 = vld [vmem:[%s2172_s1 + $0x298] sm:$0xff]  ;;  %v596_v17 = vld [vmem:[%s2175_s3 + $0x3c0] sm:$0xff] }
  0x4e   :  { %315 = vmatpush.msrb.mxu0 %v85_v62  ;;  %333 = vmatpush.msrb.mxu1 %v157_v63  ;;  %v47_v51 = vld [vmem:[%s2172_s1 + $0xd8] sm:$0xff] }
  0x4f   :  { %355 = vmatpush.msrb.mxu2 %v22_v0  ;;  %316 = vmatmul.f32.vlgmr.msrb.gmra.mxu0 %v1265_v36  ;;  %v171_v52 = vld [vmem:[%s2172_s1 + $0x4b8] sm:$0xff] }
  0x50   :  { %276 = vmatmul.f32.vlgmr.msra.gmra.mxu2 %v1267_v37  ;;  %380 = vmatpush.msra.mxu0 %v210_v2  ;;  %v43_v54 = vld [vmem:[%s2172_s1 + $0xb8] sm:$0xff] }
  0x51   :  { %420 = vmatpush.msra.mxu2 %v147_v3  ;;  %334 = vmatpush.msrb.mxu1 %v153_v4  ;;  %v99_v55 = vld [vmem:[%s2172_s1 + $0x278] sm:$0xff] }
  0x52   :  { %381 = vmatpush.msra.mxu0 %v206_v7  ;;  %443 = vmatpush.msra.mxu3 %v199_v21  ;;  %v167_v56 = vld [vmem:[%s2172_s1 + $0x498] sm:$0xff]  ;;  %v592_v21 = vld [vmem:[%s2175_s3 + $0x3a0] sm:$0xff] }
  0x53   :  { %421 = vmatpush.msra.mxu2 %v143_v6  ;;  %335 = vmatpush.msrb.mxu1 %v149_v9  ;;  %v39_v58 = vld [vmem:[%s2172_s1 + $0x98] sm:$0xff]  ;;  %v664_v6 = vld [vmem:[%s2175_s3 + $0x5e0] sm:$0xff] }
  0x54   :  { %336 = vmatmul.f32.vlgmr.msrb.gmra.mxu1 %v1267_v37  ;;  %382 = vmatpush.msra.mxu0 %v202_v11  ;;  %v95_v59 = vld [vmem:[%s2172_s1 + $0x258] sm:$0xff]  ;;  %v532_v9 = vld [vmem:[%s2175_s3 + $0x1c0] sm:$0xff]  ;;  %v537_v11 = vld [vmem:[%s2175_s3 + $0x1e8] sm:$0xff] }
  0x55   :  { %422 = vmatpush.msra.mxu2 %v139_v10  ;;  %400 = vmatpush.msra.mxu1 %v83_v12  ;;  %v163_v60 = vld [vmem:[%s2172_s1 + $0x478] sm:$0xff]  ;;  %v660_v10 = vld [vmem:[%s2175_s3 + $0x5c0] sm:$0xff] }
  0x56   :  { %383 = vmatpush.msra.mxu0 %v198_v14  ;;  %444 = vmatpush.msra.mxu3 %v195_v25  ;;  %v35_v62 = vld [vmem:[%s2172_s1 + $0x78] sm:$0xff]  ;;  %v656_v14 = vld [vmem:[%s2175_s3 + $0x5a0] sm:$0xff] }
  0x57   :  { %423 = vmatpush.msra.mxu2 %v135_v15  ;;  %401 = vmatpush.msra.mxu1 %v79_v16  ;;  %v91_v63 = vld [vmem:[%s2172_s1 + $0x238] sm:$0xff]  ;;  %v533_v15 = vld [vmem:[%s2175_s3 + $0x1c8] sm:$0xff]  ;;  %v524_v16 = vld [vmem:[%s2175_s3 + $0x180] sm:$0xff] }
  0x58   :  { %384 = vmatpush.msra.mxu0 %v194_v18  ;;  %445 = vmatpush.msra.mxu3 %v191_v29  ;;  %v159_v0 = vld [vmem:[%s2172_s1 + $0x458] sm:$0xff]  ;;  %v652_v18 = vld [vmem:[%s2175_s3 + $0x580] sm:$0xff]  ;;  %v517_v29 = vld [vmem:[%s2175_s3 + $0x148] sm:$0xff] }
  0x59   :  { %424 = vmatpush.msra.mxu2 %v131_v19  ;;  %402 = vmatpush.msra.mxu1 %v75_v20  ;;  %v31_v2 = vld [vmem:[%s2172_s1 + $0x58] sm:$0xff]  ;;  %v529_v19 = vld [vmem:[%s2175_s3 + $0x1a8] sm:$0xff]  ;;  %v520_v20 = vld [vmem:[%s2175_s3 + $0x160] sm:$0xff] }
  0x5a   :  { %385 = vmatpush.msra.mxu0 %v190_v22  ;;  %446 = vmatpush.msra.mxu3 %v187_v33  ;;  %v87_v3 = vld [vmem:[%s2172_s1 + $0x218] sm:$0xff]  ;;  %v648_v22 = vld [vmem:[%s2175_s3 + $0x560] sm:$0xff]  ;;  %v513_v33 = vld [vmem:[%s2175_s3 + $0x128] sm:$0xff] }
  0x5b   :  { %425 = vmatpush.msra.mxu2 %v127_v23  ;;  %403 = vmatpush.msra.mxu1 %v71_v24  ;;  %v155_v4 = vld [vmem:[%s2172_s1 + $0x438] sm:$0xff]  ;;  %v525_v23 = vld [vmem:[%s2175_s3 + $0x188] sm:$0xff]  ;;  %v588_v24 = vld [vmem:[%s2175_s3 + $0x380] sm:$0xff] }
  0x5c   :  { %386 = vmatpush.msra.mxu0 %v186_v26  ;;  %447 = vmatpush.msra.mxu3 %v183_v40  ;;  %v27_v7 = vld [vmem:[%s2172_s1 + $0x38] sm:$0xff]  ;;  %v644_v25 = vld [vmem:[%s2175_s3 + $0x540] sm:$0xff]  ;;  %v521_v26 = vld [vmem:[%s2175_s3 + $0x168] sm:$0xff] }
  0x5d   :  { %426 = vmatpush.msra.mxu2 %v123_v27  ;;  %404 = vmatpush.msra.mxu1 %v67_v28  ;;  %v151_v8 = vld [vmem:[%s2172_s1 + $0x418] sm:$0xff]  ;;  %v584_v27 = vld [vmem:[%s2175_s3 + $0x360] sm:$0xff]  ;;  %v509_v40 = vld [vmem:[%s2175_s3 + $0x108] sm:$0xff] }
  0x5e   :  { %387 = vmatpush.msra.mxu0 %v182_v30  ;;  %448 = vmatpush.msra.mxu3 %v179_v44  ;;  %v23_v12 = vld [vmem:[%s2172_s1 + $0x18] sm:$0xff]  ;;  %v640_v28 = vld [vmem:[%s2175_s3 + $0x520] sm:$0xff]  ;;  %v505_v44 = vld [vmem:[%s2175_s3 + $0xe8] sm:$0xff] }
  0x5f   :  { %427 = vmatpush.msra.mxu2 %v119_v31  ;;  %405 = vmatpush.msra.mxu1 %v63_v32  ;;  %v508_v30 = vld [vmem:[%s2175_s3 + $0x100] sm:$0xff] }
  0x60   :  { %388 = vmatpush.msra.mxu0 %v178_v34  ;;  %449 = vmatpush.msra.mxu3 %v175_v48  ;;  %v580_v31 = vld [vmem:[%s2175_s3 + $0x340] sm:$0xff]  ;;  %v501_v48 = vld [vmem:[%s2175_s3 + $0xc8] sm:$0xff] }
  0x61   :  { %428 = vmatpush.msra.mxu2 %v115_v38  ;;  %406 = vmatpush.msra.mxu1 %v59_v39  ;;  %v636_v32 = vld [vmem:[%s2175_s3 + $0x500] sm:$0xff] }
  0x62   :  { %389 = vmatpush.msra.mxu0 %v174_v41  ;;  %450 = vmatpush.msra.mxu3 %v171_v52  ;;  %v504_v34 = vld [vmem:[%s2175_s3 + $0xe0] sm:$0xff]  ;;  %v497_v52 = vld [vmem:[%s2175_s3 + $0xa8] sm:$0xff] }
  0x63   :  { %429 = vmatpush.msra.mxu2 %v111_v42  ;;  %407 = vmatpush.msra.mxu1 %v55_v43  ;;  %v576_v38 = vld [vmem:[%s2175_s3 + $0x320] sm:$0xff] }
  0x64   :  { %390 = vmatpush.msra.mxu0 %v170_v45  ;;  %356 = vmatmul.f32.vlgmr.msrb.gmra.mxu2 %v1263_v35  ;;  %v632_v39 = vld [vmem:[%s2175_s3 + $0x4e0] sm:$0xff] }
  0x65   :  { %430 = vmatpush.msra.mxu2 %v107_v46  ;;  %408 = vmatpush.msra.mxu1 %v51_v47  ;;  %v500_v41 = vld [vmem:[%s2175_s3 + $0xc0] sm:$0xff] }
  0x66   :  { %391 = vmatpush.msra.mxu0 %v166_v49  ;;  %451 = vmatpush.msra.mxu3 %v167_v56  ;;  %v572_v42 = vld [vmem:[%s2175_s3 + $0x300] sm:$0xff]  ;;  %v493_v56 = vld [vmem:[%s2175_s3 + $0x88] sm:$0xff] }
  0x67   :  { %431 = vmatpush.msra.mxu2 %v103_v50  ;;  %409 = vmatpush.msra.mxu1 %v47_v51  ;;  %v628_v43 = vld [vmem:[%s2175_s3 + $0x4c0] sm:$0xff] }
  0x68   :  { %392 = vmatpush.msra.mxu0 %v162_v53  ;;  %376 = vmatmul.f32.vlgmr.msrb.gmra.mxu3 %v1265_v36  ;;  %v496_v45 = vld [vmem:[%s2175_s3 + $0xa0] sm:$0xff] }
  0x69   :  { %410 = vmatpush.msra.mxu1 %v43_v54  ;;  %432 = vmatpush.msra.mxu2 %v99_v55  ;;  %v568_v46 = vld [vmem:[%s2175_s3 + $0x2e0] sm:$0xff] }
  0x6a   :  { %393 = vmatpush.msra.mxu0 %v158_v57  ;;  %452 = vmatpush.msra.mxu3 %v163_v60  ;;  %v624_v47 = vld [vmem:[%s2175_s3 + $0x4a0] sm:$0xff]  ;;  %v489_v60 = vld [vmem:[%s2175_s3 + $0x68] sm:$0xff] }
  0x6b   :  { %411 = vmatpush.msra.mxu1 %v39_v58  ;;  %433 = vmatpush.msra.mxu2 %v95_v59  ;;  %v492_v49 = vld [vmem:[%s2175_s3 + $0x80] sm:$0xff] }
  0x6c   :  { %394 = vmatpush.msra.mxu0 %v154_v61  ;;  %453 = vmatpush.msra.mxu3 %v159_v0  ;;  %v564_v50 = vld [vmem:[%s2175_s3 + $0x2c0] sm:$0xff]  ;;  %v485_v0 = vld [vmem:[%s2175_s3 + $0x48] sm:$0xff] }
  0x6d   :  { %412 = vmatpush.msra.mxu1 %v35_v62  ;;  %434 = vmatpush.msra.mxu2 %v91_v63  ;;  %v620_v51 = vld [vmem:[%s2175_s3 + $0x480] sm:$0xff] }
  0x6e   :  { %395 = vmatpush.msra.mxu0 %v150_v1  ;;  %454 = vmatpush.msra.mxu3 %v155_v4  ;;  %v488_v53 = vld [vmem:[%s2175_s3 + $0x60] sm:$0xff]  ;;  %v481_v4 = vld [vmem:[%s2175_s3 + $0x28] sm:$0xff] }
  0x6f   :  { %413 = vmatpush.msra.mxu1 %v31_v2  ;;  %435 = vmatpush.msra.mxu2 %v87_v3  ;;  %v560_v54 = vld [vmem:[%s2175_s3 + $0x2a0] sm:$0xff] }
  0x70   :  { %436 = vmatmul.f32.vlgmr.msra.gmra.mxu2 %v1265_v36  ;;  %676 = vmatpush.msrb.mxu0 %v536_v5  ;;  %v528_v36 = vld [vmem:[%s2175_s3 + $0x1a0] sm:$0xff]  ;;  %v601_v5 = vld [vmem:[%s2175_s3 + $0x3e8] sm:$0xff] }
  0x71   :  { %716 = vmatpush.msrb.mxu2 %v664_v6  ;;  %414 = vmatpush.msra.mxu1 %v27_v7  ;;  %v616_v55 = vld [vmem:[%s2175_s3 + $0x460] sm:$0xff]  ;;  %v538_v6 = vld [vmem:[%s2175_s3 + $0x1f0] sm:$0xff] }
  0x72   :  { %455 = vmatpush.msra.mxu3 %v151_v8  ;;  %677 = vmatpush.msrb.mxu0 %v532_v9  ;;  %v484_v57 = vld [vmem:[%s2175_s3 + $0x40] sm:$0xff]  ;;  %v477_v8 = vld [vmem:[%s2175_s3 + $0x8] sm:$0xff] }
  0x73   :  { %456 = vmatmul.f32.vlgmr.msra.gmra.mxu3 %v1267_v37  ;;  %717 = vmatpush.msrb.mxu2 %v660_v10  ;;  %v556_v58 = vld [vmem:[%s2175_s3 + $0x280] sm:$0xff]  ;;  %v597_v9 = vld [vmem:[%s2175_s3 + $0x3c8] sm:$0xff]  ;;  %v534_v10 = vld [vmem:[%s2175_s3 + $0x1d0] sm:$0xff] }
  0x74   :  { %736 = vmatpush.msrb.mxu3 %v537_v11  ;;  %415 = vmatpush.msra.mxu1 %v23_v12  ;;  %v612_v59 = vld [vmem:[%s2175_s3 + $0x440] sm:$0xff]  ;;  %v602_v11 = vld [vmem:[%s2175_s3 + $0x3f0] sm:$0xff] }
  0x75   :  { %678 = vmatpush.msrb.mxu0 %v528_v36  ;;  %718 = vmatpush.msrb.mxu2 %v656_v14  ;;  %v480_v61 = vld [vmem:[%s2175_s3 + $0x20] sm:$0xff]  ;;  %v593_v36 = vld [vmem:[%s2175_s3 + $0x3a8] sm:$0xff]  ;;  %v530_v14 = vld [vmem:[%s2175_s3 + $0x1b0] sm:$0xff] }
  0x76   :  { %696 = vmatpush.msrb.mxu1 %v600_v13  ;;  %737 = vmatpush.msrb.mxu3 %v533_v15  ;;  %v552_v62 = vld [vmem:[%s2175_s3 + $0x260] sm:$0xff]  ;;  %v665_v13 = vld [vmem:[%s2175_s3 + $0x5e8] sm:$0xff]  ;;  %v598_v15 = vld [vmem:[%s2175_s3 + $0x3d0] sm:$0xff] }
  0x77   :  { %416 = vmatmul.f32.vlgmr.msra.gmra.mxu1 %v1263_v35  ;;  %679 = vmatpush.msrb.mxu0 %v524_v16  ;;  %v516_v35 = vld [vmem:[%s2175_s3 + $0x140] sm:$0xff]  ;;  %v589_v16 = vld [vmem:[%s2175_s3 + $0x388] sm:$0xff] }
  0x78   :  { %697 = vmatpush.msrb.mxu1 %v596_v17  ;;  %719 = vmatpush.msrb.mxu2 %v652_v18  ;;  %v608_v63 = vld [vmem:[%s2175_s3 + $0x420] sm:$0xff]  ;;  %v661_v17 = vld [vmem:[%s2175_s3 + $0x5c8] sm:$0xff]  ;;  %v526_v18 = vld [vmem:[%s2175_s3 + $0x190] sm:$0xff] }
  0x79   :  { %738 = vmatpush.msrb.mxu3 %v529_v19  ;;  %396 = vmatmul.f32.vlgmr.msra.gmra.mxu0 %v1267_v37  ;;  %v512_v37 = vld [vmem:[%s2175_s3 + $0x120] sm:$0xff]  ;;  %v594_v19 = vld [vmem:[%s2175_s3 + $0x3b0] sm:$0xff] }
  0x7a   :  { %680 = vmatpush.msrb.mxu0 %v520_v20  ;;  %698 = vmatpush.msrb.mxu1 %v592_v21  ;;  %v476_v1 = vld [vmem:[%s2175_s3] sm:$0xff]  ;;  %v585_v20 = vld [vmem:[%s2175_s3 + $0x368] sm:$0xff] }
  0x7b   :  { %720 = vmatpush.msrb.mxu2 %v648_v22  ;;  %739 = vmatpush.msrb.mxu3 %v525_v23  ;;  %v548_v2 = vld [vmem:[%s2175_s3 + $0x240] sm:$0xff]  ;;  %v657_v21 = vld [vmem:[%s2175_s3 + $0x5a8] sm:$0xff]  ;;  %v522_v22 = vld [vmem:[%s2175_s3 + $0x170] sm:$0xff] }
  0x7c   :  { %681 = vmatpush.msrb.mxu0 %v516_v35  ;;  %699 = vmatpush.msrb.mxu1 %v588_v24  ;;  %v604_v3 = vld [vmem:[%s2175_s3 + $0x400] sm:$0xff]  ;;  %v590_v23 = vld [vmem:[%s2175_s3 + $0x390] sm:$0xff]  ;;  %v581_v35 = vld [vmem:[%s2175_s3 + $0x348] sm:$0xff] }
  0x7d   :  { %721 = vmatpush.msrb.mxu2 %v644_v25  ;;  %740 = vmatpush.msrb.mxu3 %v521_v26  ;;  %v544_v7 = vld [vmem:[%s2175_s3 + $0x220] sm:$0xff]  ;;  %v653_v24 = vld [vmem:[%s2175_s3 + $0x588] sm:$0xff]  ;;  %v518_v25 = vld [vmem:[%s2175_s3 + $0x150] sm:$0xff] }
  0x7e   :  { %682 = vmatpush.msrb.mxu0 %v512_v37  ;;  %700 = vmatpush.msrb.mxu1 %v584_v27  ;;  %v540_v12 = vld [vmem:[%s2175_s3 + $0x200] sm:$0xff]  ;;  %v586_v26 = vld [vmem:[%s2175_s3 + $0x370] sm:$0xff]  ;;  %v577_v37 = vld [vmem:[%s2175_s3 + $0x328] sm:$0xff] }
  0x7f   :  { %722 = vmatpush.msrb.mxu2 %v640_v28  ;;  %741 = vmatpush.msrb.mxu3 %v517_v29  ;;  %v649_v27 = vld [vmem:[%s2175_s3 + $0x568] sm:$0xff]  ;;  %v514_v28 = vld [vmem:[%s2175_s3 + $0x130] sm:$0xff] }
  0x80   :  { %683 = vmatpush.msrb.mxu0 %v508_v30  ;;  %701 = vmatpush.msrb.mxu1 %v580_v31  ;;  %v582_v29 = vld [vmem:[%s2175_s3 + $0x350] sm:$0xff]  ;;  %v573_v30 = vld [vmem:[%s2175_s3 + $0x308] sm:$0xff] }
  0x81   :  { %723 = vmatpush.msrb.mxu2 %v636_v32  ;;  %742 = vmatpush.msrb.mxu3 %v513_v33  ;;  %v645_v31 = vld [vmem:[%s2175_s3 + $0x548] sm:$0xff]  ;;  %v510_v32 = vld [vmem:[%s2175_s3 + $0x110] sm:$0xff] }
  0x82   :  { %684 = vmatpush.msrb.mxu0 %v504_v34  ;;  %702 = vmatpush.msrb.mxu1 %v576_v38  ;;  %v578_v33 = vld [vmem:[%s2175_s3 + $0x330] sm:$0xff]  ;;  %v569_v34 = vld [vmem:[%s2175_s3 + $0x2e8] sm:$0xff] }
  0x83   :  { %724 = vmatpush.msrb.mxu2 %v632_v39  ;;  %743 = vmatpush.msrb.mxu3 %v509_v40  ;;  %v641_v38 = vld [vmem:[%s2175_s3 + $0x528] sm:$0xff]  ;;  %v506_v39 = vld [vmem:[%s2175_s3 + $0xf0] sm:$0xff] }
  0x84   :  { %685 = vmatpush.msrb.mxu0 %v500_v41  ;;  %703 = vmatpush.msrb.mxu1 %v572_v42  ;;  %v574_v40 = vld [vmem:[%s2175_s3 + $0x310] sm:$0xff]  ;;  %v565_v41 = vld [vmem:[%s2175_s3 + $0x2c8] sm:$0xff] }
  0x85   :  { %725 = vmatpush.msrb.mxu2 %v628_v43  ;;  %744 = vmatpush.msrb.mxu3 %v505_v44  ;;  %v637_v42 = vld [vmem:[%s2175_s3 + $0x508] sm:$0xff]  ;;  %v502_v43 = vld [vmem:[%s2175_s3 + $0xd0] sm:$0xff] }
  0x86   :  { %686 = vmatpush.msrb.mxu0 %v496_v45  ;;  %704 = vmatpush.msrb.mxu1 %v568_v46  ;;  %v570_v44 = vld [vmem:[%s2175_s3 + $0x2f0] sm:$0xff]  ;;  %v561_v45 = vld [vmem:[%s2175_s3 + $0x2a8] sm:$0xff] }
  0x87   :  { %726 = vmatpush.msrb.mxu2 %v624_v47  ;;  %745 = vmatpush.msrb.mxu3 %v501_v48  ;;  %v633_v46 = vld [vmem:[%s2175_s3 + $0x4e8] sm:$0xff]  ;;  %v498_v47 = vld [vmem:[%s2175_s3 + $0xb0] sm:$0xff] }
  0x88   :  { %687 = vmatpush.msrb.mxu0 %v492_v49  ;;  %705 = vmatpush.msrb.mxu1 %v564_v50  ;;  %v566_v48 = vld [vmem:[%s2175_s3 + $0x2d0] sm:$0xff]  ;;  %v557_v49 = vld [vmem:[%s2175_s3 + $0x288] sm:$0xff] }
  0x89   :  { %727 = vmatpush.msrb.mxu2 %v620_v51  ;;  %746 = vmatpush.msrb.mxu3 %v497_v52  ;;  %v629_v50 = vld [vmem:[%s2175_s3 + $0x4c8] sm:$0xff]  ;;  %v494_v51 = vld [vmem:[%s2175_s3 + $0x90] sm:$0xff] }
  0x8a   :  { %688 = vmatpush.msrb.mxu0 %v488_v53  ;;  %706 = vmatpush.msrb.mxu1 %v560_v54  ;;  %v562_v52 = vld [vmem:[%s2175_s3 + $0x2b0] sm:$0xff]  ;;  %v553_v53 = vld [vmem:[%s2175_s3 + $0x268] sm:$0xff] }
  0x8b   :  { %728 = vmatpush.msrb.mxu2 %v616_v55  ;;  %747 = vmatpush.msrb.mxu3 %v493_v56  ;;  %v625_v54 = vld [vmem:[%s2175_s3 + $0x4a8] sm:$0xff]  ;;  %v490_v55 = vld [vmem:[%s2175_s3 + $0x70] sm:$0xff] }
  0x8c   :  { %689 = vmatpush.msrb.mxu0 %v484_v57  ;;  %707 = vmatpush.msrb.mxu1 %v556_v58  ;;  %v558_v56 = vld [vmem:[%s2175_s3 + $0x290] sm:$0xff]  ;;  %v1905_v57 = vld.sshfl [vmem:[#allocation1] sm:$0xff pattern:$0x73625140]  ;;  %v621_v58 = vld [vmem:[%s2175_s3 + $0x488] sm:$0xff] }
  0x8d   :  { %729 = vmatpush.msrb.mxu2 %v612_v59  ;;  %748 = vmatpush.msrb.mxu3 %v489_v60  ;;  %v549_v59 = vld [vmem:[%s2175_s3 + $0x248] sm:$0xff]  ;;  %v486_v60 = vld [vmem:[%s2175_s3 + $0x50] sm:$0xff] }
  0x8e   :  { %690 = vmatpush.msrb.mxu0 %v480_v61  ;;  %708 = vmatpush.msrb.mxu1 %v552_v62  ;;  %v554_v61 = vld [vmem:[%s2175_s3 + $0x270] sm:$0xff]  ;;  %v1919_v62 = vld.sshfl [vmem:[#allocation1 + $0x8] sm:$0xff pattern:$0x73625140] }
  0x8f   :  { %730 = vmatpush.msrb.mxu2 %v608_v63  ;;  %749 = vmatpush.msrb.mxu3 %v485_v0  ;;  %v545_v63 = vld [vmem:[%s2175_s3 + $0x228] sm:$0xff] }
  0x90   :  { %691 = vmatpush.msrb.mxu0 %v476_v1  ;;  %709 = vmatpush.msrb.mxu1 %v548_v2  ;;  %v617_v0 = vld [vmem:[%s2175_s3 + $0x468] sm:$0xff]  ;;  %v482_v1 = vld [vmem:[%s2175_s3 + $0x30] sm:$0xff] }
  0x91   :  { %731 = vmatpush.msrb.mxu2 %v604_v3  ;;  %750 = vmatpush.msrb.mxu3 %v481_v4  ;;  %v550_v2 = vld [vmem:[%s2175_s3 + $0x250] sm:$0xff]  ;;  %v541_v3 = vld [vmem:[%s2175_s3 + $0x208] sm:$0xff] }
  0x92   :  { %756 = vmatpush.msra.mxu0 %v601_v5  ;;  %710 = vmatpush.msrb.mxu1 %v544_v7  ;;  %v613_v4 = vld [vmem:[%s2175_s3 + $0x448] sm:$0xff]  ;;  %v478_v5 = vld [vmem:[%s2175_s3 + $0x10] sm:$0xff] }
  0x93   :  { %796 = vmatpush.msra.mxu2 %v538_v6  ;;  %751 = vmatpush.msrb.mxu3 %v477_v8  ;;  %v546_v6 = vld [vmem:[%s2175_s3 + $0x230] sm:$0xff] }
  0x94   :  { %757 = vmatpush.msra.mxu0 %v597_v9  ;;  %711 = vmatpush.msrb.mxu1 %v540_v12  ;;  %v1948_v7 = vld.sshfl [vmem:[#allocation1 + $0x10] sm:$0xff pattern:$0x73625140]  ;;  %v603_v9 = vld [vmem:[%s2175_s3 + $0x3f8] sm:$0xff] }
  0x95   :  { %797 = vmatpush.msra.mxu2 %v534_v10  ;;  %816 = vmatpush.msra.mxu3 %v602_v11  ;;  %v666_v8 = vld [vmem:[%s2175_s3 + $0x5f0] sm:$0xff]  ;;  %v609_v10 = vld [vmem:[%s2175_s3 + $0x428] sm:$0xff]  ;;  %v599_v12 = vld [vmem:[%s2175_s3 + $0x3d8] sm:$0xff] }
  0x96   :  { %758 = vmatpush.msra.mxu0 %v593_v36  ;;  %776 = vmatpush.msra.mxu1 %v665_v13  ;;  %v542_v11 = vld [vmem:[%s2175_s3 + $0x210] sm:$0xff]  ;;  %v667_v13 = vld [vmem:[%s2175_s3 + $0x5f8] sm:$0xff] }
  0x97   :  { %798 = vmatpush.msra.mxu2 %v530_v14  ;;  %817 = vmatpush.msra.mxu3 %v598_v15  ;;  %v662_v36 = vld [vmem:[%s2175_s3 + $0x5d0] sm:$0xff]  ;;  %v605_v14 = vld [vmem:[%s2175_s3 + $0x408] sm:$0xff]  ;;  %v595_v15 = vld [vmem:[%s2175_s3 + $0x3b8] sm:$0xff] }
  0x98   :  { %759 = vmatpush.msra.mxu0 %v589_v16  ;;  %777 = vmatpush.msra.mxu1 %v661_v17  ;;  %v658_v16 = vld [vmem:[%s2175_s3 + $0x5b0] sm:$0xff]  ;;  %v663_v17 = vld [vmem:[%s2175_s3 + $0x5d8] sm:$0xff] }
  0x99   :  { %799 = vmatpush.msra.mxu2 %v526_v18  ;;  %818 = vmatpush.msra.mxu3 %v594_v19  ;;  %v539_v18 = vld [vmem:[%s2175_s3 + $0x1f8] sm:$0xff]  ;;  %v654_v19 = vld [vmem:[%s2175_s3 + $0x590] sm:$0xff] }
  0x9a   :  { %760 = vmatpush.msra.mxu0 %v585_v20  ;;  %778 = vmatpush.msra.mxu1 %v657_v21  ;;  %v591_v20 = vld [vmem:[%s2175_s3 + $0x398] sm:$0xff] }
  0x9b   :  { %800 = vmatpush.msra.mxu2 %v522_v22  ;;  %819 = vmatpush.msra.mxu3 %v590_v23  ;;  %v659_v21 = vld [vmem:[%s2175_s3 + $0x5b8] sm:$0xff]  ;;  %v650_v23 = vld [vmem:[%s2175_s3 + $0x570] sm:$0xff] }
  0x9c   :  { %761 = vmatpush.msra.mxu0 %v581_v35  ;;  %779 = vmatpush.msra.mxu1 %v653_v24  ;;  %v535_v22 = vld [vmem:[%s2175_s3 + $0x1d8] sm:$0xff] }
  0x9d   :  { %801 = vmatpush.msra.mxu2 %v518_v25  ;;  %820 = vmatpush.msra.mxu3 %v586_v26  ;;  %v587_v35 = vld [vmem:[%s2175_s3 + $0x378] sm:$0xff]  ;;  %v646_v26 = vld [vmem:[%s2175_s3 + $0x550] sm:$0xff] }
  0x9e   :  { %762 = vmatpush.msra.mxu0 %v577_v37  ;;  %780 = vmatpush.msra.mxu1 %v649_v27  ;;  %v655_v24 = vld [vmem:[%s2175_s3 + $0x598] sm:$0xff] }
  0x9f   :  { %802 = vmatpush.msra.mxu2 %v514_v28  ;;  %821 = vmatpush.msra.mxu3 %v582_v29  ;;  %v531_v25 = vld [vmem:[%s2175_s3 + $0x1b8] sm:$0xff]  ;;  %v642_v29 = vld [vmem:[%s2175_s3 + $0x530] sm:$0xff] }
  0xa0   :  { %763 = vmatpush.msra.mxu0 %v573_v30  ;;  %781 = vmatpush.msra.mxu1 %v645_v31  ;;  %v583_v37 = vld [vmem:[%s2175_s3 + $0x358] sm:$0xff] }
  0xa1   :  { %803 = vmatpush.msra.mxu2 %v510_v32  ;;  %822 = vmatpush.msra.mxu3 %v578_v33  ;;  %v651_v27 = vld [vmem:[%s2175_s3 + $0x578] sm:$0xff]  ;;  %v638_v33 = vld [vmem:[%s2175_s3 + $0x510] sm:$0xff] }
  0xa2   :  { %764 = vmatpush.msra.mxu0 %v569_v34  ;;  %782 = vmatpush.msra.mxu1 %v641_v38  ;;  %v527_v28 = vld [vmem:[%s2175_s3 + $0x198] sm:$0xff] }
  0xa3   :  { %804 = vmatpush.msra.mxu2 %v506_v39  ;;  %823 = vmatpush.msra.mxu3 %v574_v40  ;;  %v579_v30 = vld [vmem:[%s2175_s3 + $0x338] sm:$0xff]  ;;  %v634_v40 = vld [vmem:[%s2175_s3 + $0x4f0] sm:$0xff] }
  0xa4   :  { %765 = vmatpush.msra.mxu0 %v565_v41  ;;  %783 = vmatpush.msra.mxu1 %v637_v42  ;;  %v647_v31 = vld [vmem:[%s2175_s3 + $0x558] sm:$0xff] }
  0xa5   :  { %805 = vmatpush.msra.mxu2 %v502_v43  ;;  %824 = vmatpush.msra.mxu3 %v570_v44  ;;  %v523_v32 = vld [vmem:[%s2175_s3 + $0x178] sm:$0xff]  ;;  %v630_v44 = vld [vmem:[%s2175_s3 + $0x4d0] sm:$0xff] }
  0xa6   :  { %766 = vmatpush.msra.mxu0 %v561_v45  ;;  %784 = vmatpush.msra.mxu1 %v633_v46  ;;  %v575_v34 = vld [vmem:[%s2175_s3 + $0x318] sm:$0xff] }
  0xa7   :  { %806 = vmatpush.msra.mxu2 %v498_v47  ;;  %825 = vmatpush.msra.mxu3 %v566_v48  ;;  %v643_v38 = vld [vmem:[%s2175_s3 + $0x538] sm:$0xff]  ;;  %v626_v48 = vld [vmem:[%s2175_s3 + $0x4b0] sm:$0xff] }
  0xa8   :  { %767 = vmatpush.msra.mxu0 %v557_v49  ;;  %785 = vmatpush.msra.mxu1 %v629_v50  ;;  %v519_v39 = vld [vmem:[%s2175_s3 + $0x158] sm:$0xff] }
  0xa9   :  { %807 = vmatpush.msra.mxu2 %v494_v51  ;;  %826 = vmatpush.msra.mxu3 %v562_v52  ;;  %v571_v41 = vld [vmem:[%s2175_s3 + $0x2f8] sm:$0xff]  ;;  %v622_v52 = vld [vmem:[%s2175_s3 + $0x490] sm:$0xff] }
  0xaa   :  { %768 = vmatpush.msra.mxu0 %v553_v53  ;;  %786 = vmatpush.msra.mxu1 %v625_v54  ;;  %v639_v42 = vld [vmem:[%s2175_s3 + $0x518] sm:$0xff] }
  0xab   :  { %808 = vmatpush.msra.mxu2 %v490_v55  ;;  %827 = vmatpush.msra.mxu3 %v558_v56  ;;  %v515_v43 = vld [vmem:[%s2175_s3 + $0x138] sm:$0xff]  ;;  %v618_v55 = vld [vmem:[%s2175_s3 + $0x470] sm:$0xff] }
  0xac   :  { %692 = vmatmul.f32.vlgmr.msrb.gmra.mxu0 %v1905_v57  ;;  %787 = vmatpush.msra.mxu1 %v621_v58  ;;  %v567_v45 = vld [vmem:[%s2175_s3 + $0x2d8] sm:$0xff] }
  0xad   :  { %769 = vmatpush.msra.mxu0 %v549_v59  ;;  %809 = vmatpush.msra.mxu2 %v486_v60  ;;  %v635_v46 = vld [vmem:[%s2175_s3 + $0x4f8] sm:$0xff]  ;;  %v614_v60 = vld [vmem:[%s2175_s3 + $0x450] sm:$0xff] }
  0xae   :  { %828 = vmatpush.msra.mxu3 %v554_v61  ;;  %712 = vmatmul.f32.vlgmr.msrb.gmra.mxu1 %v1919_v62  ;;  %v511_v47 = vld [vmem:[%s2175_s3 + $0x118] sm:$0xff] }
  0xaf   :  { %752 = vmatmul.f32.vlgmr.msrb.gmra.mxu3 %v1905_v57  ;;  %770 = vmatpush.msra.mxu0 %v545_v63  ;;  %v563_v49 = vld [vmem:[%s2175_s3 + $0x2b8] sm:$0xff] }
  0xb0   :  { %788 = vmatpush.msra.mxu1 %v617_v0  ;;  %810 = vmatpush.msra.mxu2 %v482_v1  ;;  %v631_v50 = vld [vmem:[%s2175_s3 + $0x4d8] sm:$0xff]  ;;  %v610_v1 = vld [vmem:[%s2175_s3 + $0x430] sm:$0xff] }
  0xb1   :  { %829 = vmatpush.msra.mxu3 %v550_v2  ;;  %771 = vmatpush.msra.mxu0 %v541_v3  ;;  %v507_v51 = vld [vmem:[%s2175_s3 + $0xf8] sm:$0xff] }
  0xb2   :  { %789 = vmatpush.msra.mxu1 %v613_v4  ;;  %811 = vmatpush.msra.mxu2 %v478_v5  ;;  %v559_v53 = vld [vmem:[%s2175_s3 + $0x298] sm:$0xff]  ;;  %v606_v5 = vld [vmem:[%s2175_s3 + $0x410] sm:$0xff] }
  0xb3   :  { %830 = vmatpush.msra.mxu3 %v546_v6  ;;  %732 = vmatmul.f32.vlgmr.msrb.gmra.mxu2 %v1948_v7  ;;  %v627_v54 = vld [vmem:[%s2175_s3 + $0x4b8] sm:$0xff] }
  0xb4   :  { %836 = vmatpush.msrb.mxu0 %v666_v8  ;;  %876 = vmatpush.msrb.mxu2 %v603_v9  ;;  %v503_v56 = vld [vmem:[%s2175_s3 + $0xd8] sm:$0xff] }
  0xb5   :  { %790 = vmatpush.msra.mxu1 %v609_v10  ;;  %831 = vmatpush.msra.mxu3 %v542_v11  ;;  %v555_v58 = vld [vmem:[%s2175_s3 + $0x278] sm:$0xff] }
  0xb6   :  { %772 = vmatmul.f32.vlgmr.msra.gmra.mxu0 %v1919_v62  ;;  %877 = vmatpush.msrb.mxu2 %v599_v12  ;;  %v623_v59 = vld [vmem:[%s2175_s3 + $0x498] sm:$0xff] }
  0xb7   :  { %837 = vmatpush.msrb.mxu0 %v662_v36  ;;  %896 = vmatpush.msrb.mxu3 %v667_v13  ;;  %v499_v61 = vld [vmem:[%s2175_s3 + $0xb8] sm:$0xff] }
  0xb8   :  { %791 = vmatpush.msra.mxu1 %v605_v14  ;;  %878 = vmatpush.msrb.mxu2 %v595_v15  ;;  %v551_v63 = vld [vmem:[%s2175_s3 + $0x258] sm:$0xff]  ;;  %v237_v13 = vpop.f32.mrf.mxu0 }
  0xb9   :  { %792 = vmatmul.f32.vlgmr.msra.gmra.mxu1 %v1948_v7  ;;  %838 = vmatpush.msrb.mxu0 %v658_v16  ;;  %v619_v0 = vld [vmem:[%s2175_s3 + $0x478] sm:$0xff] }
  0xba   :  { %897 = vmatpush.msrb.mxu3 %v663_v17  ;;  %856 = vmatpush.msrb.mxu1 %v539_v18  ;;  %v495_v2 = vld [vmem:[%s2175_s3 + $0x98] sm:$0xff] }
  0xbb   :  { %839 = vmatpush.msrb.mxu0 %v654_v19  ;;  %879 = vmatpush.msrb.mxu2 %v591_v20  ;;  %v547_v3 = vld [vmem:[%s2175_s3 + $0x238] sm:$0xff] }
  0xbc   :  { %898 = vmatpush.msrb.mxu3 %v659_v21  ;;  %857 = vmatpush.msrb.mxu1 %v535_v22  ;;  %v615_v4 = vld [vmem:[%s2175_s3 + $0x458] sm:$0xff]  ;;  %v257_v14 = vpop.f32.mrf.mxu1 }
  0xbd   :  { %840 = vmatpush.msrb.mxu0 %v650_v23  ;;  %880 = vmatpush.msrb.mxu2 %v587_v35  ;;  %v491_v6 = vld [vmem:[%s2175_s3 + $0x78] sm:$0xff]  ;;  %v258_v21 = vadd.f32 %v257_v14, %v237_v13 }
  0xbe   :  { %899 = vmatpush.msrb.mxu3 %v655_v24  ;;  %858 = vmatpush.msrb.mxu1 %v531_v25  ;;  %v543_v8 = vld [vmem:[%s2175_s3 + $0x218] sm:$0xff] }
  0xbf   :  { %841 = vmatpush.msrb.mxu0 %v646_v26  ;;  %881 = vmatpush.msrb.mxu2 %v583_v37  ;;  %v611_v9 = vld [vmem:[%s2175_s3 + $0x438] sm:$0xff] }
  0xc0   :  { %900 = vmatpush.msrb.mxu3 %v651_v27  ;;  %859 = vmatpush.msrb.mxu1 %v527_v28  ;;  %v487_v10 = vld [vmem:[%s2175_s3 + $0x58] sm:$0xff] }
  0xc1   :  { %842 = vmatpush.msrb.mxu0 %v642_v29  ;;  %882 = vmatpush.msrb.mxu2 %v579_v30  ;;  %v607_v11 = vld [vmem:[%s2175_s3 + $0x418] sm:$0xff] }
  0xc2   :  { %901 = vmatpush.msrb.mxu3 %v647_v31  ;;  %860 = vmatpush.msrb.mxu1 %v523_v32  ;;  %v483_v12 = vld [vmem:[%s2175_s3 + $0x38] sm:$0xff] }
  0xc3   :  { %843 = vmatpush.msrb.mxu0 %v638_v33  ;;  %883 = vmatpush.msrb.mxu2 %v575_v34  ;;  %v479_v36 = vld [vmem:[%s2175_s3 + $0x18] sm:$0xff] }
  0xc4   :  { %902 = vmatpush.msrb.mxu3 %v643_v38  ;;  %861 = vmatpush.msrb.mxu1 %v519_v39  ;;  %v297_v16 = vpop.f32.mrf.mxu3 }
  0xc5   :  { %844 = vmatpush.msrb.mxu0 %v634_v40  ;;  %884 = vmatpush.msrb.mxu2 %v571_v41 }
  0xc6   :  { %903 = vmatpush.msrb.mxu3 %v639_v42  ;;  %862 = vmatpush.msrb.mxu1 %v515_v43 }
  0xc7   :  { %845 = vmatpush.msrb.mxu0 %v630_v44  ;;  %885 = vmatpush.msrb.mxu2 %v567_v45 }
  0xc8   :  { %904 = vmatpush.msrb.mxu3 %v635_v46  ;;  %863 = vmatpush.msrb.mxu1 %v511_v47 }
  0xc9   :  { %846 = vmatpush.msrb.mxu0 %v626_v48  ;;  %886 = vmatpush.msrb.mxu2 %v563_v49 }
  0xca   :  { %905 = vmatpush.msrb.mxu3 %v631_v50  ;;  %864 = vmatpush.msrb.mxu1 %v507_v51 }
  0xcb   :  { %847 = vmatpush.msrb.mxu0 %v622_v52  ;;  %887 = vmatpush.msrb.mxu2 %v559_v53 }
  0xcc   :  { %906 = vmatpush.msrb.mxu3 %v627_v54  ;;  %812 = vmatmul.f32.vlgmr.msra.gmra.mxu2 %v1905_v57  ;;  %v317_v18 = vpop.f32.mrf.mxu0 }
  0xcd   :  { %832 = vmatmul.f32.vlgmr.msra.gmra.mxu3 %v1919_v62  ;;  %848 = vmatpush.msrb.mxu0 %v618_v55  ;;  %v318_v20 = vadd.f32 %v317_v18, %v297_v16 }
  0xce   :  { %865 = vmatpush.msrb.mxu1 %v503_v56  ;;  %888 = vmatpush.msrb.mxu2 %v555_v58 }
  0xcf   :  { %907 = vmatpush.msrb.mxu3 %v623_v59  ;;  %849 = vmatpush.msrb.mxu0 %v614_v60 }
  0xd0   :  { %866 = vmatpush.msrb.mxu1 %v499_v61  ;;  %889 = vmatpush.msrb.mxu2 %v551_v63 }
  0xd1   :  { %908 = vmatpush.msrb.mxu3 %v619_v0  ;;  %850 = vmatpush.msrb.mxu0 %v610_v1  ;;  %v337_v19 = vpop.f32.mrf.mxu1 }
  0xd2   :  { %867 = vmatpush.msrb.mxu1 %v495_v2  ;;  %890 = vmatpush.msrb.mxu2 %v547_v3  ;;  %v338_v22 = vadd.f32 %v337_v19, %v318_v20 }
  0xd3   :  { %909 = vmatpush.msrb.mxu3 %v615_v4  ;;  %851 = vmatpush.msrb.mxu0 %v606_v5  ;;  %v277_v15 = vpop.f32.mrf.mxu2 }
  0xd4   :  { %868 = vmatpush.msrb.mxu1 %v491_v6  ;;  %891 = vmatpush.msrb.mxu2 %v543_v8  ;;  %v464_v37 = vrot.slane %v338_v22, 6  ;;  %v278_v27 = vadd.f32 %v277_v15, %v258_v21 }
  0xd5   :  { %910 = vmatpush.msrb.mxu3 %v611_v9  ;;  %852 = vmatmul.f32.vlgmr.msrb.gmra.mxu0 %v1948_v7 }
  0xd6   :  { %892 = vmatmul.f32.vlgmr.msrb.gmra.mxu2 %v1919_v62  ;;  %869 = vmatpush.msrb.mxu1 %v487_v10  ;;  %v468_v31 = vsel %vm467_vm0, %v278_v27, %v464_v37 }
  0xd7   :  { %911 = vmatpush.msrb.mxu3 %v607_v11 }
  0xd8   :  { %912 = vmatmul.f32.vlgmr.msrb.gmra.mxu3 %v1948_v7  ;;  %870 = vmatpush.msrb.mxu1 %v483_v12 }
  0xda   :  { %871 = vmatpush.msrb.mxu1 %v479_v36 }
  0xdb   :  { %872 = vmatmul.f32.vlgmr.msrb.gmra.mxu1 %v1905_v57 }
  0xe7   :  { %v357_v17 = vpop.f32.mrf.mxu2 }
  0xeb   :  { %v377_v62 = vpop.f32.mrf.mxu3 }
  0xec   :  { %v378_v23 = vadd.f32 %v377_v62, %v357_v17 }
  0xf3   :  { %v437_v35 = vpop.f32.mrf.mxu2 }
  0xf4   :  { %v417_v24 = vpop.f32.mrf.mxu1 }
  0xf5   :  { %v438_v25 = vadd.f32 %v437_v35, %v417_v24 }
  0xf6   :  { %v397_v7 = vpop.f32.mrf.mxu0  ;;  %v457_v26 = vpop.f32.mrf.mxu3 }
  0xf7   :  { %v398_v57 = vadd.f32 %v397_v7, %v378_v23  ;;  %v458_v28 = vadd.f32 %v457_v26, %v438_v25 }
  0xf9   :  { %v465_v29 = vrot.slane %v398_v57, 4  ;;  %v466_v30 = vrot.slane %v458_v28, 2 }
  0xfb   :  { %v470_v32 = vsel %vm469_vm1, %v465_v29, %v466_v30 }
  0xfc   :  { %v472_v33 = vsel %vm471_vm2, %v468_v31, %v470_v32 }
  0xfd   :  { %474 = vst [vmem:[%s2176_s4] sm:$0xff] %v472_v33 }
 0x129   :  { %v693_v34 = vpop.f32.mrf.mxu0 }
 0x12b   :  { %v713_v38 = vpop.f32.mrf.mxu1 }
 0x12c   :  { %v714_v48 = vadd.f32 %v713_v38, %v693_v34 }
 0x132   :  { %v753_v40 = vpop.f32.mrf.mxu3 }
 0x133   :  { %v773_v41 = vpop.f32.mrf.mxu0 }
 0x134   :  { %v774_v45 = vadd.f32 %v773_v41, %v753_v40 }
 0x136   :  { %v733_v39 = vpop.f32.mrf.mxu2  ;;  %v793_v43 = vpop.f32.mrf.mxu1 }
 0x137   :  { %v794_v49 = vadd.f32 %v793_v43, %v774_v45  ;;  %v734_v56 = vadd.f32 %v733_v39, %v714_v48 }
 0x139   :  { %v920_v55 = vrot.slane %v794_v49, 6 }
 0x13b   :  { %v923_v61 = vsel %vm467_vm0, %v734_v56, %v920_v55 }
 0x14f   :  { %v813_v42 = vpop.f32.mrf.mxu2 }
 0x150   :  { %v833_v44 = vpop.f32.mrf.mxu3 }
 0x151   :  { %v834_v46 = vadd.f32 %v833_v44, %v813_v42 }
 0x152   :  { %v853_v47 = vpop.f32.mrf.mxu0 }
 0x153   :  { %v854_v52 = vadd.f32 %v853_v47, %v834_v46 }
 0x155   :  { %v921_v59 = vrot.slane %v854_v52, 4 }
 0x158   :  { %v873_v50 = vpop.f32.mrf.mxu1 }
 0x159   :  { %v893_v51 = vpop.f32.mrf.mxu2 }
 0x15a   :  { %v894_v53 = vadd.f32 %v893_v51, %v873_v50 }
 0x15b   :  { %v913_v54 = vpop.f32.mrf.mxu3 }
 0x15c   :  { %v914_v58 = vadd.f32 %v913_v54, %v894_v53 }
 0x15e   :  { %v922_v60 = vrot.slane %v914_v58, 2 }
 0x160   :  { %v924_v63 = vsel %vm469_vm1, %v921_v59, %v922_v60 }
 0x161   :  { %v925_v0 = vsel %vm471_vm2, %v923_v61, %v924_v63 }
 0x162   :  { %927 = vst [vmem:[%s2177_s5] sm:$0xff] %v925_v0 }

// kernel: fno_forward.18
= control target key start
LH: loop header
LB: loop body
LE: loop exit
PB: predicated region body
PF: predicated region fallthrough
CT: control target
= control target key end

     0   :  { %vm95_vm0 = vcmask 261120   ;;  %vm573_vm1 = vcmask 523264   ;;  %s2288_s2 = inlined_call_operand.vmem [shape: f32[32,64], index: 2, kind: input, shape index: {}]   ;;  %s2289_s0 = inlined_call_operand.vmem [shape: f32[512,32], index: 0, kind: input, shape index: {}]   ;;  %s2290_s3 = inlined_call_operand.vmem [shape: f32[1,64], index: 3, kind: input, shape index: {}]   ;;  %s2291_s4 = inlined_call_operand.vmem [shape: f32[64,32], index: 4, kind: input, shape index: {}]   ;;  %s2292_s5 = inlined_call_operand.vmem [shape: f32[1,32], index: 5, kind: input, shape index: {}]   ;;  %s2293_s1 = inlined_call_operand.vmem [shape: f32[512,32], index: 1, kind: input, shape index: {}]   ;;  %s2294_s6 = inlined_call_operand.vmem [shape: f32[512,32], index: 6, kind: output, shape index: {}]  }
   0x1   :  { %v90_v0 = vld [vmem:[%s2288_s2 + $0x18] sm:$0xff]  ;;  %v89_v1 = vld [vmem:[%s2288_s2 + $0x10] sm:$0xff]  ;;  %v88_v2 = vld [vmem:[%s2288_s2 + $0x8] sm:$0xff] }
   0x2   :  { %300 = vmatpush.msra.mxu0 %v90_v0  ;;  %1299 = vmatpush.msra.mxu3 %v90_v0  ;;  %v87_v3 = vld [vmem:[%s2288_s2] sm:$0xff]  ;;  %v24_v5 = vld [vmem:[%s2289_s0 + $0x8] sm:$0xff]  ;;  %v25_v6 = vld [vmem:[%s2289_s0 + $0x10] sm:$0xff] }
   0x3   :  { %v23_v4 = vld [vmem:[%s2289_s0] sm:$0xff]  ;;  %v26_v7 = vld [vmem:[%s2289_s0 + $0x18] sm:$0xff]  ;;  %v28_v9 = vld [vmem:[%s2289_s0 + $0x28] sm:$0xff] }
   0x4   :  { %301 = vmatpush.msra.mxu0 %v89_v1  ;;  %1300 = vmatpush.msra.mxu3 %v89_v1  ;;  %v27_v8 = vld [vmem:[%s2289_s0 + $0x20] sm:$0xff]  ;;  %v29_v10 = vld [vmem:[%s2289_s0 + $0x30] sm:$0xff]  ;;  %v30_v11 = vld [vmem:[%s2289_s0 + $0x38] sm:$0xff] }
   0x5   :  { %v31_v12 = vld [vmem:[%s2289_s0 + $0x40] sm:$0xff]  ;;  %v32_v13 = vld [vmem:[%s2289_s0 + $0x48] sm:$0xff]  ;;  %v33_v14 = vld [vmem:[%s2289_s0 + $0x50] sm:$0xff] }
   0x6   :  { %302 = vmatpush.msra.mxu0 %v88_v2  ;;  %1301 = vmatpush.msra.mxu3 %v88_v2  ;;  %v568_v15 = vld [vmem:[%s2291_s4 + $0x38] sm:$0xff]  ;;  %v567_v16 = vld [vmem:[%s2291_s4 + $0x30] sm:$0xff]  ;;  %v566_v17 = vld [vmem:[%s2291_s4 + $0x28] sm:$0xff] }
   0x7   :  { %774 = vmatpush.msra.mxu1 %v568_v15  ;;  %1303 = vmatpush.msra.mxu2 %v568_v15  ;;  %v34_v18 = vld [vmem:[%s2289_s0 + $0x58] sm:$0xff]  ;;  %v565_v19 = vld [vmem:[%s2291_s4 + $0x20] sm:$0xff]  ;;  %v563_v21 = vld [vmem:[%s2291_s4 + $0x10] sm:$0xff] }
   0x8   :  { %303 = vmatpush.msra.mxu0 %v87_v3  ;;  %1302 = vmatpush.msra.mxu3 %v87_v3  ;;  %v564_v20 = vld [vmem:[%s2291_s4 + $0x18] sm:$0xff]  ;;  %v35_v22 = vld [vmem:[%s2289_s0 + $0x60] sm:$0xff]  ;;  %v562_v23 = vld [vmem:[%s2291_s4 + $0x8] sm:$0xff] }
   0x9   :  { %1171 = vmatmul.msk.f32.vlgmr.msra.gmra.mxu0 %vm95_vm0, %v23_v4  ;;  %775 = vmatpush.msra.mxu1 %v567_v16  ;;  %v561_v24 = vld [vmem:[%s2291_s4] sm:$0xff]  ;;  %v36_v25 = vld [vmem:[%s2289_s0 + $0x68] sm:$0xff]  ;;  %v37_v26 = vld [vmem:[%s2289_s0 + $0x70] sm:$0xff] }
   0xa   :  { %1304 = vmatpush.msra.mxu2 %v567_v16  ;;  %v38_v27 = vld [vmem:[%s2289_s0 + $0x78] sm:$0xff]  ;;  %v1453_v28 = vld [vmem:[%s2290_s3] ss:$0 sm:$0xff]  ;;  %v40_v34 = vld [vmem:[%s2289_s0 + $0x88] sm:$0xff] }
   0xb   :  { %776 = vmatpush.msra.mxu1 %v566_v17  ;;  %v39_v30 = vld [vmem:[%s2289_s0 + $0x80] sm:$0xff]  ;;  %v41_v38 = vld [vmem:[%s2289_s0 + $0x90] sm:$0xff]  ;;  %v42_v42 = vld [vmem:[%s2289_s0 + $0x98] sm:$0xff] }
   0xc   :  { %1305 = vmatpush.msra.mxu2 %v566_v17  ;;  %v43_v46 = vld [vmem:[%s2289_s0 + $0xa0] sm:$0xff]  ;;  %v44_v50 = vld [vmem:[%s2289_s0 + $0xa8] sm:$0xff]  ;;  %v45_v54 = vld [vmem:[%s2289_s0 + $0xb0] sm:$0xff] }
   0xd   :  { %777 = vmatpush.msra.mxu1 %v565_v19  ;;  %v46_v58 = vld [vmem:[%s2289_s0 + $0xb8] sm:$0xff]  ;;  %v47_v62 = vld [vmem:[%s2289_s0 + $0xc0] sm:$0xff]  ;;  %v48_v2 = vld [vmem:[%s2289_s0 + $0xc8] sm:$0xff] }
   0xe   :  { %1306 = vmatpush.msra.mxu2 %v565_v19  ;;  %v56_v17 = vld [vmem:[%s2289_s0 + $0x108] sm:$0xff] }
   0xf   :  { %778 = vmatpush.msra.mxu1 %v564_v20  ;;  %1204 = vmatmul.msk.f32.vlgmr.msra.gmra.mxu3 %vm95_vm0, %v56_v17  ;;  %v52_v19 = vld [vmem:[%s2289_s0 + $0xe8] sm:$0xff] }
  0x10   :  { %1307 = vmatpush.msra.mxu2 %v564_v20 }
  0x11   :  { %1172 = vmatmul.msk.f32.gmra.mxu0 %vm95_vm0, %v24_v5  ;;  %779 = vmatpush.msra.mxu1 %v563_v21 }
  0x12   :  { %1308 = vmatpush.msra.mxu2 %v563_v21 }
  0x13   :  { %780 = vmatpush.msra.mxu1 %v562_v23 }
  0x14   :  { %1309 = vmatpush.msra.mxu2 %v562_v23 }
  0x15   :  { %781 = vmatpush.msra.mxu1 %v561_v24 }
  0x16   :  { %1310 = vmatpush.msra.mxu2 %v561_v24  ;;  %v53_v24 = vld [vmem:[%s2289_s0 + $0xf0] sm:$0xff] }
  0x19   :  { %1173 = vmatmul.msk.f32.gmra.mxu0 %vm95_vm0, %v25_v6  ;;  %v49_v6 = vld [vmem:[%s2289_s0 + $0xd0] sm:$0xff] }
  0x21   :  { %1174 = vmatmul.msk.f32.gmra.mxu0 %vm95_vm0, %v26_v7 }
  0x29   :  { %1175 = vmatmul.msk.f32.gmra.mxu0 %vm95_vm0, %v27_v8 }
  0x31   :  { %1176 = vmatmul.msk.f32.gmra.mxu0 %vm95_vm0, %v28_v9 }
  0x39   :  { %1177 = vmatmul.msk.f32.gmra.mxu0 %vm95_vm0, %v29_v10  ;;  %v50_v10 = vld [vmem:[%s2289_s0 + $0xd8] sm:$0xff] }
  0x41   :  { %1178 = vmatmul.msk.f32.gmra.mxu0 %vm95_vm0, %v30_v11 }
  0x49   :  { %1179 = vmatmul.msk.f32.gmra.mxu0 %vm95_vm0, %v31_v12 }
  0x51   :  { %1180 = vmatmul.msk.f32.gmra.mxu0 %vm95_vm0, %v32_v13 }
  0x59   :  { %1181 = vmatmul.msk.f32.gmra.mxu0 %vm95_vm0, %v33_v14  ;;  %v51_v14 = vld [vmem:[%s2289_s0 + $0xe0] sm:$0xff] }
  0x61   :  { %1182 = vmatmul.msk.f32.gmra.mxu0 %vm95_vm0, %v34_v18 }
  0x69   :  { %1183 = vmatmul.msk.f32.gmra.mxu0 %vm95_vm0, %v35_v22  ;;  %v57_v22 = vld [vmem:[%s2289_s0 + $0x110] sm:$0xff] }
  0x6a   :  { %1205 = vmatmul.msk.f32.gmra.mxu3 %vm95_vm0, %v57_v22 }
  0x71   :  { %1184 = vmatmul.msk.f32.gmra.mxu0 %vm95_vm0, %v36_v25 }
  0x79   :  { %1185 = vmatmul.msk.f32.gmra.mxu0 %vm95_vm0, %v37_v26 }
  0x81   :  { %1186 = vmatmul.msk.f32.gmra.mxu0 %vm95_vm0, %v38_v27  ;;  %v58_v27 = vld [vmem:[%s2289_s0 + $0x118] sm:$0xff] }
  0x82   :  { %1206 = vmatmul.msk.f32.gmra.mxu3 %vm95_vm0, %v58_v27 }
  0x86   :  { %v305_v29 = vpop.f32.mrf.mxu0 }
  0x87   :  { %v306_v31 = vadd.f32 %v1453_v28, %v305_v29 }
  0x89   :  { %v497_v32 = vmax.f32 %v306_v31, 0.0  ;;  %1187 = vmatmul.msk.f32.gmra.mxu0 %vm95_vm0, %v39_v30  ;;  %v54_v30 = vld [vmem:[%s2289_s0 + $0xf8] sm:$0xff] }
  0x8b   :  { %1235 = vmatmul.msk.f32.vlgmr.msra.gmra.mxu1 %vm573_vm1, %v497_v32 }
  0x8e   :  { %v308_v33 = vpop.f32.mrf.mxu0 }
  0x8f   :  { %v309_v35 = vadd.f32 %v1453_v28, %v308_v33  ;;  %v59_v33 = vld [vmem:[%s2289_s0 + $0x120] sm:$0xff] }
  0x90   :  { %1207 = vmatmul.msk.f32.gmra.mxu3 %vm95_vm0, %v59_v33 }
  0x91   :  { %v498_v36 = vmax.f32 %v309_v35, 0.0  ;;  %1188 = vmatmul.msk.f32.gmra.mxu0 %vm95_vm0, %v40_v34  ;;  %v1570_v34 = vld [vmem:[%s2292_s5] ss:$0 sm:$0xff] }
  0x93   :  { %1236 = vmatmul.msk.f32.gmra.mxu1 %vm573_vm1, %v498_v36  ;;  %v55_v36 = vld [vmem:[%s2289_s0 + $0x100] sm:$0xff] }
  0x96   :  { %v311_v37 = vpop.f32.mrf.mxu0 }
  0x97   :  { %v312_v39 = vadd.f32 %v1453_v28, %v311_v37 }
  0x99   :  { %v499_v40 = vmax.f32 %v312_v39, 0.0  ;;  %1189 = vmatmul.msk.f32.gmra.mxu0 %vm95_vm0, %v41_v38  ;;  %v975_v39 = vld [vmem:[%s2293_s1] sm:$0xff] }
  0x9b   :  { %1237 = vmatmul.msk.f32.gmra.mxu1 %vm573_vm1, %v499_v40 }
  0x9e   :  { %v314_v41 = vpop.f32.mrf.mxu0 }
  0x9f   :  { %v315_v43 = vadd.f32 %v1453_v28, %v314_v41 }
  0xa1   :  { %v500_v44 = vmax.f32 %v315_v43, 0.0  ;;  %1190 = vmatmul.msk.f32.gmra.mxu0 %vm95_vm0, %v42_v42  ;;  %v60_v42 = vld [vmem:[%s2289_s0 + $0x128] sm:$0xff] }
  0xa2   :  { %1208 = vmatmul.msk.f32.gmra.mxu3 %vm95_vm0, %v60_v42 }
  0xa3   :  { %1238 = vmatmul.msk.f32.gmra.mxu1 %vm573_vm1, %v500_v44 }
  0xa6   :  { %v317_v45 = vpop.f32.mrf.mxu0 }
  0xa7   :  { %v318_v47 = vadd.f32 %v1453_v28, %v317_v45 }
  0xa9   :  { %v501_v48 = vmax.f32 %v318_v47, 0.0  ;;  %1191 = vmatmul.msk.f32.gmra.mxu0 %vm95_vm0, %v43_v46  ;;  %v976_v47 = vld [vmem:[%s2293_s1 + $0x8] sm:$0xff] }
  0xab   :  { %1239 = vmatmul.msk.f32.gmra.mxu1 %vm573_vm1, %v501_v48 }
  0xae   :  { %v320_v49 = vpop.f32.mrf.mxu0 }
  0xaf   :  { %v321_v51 = vadd.f32 %v1453_v28, %v320_v49 }
  0xb1   :  { %v502_v52 = vmax.f32 %v321_v51, 0.0  ;;  %1192 = vmatmul.msk.f32.gmra.mxu0 %vm95_vm0, %v44_v50  ;;  %v61_v50 = vld [vmem:[%s2289_s0 + $0x130] sm:$0xff] }
  0xb2   :  { %1209 = vmatmul.msk.f32.gmra.mxu3 %vm95_vm0, %v61_v50 }
  0xb3   :  { %1240 = vmatmul.msk.f32.gmra.mxu1 %vm573_vm1, %v502_v52 }
  0xb6   :  { %v323_v53 = vpop.f32.mrf.mxu0 }
  0xb7   :  { %v324_v55 = vadd.f32 %v1453_v28, %v323_v53 }
  0xb9   :  { %v503_v56 = vmax.f32 %v324_v55, 0.0  ;;  %1193 = vmatmul.msk.f32.gmra.mxu0 %vm95_vm0, %v45_v54  ;;  %v977_v55 = vld [vmem:[%s2293_s1 + $0x10] sm:$0xff] }
  0xbb   :  { %1241 = vmatmul.msk.f32.gmra.mxu1 %vm573_vm1, %v503_v56 }
  0xbe   :  { %v326_v57 = vpop.f32.mrf.mxu0 }
  0xbf   :  { %v327_v59 = vadd.f32 %v1453_v28, %v326_v57 }
  0xc1   :  { %v504_v60 = vmax.f32 %v327_v59, 0.0  ;;  %1194 = vmatmul.msk.f32.gmra.mxu0 %vm95_vm0, %v46_v58  ;;  %v62_v58 = vld [vmem:[%s2289_s0 + $0x138] sm:$0xff] }
  0xc2   :  { %1210 = vmatmul.msk.f32.gmra.mxu3 %vm95_vm0, %v62_v58 }
  0xc3   :  { %1242 = vmatmul.msk.f32.gmra.mxu1 %vm573_vm1, %v504_v60 }
  0xc6   :  { %v329_v61 = vpop.f32.mrf.mxu0 }
  0xc7   :  { %v330_v63 = vadd.f32 %v1453_v28, %v329_v61 }
  0xc9   :  { %v505_v0 = vmax.f32 %v330_v63, 0.0  ;;  %1195 = vmatmul.msk.f32.gmra.mxu0 %vm95_vm0, %v47_v62  ;;  %v978_v63 = vld [vmem:[%s2293_s1 + $0x18] sm:$0xff] }
  0xcb   :  { %1243 = vmatmul.msk.f32.gmra.mxu1 %vm573_vm1, %v505_v0 }
  0xce   :  { %v332_v1 = vpop.f32.mrf.mxu0 }
  0xcf   :  { %v333_v3 = vadd.f32 %v1453_v28, %v332_v1 }
  0xd1   :  { %v506_v4 = vmax.f32 %v333_v3, 0.0  ;;  %1196 = vmatmul.msk.f32.gmra.mxu0 %vm95_vm0, %v48_v2  ;;  %v63_v2 = vld [vmem:[%s2289_s0 + $0x140] sm:$0xff] }
  0xd2   :  { %1211 = vmatmul.msk.f32.gmra.mxu3 %vm95_vm0, %v63_v2 }
  0xd3   :  { %1244 = vmatmul.msk.f32.gmra.mxu1 %vm573_vm1, %v506_v4 }
  0xd6   :  { %v335_v5 = vpop.f32.mrf.mxu0 }
  0xd7   :  { %v336_v7 = vadd.f32 %v1453_v28, %v335_v5 }
  0xd9   :  { %v507_v8 = vmax.f32 %v336_v7, 0.0  ;;  %1197 = vmatmul.msk.f32.gmra.mxu0 %vm95_vm0, %v49_v6  ;;  %v979_v7 = vld [vmem:[%s2293_s1 + $0x20] sm:$0xff] }
  0xdb   :  { %1245 = vmatmul.msk.f32.gmra.mxu1 %vm573_vm1, %v507_v8 }
  0xde   :  { %v338_v9 = vpop.f32.mrf.mxu0 }
  0xdf   :  { %v339_v11 = vadd.f32 %v1453_v28, %v338_v9 }
  0xe1   :  { %v508_v12 = vmax.f32 %v339_v11, 0.0  ;;  %1198 = vmatmul.msk.f32.gmra.mxu0 %vm95_vm0, %v50_v10  ;;  %v64_v10 = vld [vmem:[%s2289_s0 + $0x148] sm:$0xff] }
  0xe2   :  { %1212 = vmatmul.msk.f32.gmra.mxu3 %vm95_vm0, %v64_v10 }
  0xe3   :  { %1246 = vmatmul.msk.f32.gmra.mxu1 %vm573_vm1, %v508_v12 }
  0xe6   :  { %v341_v13 = vpop.f32.mrf.mxu0 }
  0xe7   :  { %v342_v15 = vadd.f32 %v1453_v28, %v341_v13 }
  0xe9   :  { %v509_v16 = vmax.f32 %v342_v15, 0.0  ;;  %1199 = vmatmul.msk.f32.gmra.mxu0 %vm95_vm0, %v51_v14  ;;  %v980_v15 = vld [vmem:[%s2293_s1 + $0x28] sm:$0xff] }
  0xeb   :  { %1247 = vmatmul.msk.f32.gmra.mxu1 %vm573_vm1, %v509_v16 }
  0xee   :  { %v344_v18 = vpop.f32.mrf.mxu0 }
  0xef   :  { %v345_v20 = vadd.f32 %v1453_v28, %v344_v18  ;;  %v65_v18 = vld [vmem:[%s2289_s0 + $0x150] sm:$0xff] }
  0xf0   :  { %1213 = vmatmul.msk.f32.gmra.mxu3 %vm95_vm0, %v65_v18  ;;  %v988_v18 = vld [vmem:[%s2293_s1 + $0x68] sm:$0xff] }
  0xf1   :  { %v510_v21 = vmax.f32 %v345_v20, 0.0  ;;  %1200 = vmatmul.msk.f32.gmra.mxu0 %vm95_vm0, %v52_v19 }
  0xf3   :  { %1248 = vmatmul.msk.f32.gmra.mxu1 %vm573_vm1, %v510_v21 }
  0xf6   :  { %v347_v23 = vpop.f32.mrf.mxu0 }
  0xf7   :  { %v348_v25 = vadd.f32 %v1453_v28, %v347_v23  ;;  %v981_v23 = vld [vmem:[%s2293_s1 + $0x30] sm:$0xff] }
  0xf9   :  { %v511_v26 = vmax.f32 %v348_v25, 0.0  ;;  %1201 = vmatmul.msk.f32.gmra.mxu0 %vm95_vm0, %v53_v24 }
  0xfb   :  { %1249 = vmatmul.msk.f32.gmra.mxu1 %vm573_vm1, %v511_v26  ;;  %v66_v26 = vld [vmem:[%s2289_s0 + $0x158] sm:$0xff] }
  0xfc   :  { %1214 = vmatmul.msk.f32.gmra.mxu3 %vm95_vm0, %v66_v26 }
  0xfe   :  { %v350_v29 = vpop.f32.mrf.mxu0 }
  0xff   :  { %v351_v31 = vadd.f32 %v1453_v28, %v350_v29 }
 0x101   :  { %v512_v32 = vmax.f32 %v351_v31, 0.0  ;;  %1202 = vmatmul.msk.f32.gmra.mxu0 %vm95_vm0, %v54_v30 }
 0x103   :  { %1250 = vmatmul.msk.f32.gmra.mxu1 %vm573_vm1, %v512_v32  ;;  %v982_v32 = vld [vmem:[%s2293_s1 + $0x38] sm:$0xff] }
 0x106   :  { %v353_v35 = vpop.f32.mrf.mxu0 }
 0x107   :  { %v354_v37 = vadd.f32 %v1453_v28, %v353_v35 }
 0x108   :  { %v783_v38 = vpop.f32.mrf.mxu1 }
 0x109   :  { %v513_v40 = vmax.f32 %v354_v37, 0.0  ;;  %v784_v41 = vadd.f32 %v1570_v34, %v783_v38  ;;  %1203 = vmatmul.msk.f32.gmra.mxu0 %vm95_vm0, %v55_v36  ;;  %v67_v36 = vld [vmem:[%s2289_s0 + $0x160] sm:$0xff] }
 0x10a   :  { %1215 = vmatmul.msk.f32.gmra.mxu3 %vm95_vm0, %v67_v36 }
 0x10b   :  { %v1039_v43 = vadd.f32 %v975_v39, %v784_v41  ;;  %1251 = vmatmul.msk.f32.gmra.mxu1 %vm573_vm1, %v513_v40  ;;  %v983_v41 = vld [vmem:[%s2293_s1 + $0x40] sm:$0xff] }
 0x10d   :  { %1103 = vst.msk [vmem:[%s2294_s6] sm:$0xff] %vm95_vm0, %v1039_v43 }
 0x10e   :  { %v356_v44 = vpop.f32.mrf.mxu0 }
 0x10f   :  { %v357_v45 = vadd.f32 %v1453_v28, %v356_v44  ;;  %v68_v44 = vld [vmem:[%s2289_s0 + $0x168] sm:$0xff] }
 0x110   :  { %v786_v46 = vpop.f32.mrf.mxu1 }
 0x111   :  { %v514_v48 = vmax.f32 %v357_v45, 0.0  ;;  %v787_v49 = vadd.f32 %v1570_v34, %v786_v46 }
 0x112   :  { %1216 = vmatmul.msk.f32.gmra.mxu3 %vm95_vm0, %v68_v44 }
 0x113   :  { %v1040_v51 = vadd.f32 %v976_v47, %v787_v49  ;;  %1252 = vmatmul.msk.f32.gmra.mxu1 %vm573_vm1, %v514_v48  ;;  %v984_v49 = vld [vmem:[%s2293_s1 + $0x48] sm:$0xff] }
 0x115   :  { %1104 = vst.msk [vmem:[%s2294_s6 + $0x8] sm:$0xff] %vm95_vm0, %v1040_v51 }
 0x116   :  { %v359_v52 = vpop.f32.mrf.mxu0 }
 0x117   :  { %v360_v53 = vadd.f32 %v1453_v28, %v359_v52  ;;  %v69_v52 = vld [vmem:[%s2289_s0 + $0x170] sm:$0xff] }
 0x118   :  { %v789_v54 = vpop.f32.mrf.mxu1 }
 0x119   :  { %v515_v56 = vmax.f32 %v360_v53, 0.0  ;;  %v790_v57 = vadd.f32 %v1570_v34, %v789_v54 }
 0x11a   :  { %1217 = vmatmul.msk.f32.gmra.mxu3 %vm95_vm0, %v69_v52 }
 0x11b   :  { %v1041_v59 = vadd.f32 %v977_v55, %v790_v57  ;;  %1253 = vmatmul.msk.f32.gmra.mxu1 %vm573_vm1, %v515_v56  ;;  %v985_v57 = vld [vmem:[%s2293_s1 + $0x50] sm:$0xff] }
 0x11d   :  { %1105 = vst.msk [vmem:[%s2294_s6 + $0x10] sm:$0xff] %vm95_vm0, %v1041_v59 }
 0x11e   :  { %v362_v60 = vpop.f32.mrf.mxu0 }
 0x11f   :  { %v363_v61 = vadd.f32 %v1453_v28, %v362_v60  ;;  %v70_v60 = vld [vmem:[%s2289_s0 + $0x178] sm:$0xff] }
 0x120   :  { %v792_v62 = vpop.f32.mrf.mxu1 }
 0x121   :  { %v516_v0 = vmax.f32 %v363_v61, 0.0  ;;  %v793_v1 = vadd.f32 %v1570_v34, %v792_v62 }
 0x122   :  { %1218 = vmatmul.msk.f32.gmra.mxu3 %vm95_vm0, %v70_v60 }
 0x123   :  { %v1042_v3 = vadd.f32 %v978_v63, %v793_v1  ;;  %1254 = vmatmul.msk.f32.gmra.mxu1 %vm573_vm1, %v516_v0  ;;  %v986_v1 = vld [vmem:[%s2293_s1 + $0x58] sm:$0xff] }
 0x125   :  { %1106 = vst.msk [vmem:[%s2294_s6 + $0x18] sm:$0xff] %vm95_vm0, %v1042_v3 }
 0x126   :  { %v365_v4 = vpop.f32.mrf.mxu0 }
 0x127   :  { %v366_v5 = vadd.f32 %v1453_v28, %v365_v4  ;;  %v71_v4 = vld [vmem:[%s2289_s0 + $0x180] sm:$0xff] }
 0x128   :  { %v795_v6 = vpop.f32.mrf.mxu1 }
 0x129   :  { %v517_v8 = vmax.f32 %v366_v5, 0.0  ;;  %v796_v9 = vadd.f32 %v1570_v34, %v795_v6 }
 0x12a   :  { %1219 = vmatmul.msk.f32.gmra.mxu3 %vm95_vm0, %v71_v4 }
 0x12b   :  { %v1043_v11 = vadd.f32 %v979_v7, %v796_v9  ;;  %1255 = vmatmul.msk.f32.gmra.mxu1 %vm573_vm1, %v517_v8  ;;  %v987_v9 = vld [vmem:[%s2293_s1 + $0x60] sm:$0xff] }
 0x12d   :  { %1107 = vst.msk [vmem:[%s2294_s6 + $0x20] sm:$0xff] %vm95_vm0, %v1043_v11 }
 0x12e   :  { %v368_v12 = vpop.f32.mrf.mxu0 }
 0x12f   :  { %v369_v13 = vadd.f32 %v1453_v28, %v368_v12  ;;  %v72_v12 = vld [vmem:[%s2289_s0 + $0x188] sm:$0xff] }
 0x130   :  { %v798_v14 = vpop.f32.mrf.mxu1 }
 0x131   :  { %v518_v16 = vmax.f32 %v369_v13, 0.0  ;;  %v799_v17 = vadd.f32 %v1570_v34, %v798_v14 }
 0x132   :  { %1220 = vmatmul.msk.f32.gmra.mxu3 %vm95_vm0, %v72_v12 }
 0x133   :  { %v1044_v19 = vadd.f32 %v980_v15, %v799_v17  ;;  %1256 = vmatmul.msk.f32.gmra.mxu1 %vm573_vm1, %v518_v16  ;;  %v404_v15 = vpop.f32.mrf.mxu3 }
 0x134   :  { %v405_v52 = vadd.f32 %v1453_v28, %v404_v15 }
 0x135   :  { %1108 = vst.msk [vmem:[%s2294_s6 + $0x28] sm:$0xff] %vm95_vm0, %v1044_v19 }
 0x136   :  { %v371_v20 = vpop.f32.mrf.mxu0 }
 0x137   :  { %v372_v21 = vadd.f32 %v1453_v28, %v371_v20 }
 0x138   :  { %v801_v22 = vpop.f32.mrf.mxu1 }
 0x139   :  { %v519_v24 = vmax.f32 %v372_v21, 0.0  ;;  %v802_v25 = vadd.f32 %v1570_v34, %v801_v22  ;;  %v73_v21 = vld [vmem:[%s2289_s0 + $0x190] sm:$0xff] }
 0x13a   :  { %1221 = vmatmul.msk.f32.gmra.mxu3 %vm95_vm0, %v73_v21 }
 0x13b   :  { %v1045_v27 = vadd.f32 %v981_v23, %v802_v25  ;;  %1257 = vmatmul.msk.f32.gmra.mxu1 %vm573_vm1, %v519_v24  ;;  %v407_v24 = vpop.f32.mrf.mxu3 }
 0x13c   :  { %v408_v60 = vadd.f32 %v1453_v28, %v407_v24  ;;  %v996_v24 = vld [vmem:[%s2293_s1 + $0xa8] sm:$0xff] }
 0x13d   :  { %1109 = vst.msk [vmem:[%s2294_s6 + $0x30] sm:$0xff] %vm95_vm0, %v1045_v27  ;;  %v989_v27 = vld [vmem:[%s2293_s1 + $0x70] sm:$0xff] }
 0x13e   :  { %v374_v29 = vpop.f32.mrf.mxu0 }
 0x13f   :  { %v375_v30 = vadd.f32 %v1453_v28, %v374_v29 }
 0x140   :  { %v804_v31 = vpop.f32.mrf.mxu1 }
 0x141   :  { %v520_v33 = vmax.f32 %v375_v30, 0.0  ;;  %v805_v35 = vadd.f32 %v1570_v34, %v804_v31  ;;  %v74_v31 = vld [vmem:[%s2289_s0 + $0x198] sm:$0xff] }
 0x142   :  { %1222 = vmatmul.msk.f32.gmra.mxu3 %vm95_vm0, %v74_v31 }
 0x143   :  { %v1046_v37 = vadd.f32 %v982_v32, %v805_v35  ;;  %1258 = vmatmul.msk.f32.gmra.mxu1 %vm573_vm1, %v520_v33  ;;  %v410_v35 = vpop.f32.mrf.mxu3 }
 0x144   :  { %v411_v4 = vadd.f32 %v1453_v28, %v410_v35 }
 0x145   :  { %1110 = vst.msk [vmem:[%s2294_s6 + $0x38] sm:$0xff] %vm95_vm0, %v1046_v37 }
 0x146   :  { %v377_v38 = vpop.f32.mrf.mxu0 }
 0x147   :  { %v378_v39 = vadd.f32 %v1453_v28, %v377_v38  ;;  %v990_v38 = vld [vmem:[%s2293_s1 + $0x78] sm:$0xff] }
 0x148   :  { %v807_v40 = vpop.f32.mrf.mxu1 }
 0x149   :  { %v521_v42 = vmax.f32 %v378_v39, 0.0  ;;  %v808_v43 = vadd.f32 %v1570_v34, %v807_v40 }
 0x14b   :  { %v1047_v45 = vadd.f32 %v983_v41, %v808_v43  ;;  %1259 = vmatmul.msk.f32.gmra.mxu1 %vm573_vm1, %v521_v42  ;;  %v75_v41 = vld [vmem:[%s2289_s0 + $0x1a0] sm:$0xff]  ;;  %v413_v44 = vpop.f32.mrf.mxu3 }
 0x14c   :  { %1223 = vmatmul.msk.f32.gmra.mxu3 %vm95_vm0, %v75_v41  ;;  %v414_v12 = vadd.f32 %v1453_v28, %v413_v44  ;;  %v83_v44 = vld [vmem:[%s2289_s0 + $0x1e0] sm:$0xff] }
 0x14d   :  { %1111 = vst.msk [vmem:[%s2294_s6 + $0x40] sm:$0xff] %vm95_vm0, %v1047_v45 }
 0x14e   :  { %v380_v46 = vpop.f32.mrf.mxu0 }
 0x14f   :  { %v381_v47 = vadd.f32 %v1453_v28, %v380_v46 }
 0x150   :  { %v810_v48 = vpop.f32.mrf.mxu1 }
 0x151   :  { %v522_v50 = vmax.f32 %v381_v47, 0.0  ;;  %v811_v51 = vadd.f32 %v1570_v34, %v810_v48  ;;  %v991_v47 = vld [vmem:[%s2293_s1 + $0x80] sm:$0xff] }
 0x153   :  { %v1048_v53 = vadd.f32 %v984_v49, %v811_v51  ;;  %1260 = vmatmul.msk.f32.gmra.mxu1 %vm573_vm1, %v522_v50  ;;  %v76_v50 = vld [vmem:[%s2289_s0 + $0x1a8] sm:$0xff] }
 0x154   :  { %1224 = vmatmul.msk.f32.gmra.mxu3 %vm95_vm0, %v76_v50  ;;  %v999_v50 = vld [vmem:[%s2293_s1 + $0xc0] sm:$0xff] }
 0x155   :  { %1112 = vst.msk [vmem:[%s2294_s6 + $0x48] sm:$0xff] %vm95_vm0, %v1048_v53  ;;  %v416_v53 = vpop.f32.mrf.mxu3 }
 0x156   :  { %v383_v54 = vpop.f32.mrf.mxu0 }
 0x157   :  { %v384_v55 = vadd.f32 %v1453_v28, %v383_v54  ;;  %v530_v54 = vmax.f32 %v405_v52, 0.0  ;;  %v84_v52 = vld [vmem:[%s2289_s0 + $0x1e8] sm:$0xff] }
 0x158   :  { %v813_v56 = vpop.f32.mrf.mxu1 }
 0x159   :  { %v523_v58 = vmax.f32 %v384_v55, 0.0  ;;  %v814_v59 = vadd.f32 %v1570_v34, %v813_v56  ;;  %v992_v56 = vld [vmem:[%s2293_s1 + $0x88] sm:$0xff] }
 0x15b   :  { %v1049_v61 = vadd.f32 %v985_v57, %v814_v59  ;;  %1261 = vmatmul.msk.f32.gmra.mxu1 %vm573_vm1, %v523_v58  ;;  %v77_v58 = vld [vmem:[%s2289_s0 + $0x1b0] sm:$0xff] }
 0x15c   :  { %1225 = vmatmul.msk.f32.gmra.mxu3 %vm95_vm0, %v77_v58  ;;  %v1000_v58 = vld [vmem:[%s2293_s1 + $0xc8] sm:$0xff] }
 0x15d   :  { %1113 = vst.msk [vmem:[%s2294_s6 + $0x50] sm:$0xff] %vm95_vm0, %v1049_v61  ;;  %v419_v61 = vpop.f32.mrf.mxu3 }
 0x15e   :  { %v386_v62 = vpop.f32.mrf.mxu0 }
 0x15f   :  { %v387_v63 = vadd.f32 %v1453_v28, %v386_v62  ;;  %v531_v62 = vmax.f32 %v408_v60, 0.0  ;;  %v85_v60 = vld [vmem:[%s2289_s0 + $0x1f0] sm:$0xff] }
 0x160   :  { %v816_v0 = vpop.f32.mrf.mxu1 }
 0x161   :  { %v524_v2 = vmax.f32 %v387_v63, 0.0  ;;  %v817_v3 = vadd.f32 %v1570_v34, %v816_v0  ;;  %v993_v0 = vld [vmem:[%s2293_s1 + $0x90] sm:$0xff] }
 0x163   :  { %v1050_v5 = vadd.f32 %v986_v1, %v817_v3  ;;  %1262 = vmatmul.msk.f32.gmra.mxu1 %vm573_vm1, %v524_v2  ;;  %v78_v2 = vld [vmem:[%s2289_s0 + $0x1b8] sm:$0xff] }
 0x164   :  { %1226 = vmatmul.msk.f32.gmra.mxu3 %vm95_vm0, %v78_v2  ;;  %v1001_v2 = vld [vmem:[%s2293_s1 + $0xd0] sm:$0xff] }
 0x165   :  { %1114 = vst.msk [vmem:[%s2294_s6 + $0x58] sm:$0xff] %vm95_vm0, %v1050_v5  ;;  %v422_v5 = vpop.f32.mrf.mxu3 }
 0x166   :  { %v389_v6 = vpop.f32.mrf.mxu0 }
 0x167   :  { %v390_v7 = vadd.f32 %v1453_v28, %v389_v6  ;;  %v532_v6 = vmax.f32 %v411_v4, 0.0  ;;  %v86_v4 = vld [vmem:[%s2289_s0 + $0x1f8] sm:$0xff] }
 0x168   :  { %v819_v8 = vpop.f32.mrf.mxu1 }
 0x169   :  { %v525_v10 = vmax.f32 %v390_v7, 0.0  ;;  %v820_v11 = vadd.f32 %v1570_v34, %v819_v8  ;;  %v994_v8 = vld [vmem:[%s2293_s1 + $0x98] sm:$0xff] }
 0x16b   :  { %v1051_v13 = vadd.f32 %v987_v9, %v820_v11  ;;  %1263 = vmatmul.msk.f32.gmra.mxu1 %vm573_vm1, %v525_v10  ;;  %v79_v10 = vld [vmem:[%s2289_s0 + $0x1c0] sm:$0xff] }
 0x16c   :  { %1227 = vmatmul.msk.f32.gmra.mxu3 %vm95_vm0, %v79_v10  ;;  %v1002_v10 = vld [vmem:[%s2293_s1 + $0xd8] sm:$0xff] }
 0x16d   :  { %1115 = vst.msk [vmem:[%s2294_s6 + $0x60] sm:$0xff] %vm95_vm0, %v1051_v13  ;;  %v425_v13 = vpop.f32.mrf.mxu3 }
 0x16e   :  { %v392_v14 = vpop.f32.mrf.mxu0 }
 0x16f   :  { %v393_v16 = vadd.f32 %v1453_v28, %v392_v14  ;;  %v533_v14 = vmax.f32 %v414_v12, 0.0 }
 0x170   :  { %v822_v17 = vpop.f32.mrf.mxu1 }
 0x171   :  { %v526_v19 = vmax.f32 %v393_v16, 0.0  ;;  %v823_v20 = vadd.f32 %v1570_v34, %v822_v17  ;;  %v995_v16 = vld [vmem:[%s2293_s1 + $0xa0] sm:$0xff] }
 0x173   :  { %v1052_v22 = vadd.f32 %v988_v18, %v823_v20  ;;  %1264 = vmatmul.msk.f32.gmra.mxu1 %vm573_vm1, %v526_v19  ;;  %v80_v18 = vld [vmem:[%s2289_s0 + $0x1c8] sm:$0xff]  ;;  %v417_v20 = vadd.f32 %v1453_v28, %v416_v53 }
 0x174   :  { %1228 = vmatmul.msk.f32.gmra.mxu3 %vm95_vm0, %v80_v18 }
 0x175   :  { %1116 = vst.msk [vmem:[%s2294_s6 + $0x68] sm:$0xff] %vm95_vm0, %v1052_v22  ;;  %v428_v21 = vpop.f32.mrf.mxu3  ;;  %v534_v22 = vmax.f32 %v417_v20, 0.0 }
 0x176   :  { %v395_v23 = vpop.f32.mrf.mxu0 }
 0x177   :  { %v396_v25 = vadd.f32 %v1453_v28, %v395_v23 }
 0x178   :  { %v825_v26 = vpop.f32.mrf.mxu1 }
 0x179   :  { %v527_v29 = vmax.f32 %v396_v25, 0.0  ;;  %v826_v30 = vadd.f32 %v1570_v34, %v825_v26  ;;  %v81_v26 = vld [vmem:[%s2289_s0 + $0x1d0] sm:$0xff] }
 0x17b   :  { %v1053_v32 = vadd.f32 %v989_v27, %v826_v30  ;;  %1265 = vmatmul.msk.f32.gmra.mxu1 %vm573_vm1, %v527_v29  ;;  %v420_v29 = vadd.f32 %v1453_v28, %v419_v61 }
 0x17c   :  { %1229 = vmatmul.msk.f32.gmra.mxu3 %vm95_vm0, %v81_v26 }
 0x17d   :  { %1117 = vst.msk [vmem:[%s2294_s6 + $0x70] sm:$0xff] %vm95_vm0, %v1053_v32  ;;  %v431_v30 = vpop.f32.mrf.mxu3  ;;  %v535_v31 = vmax.f32 %v420_v29, 0.0 }
 0x17e   :  { %v398_v33 = vpop.f32.mrf.mxu0 }
 0x17f   :  { %v399_v36 = vadd.f32 %v1453_v28, %v398_v33  ;;  %v997_v33 = vld [vmem:[%s2293_s1 + $0xb0] sm:$0xff] }
 0x180   :  { %v828_v37 = vpop.f32.mrf.mxu1 }
 0x181   :  { %v528_v39 = vmax.f32 %v399_v36, 0.0  ;;  %v829_v40 = vadd.f32 %v1570_v34, %v828_v37  ;;  %v82_v36 = vld [vmem:[%s2289_s0 + $0x1d8] sm:$0xff] }
 0x183   :  { %v1054_v42 = vadd.f32 %v990_v38, %v829_v40  ;;  %1266 = vmatmul.msk.f32.gmra.mxu1 %vm573_vm1, %v528_v39  ;;  %v423_v38 = vadd.f32 %v1453_v28, %v422_v5 }
 0x184   :  { %1230 = vmatmul.msk.f32.gmra.mxu3 %vm95_vm0, %v82_v36 }
 0x185   :  { %1118 = vst.msk [vmem:[%s2294_s6 + $0x78] sm:$0xff] %vm95_vm0, %v1054_v42  ;;  %v434_v39 = vpop.f32.mrf.mxu3  ;;  %v536_v40 = vmax.f32 %v423_v38, 0.0  ;;  %v998_v42 = vld [vmem:[%s2293_s1 + $0xb8] sm:$0xff] }
 0x186   :  { %v401_v43 = vpop.f32.mrf.mxu0 }
 0x187   :  { %v402_v45 = vadd.f32 %v1453_v28, %v401_v43 }
 0x188   :  { %v831_v46 = vpop.f32.mrf.mxu1 }
 0x189   :  { %v529_v48 = vmax.f32 %v402_v45, 0.0  ;;  %v832_v49 = vadd.f32 %v1570_v34, %v831_v46  ;;  %v426_v46 = vadd.f32 %v1453_v28, %v425_v13 }
 0x18b   :  { %v1055_v51 = vadd.f32 %v991_v47, %v832_v49  ;;  %1267 = vmatmul.msk.f32.vlgmr.msra.gmra.mxu2 %vm573_vm1, %v529_v48  ;;  %v537_v48 = vmax.f32 %v426_v46, 0.0 }
 0x18c   :  { %1231 = vmatmul.msk.f32.gmra.mxu3 %vm95_vm0, %v83_v44 }
 0x18d   :  { %1119 = vst.msk [vmem:[%s2294_s6 + $0x80] sm:$0xff] %vm95_vm0, %v1055_v51  ;;  %v437_v47 = vpop.f32.mrf.mxu3 }
 0x18e   :  { %v438_v13 = vadd.f32 %v1453_v28, %v437_v47 }
 0x190   :  { %v834_v55 = vpop.f32.mrf.mxu1 }
 0x191   :  { %v835_v57 = vadd.f32 %v1570_v34, %v834_v55 }
 0x193   :  { %v1056_v59 = vadd.f32 %v992_v56, %v835_v57  ;;  %1268 = vmatmul.msk.f32.gmra.mxu2 %vm573_vm1, %v530_v54  ;;  %v429_v54 = vadd.f32 %v1453_v28, %v428_v21 }
 0x194   :  { %1232 = vmatmul.msk.f32.gmra.mxu3 %vm95_vm0, %v84_v52 }
 0x195   :  { %1120 = vst.msk [vmem:[%s2294_s6 + $0x88] sm:$0xff] %vm95_vm0, %v1056_v59  ;;  %v440_v55 = vpop.f32.mrf.mxu3  ;;  %v538_v56 = vmax.f32 %v429_v54, 0.0 }
 0x196   :  { %v441_v20 = vadd.f32 %v1453_v28, %v440_v55  ;;  %v1008_v55 = vld [vmem:[%s2293_s1 + $0x108] sm:$0xff] }
 0x198   :  { %v837_v63 = vpop.f32.mrf.mxu1 }
 0x199   :  { %v838_v1 = vadd.f32 %v1570_v34, %v837_v63 }
 0x19b   :  { %v1057_v3 = vadd.f32 %v993_v0, %v838_v1  ;;  %1269 = vmatmul.msk.f32.gmra.mxu2 %vm573_vm1, %v531_v62  ;;  %v432_v62 = vadd.f32 %v1453_v28, %v431_v30 }
 0x19c   :  { %1233 = vmatmul.msk.f32.gmra.mxu3 %vm95_vm0, %v85_v60 }
 0x19d   :  { %1121 = vst.msk [vmem:[%s2294_s6 + $0x90] sm:$0xff] %vm95_vm0, %v1057_v3  ;;  %v443_v63 = vpop.f32.mrf.mxu3  ;;  %v539_v0 = vmax.f32 %v432_v62, 0.0 }
 0x1a0   :  { %v840_v7 = vpop.f32.mrf.mxu1 }
 0x1a1   :  { %v841_v9 = vadd.f32 %v1570_v34, %v840_v7 }
 0x1a3   :  { %v1058_v11 = vadd.f32 %v994_v8, %v841_v9  ;;  %1270 = vmatmul.msk.f32.gmra.mxu2 %vm573_vm1, %v532_v6  ;;  %v435_v6 = vadd.f32 %v1453_v28, %v434_v39  ;;  %v1006_v39 = vld [vmem:[%s2293_s1 + $0xf8] sm:$0xff] }
 0x1a4   :  { %1234 = vmatmul.msk.f32.gmra.mxu3 %vm95_vm0, %v86_v4  ;;  %v1010_v4 = vld [vmem:[%s2293_s1 + $0x118] sm:$0xff] }
 0x1a5   :  { %1122 = vst.msk [vmem:[%s2294_s6 + $0x98] sm:$0xff] %vm95_vm0, %v1058_v11  ;;  %v446_v7 = vpop.f32.mrf.mxu3  ;;  %v540_v8 = vmax.f32 %v435_v6, 0.0 }
 0x1a6   :  { %v447_v36 = vadd.f32 %v1453_v28, %v446_v7 }
 0x1a8   :  { %v843_v15 = vpop.f32.mrf.mxu1 }
 0x1a9   :  { %v844_v17 = vadd.f32 %v1570_v34, %v843_v15  ;;  %v541_v15 = vmax.f32 %v438_v13, 0.0 }
 0x1ab   :  { %v1059_v19 = vadd.f32 %v995_v16, %v844_v17  ;;  %1271 = vmatmul.msk.f32.gmra.mxu2 %vm573_vm1, %v533_v14  ;;  %v1003_v17 = vld [vmem:[%s2293_s1 + $0xe0] sm:$0xff] }
 0x1ad   :  { %1123 = vst.msk [vmem:[%s2294_s6 + $0xa0] sm:$0xff] %vm95_vm0, %v1059_v19  ;;  %v449_v14 = vpop.f32.mrf.mxu3 }
 0x1b0   :  { %v846_v23 = vpop.f32.mrf.mxu1 }
 0x1b1   :  { %v847_v25 = vadd.f32 %v1570_v34, %v846_v23 }
 0x1b3   :  { %v1060_v27 = vadd.f32 %v996_v24, %v847_v25  ;;  %1272 = vmatmul.msk.f32.gmra.mxu2 %vm573_vm1, %v534_v22  ;;  %v542_v22 = vmax.f32 %v441_v20, 0.0  ;;  %v1004_v24 = vld [vmem:[%s2293_s1 + $0xe8] sm:$0xff] }
 0x1b5   :  { %1124 = vst.msk [vmem:[%s2294_s6 + $0xa8] sm:$0xff] %vm95_vm0, %v1060_v27  ;;  %v452_v21 = vpop.f32.mrf.mxu3  ;;  %v444_v27 = vadd.f32 %v1453_v28, %v443_v63 }
 0x1b6   :  { %v453_v46 = vadd.f32 %v1453_v28, %v452_v21 }
 0x1b7   :  { %v543_v30 = vmax.f32 %v444_v27, 0.0 }
 0x1b8   :  { %v849_v32 = vpop.f32.mrf.mxu1 }
 0x1b9   :  { %v850_v35 = vadd.f32 %v1570_v34, %v849_v32  ;;  %v1005_v32 = vld [vmem:[%s2293_s1 + $0xf0] sm:$0xff] }
 0x1bb   :  { %v1061_v37 = vadd.f32 %v997_v33, %v850_v35  ;;  %1273 = vmatmul.msk.f32.gmra.mxu2 %vm573_vm1, %v535_v31 }
 0x1bd   :  { %1125 = vst.msk [vmem:[%s2294_s6 + $0xb0] sm:$0xff] %vm95_vm0, %v1061_v37  ;;  %v455_v29 = vpop.f32.mrf.mxu3  ;;  %v544_v37 = vmax.f32 %v447_v36, 0.0 }
 0x1be   :  { %v456_v52 = vadd.f32 %v1453_v28, %v455_v29 }
 0x1c0   :  { %v852_v41 = vpop.f32.mrf.mxu1 }
 0x1c1   :  { %v853_v43 = vadd.f32 %v1570_v34, %v852_v41 }
 0x1c3   :  { %v1062_v45 = vadd.f32 %v998_v42, %v853_v43  ;;  %1274 = vmatmul.msk.f32.gmra.mxu2 %vm573_vm1, %v536_v40  ;;  %v450_v43 = vadd.f32 %v1453_v28, %v449_v14 }
 0x1c5   :  { %1126 = vst.msk [vmem:[%s2294_s6 + $0xb8] sm:$0xff] %vm95_vm0, %v1062_v45  ;;  %v458_v40 = vpop.f32.mrf.mxu3  ;;  %v545_v44 = vmax.f32 %v450_v43, 0.0 }
 0x1c8   :  { %v855_v49 = vpop.f32.mrf.mxu1 }
 0x1c9   :  { %v856_v51 = vadd.f32 %v1570_v34, %v855_v49  ;;  %v546_v49 = vmax.f32 %v453_v46, 0.0 }
 0x1cb   :  { %v1063_v53 = vadd.f32 %v999_v50, %v856_v51  ;;  %1275 = vmatmul.msk.f32.gmra.mxu2 %vm573_vm1, %v537_v48  ;;  %v1007_v48 = vld [vmem:[%s2293_s1 + $0x100] sm:$0xff] }
 0x1cd   :  { %1127 = vst.msk [vmem:[%s2294_s6 + $0xc0] sm:$0xff] %vm95_vm0, %v1063_v53 }
 0x1cf   :  { %v461_v45 = vpop.f32.mrf.mxu3 }
 0x1d0   :  { %v858_v57 = vpop.f32.mrf.mxu1 }
 0x1d1   :  { %v859_v59 = vadd.f32 %v1570_v34, %v858_v57 }
 0x1d3   :  { %v1064_v61 = vadd.f32 %v1000_v58, %v859_v59  ;;  %1276 = vmatmul.msk.f32.gmra.mxu2 %vm573_vm1, %v538_v56  ;;  %v547_v56 = vmax.f32 %v456_v52, 0.0  ;;  %v459_v59 = vadd.f32 %v1453_v28, %v458_v40  ;;  %v1015_v40 = vld [vmem:[%s2293_s1 + $0x140] sm:$0xff] }
 0x1d5   :  { %1128 = vst.msk [vmem:[%s2294_s6 + $0xc8] sm:$0xff] %vm95_vm0, %v1064_v61  ;;  %v1009_v61 = vld [vmem:[%s2293_s1 + $0x110] sm:$0xff]  ;;  %v548_v63 = vmax.f32 %v459_v59, 0.0 }
 0x1d7   :  { %v464_v53 = vpop.f32.mrf.mxu3 }
 0x1d8   :  { %v861_v1 = vpop.f32.mrf.mxu1 }
 0x1d9   :  { %v862_v3 = vadd.f32 %v1570_v34, %v861_v1 }
 0x1db   :  { %v1065_v5 = vadd.f32 %v1001_v2, %v862_v3  ;;  %1277 = vmatmul.msk.f32.gmra.mxu2 %vm573_vm1, %v539_v0  ;;  %v462_v2 = vadd.f32 %v1453_v28, %v461_v45 }
 0x1dd   :  { %1129 = vst.msk [vmem:[%s2294_s6 + $0xd0] sm:$0xff] %vm95_vm0, %v1065_v5  ;;  %v549_v5 = vmax.f32 %v462_v2, 0.0 }
 0x1df   :  { %v467_v62 = vpop.f32.mrf.mxu3 }
 0x1e0   :  { %v864_v9 = vpop.f32.mrf.mxu1 }
 0x1e1   :  { %v865_v11 = vadd.f32 %v1570_v34, %v864_v9  ;;  %v465_v9 = vadd.f32 %v1453_v28, %v464_v53 }
 0x1e3   :  { %v1066_v12 = vadd.f32 %v1002_v10, %v865_v11  ;;  %1278 = vmatmul.msk.f32.gmra.mxu2 %vm573_vm1, %v540_v8  ;;  %v1011_v11 = vld [vmem:[%s2293_s1 + $0x120] sm:$0xff] }
 0x1e5   :  { %1130 = vst.msk [vmem:[%s2294_s6 + $0xd8] sm:$0xff] %vm95_vm0, %v1066_v12  ;;  %v550_v12 = vmax.f32 %v465_v9, 0.0 }
 0x1e7   :  { %v470_v7 = vpop.f32.mrf.mxu3 }
 0x1e8   :  { %v867_v16 = vpop.f32.mrf.mxu1 }
 0x1e9   :  { %v868_v18 = vadd.f32 %v1570_v34, %v867_v16  ;;  %v468_v16 = vadd.f32 %v1453_v28, %v467_v62  ;;  %v2069_v28 = vld [vmem:[%s2290_s3] ss:$0 sm:$0xff] }
 0x1eb   :  { %v1067_v19 = vadd.f32 %v1003_v17, %v868_v18  ;;  %1279 = vmatmul.msk.f32.gmra.mxu2 %vm573_vm1, %v541_v15  ;;  %v1012_v18 = vld [vmem:[%s2293_s1 + $0x128] sm:$0xff] }
 0x1ed   :  { %1131 = vst.msk [vmem:[%s2294_s6 + $0xe0] sm:$0xff] %vm95_vm0, %v1067_v19  ;;  %v551_v19 = vmax.f32 %v468_v16, 0.0 }
 0x1ef   :  { %v473_v15 = vpop.f32.mrf.mxu3 }
 0x1f0   :  { %v870_v23 = vpop.f32.mrf.mxu1 }
 0x1f1   :  { %v871_v25 = vadd.f32 %v1570_v34, %v870_v23 }
 0x1f3   :  { %v1068_v26 = vadd.f32 %v1004_v24, %v871_v25  ;;  %1280 = vmatmul.msk.f32.gmra.mxu2 %vm573_vm1, %v542_v22  ;;  %v471_v22 = vadd.f32 %v2069_v28, %v470_v7  ;;  %v1013_v25 = vld [vmem:[%s2293_s1 + $0x130] sm:$0xff] }
 0x1f5   :  { %1132 = vst.msk [vmem:[%s2294_s6 + $0xe8] sm:$0xff] %vm95_vm0, %v1068_v26  ;;  %v552_v26 = vmax.f32 %v471_v22, 0.0 }
 0x1f7   :  { %v476_v23 = vpop.f32.mrf.mxu3 }
 0x1f8   :  { %v873_v31 = vpop.f32.mrf.mxu1 }
 0x1f9   :  { %v874_v33 = vadd.f32 %v1570_v34, %v873_v31 }
 0x1fb   :  { %v1069_v35 = vadd.f32 %v1005_v32, %v874_v33  ;;  %1281 = vmatmul.msk.f32.gmra.mxu2 %vm573_vm1, %v543_v30  ;;  %v474_v30 = vadd.f32 %v2069_v28, %v473_v15  ;;  %v1014_v32 = vld [vmem:[%s2293_s1 + $0x138] sm:$0xff] }
 0x1fd   :  { %1133 = vst.msk [vmem:[%s2294_s6 + $0xf0] sm:$0xff] %vm95_vm0, %v1069_v35  ;;  %v553_v35 = vmax.f32 %v474_v30, 0.0  ;;  %v1024_v30 = vld [vmem:[%s2293_s1 + $0x188] sm:$0xff] }
 0x1ff   :  { %v479_v33 = vpop.f32.mrf.mxu3 }
 0x200   :  { %v876_v38 = vpop.f32.mrf.mxu1  ;;  %v480_v45 = vadd.f32 %v2069_v28, %v479_v33 }
 0x201   :  { %v877_v41 = vadd.f32 %v1570_v34, %v876_v38  ;;  %v477_v38 = vadd.f32 %v2069_v28, %v476_v23 }
 0x203   :  { %v1070_v42 = vadd.f32 %v1006_v39, %v877_v41  ;;  %1282 = vmatmul.msk.f32.gmra.mxu2 %vm573_vm1, %v544_v37  ;;  %v554_v41 = vmax.f32 %v477_v38, 0.0 }
 0x205   :  { %1134 = vst.msk [vmem:[%s2294_s6 + $0xf8] sm:$0xff] %vm95_vm0, %v1070_v42 }
 0x207   :  { %v482_v43 = vpop.f32.mrf.mxu3 }
 0x208   :  { %v483_v52 = vadd.f32 %v2069_v28, %v482_v43  ;;  %v1027_v43 = vld [vmem:[%s2293_s1 + $0x1a0] sm:$0xff] }
 0x20b   :  { %1283 = vmatmul.msk.f32.gmra.mxu2 %vm573_vm1, %v545_v44 }
 0x20e   :  { %v879_v47 = vpop.f32.mrf.mxu2 }
 0x20f   :  { %v880_v50 = vadd.f32 %v1570_v34, %v879_v47  ;;  %v1016_v47 = vld [vmem:[%s2293_s1 + $0x148] sm:$0xff] }
 0x211   :  { %v1071_v51 = vadd.f32 %v1007_v48, %v880_v50  ;;  %v555_v48 = vmax.f32 %v480_v45, 0.0 }
 0x213   :  { %1135 = vst.msk [vmem:[%s2294_s6 + $0x100] sm:$0xff] %vm95_vm0, %v1071_v51  ;;  %1284 = vmatmul.msk.f32.gmra.mxu2 %vm573_vm1, %v546_v49  ;;  %v485_v51 = vpop.f32.mrf.mxu3 }
 0x216   :  { %v882_v54 = vpop.f32.mrf.mxu2 }
 0x217   :  { %v883_v57 = vadd.f32 %v1570_v34, %v882_v54  ;;  %v1017_v54 = vld [vmem:[%s2293_s1 + $0x150] sm:$0xff] }
 0x219   :  { %v1072_v58 = vadd.f32 %v1008_v55, %v883_v57  ;;  %v556_v55 = vmax.f32 %v483_v52, 0.0 }
 0x21b   :  { %1136 = vst.msk [vmem:[%s2294_s6 + $0x108] sm:$0xff] %vm95_vm0, %v1072_v58  ;;  %1285 = vmatmul.msk.f32.gmra.mxu2 %vm573_vm1, %v547_v56  ;;  %v486_v58 = vadd.f32 %v2069_v28, %v485_v51  ;;  %v488_v59 = vpop.f32.mrf.mxu3  ;;  %v1029_v51 = vld [vmem:[%s2293_s1 + $0x1b0] sm:$0xff] }
 0x21d   :  { %v557_v62 = vmax.f32 %v486_v58, 0.0 }
 0x21e   :  { %v885_v60 = vpop.f32.mrf.mxu2 }
 0x21f   :  { %v886_v0 = vadd.f32 %v1570_v34, %v885_v60 }
 0x221   :  { %v1073_v1 = vadd.f32 %v1009_v61, %v886_v0  ;;  %v1018_v61 = vld [vmem:[%s2293_s1 + $0x158] sm:$0xff] }
 0x223   :  { %1137 = vst.msk [vmem:[%s2294_s6 + $0x110] sm:$0xff] %vm95_vm0, %v1073_v1  ;;  %1286 = vmatmul.msk.f32.gmra.mxu2 %vm573_vm1, %v548_v63  ;;  %v489_v1 = vadd.f32 %v2069_v28, %v488_v59  ;;  %v1031_v59 = vld [vmem:[%s2293_s1 + $0x1c0] sm:$0xff] }
 0x226   :  { %v888_v3 = vpop.f32.mrf.mxu2 }
 0x227   :  { %v889_v6 = vadd.f32 %v1570_v34, %v888_v3  ;;  %v1019_v3 = vld [vmem:[%s2293_s1 + $0x160] sm:$0xff] }
 0x229   :  { %v1074_v8 = vadd.f32 %v1010_v4, %v889_v6  ;;  %v491_v4 = vpop.f32.mrf.mxu3 }
 0x22b   :  { %1138 = vst.msk [vmem:[%s2294_s6 + $0x118] sm:$0xff] %vm95_vm0, %v1074_v8  ;;  %1287 = vmatmul.msk.f32.gmra.mxu2 %vm573_vm1, %v549_v5  ;;  %v558_v5 = vmax.f32 %v489_v1, 0.0  ;;  %v492_v8 = vadd.f32 %v2069_v28, %v491_v4 }
 0x22e   :  { %v891_v10 = vpop.f32.mrf.mxu2 }
 0x22f   :  { %v892_v13 = vadd.f32 %v1570_v34, %v891_v10  ;;  %v1020_v10 = vld [vmem:[%s2293_s1 + $0x168] sm:$0xff] }
 0x231   :  { %v1075_v14 = vadd.f32 %v1011_v11, %v892_v13  ;;  %v559_v11 = vmax.f32 %v492_v8, 0.0  ;;  %v494_v13 = vpop.f32.mrf.mxu3 }
 0x232   :  { %v495_v15 = vadd.f32 %v2069_v28, %v494_v13  ;;  %v1022_v28 = vld [vmem:[%s2293_s1 + $0x178] sm:$0xff] }
 0x233   :  { %1139 = vst.msk [vmem:[%s2294_s6 + $0x120] sm:$0xff] %vm95_vm0, %v1075_v14  ;;  %1288 = vmatmul.msk.f32.gmra.mxu2 %vm573_vm1, %v550_v12 }
 0x236   :  { %v894_v17 = vpop.f32.mrf.mxu2 }
 0x237   :  { %v895_v20 = vadd.f32 %v1570_v34, %v894_v17  ;;  %v1021_v17 = vld [vmem:[%s2293_s1 + $0x170] sm:$0xff] }
 0x239   :  { %v1076_v21 = vadd.f32 %v1012_v18, %v895_v20  ;;  %v560_v18 = vmax.f32 %v495_v15, 0.0  ;;  %v1036_v15 = vld [vmem:[%s2293_s1 + $0x1e8] sm:$0xff] }
 0x23b   :  { %1140 = vst.msk [vmem:[%s2294_s6 + $0x128] sm:$0xff] %vm95_vm0, %v1076_v21  ;;  %1289 = vmatmul.msk.f32.gmra.mxu2 %vm573_vm1, %v551_v19 }
 0x23e   :  { %v897_v24 = vpop.f32.mrf.mxu2 }
 0x23f   :  { %v898_v27 = vadd.f32 %v1570_v34, %v897_v24 }
 0x241   :  { %v1077_v29 = vadd.f32 %v1013_v25, %v898_v27  ;;  %v1023_v25 = vld [vmem:[%s2293_s1 + $0x180] sm:$0xff] }
 0x243   :  { %1141 = vst.msk [vmem:[%s2294_s6 + $0x130] sm:$0xff] %vm95_vm0, %v1077_v29  ;;  %1290 = vmatmul.msk.f32.gmra.mxu2 %vm573_vm1, %v552_v26 }
 0x246   :  { %v900_v31 = vpop.f32.mrf.mxu2 }
 0x247   :  { %v901_v36 = vadd.f32 %v1570_v34, %v900_v31 }
 0x249   :  { %v1078_v37 = vadd.f32 %v1014_v32, %v901_v36 }
 0x24b   :  { %1142 = vst.msk [vmem:[%s2294_s6 + $0x138] sm:$0xff] %vm95_vm0, %v1078_v37  ;;  %1291 = vmatmul.msk.f32.gmra.mxu2 %vm573_vm1, %v553_v35  ;;  %v1025_v35 = vld [vmem:[%s2293_s1 + $0x190] sm:$0xff] }
 0x24e   :  { %v903_v39 = vpop.f32.mrf.mxu2 }
 0x24f   :  { %v904_v42 = vadd.f32 %v1570_v34, %v903_v39  ;;  %v1026_v39 = vld [vmem:[%s2293_s1 + $0x198] sm:$0xff] }
 0x251   :  { %v1079_v44 = vadd.f32 %v1015_v40, %v904_v42 }
 0x253   :  { %1143 = vst.msk [vmem:[%s2294_s6 + $0x140] sm:$0xff] %vm95_vm0, %v1079_v44  ;;  %1292 = vmatmul.msk.f32.gmra.mxu2 %vm573_vm1, %v554_v41  ;;  %v1314_v44 = vld [vmem:[%s2292_s5] ss:$0 sm:$0xff] }
 0x256   :  { %v906_v46 = vpop.f32.mrf.mxu2 }
 0x257   :  { %v907_v49 = vadd.f32 %v1570_v34, %v906_v46 }
 0x259   :  { %v1080_v50 = vadd.f32 %v1016_v47, %v907_v49  ;;  %v1028_v47 = vld [vmem:[%s2293_s1 + $0x1a8] sm:$0xff] }
 0x25b   :  { %1144 = vst.msk [vmem:[%s2294_s6 + $0x148] sm:$0xff] %vm95_vm0, %v1080_v50  ;;  %1293 = vmatmul.msk.f32.gmra.mxu2 %vm573_vm1, %v555_v48 }
 0x25e   :  { %v909_v53 = vpop.f32.mrf.mxu2 }
 0x25f   :  { %v910_v56 = vadd.f32 %v1570_v34, %v909_v53 }
 0x261   :  { %v1081_v57 = vadd.f32 %v1017_v54, %v910_v56 }
 0x263   :  { %1145 = vst.msk [vmem:[%s2294_s6 + $0x150] sm:$0xff] %vm95_vm0, %v1081_v57  ;;  %1294 = vmatmul.msk.f32.gmra.mxu2 %vm573_vm1, %v556_v55  ;;  %v1030_v55 = vld [vmem:[%s2293_s1 + $0x1b8] sm:$0xff] }
 0x266   :  { %v912_v60 = vpop.f32.mrf.mxu2 }
 0x267   :  { %v913_v63 = vadd.f32 %v1570_v34, %v912_v60 }
 0x269   :  { %v1082_v0 = vadd.f32 %v1018_v61, %v913_v63  ;;  %v1032_v63 = vld [vmem:[%s2293_s1 + $0x1c8] sm:$0xff] }
 0x26b   :  { %1146 = vst.msk [vmem:[%s2294_s6 + $0x158] sm:$0xff] %vm95_vm0, %v1082_v0  ;;  %1295 = vmatmul.msk.f32.gmra.mxu2 %vm573_vm1, %v557_v62 }
 0x26e   :  { %v915_v2 = vpop.f32.mrf.mxu2 }
 0x26f   :  { %v916_v6 = vadd.f32 %v1570_v34, %v915_v2 }
 0x271   :  { %v1083_v7 = vadd.f32 %v1019_v3, %v916_v6  ;;  %v1033_v3 = vld [vmem:[%s2293_s1 + $0x1d0] sm:$0xff] }
 0x273   :  { %1147 = vst.msk [vmem:[%s2294_s6 + $0x160] sm:$0xff] %vm95_vm0, %v1083_v7  ;;  %1296 = vmatmul.msk.f32.gmra.mxu2 %vm573_vm1, %v558_v5  ;;  %v1034_v7 = vld [vmem:[%s2293_s1 + $0x1d8] sm:$0xff] }
 0x276   :  { %v918_v9 = vpop.f32.mrf.mxu2 }
 0x277   :  { %v919_v12 = vadd.f32 %v1570_v34, %v918_v9 }
 0x279   :  { %v1084_v14 = vadd.f32 %v1020_v10, %v919_v12 }
 0x27b   :  { %1148 = vst.msk [vmem:[%s2294_s6 + $0x168] sm:$0xff] %vm95_vm0, %v1084_v14  ;;  %1297 = vmatmul.msk.f32.gmra.mxu2 %vm573_vm1, %v559_v11  ;;  %v1035_v11 = vld [vmem:[%s2293_s1 + $0x1e0] sm:$0xff] }
 0x27e   :  { %v921_v16 = vpop.f32.mrf.mxu2 }
 0x27f   :  { %v922_v19 = vadd.f32 %v1570_v34, %v921_v16 }
 0x281   :  { %v1085_v20 = vadd.f32 %v1021_v17, %v922_v19  ;;  %v1037_v19 = vld [vmem:[%s2293_s1 + $0x1f0] sm:$0xff] }
 0x283   :  { %1149 = vst.msk [vmem:[%s2294_s6 + $0x170] sm:$0xff] %vm95_vm0, %v1085_v20  ;;  %1298 = vmatmul.msk.f32.gmra.mxu2 %vm573_vm1, %v560_v18 }
 0x286   :  { %v924_v21 = vpop.f32.mrf.mxu2 }
 0x287   :  { %v925_v22 = vadd.f32 %v1570_v34, %v924_v21 }
 0x289   :  { %v1086_v23 = vadd.f32 %v1022_v28, %v925_v22  ;;  %v1038_v22 = vld [vmem:[%s2293_s1 + $0x1f8] sm:$0xff] }
 0x28b   :  { %1150 = vst.msk [vmem:[%s2294_s6 + $0x178] sm:$0xff] %vm95_vm0, %v1086_v23 }
 0x28e   :  { %v927_v24 = vpop.f32.mrf.mxu2 }
 0x28f   :  { %v928_v26 = vadd.f32 %v1570_v34, %v927_v24 }
 0x291   :  { %v1087_v27 = vadd.f32 %v1023_v25, %v928_v26 }
 0x293   :  { %1151 = vst.msk [vmem:[%s2294_s6 + $0x180] sm:$0xff] %vm95_vm0, %v1087_v27 }
 0x296   :  { %v930_v29 = vpop.f32.mrf.mxu2 }
 0x297   :  { %v931_v31 = vadd.f32 %v1570_v34, %v930_v29 }
 0x299   :  { %v1088_v32 = vadd.f32 %v1024_v30, %v931_v31 }
 0x29b   :  { %1152 = vst.msk [vmem:[%s2294_s6 + $0x188] sm:$0xff] %vm95_vm0, %v1088_v32 }
 0x29e   :  { %v933_v33 = vpop.f32.mrf.mxu2 }
 0x29f   :  { %v934_v36 = vadd.f32 %v1570_v34, %v933_v33 }
 0x2a1   :  { %v1089_v37 = vadd.f32 %v1025_v35, %v934_v36 }
 0x2a3   :  { %1153 = vst.msk [vmem:[%s2294_s6 + $0x190] sm:$0xff] %vm95_vm0, %v1089_v37 }
 0x2a6   :  { %v936_v38 = vpop.f32.mrf.mxu2 }
 0x2a7   :  { %v937_v40 = vadd.f32 %v1570_v34, %v936_v38 }
 0x2a9   :  { %v1090_v41 = vadd.f32 %v1026_v39, %v937_v40 }
 0x2ab   :  { %1154 = vst.msk [vmem:[%s2294_s6 + $0x198] sm:$0xff] %vm95_vm0, %v1090_v41 }
 0x2ae   :  { %v939_v42 = vpop.f32.mrf.mxu2 }
 0x2af   :  { %v940_v45 = vadd.f32 %v1314_v44, %v939_v42 }
 0x2b1   :  { %v1091_v46 = vadd.f32 %v1027_v43, %v940_v45 }
 0x2b3   :  { %1155 = vst.msk [vmem:[%s2294_s6 + $0x1a0] sm:$0xff] %vm95_vm0, %v1091_v46 }
 0x2b6   :  { %v942_v34 = vpop.f32.mrf.mxu2 }
 0x2b7   :  { %v943_v48 = vadd.f32 %v1314_v44, %v942_v34 }
 0x2b9   :  { %v1092_v49 = vadd.f32 %v1028_v47, %v943_v48 }
 0x2bb   :  { %1156 = vst.msk [vmem:[%s2294_s6 + $0x1a8] sm:$0xff] %vm95_vm0, %v1092_v49 }
 0x2be   :  { %v945_v50 = vpop.f32.mrf.mxu2 }
 0x2bf   :  { %v946_v52 = vadd.f32 %v1314_v44, %v945_v50 }
 0x2c1   :  { %v1093_v53 = vadd.f32 %v1029_v51, %v946_v52 }
 0x2c3   :  { %1157 = vst.msk [vmem:[%s2294_s6 + $0x1b0] sm:$0xff] %vm95_vm0, %v1093_v53 }
 0x2c6   :  { %v948_v54 = vpop.f32.mrf.mxu2 }
 0x2c7   :  { %v949_v56 = vadd.f32 %v1314_v44, %v948_v54 }
 0x2c9   :  { %v1094_v57 = vadd.f32 %v1030_v55, %v949_v56 }
 0x2cb   :  { %1158 = vst.msk [vmem:[%s2294_s6 + $0x1b8] sm:$0xff] %vm95_vm0, %v1094_v57 }
 0x2ce   :  { %v951_v58 = vpop.f32.mrf.mxu2 }
 0x2cf   :  { %v952_v60 = vadd.f32 %v1314_v44, %v951_v58 }
 0x2d1   :  { %v1095_v61 = vadd.f32 %v1031_v59, %v952_v60 }
 0x2d3   :  { %1159 = vst.msk [vmem:[%s2294_s6 + $0x1c0] sm:$0xff] %vm95_vm0, %v1095_v61 }
 0x2d6   :  { %v954_v62 = vpop.f32.mrf.mxu2 }
 0x2d7   :  { %v955_v0 = vadd.f32 %v1314_v44, %v954_v62 }
 0x2d9   :  { %v1096_v1 = vadd.f32 %v1032_v63, %v955_v0 }
 0x2db   :  { %1160 = vst.msk [vmem:[%s2294_s6 + $0x1c8] sm:$0xff] %vm95_vm0, %v1096_v1 }
 0x2de   :  { %v957_v2 = vpop.f32.mrf.mxu2 }
 0x2df   :  { %v958_v4 = vadd.f32 %v1314_v44, %v957_v2 }
 0x2e1   :  { %v1097_v5 = vadd.f32 %v1033_v3, %v958_v4 }
 0x2e3   :  { %1161 = vst.msk [vmem:[%s2294_s6 + $0x1d0] sm:$0xff] %vm95_vm0, %v1097_v5 }
 0x2e6   :  { %v960_v6 = vpop.f32.mrf.mxu2 }
 0x2e7   :  { %v961_v8 = vadd.f32 %v1314_v44, %v960_v6 }
 0x2e9   :  { %v1098_v9 = vadd.f32 %v1034_v7, %v961_v8 }
 0x2eb   :  { %1162 = vst.msk [vmem:[%s2294_s6 + $0x1d8] sm:$0xff] %vm95_vm0, %v1098_v9 }
 0x2ee   :  { %v963_v10 = vpop.f32.mrf.mxu2 }
 0x2ef   :  { %v964_v12 = vadd.f32 %v1314_v44, %v963_v10 }
 0x2f1   :  { %v1099_v13 = vadd.f32 %v1035_v11, %v964_v12 }
 0x2f3   :  { %1163 = vst.msk [vmem:[%s2294_s6 + $0x1e0] sm:$0xff] %vm95_vm0, %v1099_v13 }
 0x2f6   :  { %v966_v14 = vpop.f32.mrf.mxu2 }
 0x2f7   :  { %v967_v16 = vadd.f32 %v1314_v44, %v966_v14 }
 0x2f9   :  { %v1100_v17 = vadd.f32 %v1036_v15, %v967_v16 }
 0x2fb   :  { %1164 = vst.msk [vmem:[%s2294_s6 + $0x1e8] sm:$0xff] %vm95_vm0, %v1100_v17 }
 0x2fe   :  { %v969_v18 = vpop.f32.mrf.mxu2 }
 0x2ff   :  { %v970_v20 = vadd.f32 %v1314_v44, %v969_v18 }
 0x301   :  { %v1101_v21 = vadd.f32 %v1037_v19, %v970_v20 }
 0x303   :  { %1165 = vst.msk [vmem:[%s2294_s6 + $0x1f0] sm:$0xff] %vm95_vm0, %v1101_v21 }
 0x306   :  { %v972_v28 = vpop.f32.mrf.mxu2 }
 0x307   :  { %v973_v23 = vadd.f32 %v1314_v44, %v972_v28 }
 0x309   :  { %v1102_v24 = vadd.f32 %v1038_v22, %v973_v23 }
 0x30b   :  { %1166 = vst.msk [vmem:[%s2294_s6 + $0x1f8] sm:$0xff] %vm95_vm0, %v1102_v24 }

// kernel: fno_forward.19
= control target key start
LH: loop header
LB: loop body
LE: loop exit
PB: predicated region body
PF: predicated region fallthrough
CT: control target
= control target key end

     0   :  { %s3499_s1 = inlined_call_operand.vmem [shape: f32[512,512], index: 1, kind: input, shape index: {}]   ;;  %s3500_s0 = inlined_call_operand.vmem [shape: f32[32,512], index: 0, kind: input, shape index: {}]   ;;  %s3501_s3 = inlined_call_operand.vmem [shape: f32[512,512], index: 3, kind: input, shape index: {}]   ;;  %s3502_s4 = inlined_call_operand.vmem [shape: f32[32,512], index: 4, kind: output, shape index: {0}]   ;;  %s3503_s2 = inlined_call_operand.vmem [shape: f32[32,512], index: 2, kind: input, shape index: {}]   ;;  %s3504_s5 = inlined_call_operand.vmem [shape: f32[32,512], index: 5, kind: output, shape index: {1}]  }
   0x1   :  { %v223_v0 = vld [vmem:[%s3499_s1 + $0x5e0] sm:$0xff]  ;;  %v1756_v62 = vld [vmem:[%s3500_s0 + $0x10] sm:$0xff]  ;;  %v1761_v63 = vld [vmem:[%s3500_s0 + $0x18] sm:$0xff] }
   0x2   :  { %v219_v1 = vld [vmem:[%s3499_s1 + $0x5c0] sm:$0xff]  ;;  %349 = vmatpush.msra.mxu2 %v223_v0  ;;  %v224_v0 = vld [vmem:[%s3499_s1 + $0x5e8] sm:$0xff] }
   0x3   :  { %v287_v2 = vld [vmem:[%s3499_s1 + $0x7e0] sm:$0xff] }
   0x4   :  { %378 = vmatpush.msra.mxu3 %v287_v2  ;;  %v95_v3 = vld [vmem:[%s3499_s1 + $0x1e0] sm:$0xff]  ;;  %350 = vmatpush.msra.mxu2 %v219_v1  ;;  %v288_v1 = vld [vmem:[%s3499_s1 + $0x7e8] sm:$0xff] }
   0x5   :  { %v159_v4 = vld [vmem:[%s3499_s1 + $0x3e0] sm:$0xff]  ;;  %291 = vmatpush.msra.mxu0 %v95_v3 }
   0x6   :  { %v215_v5 = vld [vmem:[%s3499_s1 + $0x5a0] sm:$0xff]  ;;  %320 = vmatpush.msra.mxu1 %v159_v4  ;;  %v220_v4 = vld [vmem:[%s3499_s1 + $0x5c8] sm:$0xff] }
   0x7   :  { %v283_v6 = vld [vmem:[%s3499_s1 + $0x7c0] sm:$0xff]  ;;  %351 = vmatpush.msra.mxu2 %v215_v5 }
   0x8   :  { %v91_v7 = vld [vmem:[%s3499_s1 + $0x1c0] sm:$0xff]  ;;  %379 = vmatpush.msra.mxu3 %v283_v6  ;;  %v1788_v6 = vld [vmem:[%s3500_s0 + $0x8] sm:$0xff] }
   0x9   :  { %v155_v8 = vld [vmem:[%s3499_s1 + $0x3c0] sm:$0xff]  ;;  %292 = vmatpush.msra.mxu0 %v91_v7  ;;  %v96_v7 = vld [vmem:[%s3499_s1 + $0x1e8] sm:$0xff] }
   0xa   :  { %v279_v9 = vld [vmem:[%s3499_s1 + $0x7a0] sm:$0xff]  ;;  %321 = vmatpush.msra.mxu1 %v155_v8  ;;  %v160_v8 = vld [vmem:[%s3499_s1 + $0x3e8] sm:$0xff] }
   0xb   :  { %v87_v10 = vld [vmem:[%s3499_s1 + $0x1a0] sm:$0xff]  ;;  %380 = vmatpush.msra.mxu3 %v279_v9  ;;  %v216_v9 = vld [vmem:[%s3499_s1 + $0x5a8] sm:$0xff] }
   0xc   :  { %v211_v11 = vld [vmem:[%s3499_s1 + $0x580] sm:$0xff]  ;;  %293 = vmatpush.msra.mxu0 %v87_v10  ;;  %v284_v10 = vld [vmem:[%s3499_s1 + $0x7c8] sm:$0xff] }
   0xd   :  { %v151_v12 = vld [vmem:[%s3499_s1 + $0x3a0] sm:$0xff]  ;;  %352 = vmatpush.msra.mxu2 %v211_v11  ;;  %v92_v11 = vld [vmem:[%s3499_s1 + $0x1c8] sm:$0xff] }
   0xe   :  { %v275_v13 = vld [vmem:[%s3499_s1 + $0x780] sm:$0xff]  ;;  %322 = vmatpush.msra.mxu1 %v151_v12  ;;  %v156_v12 = vld [vmem:[%s3499_s1 + $0x3c8] sm:$0xff] }
   0xf   :  { %v83_v14 = vld [vmem:[%s3499_s1 + $0x180] sm:$0xff]  ;;  %381 = vmatpush.msra.mxu3 %v275_v13  ;;  %v212_v13 = vld [vmem:[%s3499_s1 + $0x588] sm:$0xff] }
  0x10   :  { %v147_v15 = vld [vmem:[%s3499_s1 + $0x380] sm:$0xff]  ;;  %294 = vmatpush.msra.mxu0 %v83_v14  ;;  %v280_v14 = vld [vmem:[%s3499_s1 + $0x7a8] sm:$0xff] }
  0x11   :  { %v207_v16 = vld [vmem:[%s3499_s1 + $0x560] sm:$0xff]  ;;  %323 = vmatpush.msra.mxu1 %v147_v15  ;;  %v1819_v15 = vld [vmem:[%s3500_s0 + $0x30] sm:$0xff] }
  0x12   :  { %v271_v17 = vld [vmem:[%s3499_s1 + $0x760] sm:$0xff]  ;;  %353 = vmatpush.msra.mxu2 %v207_v16  ;;  %v88_v16 = vld [vmem:[%s3499_s1 + $0x1a8] sm:$0xff] }
  0x13   :  { %v79_v18 = vld [vmem:[%s3499_s1 + $0x160] sm:$0xff]  ;;  %382 = vmatpush.msra.mxu3 %v271_v17  ;;  %v152_v17 = vld [vmem:[%s3499_s1 + $0x3a8] sm:$0xff] }
  0x14   :  { %v143_v19 = vld [vmem:[%s3499_s1 + $0x360] sm:$0xff]  ;;  %295 = vmatpush.msra.mxu0 %v79_v18  ;;  %v208_v18 = vld [vmem:[%s3499_s1 + $0x568] sm:$0xff] }
  0x15   :  { %v203_v20 = vld [vmem:[%s3499_s1 + $0x540] sm:$0xff]  ;;  %324 = vmatpush.msra.mxu1 %v143_v19  ;;  %v276_v19 = vld [vmem:[%s3499_s1 + $0x788] sm:$0xff] }
  0x16   :  { %v267_v21 = vld [vmem:[%s3499_s1 + $0x740] sm:$0xff]  ;;  %354 = vmatpush.msra.mxu2 %v203_v20  ;;  %v1837_v20 = vld [vmem:[%s3500_s0 + $0x38] sm:$0xff] }
  0x17   :  { %v75_v22 = vld [vmem:[%s3499_s1 + $0x140] sm:$0xff]  ;;  %383 = vmatpush.msra.mxu3 %v267_v21  ;;  %v84_v21 = vld [vmem:[%s3499_s1 + $0x188] sm:$0xff] }
  0x18   :  { %v139_v23 = vld [vmem:[%s3499_s1 + $0x340] sm:$0xff]  ;;  %296 = vmatpush.msra.mxu0 %v75_v22  ;;  %v148_v22 = vld [vmem:[%s3499_s1 + $0x388] sm:$0xff] }
  0x19   :  { %v199_v24 = vld [vmem:[%s3499_s1 + $0x520] sm:$0xff]  ;;  %325 = vmatpush.msra.mxu1 %v139_v23  ;;  %v204_v23 = vld [vmem:[%s3499_s1 + $0x548] sm:$0xff] }
  0x1a   :  { %v263_v25 = vld [vmem:[%s3499_s1 + $0x720] sm:$0xff]  ;;  %355 = vmatpush.msra.mxu2 %v199_v24  ;;  %v272_v24 = vld [vmem:[%s3499_s1 + $0x768] sm:$0xff] }
  0x1b   :  { %v71_v26 = vld [vmem:[%s3499_s1 + $0x120] sm:$0xff]  ;;  %384 = vmatpush.msra.mxu3 %v263_v25 }
  0x1c   :  { %v135_v27 = vld [vmem:[%s3499_s1 + $0x320] sm:$0xff]  ;;  %297 = vmatpush.msra.mxu0 %v71_v26  ;;  %v1860_v26 = vld [vmem:[%s3500_s0 + $0x28] sm:$0xff] }
  0x1d   :  { %v195_v28 = vld [vmem:[%s3499_s1 + $0x500] sm:$0xff]  ;;  %326 = vmatpush.msra.mxu1 %v135_v27  ;;  %v80_v27 = vld [vmem:[%s3499_s1 + $0x168] sm:$0xff] }
  0x1e   :  { %v259_v29 = vld [vmem:[%s3499_s1 + $0x700] sm:$0xff]  ;;  %356 = vmatpush.msra.mxu2 %v195_v28  ;;  %v144_v28 = vld [vmem:[%s3499_s1 + $0x368] sm:$0xff] }
  0x1f   :  { %v67_v30 = vld [vmem:[%s3499_s1 + $0x100] sm:$0xff]  ;;  %385 = vmatpush.msra.mxu3 %v259_v29  ;;  %v200_v29 = vld [vmem:[%s3499_s1 + $0x528] sm:$0xff] }
  0x20   :  { %v131_v31 = vld [vmem:[%s3499_s1 + $0x300] sm:$0xff]  ;;  %298 = vmatpush.msra.mxu0 %v67_v30  ;;  %v268_v30 = vld [vmem:[%s3499_s1 + $0x748] sm:$0xff] }
  0x21   :  { %v191_v32 = vld [vmem:[%s3499_s1 + $0x4e0] sm:$0xff]  ;;  %327 = vmatpush.msra.mxu1 %v131_v31  ;;  %v76_v31 = vld [vmem:[%s3499_s1 + $0x148] sm:$0xff] }
  0x22   :  { %v255_v33 = vld [vmem:[%s3499_s1 + $0x6e0] sm:$0xff]  ;;  %357 = vmatpush.msra.mxu2 %v191_v32  ;;  %v140_v32 = vld [vmem:[%s3499_s1 + $0x348] sm:$0xff] }
  0x23   :  { %v63_v34 = vld [vmem:[%s3499_s1 + $0xe0] sm:$0xff]  ;;  %386 = vmatpush.msra.mxu3 %v255_v33  ;;  %v196_v33 = vld [vmem:[%s3499_s1 + $0x508] sm:$0xff] }
  0x24   :  { %v127_v35 = vld [vmem:[%s3499_s1 + $0x2e0] sm:$0xff]  ;;  %299 = vmatpush.msra.mxu0 %v63_v34  ;;  %v264_v34 = vld [vmem:[%s3499_s1 + $0x728] sm:$0xff] }
  0x25   :  { %v187_v36 = vld [vmem:[%s3499_s1 + $0x4c0] sm:$0xff]  ;;  %328 = vmatpush.msra.mxu1 %v127_v35  ;;  %v1891_v35 = vld [vmem:[%s3500_s0 + $0x50] sm:$0xff] }
  0x26   :  { %v251_v37 = vld [vmem:[%s3499_s1 + $0x6c0] sm:$0xff]  ;;  %358 = vmatpush.msra.mxu2 %v187_v36  ;;  %v72_v36 = vld [vmem:[%s3499_s1 + $0x128] sm:$0xff] }
  0x27   :  { %v59_v38 = vld [vmem:[%s3499_s1 + $0xc0] sm:$0xff]  ;;  %387 = vmatpush.msra.mxu3 %v251_v37  ;;  %v136_v37 = vld [vmem:[%s3499_s1 + $0x328] sm:$0xff] }
  0x28   :  { %v123_v39 = vld [vmem:[%s3499_s1 + $0x2c0] sm:$0xff]  ;;  %300 = vmatpush.msra.mxu0 %v59_v38  ;;  %v192_v38 = vld [vmem:[%s3499_s1 + $0x4e8] sm:$0xff] }
  0x29   :  { %v183_v40 = vld [vmem:[%s3499_s1 + $0x4a0] sm:$0xff]  ;;  %329 = vmatpush.msra.mxu1 %v123_v39  ;;  %v260_v39 = vld [vmem:[%s3499_s1 + $0x708] sm:$0xff] }
  0x2a   :  { %v247_v41 = vld [vmem:[%s3499_s1 + $0x6a0] sm:$0xff]  ;;  %359 = vmatpush.msra.mxu2 %v183_v40  ;;  %v1909_v40 = vld [vmem:[%s3500_s0 + $0x58] sm:$0xff] }
  0x2b   :  { %v55_v42 = vld [vmem:[%s3499_s1 + $0xa0] sm:$0xff]  ;;  %388 = vmatpush.msra.mxu3 %v247_v41  ;;  %v68_v41 = vld [vmem:[%s3499_s1 + $0x108] sm:$0xff] }
  0x2c   :  { %v119_v43 = vld [vmem:[%s3499_s1 + $0x2a0] sm:$0xff]  ;;  %301 = vmatpush.msra.mxu0 %v55_v42  ;;  %v132_v42 = vld [vmem:[%s3499_s1 + $0x308] sm:$0xff] }
  0x2d   :  { %v179_v44 = vld [vmem:[%s3499_s1 + $0x480] sm:$0xff]  ;;  %330 = vmatpush.msra.mxu1 %v119_v43  ;;  %v188_v43 = vld [vmem:[%s3499_s1 + $0x4c8] sm:$0xff] }
  0x2e   :  { %v243_v45 = vld [vmem:[%s3499_s1 + $0x680] sm:$0xff]  ;;  %360 = vmatpush.msra.mxu2 %v179_v44  ;;  %v256_v44 = vld [vmem:[%s3499_s1 + $0x6e8] sm:$0xff] }
  0x2f   :  { %v51_v46 = vld [vmem:[%s3499_s1 + $0x80] sm:$0xff]  ;;  %389 = vmatpush.msra.mxu3 %v243_v45 }
  0x30   :  { %v115_v47 = vld [vmem:[%s3499_s1 + $0x280] sm:$0xff]  ;;  %302 = vmatpush.msra.mxu0 %v51_v46  ;;  %v1932_v46 = vld [vmem:[%s3500_s0 + $0x48] sm:$0xff] }
  0x31   :  { %v175_v48 = vld [vmem:[%s3499_s1 + $0x460] sm:$0xff]  ;;  %331 = vmatpush.msra.mxu1 %v115_v47  ;;  %v64_v47 = vld [vmem:[%s3499_s1 + $0xe8] sm:$0xff] }
  0x32   :  { %v239_v49 = vld [vmem:[%s3499_s1 + $0x660] sm:$0xff]  ;;  %361 = vmatpush.msra.mxu2 %v175_v48  ;;  %v128_v48 = vld [vmem:[%s3499_s1 + $0x2e8] sm:$0xff] }
  0x33   :  { %v47_v50 = vld [vmem:[%s3499_s1 + $0x60] sm:$0xff]  ;;  %390 = vmatpush.msra.mxu3 %v239_v49  ;;  %v184_v49 = vld [vmem:[%s3499_s1 + $0x4a8] sm:$0xff] }
  0x34   :  { %v111_v51 = vld [vmem:[%s3499_s1 + $0x260] sm:$0xff]  ;;  %303 = vmatpush.msra.mxu0 %v47_v50  ;;  %v252_v50 = vld [vmem:[%s3499_s1 + $0x6c8] sm:$0xff] }
  0x35   :  { %v171_v52 = vld [vmem:[%s3499_s1 + $0x440] sm:$0xff]  ;;  %332 = vmatpush.msra.mxu1 %v111_v51  ;;  %v60_v51 = vld [vmem:[%s3499_s1 + $0xc8] sm:$0xff] }
  0x36   :  { %v235_v53 = vld [vmem:[%s3499_s1 + $0x640] sm:$0xff]  ;;  %362 = vmatpush.msra.mxu2 %v171_v52  ;;  %v124_v52 = vld [vmem:[%s3499_s1 + $0x2c8] sm:$0xff] }
  0x37   :  { %v43_v54 = vld [vmem:[%s3499_s1 + $0x40] sm:$0xff]  ;;  %391 = vmatpush.msra.mxu3 %v235_v53  ;;  %v180_v53 = vld [vmem:[%s3499_s1 + $0x488] sm:$0xff] }
  0x38   :  { %v107_v55 = vld [vmem:[%s3499_s1 + $0x240] sm:$0xff]  ;;  %304 = vmatpush.msra.mxu0 %v43_v54  ;;  %v248_v54 = vld [vmem:[%s3499_s1 + $0x6a8] sm:$0xff] }
  0x39   :  { %v167_v56 = vld [vmem:[%s3499_s1 + $0x420] sm:$0xff]  ;;  %333 = vmatpush.msra.mxu1 %v107_v55  ;;  %v1963_v55 = vld [vmem:[%s3500_s0 + $0x70] sm:$0xff] }
  0x3a   :  { %v231_v57 = vld [vmem:[%s3499_s1 + $0x620] sm:$0xff]  ;;  %363 = vmatpush.msra.mxu2 %v167_v56  ;;  %v56_v56 = vld [vmem:[%s3499_s1 + $0xa8] sm:$0xff] }
  0x3b   :  { %v39_v58 = vld [vmem:[%s3499_s1 + $0x20] sm:$0xff]  ;;  %392 = vmatpush.msra.mxu3 %v231_v57  ;;  %v120_v57 = vld [vmem:[%s3499_s1 + $0x2a8] sm:$0xff] }
  0x3c   :  { %v103_v59 = vld [vmem:[%s3499_s1 + $0x220] sm:$0xff]  ;;  %305 = vmatpush.msra.mxu0 %v39_v58  ;;  %v176_v58 = vld [vmem:[%s3499_s1 + $0x468] sm:$0xff] }
  0x3d   :  { %v163_v60 = vld [vmem:[%s3499_s1 + $0x400] sm:$0xff]  ;;  %334 = vmatpush.msra.mxu1 %v103_v59  ;;  %v244_v59 = vld [vmem:[%s3499_s1 + $0x688] sm:$0xff] }
  0x3e   :  { %v227_v61 = vld [vmem:[%s3499_s1 + $0x600] sm:$0xff]  ;;  %364 = vmatpush.msra.mxu2 %v163_v60  ;;  %v1981_v60 = vld [vmem:[%s3500_s0 + $0x78] sm:$0xff] }
  0x3f   :  { %393 = vmatpush.msra.mxu3 %v227_v61  ;;  %v35_v2 = vld [vmem:[%s3499_s1] sm:$0xff]  ;;  %365 = vmatmul.f32.vlgmr.msra.gmra.mxu2 %v1756_v62  ;;  %v52_v61 = vld [vmem:[%s3499_s1 + $0x88] sm:$0xff] }
  0x40   :  { %v99_v3 = vld [vmem:[%s3499_s1 + $0x200] sm:$0xff]  ;;  %394 = vmatmul.f32.vlgmr.msra.gmra.mxu3 %v1761_v63  ;;  %465 = vmatpush.msrb.mxu2 %v224_v0  ;;  %v116_v0 = vld [vmem:[%s3499_s1 + $0x288] sm:$0xff] }
  0x41   :  { %v1783_v5 = vld [vmem:[%s3500_s0] sm:$0xff]  ;;  %494 = vmatpush.msrb.mxu3 %v288_v1  ;;  %306 = vmatpush.msra.mxu0 %v35_v2  ;;  %v172_v1 = vld [vmem:[%s3499_s1 + $0x448] sm:$0xff] }
  0x42   :  { %335 = vmatpush.msra.mxu1 %v99_v3  ;;  %466 = vmatpush.msrb.mxu2 %v220_v4  ;;  %v1854_v25 = vld [vmem:[%s3500_s0 + $0x20] sm:$0xff]  ;;  %v240_v2 = vld [vmem:[%s3499_s1 + $0x668] sm:$0xff] }
  0x43   :  { %307 = vmatmul.f32.vlgmr.msra.gmra.mxu0 %v1783_v5  ;;  %336 = vmatmul.f32.vlgmr.msra.gmra.mxu1 %v1788_v6  ;;  %v1926_v45 = vld [vmem:[%s3500_s0 + $0x40] sm:$0xff]  ;;  %v2004_v4 = vld [vmem:[%s3500_s0 + $0x68] sm:$0xff] }
  0x44   :  { %407 = vmatpush.msrb.mxu0 %v96_v7  ;;  %436 = vmatpush.msrb.mxu1 %v160_v8  ;;  %v1998_v3 = vld [vmem:[%s3500_s0 + $0x60] sm:$0xff]  ;;  %v48_v7 = vld [vmem:[%s3499_s1 + $0x68] sm:$0xff] }
  0x45   :  { %467 = vmatpush.msrb.mxu2 %v216_v9  ;;  %495 = vmatpush.msrb.mxu3 %v284_v10  ;;  %v112_v8 = vld [vmem:[%s3499_s1 + $0x268] sm:$0xff] }
  0x46   :  { %408 = vmatpush.msrb.mxu0 %v92_v11  ;;  %437 = vmatpush.msrb.mxu1 %v156_v12  ;;  %v168_v9 = vld [vmem:[%s3499_s1 + $0x428] sm:$0xff] }
  0x47   :  { %468 = vmatpush.msrb.mxu2 %v212_v13  ;;  %496 = vmatpush.msrb.mxu3 %v280_v14  ;;  %v236_v10 = vld [vmem:[%s3499_s1 + $0x648] sm:$0xff] }
  0x48   :  { %368 = vmatmul.f32.gmra.mxu2 %v1819_v15  ;;  %409 = vmatpush.msrb.mxu0 %v88_v16  ;;  %v44_v11 = vld [vmem:[%s3499_s1 + $0x48] sm:$0xff] }
  0x49   :  { %438 = vmatpush.msrb.mxu1 %v152_v17  ;;  %469 = vmatpush.msrb.mxu2 %v208_v18  ;;  %v108_v12 = vld [vmem:[%s3499_s1 + $0x248] sm:$0xff] }
  0x4a   :  { %497 = vmatpush.msrb.mxu3 %v276_v19  ;;  %410 = vmatpush.msrb.mxu0 %v84_v21  ;;  %v164_v13 = vld [vmem:[%s3499_s1 + $0x408] sm:$0xff]  ;;  %v225_v19 = vld [vmem:[%s3499_s1 + $0x5f0] sm:$0xff] }
  0x4b   :  { %397 = vmatmul.f32.gmra.mxu3 %v1837_v20  ;;  %439 = vmatpush.msrb.mxu1 %v148_v22  ;;  %v232_v14 = vld [vmem:[%s3499_s1 + $0x628] sm:$0xff] }
  0x4c   :  { %470 = vmatpush.msrb.mxu2 %v204_v23  ;;  %498 = vmatpush.msrb.mxu3 %v272_v24  ;;  %v40_v16 = vld [vmem:[%s3499_s1 + $0x28] sm:$0xff]  ;;  %v221_v23 = vld [vmem:[%s3499_s1 + $0x5d0] sm:$0xff] }
  0x4d   :  { %310 = vmatmul.f32.gmra.mxu0 %v1854_v25  ;;  %339 = vmatmul.f32.gmra.mxu1 %v1860_v26  ;;  %v104_v17 = vld [vmem:[%s3499_s1 + $0x228] sm:$0xff]  ;;  %v289_v24 = vld [vmem:[%s3499_s1 + $0x7f0] sm:$0xff] }
  0x4e   :  { %411 = vmatpush.msrb.mxu0 %v80_v27  ;;  %440 = vmatpush.msrb.mxu1 %v144_v28  ;;  %v228_v18 = vld [vmem:[%s3499_s1 + $0x608] sm:$0xff]  ;;  %v97_v27 = vld [vmem:[%s3499_s1 + $0x1f0] sm:$0xff] }
  0x4f   :  { %471 = vmatpush.msrb.mxu2 %v200_v29  ;;  %499 = vmatpush.msrb.mxu3 %v268_v30  ;;  %v36_v21 = vld [vmem:[%s3499_s1 + $0x8] sm:$0xff]  ;;  %v161_v28 = vld [vmem:[%s3499_s1 + $0x3f0] sm:$0xff] }
  0x50   :  { %412 = vmatpush.msrb.mxu0 %v76_v31  ;;  %441 = vmatpush.msrb.mxu1 %v140_v32  ;;  %v100_v22 = vld [vmem:[%s3499_s1 + $0x208] sm:$0xff]  ;;  %v217_v29 = vld [vmem:[%s3499_s1 + $0x5b0] sm:$0xff] }
  0x51   :  { %472 = vmatpush.msrb.mxu2 %v196_v33  ;;  %500 = vmatpush.msrb.mxu3 %v264_v34  ;;  %v285_v30 = vld [vmem:[%s3499_s1 + $0x7d0] sm:$0xff] }
  0x52   :  { %371 = vmatmul.f32.gmra.mxu2 %v1891_v35  ;;  %413 = vmatpush.msrb.mxu0 %v72_v36  ;;  %v93_v31 = vld [vmem:[%s3499_s1 + $0x1d0] sm:$0xff] }
  0x53   :  { %442 = vmatpush.msrb.mxu1 %v136_v37  ;;  %473 = vmatpush.msrb.mxu2 %v192_v38  ;;  %v157_v32 = vld [vmem:[%s3499_s1 + $0x3d0] sm:$0xff] }
  0x54   :  { %501 = vmatpush.msrb.mxu3 %v260_v39  ;;  %414 = vmatpush.msrb.mxu0 %v68_v41  ;;  %v213_v33 = vld [vmem:[%s3499_s1 + $0x590] sm:$0xff] }
  0x55   :  { %400 = vmatmul.f32.gmra.mxu3 %v1909_v40  ;;  %443 = vmatpush.msrb.mxu1 %v132_v42  ;;  %v281_v34 = vld [vmem:[%s3499_s1 + $0x7b0] sm:$0xff] }
  0x56   :  { %474 = vmatpush.msrb.mxu2 %v188_v43  ;;  %502 = vmatpush.msrb.mxu3 %v256_v44  ;;  %v89_v36 = vld [vmem:[%s3499_s1 + $0x1b0] sm:$0xff] }
  0x57   :  { %313 = vmatmul.f32.gmra.mxu0 %v1926_v45  ;;  %342 = vmatmul.f32.gmra.mxu1 %v1932_v46  ;;  %v153_v37 = vld [vmem:[%s3499_s1 + $0x3b0] sm:$0xff] }
  0x58   :  { %415 = vmatpush.msrb.mxu0 %v64_v47  ;;  %444 = vmatpush.msrb.mxu1 %v128_v48  ;;  %v209_v38 = vld [vmem:[%s3499_s1 + $0x570] sm:$0xff] }
  0x59   :  { %475 = vmatpush.msrb.mxu2 %v184_v49  ;;  %503 = vmatpush.msrb.mxu3 %v252_v50  ;;  %v277_v39 = vld [vmem:[%s3499_s1 + $0x790] sm:$0xff] }
  0x5a   :  { %416 = vmatpush.msrb.mxu0 %v60_v51  ;;  %445 = vmatpush.msrb.mxu1 %v124_v52  ;;  %v85_v41 = vld [vmem:[%s3499_s1 + $0x190] sm:$0xff] }
  0x5b   :  { %476 = vmatpush.msrb.mxu2 %v180_v53  ;;  %504 = vmatpush.msrb.mxu3 %v248_v54  ;;  %v149_v42 = vld [vmem:[%s3499_s1 + $0x390] sm:$0xff] }
  0x5c   :  { %374 = vmatmul.f32.gmra.mxu2 %v1963_v55  ;;  %417 = vmatpush.msrb.mxu0 %v56_v56  ;;  %v205_v43 = vld [vmem:[%s3499_s1 + $0x550] sm:$0xff] }
  0x5d   :  { %446 = vmatpush.msrb.mxu1 %v120_v57  ;;  %477 = vmatpush.msrb.mxu2 %v176_v58  ;;  %v273_v44 = vld [vmem:[%s3499_s1 + $0x770] sm:$0xff] }
  0x5e   :  { %505 = vmatpush.msrb.mxu3 %v244_v59  ;;  %418 = vmatpush.msrb.mxu0 %v52_v61  ;;  %v81_v47 = vld [vmem:[%s3499_s1 + $0x170] sm:$0xff] }
  0x5f   :  { %403 = vmatmul.f32.gmra.mxu3 %v1981_v60  ;;  %447 = vmatpush.msrb.mxu1 %v116_v0  ;;  %v145_v48 = vld [vmem:[%s3499_s1 + $0x370] sm:$0xff] }
  0x60   :  { %478 = vmatpush.msrb.mxu2 %v172_v1  ;;  %506 = vmatpush.msrb.mxu3 %v240_v2  ;;  %v201_v49 = vld [vmem:[%s3499_s1 + $0x530] sm:$0xff] }
  0x61   :  { %316 = vmatmul.f32.gmra.mxu0 %v1998_v3  ;;  %345 = vmatmul.f32.gmra.mxu1 %v2004_v4  ;;  %v269_v50 = vld [vmem:[%s3499_s1 + $0x750] sm:$0xff] }
  0x62   :  { %419 = vmatpush.msrb.mxu0 %v48_v7  ;;  %448 = vmatpush.msrb.mxu1 %v112_v8  ;;  %v77_v51 = vld [vmem:[%s3499_s1 + $0x150] sm:$0xff] }
  0x63   :  { %479 = vmatpush.msrb.mxu2 %v168_v9  ;;  %507 = vmatpush.msrb.mxu3 %v236_v10  ;;  %v141_v52 = vld [vmem:[%s3499_s1 + $0x350] sm:$0xff] }
  0x64   :  { %420 = vmatpush.msrb.mxu0 %v44_v11  ;;  %449 = vmatpush.msrb.mxu1 %v108_v12  ;;  %v197_v53 = vld [vmem:[%s3499_s1 + $0x510] sm:$0xff] }
  0x65   :  { %480 = vmatpush.msrb.mxu2 %v164_v13  ;;  %508 = vmatpush.msrb.mxu3 %v232_v14  ;;  %v265_v54 = vld [vmem:[%s3499_s1 + $0x730] sm:$0xff] }
  0x66   :  { %421 = vmatpush.msrb.mxu0 %v40_v16  ;;  %450 = vmatpush.msrb.mxu1 %v104_v17  ;;  %v73_v56 = vld [vmem:[%s3499_s1 + $0x130] sm:$0xff] }
  0x67   :  { %481 = vmatmul.f32.vlgmr.msrb.gmra.mxu2 %v1756_v62  ;;  %509 = vmatpush.msrb.mxu3 %v228_v18  ;;  %v137_v57 = vld [vmem:[%s3499_s1 + $0x330] sm:$0xff] }
  0x68   :  { %581 = vmatpush.msra.mxu2 %v225_v19  ;;  %422 = vmatpush.msrb.mxu0 %v36_v21  ;;  %v193_v58 = vld [vmem:[%s3499_s1 + $0x4f0] sm:$0xff] }
  0x69   :  { %451 = vmatpush.msrb.mxu1 %v100_v22  ;;  %510 = vmatmul.f32.vlgmr.msrb.gmra.mxu3 %v1761_v63  ;;  %v261_v59 = vld [vmem:[%s3499_s1 + $0x710] sm:$0xff] }
  0x6a   :  { %582 = vmatpush.msra.mxu2 %v221_v23  ;;  %610 = vmatpush.msra.mxu3 %v289_v24  ;;  %v69_v61 = vld [vmem:[%s3499_s1 + $0x110] sm:$0xff] }
  0x6b   :  { %423 = vmatmul.f32.vlgmr.msrb.gmra.mxu0 %v1783_v5  ;;  %452 = vmatmul.f32.vlgmr.msrb.gmra.mxu1 %v1788_v6  ;;  %v133_v0 = vld [vmem:[%s3499_s1 + $0x310] sm:$0xff] }
  0x6c   :  { %523 = vmatpush.msra.mxu0 %v97_v27  ;;  %552 = vmatpush.msra.mxu1 %v161_v28  ;;  %v189_v1 = vld [vmem:[%s3499_s1 + $0x4d0] sm:$0xff] }
  0x6d   :  { %583 = vmatpush.msra.mxu2 %v217_v29  ;;  %611 = vmatpush.msra.mxu3 %v285_v30  ;;  %v257_v2 = vld [vmem:[%s3499_s1 + $0x6f0] sm:$0xff] }
  0x6e   :  { %524 = vmatpush.msra.mxu0 %v93_v31  ;;  %553 = vmatpush.msra.mxu1 %v157_v32  ;;  %v65_v7 = vld [vmem:[%s3499_s1 + $0xf0] sm:$0xff] }
  0x6f   :  { %584 = vmatpush.msra.mxu2 %v213_v33  ;;  %612 = vmatpush.msra.mxu3 %v281_v34  ;;  %v129_v8 = vld [vmem:[%s3499_s1 + $0x2f0] sm:$0xff] }
  0x70   :  { %484 = vmatmul.f32.gmra.mxu2 %v1819_v15  ;;  %525 = vmatpush.msra.mxu0 %v89_v36  ;;  %v185_v9 = vld [vmem:[%s3499_s1 + $0x4b0] sm:$0xff] }
  0x71   :  { %554 = vmatpush.msra.mxu1 %v153_v37  ;;  %585 = vmatpush.msra.mxu2 %v209_v38  ;;  %v253_v10 = vld [vmem:[%s3499_s1 + $0x6d0] sm:$0xff] }
  0x72   :  { %613 = vmatpush.msra.mxu3 %v277_v39  ;;  %526 = vmatpush.msra.mxu0 %v85_v41  ;;  %v61_v11 = vld [vmem:[%s3499_s1 + $0xd0] sm:$0xff]  ;;  %v226_v39 = vld [vmem:[%s3499_s1 + $0x5f8] sm:$0xff] }
  0x73   :  { %513 = vmatmul.f32.gmra.mxu3 %v1837_v20  ;;  %555 = vmatpush.msra.mxu1 %v149_v42  ;;  %v125_v12 = vld [vmem:[%s3499_s1 + $0x2d0] sm:$0xff] }
  0x74   :  { %586 = vmatpush.msra.mxu2 %v205_v43  ;;  %614 = vmatpush.msra.mxu3 %v273_v44  ;;  %v181_v13 = vld [vmem:[%s3499_s1 + $0x490] sm:$0xff]  ;;  %v222_v43 = vld [vmem:[%s3499_s1 + $0x5d8] sm:$0xff] }
  0x75   :  { %426 = vmatmul.f32.gmra.mxu0 %v1854_v25  ;;  %455 = vmatmul.f32.gmra.mxu1 %v1860_v26  ;;  %v249_v14 = vld [vmem:[%s3499_s1 + $0x6b0] sm:$0xff]  ;;  %v290_v44 = vld [vmem:[%s3499_s1 + $0x7f8] sm:$0xff] }
  0x76   :  { %527 = vmatpush.msra.mxu0 %v81_v47  ;;  %556 = vmatpush.msra.mxu1 %v145_v48  ;;  %v57_v16 = vld [vmem:[%s3499_s1 + $0xb0] sm:$0xff]  ;;  %v98_v47 = vld [vmem:[%s3499_s1 + $0x1f8] sm:$0xff] }
  0x77   :  { %587 = vmatpush.msra.mxu2 %v201_v49  ;;  %615 = vmatpush.msra.mxu3 %v269_v50  ;;  %v121_v17 = vld [vmem:[%s3499_s1 + $0x2b0] sm:$0xff]  ;;  %v162_v48 = vld [vmem:[%s3499_s1 + $0x3f8] sm:$0xff] }
  0x78   :  { %528 = vmatpush.msra.mxu0 %v77_v51  ;;  %557 = vmatpush.msra.mxu1 %v141_v52  ;;  %v177_v18 = vld [vmem:[%s3499_s1 + $0x470] sm:$0xff]  ;;  %v218_v49 = vld [vmem:[%s3499_s1 + $0x5b8] sm:$0xff] }
  0x79   :  { %588 = vmatpush.msra.mxu2 %v197_v53  ;;  %616 = vmatpush.msra.mxu3 %v265_v54  ;;  %v245_v19 = vld [vmem:[%s3499_s1 + $0x690] sm:$0xff]  ;;  %v286_v50 = vld [vmem:[%s3499_s1 + $0x7d8] sm:$0xff] }
  0x7a   :  { %487 = vmatmul.f32.gmra.mxu2 %v1891_v35  ;;  %529 = vmatpush.msra.mxu0 %v73_v56  ;;  %v53_v21 = vld [vmem:[%s3499_s1 + $0x90] sm:$0xff]  ;;  %v94_v51 = vld [vmem:[%s3499_s1 + $0x1d8] sm:$0xff] }
  0x7b   :  { %558 = vmatpush.msra.mxu1 %v137_v57  ;;  %589 = vmatpush.msra.mxu2 %v193_v58  ;;  %v117_v22 = vld [vmem:[%s3499_s1 + $0x290] sm:$0xff]  ;;  %v158_v52 = vld [vmem:[%s3499_s1 + $0x3d8] sm:$0xff] }
  0x7c   :  { %617 = vmatpush.msra.mxu3 %v261_v59  ;;  %530 = vmatpush.msra.mxu0 %v69_v61  ;;  %v173_v23 = vld [vmem:[%s3499_s1 + $0x450] sm:$0xff]  ;;  %v214_v53 = vld [vmem:[%s3499_s1 + $0x598] sm:$0xff] }
  0x7d   :  { %516 = vmatmul.f32.gmra.mxu3 %v1909_v40  ;;  %559 = vmatpush.msra.mxu1 %v133_v0  ;;  %v241_v24 = vld [vmem:[%s3499_s1 + $0x670] sm:$0xff]  ;;  %v282_v54 = vld [vmem:[%s3499_s1 + $0x7b8] sm:$0xff] }
  0x7e   :  { %590 = vmatpush.msra.mxu2 %v189_v1  ;;  %618 = vmatpush.msra.mxu3 %v257_v2  ;;  %v49_v27 = vld [vmem:[%s3499_s1 + $0x70] sm:$0xff]  ;;  %v90_v56 = vld [vmem:[%s3499_s1 + $0x1b8] sm:$0xff] }
  0x7f   :  { %429 = vmatmul.f32.gmra.mxu0 %v1926_v45  ;;  %458 = vmatmul.f32.gmra.mxu1 %v1932_v46  ;;  %v113_v28 = vld [vmem:[%s3499_s1 + $0x270] sm:$0xff]  ;;  %v154_v57 = vld [vmem:[%s3499_s1 + $0x3b8] sm:$0xff] }
  0x80   :  { %531 = vmatpush.msra.mxu0 %v65_v7  ;;  %560 = vmatpush.msra.mxu1 %v129_v8  ;;  %v169_v29 = vld [vmem:[%s3499_s1 + $0x430] sm:$0xff]  ;;  %v210_v58 = vld [vmem:[%s3499_s1 + $0x578] sm:$0xff] }
  0x81   :  { %591 = vmatpush.msra.mxu2 %v185_v9  ;;  %619 = vmatpush.msra.mxu3 %v253_v10  ;;  %v237_v30 = vld [vmem:[%s3499_s1 + $0x650] sm:$0xff]  ;;  %v278_v59 = vld [vmem:[%s3499_s1 + $0x798] sm:$0xff] }
  0x82   :  { %532 = vmatpush.msra.mxu0 %v61_v11  ;;  %561 = vmatpush.msra.mxu1 %v125_v12  ;;  %v45_v31 = vld [vmem:[%s3499_s1 + $0x50] sm:$0xff]  ;;  %v86_v61 = vld [vmem:[%s3499_s1 + $0x198] sm:$0xff] }
  0x83   :  { %592 = vmatpush.msra.mxu2 %v181_v13  ;;  %620 = vmatpush.msra.mxu3 %v249_v14  ;;  %v109_v32 = vld [vmem:[%s3499_s1 + $0x250] sm:$0xff]  ;;  %v150_v0 = vld [vmem:[%s3499_s1 + $0x398] sm:$0xff] }
  0x84   :  { %490 = vmatmul.f32.gmra.mxu2 %v1963_v55  ;;  %533 = vmatpush.msra.mxu0 %v57_v16  ;;  %v165_v33 = vld [vmem:[%s3499_s1 + $0x410] sm:$0xff]  ;;  %v206_v1 = vld [vmem:[%s3499_s1 + $0x558] sm:$0xff] }
  0x85   :  { %562 = vmatpush.msra.mxu1 %v121_v17  ;;  %593 = vmatpush.msra.mxu2 %v177_v18  ;;  %v233_v34 = vld [vmem:[%s3499_s1 + $0x630] sm:$0xff]  ;;  %v274_v2 = vld [vmem:[%s3499_s1 + $0x778] sm:$0xff] }
  0x86   :  { %621 = vmatpush.msra.mxu3 %v245_v19  ;;  %534 = vmatpush.msra.mxu0 %v53_v21  ;;  %v41_v36 = vld [vmem:[%s3499_s1 + $0x30] sm:$0xff]  ;;  %v82_v7 = vld [vmem:[%s3499_s1 + $0x178] sm:$0xff] }
  0x87   :  { %519 = vmatmul.f32.gmra.mxu3 %v1981_v60  ;;  %563 = vmatpush.msra.mxu1 %v117_v22  ;;  %v105_v37 = vld [vmem:[%s3499_s1 + $0x230] sm:$0xff]  ;;  %v146_v8 = vld [vmem:[%s3499_s1 + $0x378] sm:$0xff] }
  0x88   :  { %594 = vmatpush.msra.mxu2 %v173_v23  ;;  %622 = vmatpush.msra.mxu3 %v241_v24  ;;  %v229_v38 = vld [vmem:[%s3499_s1 + $0x610] sm:$0xff]  ;;  %v202_v9 = vld [vmem:[%s3499_s1 + $0x538] sm:$0xff] }
  0x89   :  { %432 = vmatmul.f32.gmra.mxu0 %v1998_v3  ;;  %461 = vmatmul.f32.gmra.mxu1 %v2004_v4  ;;  %v37_v41 = vld [vmem:[%s3499_s1 + $0x10] sm:$0xff]  ;;  %v270_v10 = vld [vmem:[%s3499_s1 + $0x758] sm:$0xff] }
  0x8a   :  { %535 = vmatpush.msra.mxu0 %v49_v27  ;;  %564 = vmatpush.msra.mxu1 %v113_v28  ;;  %v101_v42 = vld [vmem:[%s3499_s1 + $0x210] sm:$0xff]  ;;  %v78_v11 = vld [vmem:[%s3499_s1 + $0x158] sm:$0xff] }
  0x8b   :  { %595 = vmatpush.msra.mxu2 %v169_v29  ;;  %623 = vmatpush.msra.mxu3 %v237_v30  ;;  %v142_v12 = vld [vmem:[%s3499_s1 + $0x358] sm:$0xff] }
  0x8c   :  { %536 = vmatpush.msra.mxu0 %v45_v31  ;;  %565 = vmatpush.msra.mxu1 %v109_v32  ;;  %v198_v13 = vld [vmem:[%s3499_s1 + $0x518] sm:$0xff] }
  0x8d   :  { %596 = vmatpush.msra.mxu2 %v165_v33  ;;  %624 = vmatpush.msra.mxu3 %v233_v34  ;;  %v266_v14 = vld [vmem:[%s3499_s1 + $0x738] sm:$0xff] }
  0x8e   :  { %537 = vmatpush.msra.mxu0 %v41_v36  ;;  %566 = vmatpush.msra.mxu1 %v105_v37  ;;  %v74_v16 = vld [vmem:[%s3499_s1 + $0x138] sm:$0xff] }
  0x8f   :  { %597 = vmatmul.f32.vlgmr.msra.gmra.mxu2 %v1756_v62  ;;  %625 = vmatpush.msra.mxu3 %v229_v38  ;;  %v138_v17 = vld [vmem:[%s3499_s1 + $0x338] sm:$0xff] }
  0x90   :  { %697 = vmatpush.msrb.mxu2 %v226_v39  ;;  %538 = vmatpush.msra.mxu0 %v37_v41  ;;  %v194_v18 = vld [vmem:[%s3499_s1 + $0x4f8] sm:$0xff] }
  0x91   :  { %567 = vmatpush.msra.mxu1 %v101_v42  ;;  %626 = vmatmul.f32.vlgmr.msra.gmra.mxu3 %v1761_v63  ;;  %v262_v19 = vld [vmem:[%s3499_s1 + $0x718] sm:$0xff] }
  0x92   :  { %698 = vmatpush.msrb.mxu2 %v222_v43  ;;  %726 = vmatpush.msrb.mxu3 %v290_v44  ;;  %v70_v21 = vld [vmem:[%s3499_s1 + $0x118] sm:$0xff] }
  0x93   :  { %539 = vmatmul.f32.vlgmr.msra.gmra.mxu0 %v1783_v5  ;;  %568 = vmatmul.f32.vlgmr.msra.gmra.mxu1 %v1788_v6  ;;  %v134_v22 = vld [vmem:[%s3499_s1 + $0x318] sm:$0xff] }
  0x94   :  { %639 = vmatpush.msrb.mxu0 %v98_v47  ;;  %668 = vmatpush.msrb.mxu1 %v162_v48  ;;  %v190_v23 = vld [vmem:[%s3499_s1 + $0x4d8] sm:$0xff] }
  0x95   :  { %699 = vmatpush.msrb.mxu2 %v218_v49  ;;  %727 = vmatpush.msrb.mxu3 %v286_v50  ;;  %v258_v24 = vld [vmem:[%s3499_s1 + $0x6f8] sm:$0xff] }
  0x96   :  { %640 = vmatpush.msrb.mxu0 %v94_v51  ;;  %669 = vmatpush.msrb.mxu1 %v158_v52  ;;  %v66_v27 = vld [vmem:[%s3499_s1 + $0xf8] sm:$0xff] }
  0x97   :  { %700 = vmatpush.msrb.mxu2 %v214_v53  ;;  %728 = vmatpush.msrb.mxu3 %v282_v54  ;;  %v130_v28 = vld [vmem:[%s3499_s1 + $0x2f8] sm:$0xff] }
  0x98   :  { %600 = vmatmul.f32.gmra.mxu2 %v1819_v15  ;;  %641 = vmatpush.msrb.mxu0 %v90_v56  ;;  %v186_v29 = vld [vmem:[%s3499_s1 + $0x4b8] sm:$0xff] }
  0x99   :  { %670 = vmatpush.msrb.mxu1 %v154_v57  ;;  %701 = vmatpush.msrb.mxu2 %v210_v58  ;;  %v254_v30 = vld [vmem:[%s3499_s1 + $0x6d8] sm:$0xff] }
  0x9a   :  { %729 = vmatpush.msrb.mxu3 %v278_v59  ;;  %642 = vmatpush.msrb.mxu0 %v86_v61  ;;  %v62_v31 = vld [vmem:[%s3499_s1 + $0xd8] sm:$0xff]  ;;  %v975_v59 = vld [vmem:[%s3501_s3 + $0x5e0] sm:$0xff] }
  0x9b   :  { %629 = vmatmul.f32.gmra.mxu3 %v1837_v20  ;;  %671 = vmatpush.msrb.mxu1 %v150_v0  ;;  %v126_v32 = vld [vmem:[%s3499_s1 + $0x2d8] sm:$0xff] }
  0x9c   :  { %702 = vmatpush.msrb.mxu2 %v206_v1  ;;  %730 = vmatpush.msrb.mxu3 %v274_v2  ;;  %v182_v33 = vld [vmem:[%s3499_s1 + $0x498] sm:$0xff]  ;;  %v971_v1 = vld [vmem:[%s3501_s3 + $0x5c0] sm:$0xff] }
  0x9d   :  { %542 = vmatmul.f32.gmra.mxu0 %v1854_v25  ;;  %571 = vmatmul.f32.gmra.mxu1 %v1860_v26  ;;  %v250_v34 = vld [vmem:[%s3499_s1 + $0x6b8] sm:$0xff]  ;;  %v1039_v2 = vld [vmem:[%s3501_s3 + $0x7e0] sm:$0xff] }
  0x9e   :  { %643 = vmatpush.msrb.mxu0 %v82_v7  ;;  %672 = vmatpush.msrb.mxu1 %v146_v8  ;;  %v58_v36 = vld [vmem:[%s3499_s1 + $0xb8] sm:$0xff]  ;;  %v847_v7 = vld [vmem:[%s3501_s3 + $0x1e0] sm:$0xff] }
  0x9f   :  { %703 = vmatpush.msrb.mxu2 %v202_v9  ;;  %731 = vmatpush.msrb.mxu3 %v270_v10  ;;  %v122_v37 = vld [vmem:[%s3499_s1 + $0x2b8] sm:$0xff]  ;;  %v967_v8 = vld [vmem:[%s3501_s3 + $0x5a0] sm:$0xff] }
  0xa0   :  { %644 = vmatpush.msrb.mxu0 %v78_v11  ;;  %673 = vmatpush.msrb.mxu1 %v142_v12  ;;  %v178_v38 = vld [vmem:[%s3499_s1 + $0x478] sm:$0xff]  ;;  %v1035_v9 = vld [vmem:[%s3501_s3 + $0x7c0] sm:$0xff] }
  0xa1   :  { %704 = vmatpush.msrb.mxu2 %v198_v13  ;;  %732 = vmatpush.msrb.mxu3 %v266_v14  ;;  %v246_v39 = vld [vmem:[%s3499_s1 + $0x698] sm:$0xff]  ;;  %v907_v10 = vld [vmem:[%s3501_s3 + $0x3c0] sm:$0xff] }
  0xa2   :  { %603 = vmatmul.f32.gmra.mxu2 %v1891_v35  ;;  %645 = vmatpush.msrb.mxu0 %v74_v16  ;;  %v54_v41 = vld [vmem:[%s3499_s1 + $0x98] sm:$0xff]  ;;  %v963_v11 = vld [vmem:[%s3501_s3 + $0x580] sm:$0xff] }
  0xa3   :  { %674 = vmatpush.msrb.mxu1 %v138_v17  ;;  %705 = vmatpush.msrb.mxu2 %v194_v18  ;;  %v118_v42 = vld [vmem:[%s3499_s1 + $0x298] sm:$0xff]  ;;  %v903_v12 = vld [vmem:[%s3501_s3 + $0x3a0] sm:$0xff] }
  0xa4   :  { %733 = vmatpush.msrb.mxu3 %v262_v19  ;;  %646 = vmatpush.msrb.mxu0 %v70_v21  ;;  %v174_v43 = vld [vmem:[%s3499_s1 + $0x458] sm:$0xff]  ;;  %v959_v13 = vld [vmem:[%s3501_s3 + $0x560] sm:$0xff] }
  0xa5   :  { %632 = vmatmul.f32.gmra.mxu3 %v1909_v40  ;;  %675 = vmatpush.msrb.mxu1 %v134_v22  ;;  %v242_v44 = vld [vmem:[%s3499_s1 + $0x678] sm:$0xff]  ;;  %v1027_v14 = vld [vmem:[%s3501_s3 + $0x780] sm:$0xff] }
  0xa6   :  { %706 = vmatpush.msrb.mxu2 %v190_v23  ;;  %734 = vmatpush.msrb.mxu3 %v258_v24  ;;  %v50_v47 = vld [vmem:[%s3499_s1 + $0x78] sm:$0xff]  ;;  %v835_v16 = vld [vmem:[%s3501_s3 + $0x180] sm:$0xff] }
  0xa7   :  { %545 = vmatmul.f32.gmra.mxu0 %v1926_v45  ;;  %574 = vmatmul.f32.gmra.mxu1 %v1932_v46  ;;  %v114_v48 = vld [vmem:[%s3499_s1 + $0x278] sm:$0xff]  ;;  %v899_v18 = vld [vmem:[%s3501_s3 + $0x380] sm:$0xff] }
  0xa8   :  { %647 = vmatpush.msrb.mxu0 %v66_v27  ;;  %676 = vmatpush.msrb.mxu1 %v130_v28  ;;  %v170_v49 = vld [vmem:[%s3499_s1 + $0x438] sm:$0xff]  ;;  %v955_v19 = vld [vmem:[%s3501_s3 + $0x540] sm:$0xff] }
  0xa9   :  { %707 = vmatpush.msrb.mxu2 %v186_v29  ;;  %735 = vmatpush.msrb.mxu3 %v254_v30  ;;  %v238_v50 = vld [vmem:[%s3499_s1 + $0x658] sm:$0xff]  ;;  %v831_v23 = vld [vmem:[%s3501_s3 + $0x160] sm:$0xff] }
  0xaa   :  { %648 = vmatpush.msrb.mxu0 %v62_v31  ;;  %677 = vmatpush.msrb.mxu1 %v126_v32  ;;  %v46_v51 = vld [vmem:[%s3499_s1 + $0x58] sm:$0xff]  ;;  %v895_v27 = vld [vmem:[%s3501_s3 + $0x360] sm:$0xff] }
  0xab   :  { %708 = vmatpush.msrb.mxu2 %v182_v33  ;;  %736 = vmatpush.msrb.mxu3 %v250_v34  ;;  %v110_v52 = vld [vmem:[%s3499_s1 + $0x258] sm:$0xff]  ;;  %v951_v28 = vld [vmem:[%s3501_s3 + $0x520] sm:$0xff] }
  0xac   :  { %606 = vmatmul.f32.gmra.mxu2 %v1963_v55  ;;  %649 = vmatpush.msrb.mxu0 %v58_v36  ;;  %v166_v53 = vld [vmem:[%s3499_s1 + $0x418] sm:$0xff]  ;;  %v827_v30 = vld [vmem:[%s3501_s3 + $0x140] sm:$0xff] }
  0xad   :  { %678 = vmatpush.msrb.mxu1 %v122_v37  ;;  %709 = vmatpush.msrb.mxu2 %v178_v38  ;;  %v234_v54 = vld [vmem:[%s3499_s1 + $0x638] sm:$0xff]  ;;  %v891_v31 = vld [vmem:[%s3501_s3 + $0x340] sm:$0xff] }
  0xae   :  { %737 = vmatpush.msrb.mxu3 %v246_v39  ;;  %650 = vmatpush.msrb.mxu0 %v54_v41  ;;  %v42_v56 = vld [vmem:[%s3499_s1 + $0x38] sm:$0xff]  ;;  %v947_v32 = vld [vmem:[%s3501_s3 + $0x500] sm:$0xff] }
  0xaf   :  { %635 = vmatmul.f32.gmra.mxu3 %v1981_v60  ;;  %679 = vmatpush.msrb.mxu1 %v118_v42  ;;  %v106_v57 = vld [vmem:[%s3499_s1 + $0x238] sm:$0xff]  ;;  %v1015_v33 = vld [vmem:[%s3501_s3 + $0x720] sm:$0xff] }
  0xb0   :  { %710 = vmatpush.msrb.mxu2 %v174_v43  ;;  %738 = vmatpush.msrb.mxu3 %v242_v44  ;;  %v230_v58 = vld [vmem:[%s3499_s1 + $0x618] sm:$0xff]  ;;  %v887_v36 = vld [vmem:[%s3501_s3 + $0x320] sm:$0xff] }
  0xb1   :  { %548 = vmatmul.f32.gmra.mxu0 %v1998_v3  ;;  %577 = vmatmul.f32.gmra.mxu1 %v2004_v4  ;;  %v38_v61 = vld [vmem:[%s3499_s1 + $0x18] sm:$0xff]  ;;  %v943_v37 = vld [vmem:[%s3501_s3 + $0x4e0] sm:$0xff] }
  0xb2   :  { %651 = vmatpush.msrb.mxu0 %v50_v47  ;;  %680 = vmatpush.msrb.mxu1 %v114_v48  ;;  %v102_v0 = vld [vmem:[%s3499_s1 + $0x218] sm:$0xff]  ;;  %v1011_v38 = vld [vmem:[%s3501_s3 + $0x700] sm:$0xff] }
  0xb3   :  { %711 = vmatpush.msrb.mxu2 %v170_v49  ;;  %739 = vmatpush.msrb.mxu3 %v238_v50  ;;  %v819_v39 = vld [vmem:[%s3501_s3 + $0x100] sm:$0xff] }
  0xb4   :  { %652 = vmatpush.msrb.mxu0 %v46_v51  ;;  %681 = vmatpush.msrb.mxu1 %v110_v52  ;;  %v883_v42 = vld [vmem:[%s3501_s3 + $0x300] sm:$0xff] }
  0xb5   :  { %712 = vmatpush.msrb.mxu2 %v166_v53  ;;  %740 = vmatpush.msrb.mxu3 %v234_v54  ;;  %v939_v43 = vld [vmem:[%s3501_s3 + $0x4c0] sm:$0xff] }
  0xb6   :  { %653 = vmatpush.msrb.mxu0 %v42_v56  ;;  %682 = vmatpush.msrb.mxu1 %v106_v57  ;;  %v815_v48 = vld [vmem:[%s3501_s3 + $0xe0] sm:$0xff] }
  0xb7   :  { %713 = vmatmul.f32.vlgmr.msrb.gmra.mxu2 %v1756_v62  ;;  %741 = vmatpush.msrb.mxu3 %v230_v58  ;;  %v911_v62 = vld [vmem:[%s3501_s3 + $0x3e0] sm:$0xff] }
  0xb8   :  { %1101 = vmatpush.msra.mxu2 %v975_v59  ;;  %654 = vmatpush.msrb.mxu0 %v38_v61  ;;  %v879_v50 = vld [vmem:[%s3501_s3 + $0x2e0] sm:$0xff] }
  0xb9   :  { %683 = vmatpush.msrb.mxu1 %v102_v0  ;;  %742 = vmatmul.f32.vlgmr.msrb.gmra.mxu3 %v1761_v63  ;;  %v843_v63 = vld [vmem:[%s3501_s3 + $0x1c0] sm:$0xff] }
  0xba   :  { %1102 = vmatpush.msra.mxu2 %v971_v1  ;;  %1130 = vmatpush.msra.mxu3 %v1039_v2  ;;  %v935_v51 = vld [vmem:[%s3501_s3 + $0x4a0] sm:$0xff] }
  0xbb   :  { %655 = vmatmul.f32.vlgmr.msrb.gmra.mxu0 %v1783_v5  ;;  %684 = vmatmul.f32.vlgmr.msrb.gmra.mxu1 %v1788_v6  ;;  %v1031_v5 = vld [vmem:[%s3501_s3 + $0x7a0] sm:$0xff] }
  0xbc   :  { %1043 = vmatpush.msra.mxu0 %v847_v7  ;;  %1072 = vmatpush.msra.mxu1 %v911_v62  ;;  %v839_v6 = vld [vmem:[%s3501_s3 + $0x1a0] sm:$0xff] }
  0xbd   :  { %1103 = vmatpush.msra.mxu2 %v967_v8  ;;  %1131 = vmatpush.msra.mxu3 %v1035_v9  ;;  %v811_v53 = vld [vmem:[%s3501_s3 + $0xc0] sm:$0xff] }
  0xbe   :  { %1044 = vmatpush.msra.mxu0 %v843_v63  ;;  %1073 = vmatpush.msra.mxu1 %v907_v10  ;;  %v875_v54 = vld [vmem:[%s3501_s3 + $0x2c0] sm:$0xff] }
  0xbf   :  { %1104 = vmatpush.msra.mxu2 %v963_v11  ;;  %1132 = vmatpush.msra.mxu3 %v1031_v5  ;;  %v931_v56 = vld [vmem:[%s3501_s3 + $0x480] sm:$0xff] }
  0xc0   :  { %716 = vmatmul.f32.gmra.mxu2 %v1819_v15  ;;  %v308_v17 = vpop.f32.mrf.mxu0  ;;  %1045 = vmatpush.msra.mxu0 %v839_v6  ;;  %v337_v21 = vpop.f32.mrf.mxu1  ;;  %v1023_v15 = vld [vmem:[%s3501_s3 + $0x760] sm:$0xff] }
  0xc1   :  { %1074 = vmatpush.msra.mxu1 %v903_v12  ;;  %1105 = vmatpush.msra.mxu2 %v959_v13  ;;  %v338_v22 = vadd.f32 %v337_v21, %v308_v17  ;;  %v999_v57 = vld [vmem:[%s3501_s3 + $0x6a0] sm:$0xff] }
  0xc2   :  { %1133 = vmatpush.msra.mxu3 %v1027_v14  ;;  %1046 = vmatpush.msra.mxu0 %v835_v16  ;;  %v366_v24 = vpop.f32.mrf.mxu2  ;;  %v871_v59 = vld [vmem:[%s3501_s3 + $0x2a0] sm:$0xff] }
  0xc3   :  { %745 = vmatmul.f32.gmra.mxu3 %v1837_v20  ;;  %1075 = vmatpush.msra.mxu1 %v899_v18  ;;  %v367_v29 = vadd.f32 %v366_v24, %v338_v22  ;;  %v1019_v20 = vld [vmem:[%s3501_s3 + $0x740] sm:$0xff] }
  0xc4   :  { %1106 = vmatpush.msra.mxu2 %v955_v19  ;;  %1134 = vmatpush.msra.mxu3 %v1023_v15  ;;  %v927_v61 = vld [vmem:[%s3501_s3 + $0x460] sm:$0xff]  ;;  %v2671_v19 = vld [vmem:[%s3503_s2 + $0x10] sm:$0xff]  ;;  %v976_v15 = vld [vmem:[%s3501_s3 + $0x5e8] sm:$0xff] }
  0xc5   :  { %658 = vmatmul.f32.gmra.mxu0 %v1854_v25  ;;  %687 = vmatmul.f32.gmra.mxu1 %v1860_v26  ;;  %v395_v25 = vpop.f32.mrf.mxu3  ;;  %v823_v26 = vld [vmem:[%s3501_s3 + $0x120] sm:$0xff] }
  0xc6   :  { %1047 = vmatpush.msra.mxu0 %v831_v23  ;;  %1076 = vmatpush.msra.mxu1 %v895_v27  ;;  %v396_v34 = vadd.f32 %v395_v25, %v367_v29  ;;  %v995_v0 = vld [vmem:[%s3501_s3 + $0x680] sm:$0xff]  ;;  %v2692_v27 = vld [vmem:[%s3503_s2 + $0x18] sm:$0xff]  ;;  %v848_v25 = vld [vmem:[%s3501_s3 + $0x1e8] sm:$0xff] }
  0xc7   :  { %1107 = vmatpush.msra.mxu2 %v951_v28  ;;  %1135 = vmatpush.msra.mxu3 %v1019_v20  ;;  %v803_v1 = vld [vmem:[%s3501_s3 + $0x80] sm:$0xff]  ;;  %v972_v28 = vld [vmem:[%s3501_s3 + $0x5c8] sm:$0xff] }
  0xc8   :  { %1048 = vmatpush.msra.mxu0 %v827_v30  ;;  %1077 = vmatpush.msra.mxu1 %v891_v31  ;;  %755 = vst [vmem:[%s3502_s4] sm:$0xff] %v396_v34  ;;  %v867_v7 = vld [vmem:[%s3501_s3 + $0x280] sm:$0xff]  ;;  %v1040_v20 = vld [vmem:[%s3501_s3 + $0x7e8] sm:$0xff] }
  0xc9   :  { %1108 = vmatpush.msra.mxu2 %v947_v32  ;;  %1136 = vmatpush.msra.mxu3 %v1015_v33  ;;  %v923_v62 = vld [vmem:[%s3501_s3 + $0x440] sm:$0xff]  ;;  %v2708_v32 = vld [vmem:[%s3503_s2 + $0x8] sm:$0xff] }
  0xca   :  { %719 = vmatmul.f32.gmra.mxu2 %v1891_v35  ;;  %v311_v41 = vpop.f32.mrf.mxu0  ;;  %1049 = vmatpush.msra.mxu0 %v823_v26  ;;  %v340_v44 = vpop.f32.mrf.mxu1  ;;  %v1007_v35 = vld [vmem:[%s3501_s3 + $0x6e0] sm:$0xff]  ;;  %v912_v34 = vld [vmem:[%s3501_s3 + $0x3e8] sm:$0xff] }
  0xcb   :  { %1078 = vmatpush.msra.mxu1 %v887_v36  ;;  %1109 = vmatpush.msra.mxu2 %v943_v37  ;;  %v341_v47 = vadd.f32 %v340_v44, %v311_v41  ;;  %v369_v49 = vpop.f32.mrf.mxu2  ;;  %v799_v63 = vld [vmem:[%s3501_s3 + $0x60] sm:$0xff]  ;;  %v968_v26 = vld [vmem:[%s3501_s3 + $0x5a8] sm:$0xff]  ;;  %v2740_v44 = vld [vmem:[%s3503_s2 + $0x30] sm:$0xff] }
  0xcc   :  { %1137 = vmatpush.msra.mxu3 %v1011_v38  ;;  %1050 = vmatpush.msra.mxu0 %v819_v39  ;;  %v863_v11 = vld [vmem:[%s3501_s3 + $0x260] sm:$0xff]  ;;  %v1036_v37 = vld [vmem:[%s3501_s3 + $0x7c8] sm:$0xff] }
  0xcd   :  { %748 = vmatmul.f32.gmra.mxu3 %v1909_v40  ;;  %1079 = vmatpush.msra.mxu1 %v883_v42  ;;  %v370_v52 = vadd.f32 %v369_v49, %v341_v47  ;;  %v1003_v40 = vld [vmem:[%s3501_s3 + $0x6c0] sm:$0xff]  ;;  %v844_v38 = vld [vmem:[%s3501_s3 + $0x1c8] sm:$0xff] }
  0xce   :  { %1110 = vmatpush.msra.mxu2 %v939_v43  ;;  %1138 = vmatpush.msra.mxu3 %v1007_v35  ;;  %v919_v5 = vld [vmem:[%s3501_s3 + $0x420] sm:$0xff]  ;;  %v908_v39 = vld [vmem:[%s3501_s3 + $0x3c8] sm:$0xff] }
  0xcf   :  { %661 = vmatmul.f32.gmra.mxu0 %v1926_v45  ;;  %690 = vmatmul.f32.gmra.mxu1 %v1932_v46  ;;  %v398_v45 = vpop.f32.mrf.mxu3  ;;  %v807_v46 = vld [vmem:[%s3501_s3 + $0xa0] sm:$0xff]  ;;  %v964_v41 = vld [vmem:[%s3501_s3 + $0x588] sm:$0xff] }
  0xd0   :  { %1051 = vmatpush.msra.mxu0 %v815_v48  ;;  %1080 = vmatpush.msra.mxu1 %v879_v50  ;;  %v399_v58 = vadd.f32 %v398_v45, %v370_v52  ;;  %v795_v12 = vld [vmem:[%s3501_s3 + $0x40] sm:$0xff]  ;;  %v1032_v43 = vld [vmem:[%s3501_s3 + $0x7a8] sm:$0xff] }
  0xd1   :  { %1111 = vmatpush.msra.mxu2 %v935_v51  ;;  %1139 = vmatpush.msra.mxu3 %v1003_v40  ;;  %v859_v13 = vld [vmem:[%s3501_s3 + $0x240] sm:$0xff]  ;;  %v840_v47 = vld [vmem:[%s3501_s3 + $0x1a8] sm:$0xff]  ;;  %v2761_v51 = vld [vmem:[%s3503_s2 + $0x38] sm:$0xff] }
  0xd2   :  { %1052 = vmatpush.msra.mxu0 %v811_v53  ;;  %1081 = vmatpush.msra.mxu1 %v875_v54  ;;  %759 = vst [vmem:[%s3502_s4 + $0x20] sm:$0xff] %v399_v58  ;;  %v915_v14 = vld [vmem:[%s3501_s3 + $0x400] sm:$0xff]  ;;  %v904_v48 = vld [vmem:[%s3501_s3 + $0x3a8] sm:$0xff] }
  0xd3   :  { %1112 = vmatpush.msra.mxu2 %v931_v56  ;;  %1140 = vmatpush.msra.mxu3 %v999_v57  ;;  %v983_v16 = vld [vmem:[%s3501_s3 + $0x620] sm:$0xff]  ;;  %v960_v49 = vld [vmem:[%s3501_s3 + $0x568] sm:$0xff] }
  0xd4   :  { %722 = vmatmul.f32.gmra.mxu2 %v1963_v55  ;;  %v314_v2 = vpop.f32.mrf.mxu0  ;;  %1053 = vmatpush.msra.mxu0 %v807_v46  ;;  %v343_v8 = vpop.f32.mrf.mxu1  ;;  %v991_v55 = vld [vmem:[%s3501_s3 + $0x660] sm:$0xff]  ;;  %v1028_v50 = vld [vmem:[%s3501_s3 + $0x788] sm:$0xff] }
  0xd5   :  { %1082 = vmatpush.msra.mxu1 %v871_v59  ;;  %1113 = vmatpush.msra.mxu2 %v927_v61  ;;  %v344_v9 = vadd.f32 %v343_v8, %v314_v2  ;;  %v372_v10 = vpop.f32.mrf.mxu2  ;;  %v855_v18 = vld [vmem:[%s3501_s3 + $0x220] sm:$0xff]  ;;  %v836_v52 = vld [vmem:[%s3501_s3 + $0x188] sm:$0xff] }
  0xd6   :  { %1141 = vmatpush.msra.mxu3 %v995_v0  ;;  %1054 = vmatpush.msra.mxu0 %v803_v1  ;;  %v979_v21 = vld [vmem:[%s3501_s3 + $0x600] sm:$0xff]  ;;  %v900_v53 = vld [vmem:[%s3501_s3 + $0x388] sm:$0xff] }
  0xd7   :  { %751 = vmatmul.f32.gmra.mxu3 %v1981_v60  ;;  %1083 = vmatpush.msra.mxu1 %v867_v7  ;;  %v373_v6 = vadd.f32 %v372_v10, %v344_v9  ;;  %v987_v60 = vld [vmem:[%s3501_s3 + $0x640] sm:$0xff]  ;;  %v956_v54 = vld [vmem:[%s3501_s3 + $0x548] sm:$0xff]  ;;  %v2815_v10 = vld [vmem:[%s3503_s2 + $0x50] sm:$0xff] }
  0xd8   :  { %1114 = vmatpush.msra.mxu2 %v923_v62  ;;  %1142 = vmatpush.msra.mxu3 %v991_v55  ;;  %v787_v22 = vld [vmem:[%s3501_s3] sm:$0xff]  ;;  %v1024_v45 = vld [vmem:[%s3501_s3 + $0x768] sm:$0xff] }
  0xd9   :  { %664 = vmatmul.f32.gmra.mxu0 %v1998_v3  ;;  %693 = vmatmul.f32.gmra.mxu1 %v2004_v4  ;;  %v401_v3 = vpop.f32.mrf.mxu3  ;;  %v791_v4 = vld [vmem:[%s3501_s3 + $0x20] sm:$0xff]  ;;  %v2784_v46 = vld [vmem:[%s3503_s2 + $0x28] sm:$0xff] }
  0xda   :  { %1055 = vmatpush.msra.mxu0 %v799_v63  ;;  %1084 = vmatpush.msra.mxu1 %v863_v11  ;;  %v402_v17 = vadd.f32 %v401_v3, %v373_v6  ;;  %v851_v23 = vld [vmem:[%s3501_s3 + $0x200] sm:$0xff]  ;;  %v832_v59 = vld [vmem:[%s3501_s3 + $0x168] sm:$0xff] }
  0xdb   :  { %1115 = vmatpush.msra.mxu2 %v919_v5  ;;  %1143 = vmatpush.msra.mxu3 %v987_v60  ;;  %v2703_v30 = vld [vmem:[%s3503_s2] sm:$0xff]  ;;  %v896_v0 = vld [vmem:[%s3501_s3 + $0x368] sm:$0xff] }
  0xdc   :  { %1056 = vmatpush.msra.mxu0 %v795_v12  ;;  %1085 = vmatpush.msra.mxu1 %v859_v13  ;;  %763 = vst [vmem:[%s3502_s4 + $0x40] sm:$0xff] %v402_v17  ;;  %v2778_v57 = vld [vmem:[%s3503_s2 + $0x20] sm:$0xff]  ;;  %v952_v1 = vld [vmem:[%s3501_s3 + $0x528] sm:$0xff]  ;;  %v2836_v13 = vld [vmem:[%s3503_s2 + $0x58] sm:$0xff] }
  0xdd   :  { %1116 = vmatpush.msra.mxu2 %v915_v14  ;;  %1144 = vmatpush.msra.mxu3 %v983_v16  ;;  %v1020_v7 = vld [vmem:[%s3501_s3 + $0x748] sm:$0xff] }
  0xde   :  { %1057 = vmatpush.msra.mxu0 %v791_v4  ;;  %v317_v24 = vpop.f32.mrf.mxu0  ;;  %1086 = vmatpush.msra.mxu1 %v855_v18  ;;  %v346_v29 = vpop.f32.mrf.mxu1  ;;  %v828_v62 = vld [vmem:[%s3501_s3 + $0x148] sm:$0xff] }
  0xdf   :  { %1117 = vmatmul.f32.vlgmr.msra.gmra.mxu2 %v2671_v19  ;;  %1145 = vmatpush.msra.mxu3 %v979_v21  ;;  %v347_v31 = vadd.f32 %v346_v29, %v317_v24  ;;  %v375_v33 = vpop.f32.mrf.mxu2  ;;  %v892_v8 = vld [vmem:[%s3501_s3 + $0x348] sm:$0xff]  ;;  %v2853_v21 = vld [vmem:[%s3503_s2 + $0x40] sm:$0xff] }
  0xe0   :  { %1217 = vmatpush.msrb.mxu2 %v976_v15  ;;  %1058 = vmatpush.msra.mxu0 %v787_v22  ;;  %v948_v55 = vld [vmem:[%s3501_s3 + $0x508] sm:$0xff] }
  0xe1   :  { %1087 = vmatpush.msra.mxu1 %v851_v23  ;;  %1146 = vmatmul.f32.vlgmr.msra.gmra.mxu3 %v2692_v27  ;;  %v376_v36 = vadd.f32 %v375_v33, %v347_v31  ;;  %v1016_v63 = vld [vmem:[%s3501_s3 + $0x728] sm:$0xff] }
  0xe2   :  { %1218 = vmatpush.msrb.mxu2 %v972_v28  ;;  %1246 = vmatpush.msrb.mxu3 %v1040_v20  ;;  %v404_v42 = vpop.f32.mrf.mxu3  ;;  %v824_v5 = vld [vmem:[%s3501_s3 + $0x128] sm:$0xff] }
  0xe3   :  { %1059 = vmatmul.f32.vlgmr.msra.gmra.mxu0 %v2703_v30  ;;  %1088 = vmatmul.f32.vlgmr.msra.gmra.mxu1 %v2708_v32  ;;  %v405_v35 = vadd.f32 %v404_v42, %v376_v36  ;;  %v888_v6 = vld [vmem:[%s3501_s3 + $0x328] sm:$0xff] }
  0xe4   :  { %1159 = vmatpush.msrb.mxu0 %v848_v25  ;;  %1188 = vmatpush.msrb.mxu1 %v912_v34  ;;  %v944_v60 = vld [vmem:[%s3501_s3 + $0x4e8] sm:$0xff] }
  0xe5   :  { %1219 = vmatpush.msrb.mxu2 %v968_v26  ;;  %1247 = vmatpush.msrb.mxu3 %v1036_v37  ;;  %767 = vst [vmem:[%s3502_s4 + $0x60] sm:$0xff] %v405_v35  ;;  %v1012_v12 = vld [vmem:[%s3501_s3 + $0x708] sm:$0xff]  ;;  %v2890_v37 = vld [vmem:[%s3503_s2 + $0x70] sm:$0xff]  ;;  %v2911_v35 = vld [vmem:[%s3503_s2 + $0x78] sm:$0xff] }
  0xe6   :  { %1160 = vmatpush.msrb.mxu0 %v844_v38  ;;  %1189 = vmatpush.msrb.mxu1 %v908_v39  ;;  %v820_v14 = vld [vmem:[%s3501_s3 + $0x108] sm:$0xff] }
  0xe7   :  { %1220 = vmatpush.msrb.mxu2 %v964_v41  ;;  %1248 = vmatpush.msrb.mxu3 %v1032_v43  ;;  %v884_v16 = vld [vmem:[%s3501_s3 + $0x308] sm:$0xff] }
  0xe8   :  { %1120 = vmatmul.f32.gmra.mxu2 %v2740_v44  ;;  %v424_v40 = vpop.f32.mrf.mxu0  ;;  %1161 = vmatpush.msrb.mxu0 %v840_v47  ;;  %v453_v56 = vpop.f32.mrf.mxu1  ;;  %v940_v4 = vld [vmem:[%s3501_s3 + $0x4c8] sm:$0xff] }
  0xe9   :  { %1190 = vmatpush.msrb.mxu1 %v904_v48  ;;  %1221 = vmatpush.msrb.mxu2 %v960_v49  ;;  %v454_v58 = vadd.f32 %v453_v56, %v424_v40  ;;  %v1008_v18 = vld [vmem:[%s3501_s3 + $0x6e8] sm:$0xff] }
  0xea   :  { %1249 = vmatpush.msrb.mxu3 %v1028_v50  ;;  %1162 = vmatpush.msrb.mxu0 %v836_v52  ;;  %v482_v61 = vpop.f32.mrf.mxu2  ;;  %v2859_v22 = vld [vmem:[%s3503_s2 + $0x48] sm:$0xff] }
  0xeb   :  { %1149 = vmatmul.f32.gmra.mxu3 %v2761_v51  ;;  %1191 = vmatpush.msrb.mxu1 %v900_v53  ;;  %v483_v2 = vadd.f32 %v482_v61, %v454_v58  ;;  %v816_v23 = vld [vmem:[%s3501_s3 + $0xe8] sm:$0xff]  ;;  %v2928_v53 = vld [vmem:[%s3503_s2 + $0x60] sm:$0xff] }
  0xec   :  { %1222 = vmatpush.msrb.mxu2 %v956_v54  ;;  %1250 = vmatpush.msrb.mxu3 %v1024_v45  ;;  %v511_v9 = vpop.f32.mrf.mxu3  ;;  %v880_v28 = vld [vmem:[%s3501_s3 + $0x2e8] sm:$0xff] }
  0xed   :  { %1062 = vmatmul.f32.gmra.mxu0 %v2778_v57  ;;  %1091 = vmatmul.f32.gmra.mxu1 %v2784_v46  ;;  %v512_v11 = vadd.f32 %v511_v9, %v483_v2  ;;  %v936_v29 = vld [vmem:[%s3501_s3 + $0x4a8] sm:$0xff] }
  0xee   :  { %1163 = vmatpush.msrb.mxu0 %v832_v59  ;;  %1192 = vmatpush.msrb.mxu1 %v896_v0  ;;  %v1004_v31 = vld [vmem:[%s3501_s3 + $0x6c8] sm:$0xff] }
  0xef   :  { %1223 = vmatpush.msrb.mxu2 %v952_v1  ;;  %1251 = vmatpush.msrb.mxu3 %v1020_v7  ;;  %756 = vst [vmem:[%s3502_s4 + $0x8] sm:$0xff] %v512_v11  ;;  %v812_v25 = vld [vmem:[%s3501_s3 + $0xc8] sm:$0xff] }
  0xf0   :  { %1164 = vmatpush.msrb.mxu0 %v828_v62  ;;  %1193 = vmatpush.msrb.mxu1 %v892_v8  ;;  %v876_v33 = vld [vmem:[%s3501_s3 + $0x2c8] sm:$0xff] }
  0xf1   :  { %1224 = vmatpush.msrb.mxu2 %v948_v55  ;;  %1252 = vmatpush.msrb.mxu3 %v1016_v63  ;;  %v932_v34 = vld [vmem:[%s3501_s3 + $0x488] sm:$0xff] }
  0xf2   :  { %1123 = vmatmul.f32.gmra.mxu2 %v2815_v10  ;;  %v427_v3 = vpop.f32.mrf.mxu0  ;;  %1165 = vmatpush.msrb.mxu0 %v824_v5  ;;  %v456_v17 = vpop.f32.mrf.mxu1  ;;  %v1000_v36 = vld [vmem:[%s3501_s3 + $0x6a8] sm:$0xff] }
  0xf3   :  { %1194 = vmatpush.msrb.mxu1 %v888_v6  ;;  %1225 = vmatpush.msrb.mxu2 %v944_v60  ;;  %v457_v15 = vadd.f32 %v456_v17, %v427_v3  ;;  %v485_v24 = vpop.f32.mrf.mxu2  ;;  %v808_v39 = vld [vmem:[%s3501_s3 + $0xa8] sm:$0xff]  ;;  %v977_v6 = vld [vmem:[%s3501_s3 + $0x5f0] sm:$0xff] }
  0xf4   :  { %1253 = vmatpush.msrb.mxu3 %v1012_v12  ;;  %1166 = vmatpush.msrb.mxu0 %v820_v14  ;;  %v872_v41 = vld [vmem:[%s3501_s3 + $0x2a8] sm:$0xff]  ;;  %v973_v3 = vld [vmem:[%s3501_s3 + $0x5d0] sm:$0xff] }
  0xf5   :  { %1152 = vmatmul.f32.gmra.mxu3 %v2836_v13  ;;  %1195 = vmatpush.msrb.mxu1 %v884_v16  ;;  %v486_v20 = vadd.f32 %v485_v24, %v457_v15  ;;  %v928_v42 = vld [vmem:[%s3501_s3 + $0x468] sm:$0xff]  ;;  %v969_v24 = vld [vmem:[%s3501_s3 + $0x5b0] sm:$0xff] }
  0xf6   :  { %1226 = vmatpush.msrb.mxu2 %v940_v4  ;;  %1254 = vmatpush.msrb.mxu3 %v1008_v18  ;;  %v514_v26 = vpop.f32.mrf.mxu3  ;;  %v996_v43 = vld [vmem:[%s3501_s3 + $0x688] sm:$0xff]  ;;  %v1041_v4 = vld [vmem:[%s3501_s3 + $0x7f0] sm:$0xff] }
  0xf7   :  { %1065 = vmatmul.f32.gmra.mxu0 %v2853_v21  ;;  %1094 = vmatmul.f32.gmra.mxu1 %v2859_v22  ;;  %v515_v38 = vadd.f32 %v514_v26, %v486_v20  ;;  %v804_v47 = vld [vmem:[%s3501_s3 + $0x88] sm:$0xff]  ;;  %v849_v18 = vld [vmem:[%s3501_s3 + $0x1f0] sm:$0xff] }
  0xf8   :  { %1167 = vmatpush.msrb.mxu0 %v816_v23  ;;  %1196 = vmatpush.msrb.mxu1 %v880_v28  ;;  %v868_v49 = vld [vmem:[%s3501_s3 + $0x288] sm:$0xff]  ;;  %v913_v23 = vld [vmem:[%s3501_s3 + $0x3f0] sm:$0xff] }
  0xf9   :  { %1227 = vmatpush.msrb.mxu2 %v936_v29  ;;  %1255 = vmatpush.msrb.mxu3 %v1004_v31  ;;  %760 = vst [vmem:[%s3502_s4 + $0x28] sm:$0xff] %v515_v38  ;;  %v924_v50 = vld [vmem:[%s3501_s3 + $0x448] sm:$0xff]  ;;  %v1037_v29 = vld [vmem:[%s3501_s3 + $0x7d0] sm:$0xff] }
  0xfa   :  { %1168 = vmatpush.msrb.mxu0 %v812_v25  ;;  %1197 = vmatpush.msrb.mxu1 %v876_v33  ;;  %v992_v40 = vld [vmem:[%s3501_s3 + $0x668] sm:$0xff]  ;;  %v845_v20 = vld [vmem:[%s3501_s3 + $0x1d0] sm:$0xff] }
  0xfb   :  { %1228 = vmatpush.msrb.mxu2 %v932_v34  ;;  %1256 = vmatpush.msrb.mxu3 %v1000_v36  ;;  %v2934_v56 = vld [vmem:[%s3503_s2 + $0x68] sm:$0xff]  ;;  %v909_v31 = vld [vmem:[%s3501_s3 + $0x3d0] sm:$0xff] }
  0xfc   :  { %1126 = vmatmul.f32.gmra.mxu2 %v2890_v37  ;;  %v430_v48 = vpop.f32.mrf.mxu0  ;;  %1169 = vmatpush.msrb.mxu0 %v808_v39  ;;  %v459_v52 = vpop.f32.mrf.mxu1  ;;  %v800_v45 = vld [vmem:[%s3501_s3 + $0x68] sm:$0xff]  ;;  %v965_v25 = vld [vmem:[%s3501_s3 + $0x590] sm:$0xff] }
  0xfd   :  { %1198 = vmatpush.msrb.mxu1 %v872_v41  ;;  %1229 = vmatpush.msrb.mxu2 %v928_v42  ;;  %v460_v54 = vadd.f32 %v459_v52, %v430_v48  ;;  %v488_v58 = vpop.f32.mrf.mxu2  ;;  %v864_v59 = vld [vmem:[%s3501_s3 + $0x268] sm:$0xff]  ;;  %v1033_v34 = vld [vmem:[%s3501_s3 + $0x7b0] sm:$0xff] }
  0xfe   :  { %1257 = vmatpush.msrb.mxu3 %v996_v43  ;;  %1170 = vmatpush.msrb.mxu0 %v804_v47  ;;  %v920_v61 = vld [vmem:[%s3501_s3 + $0x428] sm:$0xff]  ;;  %v841_v36 = vld [vmem:[%s3501_s3 + $0x1b0] sm:$0xff] }
  0xff   :  { %1155 = vmatmul.f32.gmra.mxu3 %v2911_v35  ;;  %1199 = vmatpush.msrb.mxu1 %v868_v49  ;;  %v489_v0 = vadd.f32 %v488_v58, %v460_v54  ;;  %v988_v1 = vld [vmem:[%s3501_s3 + $0x648] sm:$0xff]  ;;  %v905_v38 = vld [vmem:[%s3501_s3 + $0x3b0] sm:$0xff] }
 0x100   :  { %1230 = vmatpush.msrb.mxu2 %v924_v50  ;;  %1258 = vmatpush.msrb.mxu3 %v992_v40  ;;  %v796_v2 = vld [vmem:[%s3501_s3 + $0x48] sm:$0xff]  ;;  %v517_v8 = vpop.f32.mrf.mxu3  ;;  %v961_v39 = vld [vmem:[%s3501_s3 + $0x570] sm:$0xff] }
 0x101   :  { %1068 = vmatmul.f32.gmra.mxu0 %v2928_v53  ;;  %1097 = vmatmul.f32.gmra.mxu1 %v2934_v56  ;;  %v860_v7 = vld [vmem:[%s3501_s3 + $0x248] sm:$0xff]  ;;  %v518_v63 = vadd.f32 %v517_v8, %v489_v0  ;;  %v1029_v41 = vld [vmem:[%s3501_s3 + $0x790] sm:$0xff] }
 0x102   :  { %1171 = vmatpush.msrb.mxu0 %v800_v45  ;;  %v916_v62 = vld [vmem:[%s3501_s3 + $0x408] sm:$0xff]  ;;  %1200 = vmatpush.msrb.mxu1 %v864_v59  ;;  %v837_v42 = vld [vmem:[%s3501_s3 + $0x190] sm:$0xff] }
 0x103   :  { %1231 = vmatpush.msrb.mxu2 %v920_v61  ;;  %v984_v55 = vld [vmem:[%s3501_s3 + $0x628] sm:$0xff]  ;;  %1259 = vmatpush.msrb.mxu3 %v988_v1  ;;  %764 = vst [vmem:[%s3502_s4 + $0x48] sm:$0xff] %v518_v63  ;;  %v901_v47 = vld [vmem:[%s3501_s3 + $0x390] sm:$0xff] }
 0x104   :  { %v792_v9 = vld [vmem:[%s3501_s3 + $0x28] sm:$0xff]  ;;  %1172 = vmatpush.msrb.mxu0 %v796_v2  ;;  %1201 = vmatpush.msrb.mxu1 %v860_v7  ;;  %v957_v48 = vld [vmem:[%s3501_s3 + $0x550] sm:$0xff] }
 0x105   :  { %v856_v11 = vld [vmem:[%s3501_s3 + $0x228] sm:$0xff]  ;;  %1232 = vmatpush.msrb.mxu2 %v916_v62  ;;  %1260 = vmatpush.msrb.mxu3 %v984_v55  ;;  %v1025_v50 = vld [vmem:[%s3501_s3 + $0x770] sm:$0xff] }
 0x106   :  { %v980_v5 = vld [vmem:[%s3501_s3 + $0x608] sm:$0xff]  ;;  %1173 = vmatpush.msrb.mxu0 %v792_v9  ;;  %v433_v14 = vpop.f32.mrf.mxu0  ;;  %1202 = vmatpush.msrb.mxu1 %v856_v11  ;;  %v462_v16 = vpop.f32.mrf.mxu1  ;;  %v833_v40 = vld [vmem:[%s3501_s3 + $0x170] sm:$0xff] }
 0x107   :  { %v788_v60 = vld [vmem:[%s3501_s3 + $0x8] sm:$0xff]  ;;  %1233 = vmatmul.f32.vlgmr.msrb.gmra.mxu2 %v2671_v19  ;;  %1261 = vmatpush.msrb.mxu3 %v980_v5  ;;  %v463_v17 = vadd.f32 %v462_v16, %v433_v14  ;;  %v491_v15 = vpop.f32.mrf.mxu2  ;;  %v897_v45 = vld [vmem:[%s3501_s3 + $0x370] sm:$0xff] }
 0x108   :  { %v852_v12 = vld [vmem:[%s3501_s3 + $0x208] sm:$0xff]  ;;  %1333 = vmatpush.msra.mxu2 %v977_v6  ;;  %1174 = vmatpush.msrb.mxu0 %v788_v60  ;;  %v953_v58 = vld [vmem:[%s3501_s3 + $0x530] sm:$0xff] }
 0x109   :  { %1203 = vmatpush.msrb.mxu1 %v852_v12  ;;  %1262 = vmatmul.f32.vlgmr.msrb.gmra.mxu3 %v2692_v27  ;;  %v492_v28 = vadd.f32 %v491_v15, %v463_v17  ;;  %v1021_v61 = vld [vmem:[%s3501_s3 + $0x750] sm:$0xff] }
 0x10a   :  { %1334 = vmatpush.msra.mxu2 %v973_v3  ;;  %1362 = vmatpush.msra.mxu3 %v1041_v4  ;;  %v520_v33 = vpop.f32.mrf.mxu3  ;;  %v829_v0 = vld [vmem:[%s3501_s3 + $0x150] sm:$0xff] }
 0x10b   :  { %1175 = vmatmul.f32.vlgmr.msrb.gmra.mxu0 %v2703_v30  ;;  %1204 = vmatmul.f32.vlgmr.msrb.gmra.mxu1 %v2708_v32  ;;  %v521_v26 = vadd.f32 %v520_v33, %v492_v28  ;;  %v893_v1 = vld [vmem:[%s3501_s3 + $0x350] sm:$0xff] }
 0x10c   :  { %1275 = vmatpush.msra.mxu0 %v849_v18  ;;  %1304 = vmatpush.msra.mxu1 %v913_v23  ;;  %v949_v2 = vld [vmem:[%s3501_s3 + $0x510] sm:$0xff] }
 0x10d   :  { %1335 = vmatpush.msra.mxu2 %v969_v24  ;;  %1363 = vmatpush.msra.mxu3 %v1037_v29  ;;  %768 = vst [vmem:[%s3502_s4 + $0x68] sm:$0xff] %v521_v26  ;;  %v1017_v62 = vld [vmem:[%s3501_s3 + $0x730] sm:$0xff] }
 0x10e   :  { %1276 = vmatpush.msra.mxu0 %v845_v20  ;;  %1305 = vmatpush.msra.mxu1 %v909_v31  ;;  %v825_v55 = vld [vmem:[%s3501_s3 + $0x130] sm:$0xff] }
 0x10f   :  { %1336 = vmatpush.msra.mxu2 %v965_v25  ;;  %1364 = vmatpush.msra.mxu3 %v1033_v34  ;;  %v889_v9 = vld [vmem:[%s3501_s3 + $0x330] sm:$0xff] }
 0x110   :  { %1236 = vmatmul.f32.gmra.mxu2 %v2740_v44  ;;  %v540_v43 = vpop.f32.mrf.mxu0  ;;  %1277 = vmatpush.msra.mxu0 %v841_v36  ;;  %v569_v49 = vpop.f32.mrf.mxu1  ;;  %v945_v63 = vld [vmem:[%s3501_s3 + $0x4f0] sm:$0xff] }
 0x111   :  { %1306 = vmatpush.msra.mxu1 %v905_v38  ;;  %1337 = vmatpush.msra.mxu2 %v961_v39  ;;  %v570_v52 = vadd.f32 %v569_v49, %v540_v43  ;;  %v1013_v11 = vld [vmem:[%s3501_s3 + $0x710] sm:$0xff] }
 0x112   :  { %1365 = vmatpush.msra.mxu3 %v1029_v41  ;;  %1278 = vmatpush.msra.mxu0 %v837_v42  ;;  %v598_v54 = vpop.f32.mrf.mxu2  ;;  %v821_v5 = vld [vmem:[%s3501_s3 + $0x110] sm:$0xff] }
 0x113   :  { %1265 = vmatmul.f32.gmra.mxu3 %v2761_v51  ;;  %1307 = vmatpush.msra.mxu1 %v901_v47  ;;  %v599_v59 = vadd.f32 %v598_v54, %v570_v52  ;;  %v885_v60 = vld [vmem:[%s3501_s3 + $0x310] sm:$0xff] }
 0x114   :  { %1338 = vmatpush.msra.mxu2 %v957_v48  ;;  %1366 = vmatpush.msra.mxu3 %v1025_v50  ;;  %v627_v7 = vpop.f32.mrf.mxu3  ;;  %v941_v12 = vld [vmem:[%s3501_s3 + $0x4d0] sm:$0xff] }
 0x115   :  { %1178 = vmatmul.f32.gmra.mxu0 %v2778_v57  ;;  %1207 = vmatmul.f32.gmra.mxu1 %v2784_v46  ;;  %v628_v8 = vadd.f32 %v627_v7, %v599_v59  ;;  %v1009_v3 = vld [vmem:[%s3501_s3 + $0x6f0] sm:$0xff] }
 0x116   :  { %1279 = vmatpush.msra.mxu0 %v833_v40  ;;  %1308 = vmatpush.msra.mxu1 %v897_v45  ;;  %v817_v4 = vld [vmem:[%s3501_s3 + $0xf0] sm:$0xff] }
 0x117   :  { %1339 = vmatpush.msra.mxu2 %v953_v58  ;;  %1367 = vmatpush.msra.mxu3 %v1021_v61  ;;  %757 = vst [vmem:[%s3502_s4 + $0x10] sm:$0xff] %v628_v8  ;;  %v881_v18 = vld [vmem:[%s3501_s3 + $0x2f0] sm:$0xff] }
 0x118   :  { %1280 = vmatpush.msra.mxu0 %v829_v0  ;;  %1309 = vmatpush.msra.mxu1 %v893_v1  ;;  %v937_v15 = vld [vmem:[%s3501_s3 + $0x4b0] sm:$0xff] }
 0x119   :  { %1340 = vmatpush.msra.mxu2 %v949_v2  ;;  %1368 = vmatpush.msra.mxu3 %v1017_v62  ;;  %v1005_v24 = vld [vmem:[%s3501_s3 + $0x6d0] sm:$0xff] }
 0x11a   :  { %1239 = vmatmul.f32.gmra.mxu2 %v2815_v10  ;;  %v543_v6 = vpop.f32.mrf.mxu0  ;;  %1281 = vmatpush.msra.mxu0 %v825_v55  ;;  %v572_v14 = vpop.f32.mrf.mxu1  ;;  %v813_v28 = vld [vmem:[%s3501_s3 + $0xd0] sm:$0xff] }
 0x11b   :  { %1310 = vmatpush.msra.mxu1 %v889_v9  ;;  %1341 = vmatpush.msra.mxu2 %v945_v63  ;;  %v573_v16 = vadd.f32 %v572_v14, %v543_v6  ;;  %v601_v17 = vpop.f32.mrf.mxu2  ;;  %v877_v29 = vld [vmem:[%s3501_s3 + $0x2d0] sm:$0xff]  ;;  %v978_v9 = vld [vmem:[%s3501_s3 + $0x5f8] sm:$0xff] }
 0x11c   :  { %1369 = vmatpush.msra.mxu3 %v1013_v11  ;;  %1282 = vmatpush.msra.mxu0 %v821_v5  ;;  %v933_v20 = vld [vmem:[%s3501_s3 + $0x490] sm:$0xff]  ;;  %v974_v6 = vld [vmem:[%s3501_s3 + $0x5d8] sm:$0xff] }
 0x11d   :  { %1268 = vmatmul.f32.gmra.mxu3 %v2836_v13  ;;  %1311 = vmatpush.msra.mxu1 %v885_v60  ;;  %v602_v23 = vadd.f32 %v601_v17, %v573_v16  ;;  %v1001_v25 = vld [vmem:[%s3501_s3 + $0x6b0] sm:$0xff] }
 0x11e   :  { %1342 = vmatpush.msra.mxu2 %v941_v12  ;;  %1370 = vmatpush.msra.mxu3 %v1009_v3  ;;  %v630_v31 = vpop.f32.mrf.mxu3  ;;  %v809_v34 = vld [vmem:[%s3501_s3 + $0xb0] sm:$0xff]  ;;  %v1042_v12 = vld [vmem:[%s3501_s3 + $0x7f8] sm:$0xff] }
 0x11f   :  { %1181 = vmatmul.f32.gmra.mxu0 %v2853_v21  ;;  %1210 = vmatmul.f32.gmra.mxu1 %v2859_v22  ;;  %v631_v33 = vadd.f32 %v630_v31, %v602_v23  ;;  %v873_v26 = vld [vmem:[%s3501_s3 + $0x2b0] sm:$0xff]  ;;  %v850_v3 = vld [vmem:[%s3501_s3 + $0x1f8] sm:$0xff] }
 0x120   :  { %1283 = vmatpush.msra.mxu0 %v817_v4  ;;  %1312 = vmatpush.msra.mxu1 %v881_v18  ;;  %v929_v36 = vld [vmem:[%s3501_s3 + $0x470] sm:$0xff]  ;;  %v970_v4 = vld [vmem:[%s3501_s3 + $0x5b8] sm:$0xff] }
 0x121   :  { %1343 = vmatpush.msra.mxu2 %v937_v15  ;;  %1371 = vmatpush.msra.mxu3 %v1005_v24  ;;  %v997_v38 = vld [vmem:[%s3501_s3 + $0x690] sm:$0xff]  ;;  %761 = vst [vmem:[%s3502_s4 + $0x30] sm:$0xff] %v631_v33  ;;  %v1038_v18 = vld [vmem:[%s3501_s3 + $0x7d8] sm:$0xff] }
 0x122   :  { %1284 = vmatpush.msra.mxu0 %v813_v28  ;;  %1313 = vmatpush.msra.mxu1 %v877_v29  ;;  %v805_v39 = vld [vmem:[%s3501_s3 + $0x90] sm:$0xff]  ;;  %v910_v15 = vld [vmem:[%s3501_s3 + $0x3d8] sm:$0xff] }
 0x123   :  { %1344 = vmatpush.msra.mxu2 %v933_v20  ;;  %1372 = vmatpush.msra.mxu3 %v1001_v25  ;;  %v869_v42 = vld [vmem:[%s3501_s3 + $0x290] sm:$0xff]  ;;  %v966_v23 = vld [vmem:[%s3501_s3 + $0x598] sm:$0xff] }
 0x124   :  { %1242 = vmatmul.f32.gmra.mxu2 %v2890_v37  ;;  %v546_v41 = vpop.f32.mrf.mxu0  ;;  %1285 = vmatpush.msra.mxu0 %v809_v34  ;;  %v925_v43 = vld [vmem:[%s3501_s3 + $0x450] sm:$0xff]  ;;  %v575_v47 = vpop.f32.mrf.mxu1  ;;  %v1034_v24 = vld [vmem:[%s3501_s3 + $0x7b8] sm:$0xff] }
 0x125   :  { %1314 = vmatpush.msra.mxu1 %v873_v26  ;;  %1345 = vmatpush.msra.mxu2 %v929_v36  ;;  %v993_v48 = vld [vmem:[%s3501_s3 + $0x670] sm:$0xff]  ;;  %v576_v49 = vadd.f32 %v575_v47, %v546_v41  ;;  %v604_v52 = vpop.f32.mrf.mxu2  ;;  %v906_v29 = vld [vmem:[%s3501_s3 + $0x3b8] sm:$0xff] }
 0x126   :  { %1373 = vmatpush.msra.mxu3 %v997_v38  ;;  %1286 = vmatpush.msra.mxu0 %v805_v39  ;;  %v801_v50 = vld [vmem:[%s3501_s3 + $0x70] sm:$0xff]  ;;  %v962_v20 = vld [vmem:[%s3501_s3 + $0x578] sm:$0xff] }
 0x127   :  { %1271 = vmatmul.f32.gmra.mxu3 %v2911_v35  ;;  %1315 = vmatpush.msra.mxu1 %v869_v42  ;;  %v865_v40 = vld [vmem:[%s3501_s3 + $0x270] sm:$0xff]  ;;  %v605_v45 = vadd.f32 %v604_v52, %v576_v49  ;;  %v1030_v31 = vld [vmem:[%s3501_s3 + $0x798] sm:$0xff] }
 0x128   :  { %1346 = vmatpush.msra.mxu2 %v925_v43  ;;  %v921_v54 = vld [vmem:[%s3501_s3 + $0x430] sm:$0xff]  ;;  %1374 = vmatpush.msra.mxu3 %v993_v48  ;;  %v633_v1 = vpop.f32.mrf.mxu3  ;;  %v838_v25 = vld [vmem:[%s3501_s3 + $0x198] sm:$0xff] }
 0x129   :  { %1184 = vmatmul.f32.gmra.mxu0 %v2928_v53  ;;  %v989_v58 = vld [vmem:[%s3501_s3 + $0x650] sm:$0xff]  ;;  %1213 = vmatmul.f32.gmra.mxu1 %v2934_v56  ;;  %v634_v62 = vadd.f32 %v633_v1, %v605_v45  ;;  %v902_v34 = vld [vmem:[%s3501_s3 + $0x398] sm:$0xff] }
 0x12a   :  { %v797_v59 = vld [vmem:[%s3501_s3 + $0x50] sm:$0xff]  ;;  %1287 = vmatpush.msra.mxu0 %v801_v50  ;;  %1316 = vmatpush.msra.mxu1 %v865_v40  ;;  %v958_v26 = vld [vmem:[%s3501_s3 + $0x558] sm:$0xff] }
 0x12b   :  { %v861_v61 = vld [vmem:[%s3501_s3 + $0x250] sm:$0xff]  ;;  %1347 = vmatpush.msra.mxu2 %v921_v54  ;;  %1375 = vmatpush.msra.mxu3 %v989_v58  ;;  %765 = vst [vmem:[%s3502_s4 + $0x50] sm:$0xff] %v634_v62  ;;  %v834_v41 = vld [vmem:[%s3501_s3 + $0x178] sm:$0xff] }
 0x12c   :  { %v917_v0 = vld [vmem:[%s3501_s3 + $0x410] sm:$0xff]  ;;  %1288 = vmatpush.msra.mxu0 %v797_v59  ;;  %1317 = vmatpush.msra.mxu1 %v861_v61  ;;  %v898_v42 = vld [vmem:[%s3501_s3 + $0x378] sm:$0xff] }
 0x12d   :  { %v985_v2 = vld [vmem:[%s3501_s3 + $0x630] sm:$0xff]  ;;  %1348 = vmatpush.msra.mxu2 %v917_v0  ;;  %v954_v43 = vld [vmem:[%s3501_s3 + $0x538] sm:$0xff] }
 0x12e   :  { %v793_v7 = vld [vmem:[%s3501_s3 + $0x30] sm:$0xff]  ;;  %1376 = vmatpush.msra.mxu3 %v985_v2  ;;  %v549_v5 = vpop.f32.mrf.mxu0  ;;  %1349 = vmatmul.f32.vlgmr.msra.gmra.mxu2 %v2671_v19  ;;  %v578_v60 = vpop.f32.mrf.mxu1  ;;  %v914_v19 = vld [vmem:[%s3501_s3 + $0x3f8] sm:$0xff] }
 0x12f   :  { %v857_v8 = vld [vmem:[%s3501_s3 + $0x230] sm:$0xff]  ;;  %1289 = vmatpush.msra.mxu0 %v793_v7  ;;  %1449 = vmatpush.msrb.mxu2 %v978_v9  ;;  %v579_v14 = vadd.f32 %v578_v60, %v549_v5  ;;  %v607_v16 = vpop.f32.mrf.mxu2  ;;  %v830_v48 = vld [vmem:[%s3501_s3 + $0x158] sm:$0xff] }
 0x130   :  { %v981_v55 = vld [vmem:[%s3501_s3 + $0x610] sm:$0xff]  ;;  %1318 = vmatpush.msra.mxu1 %v857_v8  ;;  %v894_v50 = vld [vmem:[%s3501_s3 + $0x358] sm:$0xff] }
 0x131   :  { %v789_v63 = vld [vmem:[%s3501_s3 + $0x10] sm:$0xff]  ;;  %1377 = vmatpush.msra.mxu3 %v981_v55  ;;  %1450 = vmatpush.msrb.mxu2 %v974_v6  ;;  %v608_v17 = vadd.f32 %v607_v16, %v579_v14  ;;  %v950_v52 = vld [vmem:[%s3501_s3 + $0x518] sm:$0xff] }
 0x132   :  { %v853_v11 = vld [vmem:[%s3501_s3 + $0x210] sm:$0xff]  ;;  %1290 = vmatpush.msra.mxu0 %v789_v63  ;;  %1378 = vmatmul.f32.vlgmr.msra.gmra.mxu3 %v2692_v27  ;;  %v846_v27 = vld [vmem:[%s3501_s3 + $0x1d8] sm:$0xff] }
 0x133   :  { %1319 = vmatpush.msra.mxu1 %v853_v11  ;;  %1478 = vmatpush.msrb.mxu3 %v1042_v12  ;;  %v1018_v54 = vld [vmem:[%s3501_s3 + $0x738] sm:$0xff] }
 0x134   :  { %1291 = vmatmul.f32.vlgmr.msra.gmra.mxu0 %v2703_v30  ;;  %1320 = vmatmul.f32.vlgmr.msra.gmra.mxu1 %v2708_v32  ;;  %v636_v30 = vpop.f32.mrf.mxu3  ;;  %v842_v32 = vld [vmem:[%s3501_s3 + $0x1b8] sm:$0xff] }
 0x135   :  { %1391 = vmatpush.msrb.mxu0 %v850_v3  ;;  %1420 = vmatpush.msrb.mxu1 %v914_v19  ;;  %v637_v28 = vadd.f32 %v636_v30, %v608_v17  ;;  %v826_v45 = vld [vmem:[%s3501_s3 + $0x138] sm:$0xff] }
 0x136   :  { %1451 = vmatpush.msrb.mxu2 %v970_v4  ;;  %1479 = vmatpush.msrb.mxu3 %v1038_v18  ;;  %v890_v58 = vld [vmem:[%s3501_s3 + $0x338] sm:$0xff] }
 0x137   :  { %1392 = vmatpush.msrb.mxu0 %v846_v27  ;;  %1421 = vmatpush.msrb.mxu1 %v910_v15  ;;  %769 = vst [vmem:[%s3502_s4 + $0x70] sm:$0xff] %v637_v28  ;;  %v946_v59 = vld [vmem:[%s3501_s3 + $0x4f8] sm:$0xff] }
 0x138   :  { %1452 = vmatpush.msrb.mxu2 %v966_v23  ;;  %1480 = vmatpush.msrb.mxu3 %v1034_v24  ;;  %v656_v33 = vpop.f32.mrf.mxu0  ;;  %v685_v36 = vpop.f32.mrf.mxu1  ;;  %v1014_v61 = vld [vmem:[%s3501_s3 + $0x718] sm:$0xff] }
 0x139   :  { %1352 = vmatmul.f32.gmra.mxu2 %v2740_v44  ;;  %1393 = vmatpush.msrb.mxu0 %v842_v32  ;;  %v1026_v44 = vld [vmem:[%s3501_s3 + $0x778] sm:$0xff]  ;;  %v686_v38 = vadd.f32 %v685_v36, %v656_v33 }
 0x13a   :  { %1422 = vmatpush.msrb.mxu1 %v906_v29  ;;  %1453 = vmatpush.msrb.mxu2 %v962_v20  ;;  %v714_v39 = vpop.f32.mrf.mxu2  ;;  %v822_v0 = vld [vmem:[%s3501_s3 + $0x118] sm:$0xff] }
 0x13b   :  { %1481 = vmatpush.msrb.mxu3 %v1030_v31  ;;  %1394 = vmatpush.msrb.mxu0 %v838_v25  ;;  %v715_v47 = vadd.f32 %v714_v39, %v686_v38  ;;  %v886_v2 = vld [vmem:[%s3501_s3 + $0x318] sm:$0xff] }
 0x13c   :  { %1381 = vmatmul.f32.gmra.mxu3 %v2761_v51  ;;  %1423 = vmatpush.msrb.mxu1 %v902_v34  ;;  %v1022_v51 = vld [vmem:[%s3501_s3 + $0x758] sm:$0xff]  ;;  %v743_v49 = vpop.f32.mrf.mxu3 }
 0x13d   :  { %1454 = vmatpush.msrb.mxu2 %v958_v26  ;;  %1482 = vmatpush.msrb.mxu3 %v1026_v44  ;;  %v744_v40 = vadd.f32 %v743_v49, %v715_v47  ;;  %v942_v7 = vld [vmem:[%s3501_s3 + $0x4d8] sm:$0xff] }
 0x13e   :  { %1294 = vmatmul.f32.gmra.mxu0 %v2778_v57  ;;  %1323 = vmatmul.f32.gmra.mxu1 %v2784_v46  ;;  %v1010_v55 = vld [vmem:[%s3501_s3 + $0x6f8] sm:$0xff] }
 0x13f   :  { %1395 = vmatpush.msrb.mxu0 %v834_v41  ;;  %1424 = vmatpush.msrb.mxu1 %v898_v42  ;;  %758 = vst [vmem:[%s3502_s4 + $0x18] sm:$0xff] %v744_v40  ;;  %v818_v63 = vld [vmem:[%s3501_s3 + $0xf8] sm:$0xff]  ;;  %v1531_v40 = vld [vmem:[%s3503_s2 + $0x10] sm:$0xff] }
 0x140   :  { %1455 = vmatpush.msrb.mxu2 %v954_v43  ;;  %1483 = vmatpush.msrb.mxu3 %v1022_v51  ;;  %v882_v11 = vld [vmem:[%s3501_s3 + $0x2f8] sm:$0xff] }
 0x141   :  { %1396 = vmatpush.msrb.mxu0 %v830_v48  ;;  %1425 = vmatpush.msrb.mxu1 %v894_v50  ;;  %v938_v5 = vld [vmem:[%s3501_s3 + $0x4b8] sm:$0xff] }
 0x142   :  { %1456 = vmatpush.msrb.mxu2 %v950_v52  ;;  %1484 = vmatpush.msrb.mxu3 %v1018_v54  ;;  %v659_v1 = vpop.f32.mrf.mxu0  ;;  %v688_v62 = vpop.f32.mrf.mxu1  ;;  %v1006_v12 = vld [vmem:[%s3501_s3 + $0x6d8] sm:$0xff] }
 0x143   :  { %1355 = vmatmul.f32.gmra.mxu2 %v2815_v10  ;;  %1397 = vmatpush.msrb.mxu0 %v826_v45  ;;  %v717_v8 = vpop.f32.mrf.mxu2  ;;  %v689_v9 = vadd.f32 %v688_v62, %v659_v1  ;;  %v814_v14 = vld [vmem:[%s3501_s3 + $0xd8] sm:$0xff]  ;;  %v1535_v62 = vld [vmem:[%s3503_s2 + $0x30] sm:$0xff] }
 0x144   :  { %1426 = vmatpush.msrb.mxu1 %v890_v58  ;;  %1457 = vmatpush.msrb.mxu2 %v946_v59  ;;  %v878_v3 = vld [vmem:[%s3501_s3 + $0x2d8] sm:$0xff] }
 0x145   :  { %1485 = vmatpush.msrb.mxu3 %v1014_v61  ;;  %1398 = vmatpush.msrb.mxu0 %v822_v0  ;;  %v718_v6 = vadd.f32 %v717_v8, %v689_v9  ;;  %v934_v16 = vld [vmem:[%s3501_s3 + $0x498] sm:$0xff]  ;;  %v1533_v61 = vld [vmem:[%s3503_s2] sm:$0xff]  ;;  %v1534_v0 = vld [vmem:[%s3503_s2 + $0x8] sm:$0xff] }
 0x146   :  { %1384 = vmatmul.f32.gmra.mxu3 %v2836_v13  ;;  %1427 = vmatpush.msrb.mxu1 %v886_v2  ;;  %v746_v60 = vpop.f32.mrf.mxu3  ;;  %v1002_v4 = vld [vmem:[%s3501_s3 + $0x6b8] sm:$0xff] }
 0x147   :  { %1458 = vmatpush.msrb.mxu2 %v942_v7  ;;  %1486 = vmatpush.msrb.mxu3 %v1010_v55  ;;  %v747_v19 = vadd.f32 %v746_v60, %v718_v6  ;;  %v810_v17 = vld [vmem:[%s3501_s3 + $0xb8] sm:$0xff] }
 0x148   :  { %1297 = vmatmul.f32.gmra.mxu0 %v2853_v21  ;;  %1326 = vmatmul.f32.gmra.mxu1 %v2859_v22  ;;  %v874_v18 = vld [vmem:[%s3501_s3 + $0x2b8] sm:$0xff] }
 0x149   :  { %1399 = vmatpush.msrb.mxu0 %v818_v63  ;;  %1428 = vmatpush.msrb.mxu1 %v882_v11  ;;  %762 = vst [vmem:[%s3502_s4 + $0x38] sm:$0xff] %v747_v19  ;;  %v930_v27 = vld [vmem:[%s3501_s3 + $0x478] sm:$0xff] }
 0x14a   :  { %1459 = vmatpush.msrb.mxu2 %v938_v5  ;;  %1487 = vmatpush.msrb.mxu3 %v1006_v12  ;;  %v998_v15 = vld [vmem:[%s3501_s3 + $0x698] sm:$0xff] }
 0x14b   :  { %1400 = vmatpush.msrb.mxu0 %v814_v14  ;;  %1429 = vmatpush.msrb.mxu1 %v878_v3  ;;  %v806_v23 = vld [vmem:[%s3501_s3 + $0x98] sm:$0xff] }
 0x14c   :  { %1460 = vmatpush.msrb.mxu2 %v934_v16  ;;  %1488 = vmatpush.msrb.mxu3 %v1002_v4  ;;  %v662_v30 = vpop.f32.mrf.mxu0  ;;  %v870_v24 = vld [vmem:[%s3501_s3 + $0x298] sm:$0xff]  ;;  %v691_v32 = vpop.f32.mrf.mxu1 }
 0x14d   :  { %1358 = vmatmul.f32.gmra.mxu2 %v2890_v37  ;;  %1401 = vmatpush.msrb.mxu0 %v810_v17  ;;  %v926_v28 = vld [vmem:[%s3501_s3 + $0x458] sm:$0xff]  ;;  %v720_v29 = vpop.f32.mrf.mxu2  ;;  %v692_v31 = vadd.f32 %v691_v32, %v662_v30 }
 0x14e   :  { %1430 = vmatpush.msrb.mxu1 %v874_v18  ;;  %1461 = vmatpush.msrb.mxu2 %v930_v27  ;;  %v994_v20 = vld [vmem:[%s3501_s3 + $0x678] sm:$0xff] }
 0x14f   :  { %1489 = vmatpush.msrb.mxu3 %v998_v15  ;;  %1402 = vmatpush.msrb.mxu0 %v806_v23  ;;  %v802_v25 = vld [vmem:[%s3501_s3 + $0x78] sm:$0xff]  ;;  %v721_v26 = vadd.f32 %v720_v29, %v692_v31 }
 0x150   :  { %1387 = vmatmul.f32.gmra.mxu3 %v2911_v35  ;;  %1431 = vmatpush.msrb.mxu1 %v870_v24  ;;  %v866_v33 = vld [vmem:[%s3501_s3 + $0x278] sm:$0xff]  ;;  %v749_v36 = vpop.f32.mrf.mxu3 }
 0x151   :  { %1462 = vmatpush.msrb.mxu2 %v926_v28  ;;  %v922_v34 = vld [vmem:[%s3501_s3 + $0x438] sm:$0xff]  ;;  %1490 = vmatpush.msrb.mxu3 %v994_v20  ;;  %v750_v42 = vadd.f32 %v749_v36, %v721_v26 }
 0x152   :  { %1300 = vmatmul.f32.gmra.mxu0 %v2928_v53  ;;  %v990_v44 = vld [vmem:[%s3501_s3 + $0x658] sm:$0xff]  ;;  %1329 = vmatmul.f32.gmra.mxu1 %v2934_v56 }
 0x153   :  { %v798_v38 = vld [vmem:[%s3501_s3 + $0x58] sm:$0xff]  ;;  %1403 = vmatpush.msrb.mxu0 %v802_v25  ;;  %1432 = vmatpush.msrb.mxu1 %v866_v33  ;;  %766 = vst [vmem:[%s3502_s4 + $0x58] sm:$0xff] %v750_v42 }
 0x154   :  { %v862_v39 = vld [vmem:[%s3501_s3 + $0x258] sm:$0xff]  ;;  %1463 = vmatpush.msrb.mxu2 %v922_v34  ;;  %1491 = vmatpush.msrb.mxu3 %v990_v44 }
 0x155   :  { %v918_v41 = vld [vmem:[%s3501_s3 + $0x418] sm:$0xff]  ;;  %1404 = vmatpush.msrb.mxu0 %v798_v38  ;;  %1433 = vmatpush.msrb.mxu1 %v862_v39 }
 0x156   :  { %v986_v43 = vld [vmem:[%s3501_s3 + $0x638] sm:$0xff]  ;;  %1464 = vmatpush.msrb.mxu2 %v918_v41  ;;  %v665_v52 = vpop.f32.mrf.mxu0  ;;  %v694_v54 = vpop.f32.mrf.mxu1 }
 0x157   :  { %v794_v47 = vld [vmem:[%s3501_s3 + $0x38] sm:$0xff]  ;;  %1492 = vmatpush.msrb.mxu3 %v986_v43  ;;  %1465 = vmatmul.f32.vlgmr.msrb.gmra.mxu2 %v1531_v40  ;;  %v723_v45 = vpop.f32.mrf.mxu2  ;;  %v695_v58 = vadd.f32 %v694_v54, %v665_v52 }
 0x158   :  { %v858_v51 = vld [vmem:[%s3501_s3 + $0x238] sm:$0xff]  ;;  %1405 = vmatpush.msrb.mxu0 %v794_v47 }
 0x159   :  { %v982_v48 = vld [vmem:[%s3501_s3 + $0x618] sm:$0xff]  ;;  %1434 = vmatpush.msrb.mxu1 %v858_v51  ;;  %v724_v1 = vadd.f32 %v723_v45, %v695_v58 }
 0x15a   :  { %v790_v49 = vld [vmem:[%s3501_s3 + $0x18] sm:$0xff]  ;;  %1493 = vmatpush.msrb.mxu3 %v982_v48  ;;  %v752_v2 = vpop.f32.mrf.mxu3 }
 0x15b   :  { %v854_v50 = vld [vmem:[%s3501_s3 + $0x218] sm:$0xff]  ;;  %1406 = vmatpush.msrb.mxu0 %v790_v49  ;;  %v753_v7 = vadd.f32 %v752_v2, %v724_v1 }
 0x15c   :  { %1435 = vmatpush.msrb.mxu1 %v854_v50  ;;  %v1532_v59 = vld [vmem:[%s3503_s2 + $0x18] sm:$0xff]  ;;  %1407 = vmatmul.f32.vlgmr.msrb.gmra.mxu0 %v1533_v61 }
 0x15d   :  { %1494 = vmatmul.f32.vlgmr.msrb.gmra.mxu3 %v1532_v59  ;;  %1436 = vmatmul.f32.vlgmr.msrb.gmra.mxu1 %v1534_v0  ;;  %770 = vst [vmem:[%s3502_s4 + $0x78] sm:$0xff] %v753_v7  ;;  %v1536_v55 = vld [vmem:[%s3503_s2 + $0x38] sm:$0xff] }
 0x15f   :  { %1468 = vmatmul.f32.gmra.mxu2 %v1535_v62 }
 0x160   :  { %v1060_v8 = vpop.f32.mrf.mxu0  ;;  %v1089_v9 = vpop.f32.mrf.mxu1 }
 0x161   :  { %v1090_v63 = vadd.f32 %v1089_v9, %v1060_v8 }
 0x162   :  { %v1118_v11 = vpop.f32.mrf.mxu2 }
 0x163   :  { %v1119_v5 = vadd.f32 %v1118_v11, %v1090_v63 }
 0x164   :  { %1410 = vmatmul.f32.gmra.mxu0 %v2778_v57  ;;  %v1147_v6 = vpop.f32.mrf.mxu3 }
 0x165   :  { %1497 = vmatmul.f32.gmra.mxu3 %v1536_v55  ;;  %1439 = vmatmul.f32.gmra.mxu1 %v2784_v46  ;;  %v1148_v60 = vadd.f32 %v1147_v6, %v1119_v5 }
 0x167   :  { %1471 = vmatmul.f32.gmra.mxu2 %v2815_v10  ;;  %1507 = vst [vmem:[%s3504_s5] sm:$0xff] %v1148_v60 }
 0x16a   :  { %v1063_v57 = vpop.f32.mrf.mxu0  ;;  %v1092_v12 = vpop.f32.mrf.mxu1 }
 0x16b   :  { %v1121_v46 = vpop.f32.mrf.mxu2  ;;  %v1093_v14 = vadd.f32 %v1092_v12, %v1063_v57 }
 0x16c   :  { %1413 = vmatmul.f32.gmra.mxu0 %v2853_v21 }
 0x16d   :  { %1500 = vmatmul.f32.gmra.mxu3 %v2836_v13  ;;  %1442 = vmatmul.f32.gmra.mxu1 %v2859_v22  ;;  %v1122_v3 = vadd.f32 %v1121_v46, %v1093_v14 }
 0x16e   :  { %v1150_v16 = vpop.f32.mrf.mxu3 }
 0x16f   :  { %1474 = vmatmul.f32.gmra.mxu2 %v2890_v37  ;;  %v1151_v19 = vadd.f32 %v1150_v16, %v1122_v3 }
 0x171   :  { %1511 = vst [vmem:[%s3504_s5 + $0x20] sm:$0xff] %v1151_v19 }
 0x174   :  { %1416 = vmatmul.f32.gmra.mxu0 %v2928_v53  ;;  %v1066_v10 = vpop.f32.mrf.mxu0  ;;  %v1095_v13 = vpop.f32.mrf.mxu1 }
 0x175   :  { %1503 = vmatmul.f32.gmra.mxu3 %v2911_v35  ;;  %1445 = vmatmul.f32.gmra.mxu1 %v2934_v56  ;;  %v1124_v21 = vpop.f32.mrf.mxu2  ;;  %v1096_v22 = vadd.f32 %v1095_v13, %v1066_v10 }
 0x177   :  { %v1125_v4 = vadd.f32 %v1124_v21, %v1096_v22 }
 0x178   :  { %v1153_v17 = vpop.f32.mrf.mxu3 }
 0x179   :  { %v1154_v18 = vadd.f32 %v1153_v17, %v1125_v4 }
 0x17b   :  { %1515 = vst [vmem:[%s3504_s5 + $0x40] sm:$0xff] %v1154_v18 }
 0x17e   :  { %v1069_v37 = vpop.f32.mrf.mxu0  ;;  %v1098_v35 = vpop.f32.mrf.mxu1 }
 0x17f   :  { %v1127_v53 = vpop.f32.mrf.mxu2  ;;  %v1099_v27 = vadd.f32 %v1098_v35, %v1069_v37 }
 0x181   :  { %v1128_v56 = vadd.f32 %v1127_v53, %v1099_v27 }
 0x182   :  { %v1156_v15 = vpop.f32.mrf.mxu3 }
 0x183   :  { %v1157_v23 = vadd.f32 %v1156_v15, %v1128_v56 }
 0x185   :  { %1519 = vst [vmem:[%s3504_s5 + $0x60] sm:$0xff] %v1157_v23 }
 0x188   :  { %v1176_v30 = vpop.f32.mrf.mxu0  ;;  %v1205_v24 = vpop.f32.mrf.mxu1 }
 0x189   :  { %v1206_v28 = vadd.f32 %v1205_v24, %v1176_v30 }
 0x18a   :  { %v1234_v32 = vpop.f32.mrf.mxu2 }
 0x18b   :  { %v1235_v29 = vadd.f32 %v1234_v32, %v1206_v28 }
 0x18c   :  { %v1263_v20 = vpop.f32.mrf.mxu3 }
 0x18d   :  { %v1264_v31 = vadd.f32 %v1263_v20, %v1235_v29 }
 0x18f   :  { %1508 = vst [vmem:[%s3504_s5 + $0x8] sm:$0xff] %v1264_v31 }
 0x192   :  { %v1179_v25 = vpop.f32.mrf.mxu0  ;;  %v1208_v33 = vpop.f32.mrf.mxu1 }
 0x193   :  { %v1237_v34 = vpop.f32.mrf.mxu2  ;;  %v1209_v26 = vadd.f32 %v1208_v33, %v1179_v25 }
 0x195   :  { %v1238_v36 = vadd.f32 %v1237_v34, %v1209_v26 }
 0x196   :  { %v1266_v44 = vpop.f32.mrf.mxu3 }
 0x197   :  { %v1267_v38 = vadd.f32 %v1266_v44, %v1238_v36 }
 0x199   :  { %1512 = vst [vmem:[%s3504_s5 + $0x28] sm:$0xff] %v1267_v38 }
 0x19c   :  { %v1182_v39 = vpop.f32.mrf.mxu0  ;;  %v1211_v41 = vpop.f32.mrf.mxu1 }
 0x19d   :  { %v1240_v42 = vpop.f32.mrf.mxu2  ;;  %v1212_v43 = vadd.f32 %v1211_v41, %v1182_v39 }
 0x19f   :  { %v1241_v47 = vadd.f32 %v1240_v42, %v1212_v43 }
 0x1a0   :  { %v1269_v51 = vpop.f32.mrf.mxu3 }
 0x1a1   :  { %v1270_v48 = vadd.f32 %v1269_v51, %v1241_v47 }
 0x1a3   :  { %1516 = vst [vmem:[%s3504_s5 + $0x48] sm:$0xff] %v1270_v48 }
 0x1a6   :  { %v1185_v49 = vpop.f32.mrf.mxu0  ;;  %v1214_v50 = vpop.f32.mrf.mxu1 }
 0x1a7   :  { %v1243_v52 = vpop.f32.mrf.mxu2  ;;  %v1215_v40 = vadd.f32 %v1214_v50, %v1185_v49 }
 0x1a9   :  { %v1244_v54 = vadd.f32 %v1243_v52, %v1215_v40 }
 0x1aa   :  { %v1272_v45 = vpop.f32.mrf.mxu3 }
 0x1ab   :  { %v1273_v58 = vadd.f32 %v1272_v45, %v1244_v54 }
 0x1ad   :  { %1520 = vst [vmem:[%s3504_s5 + $0x68] sm:$0xff] %v1273_v58 }
 0x1b1   :  { %v1292_v59 = vpop.f32.mrf.mxu0  ;;  %v1321_v61 = vpop.f32.mrf.mxu1 }
 0x1b2   :  { %v1322_v0 = vadd.f32 %v1321_v61, %v1292_v59  ;;  %v1350_v1 = vpop.f32.mrf.mxu2 }
 0x1b4   :  { %v1351_v2 = vadd.f32 %v1350_v1, %v1322_v0 }
 0x1b5   :  { %v1379_v7 = vpop.f32.mrf.mxu3 }
 0x1b6   :  { %v1380_v62 = vadd.f32 %v1379_v7, %v1351_v2 }
 0x1b8   :  { %1509 = vst [vmem:[%s3504_s5 + $0x10] sm:$0xff] %v1380_v62 }
 0x1bb   :  { %v1295_v8 = vpop.f32.mrf.mxu0  ;;  %v1324_v55 = vpop.f32.mrf.mxu1 }
 0x1bc   :  { %v1353_v9 = vpop.f32.mrf.mxu2  ;;  %v1325_v63 = vadd.f32 %v1324_v55, %v1295_v8 }
 0x1be   :  { %v1354_v11 = vadd.f32 %v1353_v9, %v1325_v63 }
 0x1bf   :  { %v1382_v5 = vpop.f32.mrf.mxu3 }
 0x1c0   :  { %v1383_v6 = vadd.f32 %v1382_v5, %v1354_v11 }
 0x1c2   :  { %1513 = vst [vmem:[%s3504_s5 + $0x30] sm:$0xff] %v1383_v6 }
 0x1c5   :  { %v1298_v60 = vpop.f32.mrf.mxu0  ;;  %v1327_v57 = vpop.f32.mrf.mxu1 }
 0x1c6   :  { %v1356_v12 = vpop.f32.mrf.mxu2  ;;  %v1328_v46 = vadd.f32 %v1327_v57, %v1298_v60 }
 0x1c8   :  { %v1357_v14 = vadd.f32 %v1356_v12, %v1328_v46 }
 0x1c9   :  { %v1385_v3 = vpop.f32.mrf.mxu3 }
 0x1ca   :  { %v1386_v16 = vadd.f32 %v1385_v3, %v1357_v14 }
 0x1cc   :  { %1517 = vst [vmem:[%s3504_s5 + $0x50] sm:$0xff] %v1386_v16 }
 0x1cf   :  { %v1301_v19 = vpop.f32.mrf.mxu0  ;;  %v1330_v10 = vpop.f32.mrf.mxu1 }
 0x1d0   :  { %v1359_v13 = vpop.f32.mrf.mxu2  ;;  %v1331_v21 = vadd.f32 %v1330_v10, %v1301_v19 }
 0x1d2   :  { %v1360_v22 = vadd.f32 %v1359_v13, %v1331_v21 }
 0x1d3   :  { %v1388_v4 = vpop.f32.mrf.mxu3 }
 0x1d4   :  { %v1389_v17 = vadd.f32 %v1388_v4, %v1360_v22 }
 0x1d6   :  { %1521 = vst [vmem:[%s3504_s5 + $0x70] sm:$0xff] %v1389_v17 }
 0x1d9   :  { %v1408_v18 = vpop.f32.mrf.mxu0 }
 0x1da   :  { %v1437_v37 = vpop.f32.mrf.mxu1  ;;  %v1466_v53 = vpop.f32.mrf.mxu2 }
 0x1db   :  { %v1438_v35 = vadd.f32 %v1437_v37, %v1408_v18 }
 0x1dd   :  { %v1467_v27 = vadd.f32 %v1466_v53, %v1438_v35 }
 0x1e0   :  { %v1495_v56 = vpop.f32.mrf.mxu3 }
 0x1e1   :  { %v1496_v15 = vadd.f32 %v1495_v56, %v1467_v27  ;;  %v1411_v23 = vpop.f32.mrf.mxu0 }
 0x1e2   :  { %v1440_v30 = vpop.f32.mrf.mxu1  ;;  %v1469_v28 = vpop.f32.mrf.mxu2 }
 0x1e3   :  { %1510 = vst [vmem:[%s3504_s5 + $0x18] sm:$0xff] %v1496_v15  ;;  %v1441_v24 = vadd.f32 %v1440_v30, %v1411_v23 }
 0x1e5   :  { %v1470_v32 = vadd.f32 %v1469_v28, %v1441_v24 }
 0x1e8   :  { %v1498_v29 = vpop.f32.mrf.mxu3 }
 0x1e9   :  { %v1499_v20 = vadd.f32 %v1498_v29, %v1470_v32  ;;  %v1414_v31 = vpop.f32.mrf.mxu0 }
 0x1ea   :  { %v1443_v25 = vpop.f32.mrf.mxu1  ;;  %v1472_v34 = vpop.f32.mrf.mxu2 }
 0x1eb   :  { %1514 = vst [vmem:[%s3504_s5 + $0x38] sm:$0xff] %v1499_v20  ;;  %v1444_v33 = vadd.f32 %v1443_v25, %v1414_v31 }
 0x1ed   :  { %v1473_v26 = vadd.f32 %v1472_v34, %v1444_v33 }
 0x1f0   :  { %v1501_v36 = vpop.f32.mrf.mxu3 }
 0x1f1   :  { %v1502_v44 = vadd.f32 %v1501_v36, %v1473_v26  ;;  %v1417_v38 = vpop.f32.mrf.mxu0 }
 0x1f2   :  { %v1446_v39 = vpop.f32.mrf.mxu1  ;;  %v1475_v42 = vpop.f32.mrf.mxu2 }
 0x1f3   :  { %1518 = vst [vmem:[%s3504_s5 + $0x58] sm:$0xff] %v1502_v44  ;;  %v1447_v41 = vadd.f32 %v1446_v39, %v1417_v38 }
 0x1f5   :  { %v1476_v43 = vadd.f32 %v1475_v42, %v1447_v41 }
 0x1f8   :  { %v1504_v47 = vpop.f32.mrf.mxu3 }
 0x1f9   :  { %v1505_v51 = vadd.f32 %v1504_v47, %v1476_v43 }
 0x1fb   :  { %1522 = vst [vmem:[%s3504_s5 + $0x78] sm:$0xff] %v1505_v51 }

// kernel: fno_forward.20
= control target key start
LH: loop header
LB: loop body
LE: loop exit
PB: predicated region body
PF: predicated region fallthrough
CT: control target
= control target key end

     0   :  { %vm98_vm0 = vcmask 261120   ;;  %vm576_vm1 = vcmask 523264   ;;  %s2630_s3 = inlined_call_operand.vmem [shape: f32[32,64], index: 3, kind: input, shape index: {}]   ;;  %s2631_s0 = inlined_call_operand.vmem [shape: f32[512,32], index: 0, kind: input, shape index: {}]   ;;  %s2632_s4 = inlined_call_operand.vmem [shape: f32[1,64], index: 4, kind: input, shape index: {}]   ;;  %s2633_s5 = inlined_call_operand.vmem [shape: f32[64,32], index: 5, kind: input, shape index: {}]   ;;  %s2634_s6 = inlined_call_operand.vmem [shape: f32[1,32], index: 6, kind: input, shape index: {}]   ;;  %s2635_s2 = inlined_call_operand.vmem [shape: f32[512,32], index: 2, kind: input, shape index: {}]   ;;  %s2636_s1 = inlined_call_operand.vmem [shape: f32[512,32], index: 1, kind: input, shape index: {}]   ;;  %s2637_s7 = inlined_call_operand.vmem [shape: f32[512,32], index: 7, kind: output, shape index: {}]  }
   0x1   :  { %v93_v0 = vld [vmem:[%s2630_s3 + $0x18] sm:$0xff]  ;;  %v92_v1 = vld [vmem:[%s2630_s3 + $0x10] sm:$0xff]  ;;  %v91_v2 = vld [vmem:[%s2630_s3 + $0x8] sm:$0xff] }
   0x2   :  { %303 = vmatpush.msra.mxu0 %v93_v0  ;;  %1430 = vmatpush.msra.mxu3 %v93_v0  ;;  %v90_v3 = vld [vmem:[%s2630_s3] sm:$0xff]  ;;  %v27_v5 = vld [vmem:[%s2631_s0 + $0x8] sm:$0xff]  ;;  %v28_v6 = vld [vmem:[%s2631_s0 + $0x10] sm:$0xff] }
   0x3   :  { %v26_v4 = vld [vmem:[%s2631_s0] sm:$0xff]  ;;  %v29_v7 = vld [vmem:[%s2631_s0 + $0x18] sm:$0xff]  ;;  %v31_v9 = vld [vmem:[%s2631_s0 + $0x28] sm:$0xff] }
   0x4   :  { %304 = vmatpush.msra.mxu0 %v92_v1  ;;  %1431 = vmatpush.msra.mxu3 %v92_v1  ;;  %v30_v8 = vld [vmem:[%s2631_s0 + $0x20] sm:$0xff]  ;;  %v32_v10 = vld [vmem:[%s2631_s0 + $0x30] sm:$0xff]  ;;  %v33_v11 = vld [vmem:[%s2631_s0 + $0x38] sm:$0xff] }
   0x5   :  { %v34_v12 = vld [vmem:[%s2631_s0 + $0x40] sm:$0xff]  ;;  %v35_v13 = vld [vmem:[%s2631_s0 + $0x48] sm:$0xff]  ;;  %v36_v14 = vld [vmem:[%s2631_s0 + $0x50] sm:$0xff] }
   0x6   :  { %305 = vmatpush.msra.mxu0 %v91_v2  ;;  %1432 = vmatpush.msra.mxu3 %v91_v2  ;;  %v571_v15 = vld [vmem:[%s2633_s5 + $0x38] sm:$0xff]  ;;  %v570_v16 = vld [vmem:[%s2633_s5 + $0x30] sm:$0xff]  ;;  %v569_v17 = vld [vmem:[%s2633_s5 + $0x28] sm:$0xff] }
   0x7   :  { %777 = vmatpush.msra.mxu1 %v571_v15  ;;  %1434 = vmatpush.msra.mxu2 %v571_v15  ;;  %v37_v18 = vld [vmem:[%s2631_s0 + $0x58] sm:$0xff]  ;;  %v568_v19 = vld [vmem:[%s2633_s5 + $0x20] sm:$0xff]  ;;  %v566_v21 = vld [vmem:[%s2633_s5 + $0x10] sm:$0xff] }
   0x8   :  { %306 = vmatpush.msra.mxu0 %v90_v3  ;;  %1433 = vmatpush.msra.mxu3 %v90_v3  ;;  %v567_v20 = vld [vmem:[%s2633_s5 + $0x18] sm:$0xff]  ;;  %v38_v22 = vld [vmem:[%s2631_s0 + $0x60] sm:$0xff]  ;;  %v565_v23 = vld [vmem:[%s2633_s5 + $0x8] sm:$0xff] }
   0x9   :  { %1302 = vmatmul.msk.f32.vlgmr.msra.gmra.mxu0 %vm98_vm0, %v26_v4  ;;  %778 = vmatpush.msra.mxu1 %v570_v16  ;;  %v564_v24 = vld [vmem:[%s2633_s5] sm:$0xff]  ;;  %v39_v25 = vld [vmem:[%s2631_s0 + $0x68] sm:$0xff]  ;;  %v40_v26 = vld [vmem:[%s2631_s0 + $0x70] sm:$0xff] }
   0xa   :  { %1435 = vmatpush.msra.mxu2 %v570_v16  ;;  %v41_v27 = vld [vmem:[%s2631_s0 + $0x78] sm:$0xff]  ;;  %v1589_v28 = vld [vmem:[%s2632_s4] ss:$0 sm:$0xff]  ;;  %v43_v34 = vld [vmem:[%s2631_s0 + $0x88] sm:$0xff] }
   0xb   :  { %779 = vmatpush.msra.mxu1 %v569_v17  ;;  %v42_v30 = vld [vmem:[%s2631_s0 + $0x80] sm:$0xff]  ;;  %v44_v38 = vld [vmem:[%s2631_s0 + $0x90] sm:$0xff]  ;;  %v45_v42 = vld [vmem:[%s2631_s0 + $0x98] sm:$0xff] }
   0xc   :  { %1436 = vmatpush.msra.mxu2 %v569_v17  ;;  %v46_v46 = vld [vmem:[%s2631_s0 + $0xa0] sm:$0xff]  ;;  %v47_v50 = vld [vmem:[%s2631_s0 + $0xa8] sm:$0xff]  ;;  %v48_v54 = vld [vmem:[%s2631_s0 + $0xb0] sm:$0xff] }
   0xd   :  { %780 = vmatpush.msra.mxu1 %v568_v19  ;;  %v49_v58 = vld [vmem:[%s2631_s0 + $0xb8] sm:$0xff]  ;;  %v50_v62 = vld [vmem:[%s2631_s0 + $0xc0] sm:$0xff]  ;;  %v51_v2 = vld [vmem:[%s2631_s0 + $0xc8] sm:$0xff] }
   0xe   :  { %1437 = vmatpush.msra.mxu2 %v568_v19  ;;  %v59_v17 = vld [vmem:[%s2631_s0 + $0x108] sm:$0xff] }
   0xf   :  { %781 = vmatpush.msra.mxu1 %v567_v20  ;;  %1335 = vmatmul.msk.f32.vlgmr.msra.gmra.mxu3 %vm98_vm0, %v59_v17  ;;  %v55_v19 = vld [vmem:[%s2631_s0 + $0xe8] sm:$0xff] }
  0x10   :  { %1438 = vmatpush.msra.mxu2 %v567_v20 }
  0x11   :  { %1303 = vmatmul.msk.f32.gmra.mxu0 %vm98_vm0, %v27_v5  ;;  %782 = vmatpush.msra.mxu1 %v566_v21 }
  0x12   :  { %1439 = vmatpush.msra.mxu2 %v566_v21 }
  0x13   :  { %783 = vmatpush.msra.mxu1 %v565_v23 }
  0x14   :  { %1440 = vmatpush.msra.mxu2 %v565_v23 }
  0x15   :  { %784 = vmatpush.msra.mxu1 %v564_v24 }
  0x16   :  { %1441 = vmatpush.msra.mxu2 %v564_v24  ;;  %v56_v24 = vld [vmem:[%s2631_s0 + $0xf0] sm:$0xff] }
  0x19   :  { %1304 = vmatmul.msk.f32.gmra.mxu0 %vm98_vm0, %v28_v6  ;;  %v52_v6 = vld [vmem:[%s2631_s0 + $0xd0] sm:$0xff] }
  0x21   :  { %1305 = vmatmul.msk.f32.gmra.mxu0 %vm98_vm0, %v29_v7 }
  0x29   :  { %1306 = vmatmul.msk.f32.gmra.mxu0 %vm98_vm0, %v30_v8 }
  0x31   :  { %1307 = vmatmul.msk.f32.gmra.mxu0 %vm98_vm0, %v31_v9 }
  0x39   :  { %1308 = vmatmul.msk.f32.gmra.mxu0 %vm98_vm0, %v32_v10  ;;  %v53_v10 = vld [vmem:[%s2631_s0 + $0xd8] sm:$0xff] }
  0x41   :  { %1309 = vmatmul.msk.f32.gmra.mxu0 %vm98_vm0, %v33_v11 }
  0x49   :  { %1310 = vmatmul.msk.f32.gmra.mxu0 %vm98_vm0, %v34_v12 }
  0x51   :  { %1311 = vmatmul.msk.f32.gmra.mxu0 %vm98_vm0, %v35_v13 }
  0x59   :  { %1312 = vmatmul.msk.f32.gmra.mxu0 %vm98_vm0, %v36_v14  ;;  %v54_v14 = vld [vmem:[%s2631_s0 + $0xe0] sm:$0xff] }
  0x61   :  { %1313 = vmatmul.msk.f32.gmra.mxu0 %vm98_vm0, %v37_v18 }
  0x69   :  { %1314 = vmatmul.msk.f32.gmra.mxu0 %vm98_vm0, %v38_v22  ;;  %v60_v22 = vld [vmem:[%s2631_s0 + $0x110] sm:$0xff] }
  0x6a   :  { %1336 = vmatmul.msk.f32.gmra.mxu3 %vm98_vm0, %v60_v22 }
  0x71   :  { %1315 = vmatmul.msk.f32.gmra.mxu0 %vm98_vm0, %v39_v25 }
  0x79   :  { %1316 = vmatmul.msk.f32.gmra.mxu0 %vm98_vm0, %v40_v26 }
  0x81   :  { %1317 = vmatmul.msk.f32.gmra.mxu0 %vm98_vm0, %v41_v27  ;;  %v61_v27 = vld [vmem:[%s2631_s0 + $0x118] sm:$0xff] }
  0x82   :  { %1337 = vmatmul.msk.f32.gmra.mxu3 %vm98_vm0, %v61_v27 }
  0x86   :  { %v308_v29 = vpop.f32.mrf.mxu0 }
  0x87   :  { %v309_v31 = vadd.f32 %v1589_v28, %v308_v29 }
  0x89   :  { %v500_v32 = vmax.f32 %v309_v31, 0.0  ;;  %1318 = vmatmul.msk.f32.gmra.mxu0 %vm98_vm0, %v42_v30  ;;  %v57_v30 = vld [vmem:[%s2631_s0 + $0xf8] sm:$0xff] }
  0x8b   :  { %1366 = vmatmul.msk.f32.vlgmr.msra.gmra.mxu1 %vm576_vm1, %v500_v32 }
  0x8e   :  { %v311_v33 = vpop.f32.mrf.mxu0 }
  0x8f   :  { %v312_v35 = vadd.f32 %v1589_v28, %v311_v33  ;;  %v62_v33 = vld [vmem:[%s2631_s0 + $0x120] sm:$0xff] }
  0x90   :  { %1338 = vmatmul.msk.f32.gmra.mxu3 %vm98_vm0, %v62_v33 }
  0x91   :  { %v501_v36 = vmax.f32 %v312_v35, 0.0  ;;  %1319 = vmatmul.msk.f32.gmra.mxu0 %vm98_vm0, %v43_v34  ;;  %v1706_v34 = vld [vmem:[%s2634_s6] ss:$0 sm:$0xff] }
  0x93   :  { %1367 = vmatmul.msk.f32.gmra.mxu1 %vm576_vm1, %v501_v36  ;;  %v58_v36 = vld [vmem:[%s2631_s0 + $0x100] sm:$0xff] }
  0x96   :  { %v314_v37 = vpop.f32.mrf.mxu0 }
  0x97   :  { %v315_v39 = vadd.f32 %v1589_v28, %v314_v37 }
  0x99   :  { %v502_v40 = vmax.f32 %v315_v39, 0.0  ;;  %1320 = vmatmul.msk.f32.gmra.mxu0 %vm98_vm0, %v44_v38  ;;  %v978_v39 = vld [vmem:[%s2635_s2] sm:$0xff] }
  0x9b   :  { %1368 = vmatmul.msk.f32.gmra.mxu1 %vm576_vm1, %v502_v40 }
  0x9e   :  { %v317_v41 = vpop.f32.mrf.mxu0 }
  0x9f   :  { %v318_v43 = vadd.f32 %v1589_v28, %v317_v41 }
  0xa1   :  { %v503_v44 = vmax.f32 %v318_v43, 0.0  ;;  %1321 = vmatmul.msk.f32.gmra.mxu0 %vm98_vm0, %v45_v42  ;;  %v1106_v42 = vld [vmem:[%s2636_s1] sm:$0xff]  ;;  %v63_v43 = vld [vmem:[%s2631_s0 + $0x128] sm:$0xff] }
  0xa2   :  { %1339 = vmatmul.msk.f32.gmra.mxu3 %vm98_vm0, %v63_v43 }
  0xa3   :  { %1369 = vmatmul.msk.f32.gmra.mxu1 %vm576_vm1, %v503_v44 }
  0xa6   :  { %v320_v45 = vpop.f32.mrf.mxu0 }
  0xa7   :  { %v321_v47 = vadd.f32 %v1589_v28, %v320_v45 }
  0xa9   :  { %v504_v48 = vmax.f32 %v321_v47, 0.0  ;;  %1322 = vmatmul.msk.f32.gmra.mxu0 %vm98_vm0, %v46_v46 }
  0xab   :  { %1370 = vmatmul.msk.f32.gmra.mxu1 %vm576_vm1, %v504_v48 }
  0xae   :  { %v323_v49 = vpop.f32.mrf.mxu0 }
  0xaf   :  { %v324_v51 = vadd.f32 %v1589_v28, %v323_v49  ;;  %v979_v49 = vld [vmem:[%s2635_s2 + $0x8] sm:$0xff] }
  0xb1   :  { %v505_v52 = vmax.f32 %v324_v51, 0.0  ;;  %1323 = vmatmul.msk.f32.gmra.mxu0 %vm98_vm0, %v47_v50 }
  0xb3   :  { %1371 = vmatmul.msk.f32.gmra.mxu1 %vm576_vm1, %v505_v52  ;;  %v1107_v52 = vld [vmem:[%s2636_s1 + $0x8] sm:$0xff] }
  0xb6   :  { %v326_v53 = vpop.f32.mrf.mxu0 }
  0xb7   :  { %v327_v55 = vadd.f32 %v1589_v28, %v326_v53  ;;  %v64_v53 = vld [vmem:[%s2631_s0 + $0x130] sm:$0xff] }
  0xb8   :  { %1340 = vmatmul.msk.f32.gmra.mxu3 %vm98_vm0, %v64_v53 }
  0xb9   :  { %v506_v56 = vmax.f32 %v327_v55, 0.0  ;;  %1324 = vmatmul.msk.f32.gmra.mxu0 %vm98_vm0, %v48_v54 }
  0xbb   :  { %1372 = vmatmul.msk.f32.gmra.mxu1 %vm576_vm1, %v506_v56 }
  0xbe   :  { %v329_v57 = vpop.f32.mrf.mxu0 }
  0xbf   :  { %v330_v59 = vadd.f32 %v1589_v28, %v329_v57 }
  0xc1   :  { %v507_v60 = vmax.f32 %v330_v59, 0.0  ;;  %1325 = vmatmul.msk.f32.gmra.mxu0 %vm98_vm0, %v49_v58  ;;  %v980_v59 = vld [vmem:[%s2635_s2 + $0x10] sm:$0xff] }
  0xc3   :  { %1373 = vmatmul.msk.f32.gmra.mxu1 %vm576_vm1, %v507_v60 }
  0xc6   :  { %v332_v61 = vpop.f32.mrf.mxu0 }
  0xc7   :  { %v333_v63 = vadd.f32 %v1589_v28, %v332_v61 }
  0xc9   :  { %v508_v0 = vmax.f32 %v333_v63, 0.0  ;;  %1326 = vmatmul.msk.f32.gmra.mxu0 %vm98_vm0, %v50_v62  ;;  %v1108_v62 = vld [vmem:[%s2636_s1 + $0x10] sm:$0xff]  ;;  %v65_v63 = vld [vmem:[%s2631_s0 + $0x138] sm:$0xff] }
  0xca   :  { %1341 = vmatmul.msk.f32.gmra.mxu3 %vm98_vm0, %v65_v63 }
  0xcb   :  { %1374 = vmatmul.msk.f32.gmra.mxu1 %vm576_vm1, %v508_v0 }
  0xce   :  { %v335_v1 = vpop.f32.mrf.mxu0 }
  0xcf   :  { %v336_v3 = vadd.f32 %v1589_v28, %v335_v1 }
  0xd1   :  { %v509_v4 = vmax.f32 %v336_v3, 0.0  ;;  %1327 = vmatmul.msk.f32.gmra.mxu0 %vm98_vm0, %v51_v2 }
  0xd3   :  { %1375 = vmatmul.msk.f32.gmra.mxu1 %vm576_vm1, %v509_v4 }
  0xd6   :  { %v338_v5 = vpop.f32.mrf.mxu0 }
  0xd7   :  { %v339_v7 = vadd.f32 %v1589_v28, %v338_v5  ;;  %v981_v5 = vld [vmem:[%s2635_s2 + $0x18] sm:$0xff] }
  0xd9   :  { %v510_v8 = vmax.f32 %v339_v7, 0.0  ;;  %1328 = vmatmul.msk.f32.gmra.mxu0 %vm98_vm0, %v52_v6 }
  0xdb   :  { %1376 = vmatmul.msk.f32.gmra.mxu1 %vm576_vm1, %v510_v8  ;;  %v1109_v8 = vld [vmem:[%s2636_s1 + $0x18] sm:$0xff] }
  0xde   :  { %v341_v9 = vpop.f32.mrf.mxu0 }
  0xdf   :  { %v342_v11 = vadd.f32 %v1589_v28, %v341_v9  ;;  %v66_v9 = vld [vmem:[%s2631_s0 + $0x140] sm:$0xff] }
  0xe0   :  { %1342 = vmatmul.msk.f32.gmra.mxu3 %vm98_vm0, %v66_v9 }
  0xe1   :  { %v511_v12 = vmax.f32 %v342_v11, 0.0  ;;  %1329 = vmatmul.msk.f32.gmra.mxu0 %vm98_vm0, %v53_v10 }
  0xe3   :  { %1377 = vmatmul.msk.f32.gmra.mxu1 %vm576_vm1, %v511_v12 }
  0xe6   :  { %v344_v13 = vpop.f32.mrf.mxu0 }
  0xe7   :  { %v345_v15 = vadd.f32 %v1589_v28, %v344_v13 }
  0xe9   :  { %v512_v16 = vmax.f32 %v345_v15, 0.0  ;;  %1330 = vmatmul.msk.f32.gmra.mxu0 %vm98_vm0, %v54_v14  ;;  %v982_v15 = vld [vmem:[%s2635_s2 + $0x20] sm:$0xff] }
  0xeb   :  { %1378 = vmatmul.msk.f32.gmra.mxu1 %vm576_vm1, %v512_v16 }
  0xee   :  { %v347_v18 = vpop.f32.mrf.mxu0 }
  0xef   :  { %v348_v20 = vadd.f32 %v1589_v28, %v347_v18  ;;  %v1110_v18 = vld [vmem:[%s2636_s1 + $0x20] sm:$0xff] }
  0xf1   :  { %v513_v21 = vmax.f32 %v348_v20, 0.0  ;;  %1331 = vmatmul.msk.f32.gmra.mxu0 %vm98_vm0, %v55_v19  ;;  %v67_v19 = vld [vmem:[%s2631_s0 + $0x148] sm:$0xff] }
  0xf2   :  { %1343 = vmatmul.msk.f32.gmra.mxu3 %vm98_vm0, %v67_v19 }
  0xf3   :  { %1379 = vmatmul.msk.f32.gmra.mxu1 %vm576_vm1, %v513_v21 }
  0xf6   :  { %v350_v23 = vpop.f32.mrf.mxu0 }
  0xf7   :  { %v351_v25 = vadd.f32 %v1589_v28, %v350_v23 }
  0xf9   :  { %v514_v26 = vmax.f32 %v351_v25, 0.0  ;;  %1332 = vmatmul.msk.f32.gmra.mxu0 %vm98_vm0, %v56_v24  ;;  %v983_v25 = vld [vmem:[%s2635_s2 + $0x28] sm:$0xff] }
  0xfb   :  { %1380 = vmatmul.msk.f32.gmra.mxu1 %vm576_vm1, %v514_v26 }
  0xfe   :  { %v353_v29 = vpop.f32.mrf.mxu0 }
  0xff   :  { %v354_v31 = vadd.f32 %v1589_v28, %v353_v29  ;;  %v1111_v29 = vld [vmem:[%s2636_s1 + $0x28] sm:$0xff] }
 0x101   :  { %v515_v32 = vmax.f32 %v354_v31, 0.0  ;;  %1333 = vmatmul.msk.f32.gmra.mxu0 %vm98_vm0, %v57_v30  ;;  %v68_v30 = vld [vmem:[%s2631_s0 + $0x150] sm:$0xff] }
 0x102   :  { %1344 = vmatmul.msk.f32.gmra.mxu3 %vm98_vm0, %v68_v30 }
 0x103   :  { %1381 = vmatmul.msk.f32.gmra.mxu1 %vm576_vm1, %v515_v32 }
 0x106   :  { %v356_v35 = vpop.f32.mrf.mxu0 }
 0x107   :  { %v357_v37 = vadd.f32 %v1589_v28, %v356_v35 }
 0x108   :  { %v786_v38 = vpop.f32.mrf.mxu1 }
 0x109   :  { %v516_v40 = vmax.f32 %v357_v37, 0.0  ;;  %v787_v41 = vadd.f32 %v1706_v34, %v786_v38  ;;  %1334 = vmatmul.msk.f32.gmra.mxu0 %vm98_vm0, %v58_v36  ;;  %v984_v37 = vld [vmem:[%s2635_s2 + $0x30] sm:$0xff] }
 0x10b   :  { %v1042_v44 = vadd.f32 %v978_v39, %v787_v41  ;;  %1382 = vmatmul.msk.f32.gmra.mxu1 %vm576_vm1, %v516_v40  ;;  %v1112_v40 = vld [vmem:[%s2636_s1 + $0x30] sm:$0xff]  ;;  %v69_v41 = vld [vmem:[%s2631_s0 + $0x158] sm:$0xff] }
 0x10c   :  { %1345 = vmatmul.msk.f32.gmra.mxu3 %vm98_vm0, %v69_v41 }
 0x10d   :  { %v1170_v45 = vadd.f32 %v1106_v42, %v1042_v44 }
 0x10e   :  { %v359_v46 = vpop.f32.mrf.mxu0 }
 0x10f   :  { %1234 = vst.msk [vmem:[%s2637_s7] sm:$0xff] %vm98_vm0, %v1170_v45  ;;  %v360_v47 = vadd.f32 %v1589_v28, %v359_v46 }
 0x110   :  { %v789_v48 = vpop.f32.mrf.mxu1 }
 0x111   :  { %v517_v50 = vmax.f32 %v360_v47, 0.0  ;;  %v790_v51 = vadd.f32 %v1706_v34, %v789_v48  ;;  %v985_v47 = vld [vmem:[%s2635_s2 + $0x38] sm:$0xff] }
 0x113   :  { %v1043_v54 = vadd.f32 %v979_v49, %v790_v51  ;;  %1383 = vmatmul.msk.f32.gmra.mxu1 %vm576_vm1, %v517_v50  ;;  %v1113_v50 = vld [vmem:[%s2636_s1 + $0x38] sm:$0xff]  ;;  %v70_v51 = vld [vmem:[%s2631_s0 + $0x160] sm:$0xff] }
 0x114   :  { %1346 = vmatmul.msk.f32.gmra.mxu3 %vm98_vm0, %v70_v51 }
 0x115   :  { %v1171_v55 = vadd.f32 %v1107_v52, %v1043_v54 }
 0x116   :  { %v362_v56 = vpop.f32.mrf.mxu0 }
 0x117   :  { %1235 = vst.msk [vmem:[%s2637_s7 + $0x8] sm:$0xff] %vm98_vm0, %v1171_v55  ;;  %v363_v57 = vadd.f32 %v1589_v28, %v362_v56 }
 0x118   :  { %v792_v58 = vpop.f32.mrf.mxu1 }
 0x119   :  { %v518_v60 = vmax.f32 %v363_v57, 0.0  ;;  %v793_v61 = vadd.f32 %v1706_v34, %v792_v58  ;;  %v986_v57 = vld [vmem:[%s2635_s2 + $0x40] sm:$0xff] }
 0x11b   :  { %v1044_v0 = vadd.f32 %v980_v59, %v793_v61  ;;  %1384 = vmatmul.msk.f32.gmra.mxu1 %vm576_vm1, %v518_v60  ;;  %v1114_v60 = vld [vmem:[%s2636_s1 + $0x40] sm:$0xff]  ;;  %v71_v61 = vld [vmem:[%s2631_s0 + $0x168] sm:$0xff] }
 0x11c   :  { %1347 = vmatmul.msk.f32.gmra.mxu3 %vm98_vm0, %v71_v61  ;;  %v77_v61 = vld [vmem:[%s2631_s0 + $0x198] sm:$0xff] }
 0x11d   :  { %v1172_v1 = vadd.f32 %v1108_v62, %v1044_v0 }
 0x11e   :  { %v365_v2 = vpop.f32.mrf.mxu0 }
 0x11f   :  { %1236 = vst.msk [vmem:[%s2637_s7 + $0x10] sm:$0xff] %vm98_vm0, %v1172_v1  ;;  %v366_v3 = vadd.f32 %v1589_v28, %v365_v2 }
 0x120   :  { %v795_v4 = vpop.f32.mrf.mxu1 }
 0x121   :  { %v519_v6 = vmax.f32 %v366_v3, 0.0  ;;  %v796_v7 = vadd.f32 %v1706_v34, %v795_v4  ;;  %v987_v3 = vld [vmem:[%s2635_s2 + $0x48] sm:$0xff] }
 0x123   :  { %v1045_v10 = vadd.f32 %v981_v5, %v796_v7  ;;  %1385 = vmatmul.msk.f32.gmra.mxu1 %vm576_vm1, %v519_v6  ;;  %v1115_v6 = vld [vmem:[%s2636_s1 + $0x48] sm:$0xff]  ;;  %v72_v7 = vld [vmem:[%s2631_s0 + $0x170] sm:$0xff] }
 0x124   :  { %1348 = vmatmul.msk.f32.gmra.mxu3 %vm98_vm0, %v72_v7  ;;  %v1121_v7 = vld [vmem:[%s2636_s1 + $0x78] sm:$0xff] }
 0x125   :  { %v1173_v11 = vadd.f32 %v1109_v8, %v1045_v10 }
 0x126   :  { %v368_v12 = vpop.f32.mrf.mxu0 }
 0x127   :  { %1237 = vst.msk [vmem:[%s2637_s7 + $0x18] sm:$0xff] %vm98_vm0, %v1173_v11  ;;  %v369_v13 = vadd.f32 %v1589_v28, %v368_v12 }
 0x128   :  { %v798_v14 = vpop.f32.mrf.mxu1 }
 0x129   :  { %v520_v16 = vmax.f32 %v369_v13, 0.0  ;;  %v799_v17 = vadd.f32 %v1706_v34, %v798_v14  ;;  %v988_v13 = vld [vmem:[%s2635_s2 + $0x50] sm:$0xff] }
 0x12b   :  { %v1046_v20 = vadd.f32 %v982_v15, %v799_v17  ;;  %1386 = vmatmul.msk.f32.gmra.mxu1 %vm576_vm1, %v520_v16  ;;  %v1116_v16 = vld [vmem:[%s2636_s1 + $0x50] sm:$0xff]  ;;  %v73_v17 = vld [vmem:[%s2631_s0 + $0x178] sm:$0xff] }
 0x12c   :  { %1349 = vmatmul.msk.f32.gmra.mxu3 %vm98_vm0, %v73_v17 }
 0x12d   :  { %v1174_v21 = vadd.f32 %v1110_v18, %v1046_v20 }
 0x12e   :  { %v371_v22 = vpop.f32.mrf.mxu0 }
 0x12f   :  { %1238 = vst.msk [vmem:[%s2637_s7 + $0x20] sm:$0xff] %vm98_vm0, %v1174_v21  ;;  %v372_v23 = vadd.f32 %v1589_v28, %v371_v22 }
 0x130   :  { %v801_v24 = vpop.f32.mrf.mxu1 }
 0x131   :  { %v521_v26 = vmax.f32 %v372_v23, 0.0  ;;  %v802_v27 = vadd.f32 %v1706_v34, %v801_v24  ;;  %v989_v23 = vld [vmem:[%s2635_s2 + $0x58] sm:$0xff] }
 0x133   :  { %v1047_v31 = vadd.f32 %v983_v25, %v802_v27  ;;  %1387 = vmatmul.msk.f32.gmra.mxu1 %vm576_vm1, %v521_v26  ;;  %v1117_v26 = vld [vmem:[%s2636_s1 + $0x58] sm:$0xff]  ;;  %v74_v27 = vld [vmem:[%s2631_s0 + $0x180] sm:$0xff] }
 0x134   :  { %1350 = vmatmul.msk.f32.gmra.mxu3 %vm98_vm0, %v74_v27 }
 0x135   :  { %v1175_v32 = vadd.f32 %v1111_v29, %v1047_v31 }
 0x136   :  { %v374_v33 = vpop.f32.mrf.mxu0 }
 0x137   :  { %1239 = vst.msk [vmem:[%s2637_s7 + $0x28] sm:$0xff] %vm98_vm0, %v1175_v32  ;;  %v375_v35 = vadd.f32 %v1589_v28, %v374_v33 }
 0x138   :  { %v804_v36 = vpop.f32.mrf.mxu1 }
 0x139   :  { %v522_v38 = vmax.f32 %v375_v35, 0.0  ;;  %v805_v39 = vadd.f32 %v1706_v34, %v804_v36  ;;  %v990_v35 = vld [vmem:[%s2635_s2 + $0x60] sm:$0xff] }
 0x13b   :  { %v1048_v42 = vadd.f32 %v984_v37, %v805_v39  ;;  %1388 = vmatmul.msk.f32.gmra.mxu1 %vm576_vm1, %v522_v38  ;;  %v1118_v38 = vld [vmem:[%s2636_s1 + $0x60] sm:$0xff]  ;;  %v75_v39 = vld [vmem:[%s2631_s0 + $0x188] sm:$0xff] }
 0x13c   :  { %1351 = vmatmul.msk.f32.gmra.mxu3 %vm98_vm0, %v75_v39 }
 0x13d   :  { %v1176_v43 = vadd.f32 %v1112_v40, %v1048_v42 }
 0x13e   :  { %v377_v44 = vpop.f32.mrf.mxu0 }
 0x13f   :  { %1240 = vst.msk [vmem:[%s2637_s7 + $0x30] sm:$0xff] %vm98_vm0, %v1176_v43  ;;  %v378_v45 = vadd.f32 %v1589_v28, %v377_v44  ;;  %v407_v43 = vpop.f32.mrf.mxu3 }
 0x140   :  { %v807_v46 = vpop.f32.mrf.mxu1 }
 0x141   :  { %v523_v48 = vmax.f32 %v378_v45, 0.0  ;;  %v808_v49 = vadd.f32 %v1706_v34, %v807_v46  ;;  %v991_v46 = vld [vmem:[%s2635_s2 + $0x68] sm:$0xff] }
 0x143   :  { %v1049_v52 = vadd.f32 %v985_v47, %v808_v49  ;;  %1389 = vmatmul.msk.f32.gmra.mxu1 %vm576_vm1, %v523_v48  ;;  %v1119_v49 = vld [vmem:[%s2636_s1 + $0x68] sm:$0xff] }
 0x145   :  { %v1177_v53 = vadd.f32 %v1113_v50, %v1049_v52  ;;  %v76_v50 = vld [vmem:[%s2631_s0 + $0x190] sm:$0xff] }
 0x146   :  { %v380_v54 = vpop.f32.mrf.mxu0  ;;  %1352 = vmatmul.msk.f32.gmra.mxu3 %vm98_vm0, %v76_v50  ;;  %v1125_v50 = vld [vmem:[%s2636_s1 + $0x98] sm:$0xff] }
 0x147   :  { %1241 = vst.msk [vmem:[%s2637_s7 + $0x38] sm:$0xff] %vm98_vm0, %v1177_v53  ;;  %v381_v55 = vadd.f32 %v1589_v28, %v380_v54  ;;  %v410_v54 = vpop.f32.mrf.mxu3 }
 0x148   :  { %v810_v56 = vpop.f32.mrf.mxu1 }
 0x149   :  { %v524_v58 = vmax.f32 %v381_v55, 0.0  ;;  %v811_v59 = vadd.f32 %v1706_v34, %v810_v56 }
 0x14b   :  { %v1050_v62 = vadd.f32 %v986_v57, %v811_v59  ;;  %1390 = vmatmul.msk.f32.gmra.mxu1 %vm576_vm1, %v524_v58  ;;  %v992_v57 = vld [vmem:[%s2635_s2 + $0x70] sm:$0xff] }
 0x14d   :  { %v1178_v63 = vadd.f32 %v1114_v60, %v1050_v62  ;;  %v1120_v60 = vld [vmem:[%s2636_s1 + $0x70] sm:$0xff] }
 0x14e   :  { %v383_v0 = vpop.f32.mrf.mxu0  ;;  %1353 = vmatmul.msk.f32.gmra.mxu3 %vm98_vm0, %v77_v61  ;;  %v83_v61 = vld [vmem:[%s2631_s0 + $0x1c8] sm:$0xff] }
 0x14f   :  { %1242 = vst.msk [vmem:[%s2637_s7 + $0x40] sm:$0xff] %vm98_vm0, %v1178_v63  ;;  %v384_v1 = vadd.f32 %v1589_v28, %v383_v0 }
 0x150   :  { %v813_v2 = vpop.f32.mrf.mxu1 }
 0x151   :  { %v525_v4 = vmax.f32 %v384_v1, 0.0  ;;  %v814_v5 = vadd.f32 %v1706_v34, %v813_v2  ;;  %v413_v1 = vpop.f32.mrf.mxu3 }
 0x153   :  { %v1051_v8 = vadd.f32 %v987_v3, %v814_v5  ;;  %1391 = vmatmul.msk.f32.gmra.mxu1 %vm576_vm1, %v525_v4  ;;  %v993_v4 = vld [vmem:[%s2635_s2 + $0x78] sm:$0xff] }
 0x155   :  { %v1179_v9 = vadd.f32 %v1115_v6, %v1051_v8  ;;  %v78_v8 = vld [vmem:[%s2631_s0 + $0x1a0] sm:$0xff] }
 0x156   :  { %v386_v10 = vpop.f32.mrf.mxu0  ;;  %1354 = vmatmul.msk.f32.gmra.mxu3 %vm98_vm0, %v78_v8 }
 0x157   :  { %1243 = vst.msk [vmem:[%s2637_s7 + $0x48] sm:$0xff] %vm98_vm0, %v1179_v9  ;;  %v387_v11 = vadd.f32 %v1589_v28, %v386_v10 }
 0x158   :  { %v816_v12 = vpop.f32.mrf.mxu1 }
 0x159   :  { %v526_v14 = vmax.f32 %v387_v11, 0.0  ;;  %v817_v15 = vadd.f32 %v1706_v34, %v816_v12  ;;  %v416_v12 = vpop.f32.mrf.mxu3 }
 0x15b   :  { %v1052_v18 = vadd.f32 %v988_v13, %v817_v15  ;;  %1392 = vmatmul.msk.f32.gmra.mxu1 %vm576_vm1, %v526_v14  ;;  %v994_v15 = vld [vmem:[%s2635_s2 + $0x80] sm:$0xff] }
 0x15d   :  { %v1180_v19 = vadd.f32 %v1116_v16, %v1052_v18  ;;  %v1122_v18 = vld [vmem:[%s2636_s1 + $0x80] sm:$0xff] }
 0x15e   :  { %v389_v20 = vpop.f32.mrf.mxu0 }
 0x15f   :  { %1244 = vst.msk [vmem:[%s2637_s7 + $0x50] sm:$0xff] %vm98_vm0, %v1180_v19  ;;  %v390_v21 = vadd.f32 %v1589_v28, %v389_v20  ;;  %v79_v19 = vld [vmem:[%s2631_s0 + $0x1a8] sm:$0xff] }
 0x160   :  { %v819_v22 = vpop.f32.mrf.mxu1  ;;  %1355 = vmatmul.msk.f32.gmra.mxu3 %vm98_vm0, %v79_v19 }
 0x161   :  { %v527_v24 = vmax.f32 %v390_v21, 0.0  ;;  %v820_v25 = vadd.f32 %v1706_v34, %v819_v22  ;;  %v408_v21 = vadd.f32 %v1589_v28, %v407_v43  ;;  %v414_v43 = vadd.f32 %v1589_v28, %v413_v1 }
 0x163   :  { %v1053_v29 = vadd.f32 %v989_v23, %v820_v25  ;;  %1393 = vmatmul.msk.f32.gmra.mxu1 %vm576_vm1, %v527_v24  ;;  %v419_v23 = vpop.f32.mrf.mxu3  ;;  %v533_v24 = vmax.f32 %v408_v21, 0.0 }
 0x165   :  { %v1181_v30 = vadd.f32 %v1117_v26, %v1053_v29  ;;  %v995_v26 = vld [vmem:[%s2635_s2 + $0x88] sm:$0xff] }
 0x166   :  { %v392_v31 = vpop.f32.mrf.mxu0  ;;  %v1123_v29 = vld [vmem:[%s2636_s1 + $0x88] sm:$0xff] }
 0x167   :  { %1245 = vst.msk [vmem:[%s2637_s7 + $0x58] sm:$0xff] %vm98_vm0, %v1181_v30  ;;  %v393_v32 = vadd.f32 %v1589_v28, %v392_v31  ;;  %v80_v30 = vld [vmem:[%s2631_s0 + $0x1b0] sm:$0xff] }
 0x168   :  { %v822_v33 = vpop.f32.mrf.mxu1  ;;  %1356 = vmatmul.msk.f32.gmra.mxu3 %vm98_vm0, %v80_v30 }
 0x169   :  { %v528_v36 = vmax.f32 %v393_v32, 0.0  ;;  %v823_v37 = vadd.f32 %v1706_v34, %v822_v33  ;;  %v411_v32 = vadd.f32 %v1589_v28, %v410_v54 }
 0x16b   :  { %v1054_v40 = vadd.f32 %v990_v35, %v823_v37  ;;  %1394 = vmatmul.msk.f32.gmra.mxu1 %vm576_vm1, %v528_v36  ;;  %v422_v35 = vpop.f32.mrf.mxu3  ;;  %v534_v36 = vmax.f32 %v411_v32, 0.0 }
 0x16d   :  { %v1182_v41 = vadd.f32 %v1118_v38, %v1054_v40  ;;  %v996_v38 = vld [vmem:[%s2635_s2 + $0x90] sm:$0xff] }
 0x16e   :  { %v395_v42 = vpop.f32.mrf.mxu0  ;;  %v1124_v40 = vld [vmem:[%s2636_s1 + $0x90] sm:$0xff] }
 0x16f   :  { %1246 = vst.msk [vmem:[%s2637_s7 + $0x60] sm:$0xff] %vm98_vm0, %v1182_v41  ;;  %v396_v44 = vadd.f32 %v1589_v28, %v395_v42  ;;  %v81_v41 = vld [vmem:[%s2631_s0 + $0x1b8] sm:$0xff] }
 0x170   :  { %v825_v45 = vpop.f32.mrf.mxu1  ;;  %1357 = vmatmul.msk.f32.gmra.mxu3 %vm98_vm0, %v81_v41 }
 0x171   :  { %v529_v47 = vmax.f32 %v396_v44, 0.0  ;;  %v826_v48 = vadd.f32 %v1706_v34, %v825_v45 }
 0x173   :  { %v1055_v51 = vadd.f32 %v991_v46, %v826_v48  ;;  %1395 = vmatmul.msk.f32.gmra.mxu1 %vm576_vm1, %v529_v47  ;;  %v425_v45 = vpop.f32.mrf.mxu3  ;;  %v535_v46 = vmax.f32 %v414_v43, 0.0  ;;  %v997_v48 = vld [vmem:[%s2635_s2 + $0x98] sm:$0xff] }
 0x174   :  { %v426_v19 = vadd.f32 %v1589_v28, %v425_v45 }
 0x175   :  { %v1183_v52 = vadd.f32 %v1119_v49, %v1055_v51  ;;  %v82_v51 = vld [vmem:[%s2631_s0 + $0x1c0] sm:$0xff] }
 0x176   :  { %v398_v53 = vpop.f32.mrf.mxu0 }
 0x177   :  { %1247 = vst.msk [vmem:[%s2637_s7 + $0x68] sm:$0xff] %vm98_vm0, %v1183_v52  ;;  %v399_v55 = vadd.f32 %v1589_v28, %v398_v53  ;;  %v417_v53 = vadd.f32 %v1589_v28, %v416_v12 }
 0x178   :  { %v828_v56 = vpop.f32.mrf.mxu1  ;;  %1358 = vmatmul.msk.f32.gmra.mxu3 %vm98_vm0, %v82_v51 }
 0x179   :  { %v530_v58 = vmax.f32 %v399_v55, 0.0  ;;  %v829_v59 = vadd.f32 %v1706_v34, %v828_v56  ;;  %v536_v56 = vmax.f32 %v417_v53, 0.0 }
 0x17b   :  { %v1056_v62 = vadd.f32 %v992_v57, %v829_v59  ;;  %1396 = vmatmul.msk.f32.gmra.mxu1 %vm576_vm1, %v530_v58  ;;  %v428_v55 = vpop.f32.mrf.mxu3  ;;  %v998_v58 = vld [vmem:[%s2635_s2 + $0xa0] sm:$0xff] }
 0x17c   :  { %v429_v30 = vadd.f32 %v1589_v28, %v428_v55 }
 0x17d   :  { %v1184_v63 = vadd.f32 %v1120_v60, %v1056_v62  ;;  %v1126_v60 = vld [vmem:[%s2636_s1 + $0xa0] sm:$0xff] }
 0x17e   :  { %v401_v0 = vpop.f32.mrf.mxu0 }
 0x17f   :  { %1248 = vst.msk [vmem:[%s2637_s7 + $0x70] sm:$0xff] %vm98_vm0, %v1184_v63  ;;  %v402_v2 = vadd.f32 %v1589_v28, %v401_v0  ;;  %v420_v63 = vadd.f32 %v1589_v28, %v419_v23 }
 0x180   :  { %v831_v3 = vpop.f32.mrf.mxu1  ;;  %1359 = vmatmul.msk.f32.gmra.mxu3 %vm98_vm0, %v83_v61 }
 0x181   :  { %v531_v5 = vmax.f32 %v402_v2, 0.0  ;;  %v832_v6 = vadd.f32 %v1706_v34, %v831_v3  ;;  %v537_v2 = vmax.f32 %v420_v63, 0.0 }
 0x183   :  { %v1057_v9 = vadd.f32 %v993_v4, %v832_v6  ;;  %1397 = vmatmul.msk.f32.gmra.mxu1 %vm576_vm1, %v531_v5  ;;  %v431_v1 = vpop.f32.mrf.mxu3  ;;  %v999_v4 = vld [vmem:[%s2635_s2 + $0xa8] sm:$0xff] }
 0x184   :  { %v1127_v6 = vld [vmem:[%s2636_s1 + $0xa8] sm:$0xff]  ;;  %v432_v41 = vadd.f32 %v1589_v28, %v431_v1 }
 0x185   :  { %v1185_v10 = vadd.f32 %v1121_v7, %v1057_v9  ;;  %v84_v7 = vld [vmem:[%s2631_s0 + $0x1d0] sm:$0xff]  ;;  %v423_v9 = vadd.f32 %v1589_v28, %v422_v35 }
 0x186   :  { %v404_v11 = vpop.f32.mrf.mxu0 }
 0x187   :  { %1249 = vst.msk [vmem:[%s2637_s7 + $0x78] sm:$0xff] %vm98_vm0, %v1185_v10  ;;  %v405_v13 = vadd.f32 %v1589_v28, %v404_v11  ;;  %v538_v12 = vmax.f32 %v423_v9, 0.0 }
 0x188   :  { %v834_v14 = vpop.f32.mrf.mxu1  ;;  %1360 = vmatmul.msk.f32.gmra.mxu3 %vm98_vm0, %v84_v7 }
 0x189   :  { %v532_v16 = vmax.f32 %v405_v13, 0.0  ;;  %v835_v17 = vadd.f32 %v1706_v34, %v834_v14  ;;  %v1000_v14 = vld [vmem:[%s2635_s2 + $0xb0] sm:$0xff] }
 0x18b   :  { %v1058_v20 = vadd.f32 %v994_v15, %v835_v17  ;;  %1398 = vmatmul.msk.f32.vlgmr.msra.gmra.mxu2 %vm576_vm1, %v532_v16  ;;  %v434_v11 = vpop.f32.mrf.mxu3  ;;  %v1128_v16 = vld [vmem:[%s2636_s1 + $0xb0] sm:$0xff]  ;;  %v85_v17 = vld [vmem:[%s2631_s0 + $0x1d8] sm:$0xff] }
 0x18c   :  { %v435_v51 = vadd.f32 %v1589_v28, %v434_v11  ;;  %v1006_v11 = vld [vmem:[%s2635_s2 + $0xe0] sm:$0xff] }
 0x18d   :  { %v1186_v22 = vadd.f32 %v1122_v18, %v1058_v20 }
 0x18f   :  { %1250 = vst.msk [vmem:[%s2637_s7 + $0x80] sm:$0xff] %vm98_vm0, %v1186_v22  ;;  %v539_v22 = vmax.f32 %v426_v19, 0.0 }
 0x190   :  { %v837_v25 = vpop.f32.mrf.mxu1  ;;  %1361 = vmatmul.msk.f32.gmra.mxu3 %vm98_vm0, %v85_v17 }
 0x191   :  { %v838_v27 = vadd.f32 %v1706_v34, %v837_v25 }
 0x193   :  { %v1059_v31 = vadd.f32 %v995_v26, %v838_v27  ;;  %1399 = vmatmul.msk.f32.gmra.mxu2 %vm576_vm1, %v533_v24  ;;  %v437_v21 = vpop.f32.mrf.mxu3  ;;  %v1001_v24 = vld [vmem:[%s2635_s2 + $0xb8] sm:$0xff]  ;;  %v86_v27 = vld [vmem:[%s2631_s0 + $0x1e0] sm:$0xff] }
 0x194   :  { %v1129_v26 = vld [vmem:[%s2636_s1 + $0xb8] sm:$0xff]  ;;  %v438_v61 = vadd.f32 %v1589_v28, %v437_v21 }
 0x195   :  { %v1187_v33 = vadd.f32 %v1123_v29, %v1059_v31 }
 0x197   :  { %1251 = vst.msk [vmem:[%s2637_s7 + $0x88] sm:$0xff] %vm98_vm0, %v1187_v33  ;;  %v540_v33 = vmax.f32 %v429_v30, 0.0  ;;  %v1008_v30 = vld [vmem:[%s2635_s2 + $0xf0] sm:$0xff] }
 0x198   :  { %v840_v37 = vpop.f32.mrf.mxu1  ;;  %1362 = vmatmul.msk.f32.gmra.mxu3 %vm98_vm0, %v86_v27 }
 0x199   :  { %v841_v39 = vadd.f32 %v1706_v34, %v840_v37 }
 0x19b   :  { %v1060_v42 = vadd.f32 %v996_v38, %v841_v39  ;;  %1400 = vmatmul.msk.f32.gmra.mxu2 %vm576_vm1, %v534_v36  ;;  %v440_v32 = vpop.f32.mrf.mxu3  ;;  %v1002_v36 = vld [vmem:[%s2635_s2 + $0xc0] sm:$0xff]  ;;  %v87_v39 = vld [vmem:[%s2631_s0 + $0x1e8] sm:$0xff] }
 0x19c   :  { %v1130_v38 = vld [vmem:[%s2636_s1 + $0xc0] sm:$0xff] }
 0x19d   :  { %v1188_v44 = vadd.f32 %v1124_v40, %v1060_v42 }
 0x19f   :  { %1252 = vst.msk [vmem:[%s2637_s7 + $0x90] sm:$0xff] %vm98_vm0, %v1188_v44  ;;  %v541_v44 = vmax.f32 %v432_v41, 0.0 }
 0x1a0   :  { %v843_v47 = vpop.f32.mrf.mxu1  ;;  %1363 = vmatmul.msk.f32.gmra.mxu3 %vm98_vm0, %v87_v39  ;;  %v1009_v39 = vld [vmem:[%s2635_s2 + $0xf8] sm:$0xff] }
 0x1a1   :  { %v844_v49 = vadd.f32 %v1706_v34, %v843_v47 }
 0x1a3   :  { %v1061_v52 = vadd.f32 %v997_v48, %v844_v49  ;;  %1401 = vmatmul.msk.f32.gmra.mxu2 %vm576_vm1, %v535_v46  ;;  %v443_v43 = vpop.f32.mrf.mxu3  ;;  %v1003_v46 = vld [vmem:[%s2635_s2 + $0xc8] sm:$0xff]  ;;  %v88_v49 = vld [vmem:[%s2631_s0 + $0x1f0] sm:$0xff] }
 0x1a4   :  { %v1131_v48 = vld [vmem:[%s2636_s1 + $0xc8] sm:$0xff] }
 0x1a5   :  { %v1189_v54 = vadd.f32 %v1125_v50, %v1061_v52 }
 0x1a7   :  { %1253 = vst.msk [vmem:[%s2637_s7 + $0x98] sm:$0xff] %vm98_vm0, %v1189_v54  ;;  %v542_v54 = vmax.f32 %v435_v51, 0.0 }
 0x1a8   :  { %v846_v57 = vpop.f32.mrf.mxu1  ;;  %1364 = vmatmul.msk.f32.gmra.mxu3 %vm98_vm0, %v88_v49 }
 0x1a9   :  { %v847_v59 = vadd.f32 %v1706_v34, %v846_v57 }
 0x1ab   :  { %v1062_v62 = vadd.f32 %v998_v58, %v847_v59  ;;  %1402 = vmatmul.msk.f32.gmra.mxu2 %vm576_vm1, %v536_v56  ;;  %v446_v53 = vpop.f32.mrf.mxu3  ;;  %v1004_v56 = vld [vmem:[%s2635_s2 + $0xd0] sm:$0xff]  ;;  %v89_v59 = vld [vmem:[%s2631_s0 + $0x1f8] sm:$0xff] }
 0x1ac   :  { %v1132_v58 = vld [vmem:[%s2636_s1 + $0xd0] sm:$0xff] }
 0x1ad   :  { %v1190_v0 = vadd.f32 %v1126_v60, %v1062_v62 }
 0x1af   :  { %1254 = vst.msk [vmem:[%s2637_s7 + $0xa0] sm:$0xff] %vm98_vm0, %v1190_v0  ;;  %v543_v0 = vmax.f32 %v438_v61, 0.0 }
 0x1b0   :  { %v849_v3 = vpop.f32.mrf.mxu1  ;;  %1365 = vmatmul.msk.f32.gmra.mxu3 %vm98_vm0, %v89_v59  ;;  %v1011_v59 = vld [vmem:[%s2635_s2 + $0x108] sm:$0xff] }
 0x1b1   :  { %v850_v5 = vadd.f32 %v1706_v34, %v849_v3 }
 0x1b3   :  { %v1063_v8 = vadd.f32 %v999_v4, %v850_v5  ;;  %1403 = vmatmul.msk.f32.gmra.mxu2 %vm576_vm1, %v537_v2  ;;  %v449_v63 = vpop.f32.mrf.mxu3  ;;  %v1005_v2 = vld [vmem:[%s2635_s2 + $0xd8] sm:$0xff] }
 0x1b4   :  { %v1133_v4 = vld [vmem:[%s2636_s1 + $0xd8] sm:$0xff] }
 0x1b5   :  { %v1191_v10 = vadd.f32 %v1127_v6, %v1063_v8  ;;  %v441_v6 = vadd.f32 %v1589_v28, %v440_v32  ;;  %v1136_v32 = vld [vmem:[%s2636_s1 + $0xf0] sm:$0xff] }
 0x1b7   :  { %1255 = vst.msk [vmem:[%s2637_s7 + $0xa8] sm:$0xff] %vm98_vm0, %v1191_v10  ;;  %v544_v9 = vmax.f32 %v441_v6, 0.0 }
 0x1b8   :  { %v852_v13 = vpop.f32.mrf.mxu1 }
 0x1b9   :  { %v853_v15 = vadd.f32 %v1706_v34, %v852_v13  ;;  %v1134_v13 = vld [vmem:[%s2636_s1 + $0xe0] sm:$0xff] }
 0x1bb   :  { %v1064_v18 = vadd.f32 %v1000_v14, %v853_v15  ;;  %1404 = vmatmul.msk.f32.gmra.mxu2 %vm576_vm1, %v538_v12  ;;  %v452_v8 = vpop.f32.mrf.mxu3  ;;  %v444_v15 = vadd.f32 %v1589_v28, %v443_v43  ;;  %v2235_v43 = vld [vmem:[%s2632_s4] ss:$0 sm:$0xff] }
 0x1bd   :  { %v1192_v20 = vadd.f32 %v1128_v16, %v1064_v18  ;;  %v545_v18 = vmax.f32 %v444_v15, 0.0  ;;  %v1141_v15 = vld [vmem:[%s2636_s1 + $0x118] sm:$0xff] }
 0x1bf   :  { %1256 = vst.msk [vmem:[%s2637_s7 + $0xb0] sm:$0xff] %vm98_vm0, %v1192_v20  ;;  %v1007_v20 = vld [vmem:[%s2635_s2 + $0xe8] sm:$0xff] }
 0x1c0   :  { %v855_v23 = vpop.f32.mrf.mxu1 }
 0x1c1   :  { %v856_v25 = vadd.f32 %v1706_v34, %v855_v23 }
 0x1c3   :  { %v1065_v29 = vadd.f32 %v1001_v24, %v856_v25  ;;  %1405 = vmatmul.msk.f32.gmra.mxu2 %vm576_vm1, %v539_v22  ;;  %v455_v17 = vpop.f32.mrf.mxu3  ;;  %v1135_v22 = vld [vmem:[%s2636_s1 + $0xe8] sm:$0xff]  ;;  %v447_v24 = vadd.f32 %v1589_v28, %v446_v53  ;;  %v1138_v53 = vld [vmem:[%s2636_s1 + $0x100] sm:$0xff] }
 0x1c5   :  { %v1193_v31 = vadd.f32 %v1129_v26, %v1065_v29  ;;  %v546_v27 = vmax.f32 %v447_v24, 0.0  ;;  %v1142_v24 = vld [vmem:[%s2636_s1 + $0x120] sm:$0xff] }
 0x1c7   :  { %1257 = vst.msk [vmem:[%s2637_s7 + $0xb8] sm:$0xff] %vm98_vm0, %v1193_v31 }
 0x1c8   :  { %v858_v35 = vpop.f32.mrf.mxu1 }
 0x1c9   :  { %v859_v37 = vadd.f32 %v1706_v34, %v858_v35  ;;  %v450_v35 = vadd.f32 %v1589_v28, %v449_v63 }
 0x1cb   :  { %v1066_v40 = vadd.f32 %v1002_v36, %v859_v37  ;;  %1406 = vmatmul.msk.f32.gmra.mxu2 %vm576_vm1, %v540_v33  ;;  %v458_v26 = vpop.f32.mrf.mxu3  ;;  %v547_v37 = vmax.f32 %v450_v35, 0.0  ;;  %v1143_v35 = vld [vmem:[%s2636_s1 + $0x128] sm:$0xff] }
 0x1cd   :  { %v1194_v42 = vadd.f32 %v1130_v38, %v1066_v40 }
 0x1cf   :  { %1258 = vst.msk [vmem:[%s2637_s7 + $0xc0] sm:$0xff] %vm98_vm0, %v1194_v42  ;;  %v1137_v42 = vld [vmem:[%s2636_s1 + $0xf8] sm:$0xff] }
 0x1d0   :  { %v861_v45 = vpop.f32.mrf.mxu1 }
 0x1d1   :  { %v862_v47 = vadd.f32 %v1706_v34, %v861_v45 }
 0x1d3   :  { %v1067_v50 = vadd.f32 %v1003_v46, %v862_v47  ;;  %1407 = vmatmul.msk.f32.gmra.mxu2 %vm576_vm1, %v541_v44  ;;  %v461_v40 = vpop.f32.mrf.mxu3  ;;  %v453_v44 = vadd.f32 %v2235_v43, %v452_v8 }
 0x1d5   :  { %v1195_v52 = vadd.f32 %v1131_v48, %v1067_v50  ;;  %v548_v46 = vmax.f32 %v453_v44, 0.0  ;;  %v456_v48 = vadd.f32 %v2235_v43, %v455_v17  ;;  %v1010_v50 = vld [vmem:[%s2635_s2 + $0x100] sm:$0xff]  ;;  %v1144_v44 = vld [vmem:[%s2636_s1 + $0x130] sm:$0xff] }
 0x1d7   :  { %1259 = vst.msk [vmem:[%s2637_s7 + $0xc8] sm:$0xff] %vm98_vm0, %v1195_v52  ;;  %v549_v51 = vmax.f32 %v456_v48, 0.0 }
 0x1d8   :  { %v864_v55 = vpop.f32.mrf.mxu1 }
 0x1d9   :  { %v865_v57 = vadd.f32 %v1706_v34, %v864_v55 }
 0x1db   :  { %v1068_v60 = vadd.f32 %v1004_v56, %v865_v57  ;;  %1408 = vmatmul.msk.f32.gmra.mxu2 %vm576_vm1, %v542_v54  ;;  %v464_v47 = vpop.f32.mrf.mxu3  ;;  %v459_v56 = vadd.f32 %v2235_v43, %v458_v26 }
 0x1dd   :  { %v1196_v62 = vadd.f32 %v1132_v58, %v1068_v60  ;;  %v550_v60 = vmax.f32 %v459_v56, 0.0 }
 0x1df   :  { %1260 = vst.msk [vmem:[%s2637_s7 + $0xd0] sm:$0xff] %vm98_vm0, %v1196_v62  ;;  %v1139_v62 = vld [vmem:[%s2636_s1 + $0x108] sm:$0xff] }
 0x1e0   :  { %v867_v1 = vpop.f32.mrf.mxu1 }
 0x1e1   :  { %v868_v3 = vadd.f32 %v1706_v34, %v867_v1  ;;  %v462_v1 = vadd.f32 %v2235_v43, %v461_v40 }
 0x1e3   :  { %v1069_v5 = vadd.f32 %v1005_v2, %v868_v3  ;;  %1409 = vmatmul.msk.f32.gmra.mxu2 %vm576_vm1, %v543_v0  ;;  %v467_v57 = vpop.f32.mrf.mxu3  ;;  %v1012_v3 = vld [vmem:[%s2635_s2 + $0x110] sm:$0xff] }
 0x1e5   :  { %v1197_v7 = vadd.f32 %v1133_v4, %v1069_v5  ;;  %v551_v5 = vmax.f32 %v462_v1, 0.0 }
 0x1e7   :  { %1261 = vst.msk [vmem:[%s2637_s7 + $0xd8] sm:$0xff] %vm98_vm0, %v1197_v7  ;;  %v1140_v7 = vld [vmem:[%s2636_s1 + $0x110] sm:$0xff] }
 0x1e8   :  { %v870_v10 = vpop.f32.mrf.mxu1 }
 0x1e9   :  { %v871_v12 = vadd.f32 %v1706_v34, %v870_v10  ;;  %v465_v10 = vadd.f32 %v2235_v43, %v464_v47 }
 0x1eb   :  { %v1070_v14 = vadd.f32 %v1006_v11, %v871_v12  ;;  %1410 = vmatmul.msk.f32.gmra.mxu2 %vm576_vm1, %v544_v9  ;;  %v470_v4 = vpop.f32.mrf.mxu3  ;;  %v1013_v12 = vld [vmem:[%s2635_s2 + $0x118] sm:$0xff] }
 0x1ed   :  { %v1198_v16 = vadd.f32 %v1134_v13, %v1070_v14  ;;  %v552_v13 = vmax.f32 %v465_v10, 0.0 }
 0x1ef   :  { %1262 = vst.msk [vmem:[%s2637_s7 + $0xe0] sm:$0xff] %vm98_vm0, %v1198_v16 }
 0x1f0   :  { %v873_v19 = vpop.f32.mrf.mxu1 }
 0x1f1   :  { %v874_v21 = vadd.f32 %v1706_v34, %v873_v19  ;;  %v468_v19 = vadd.f32 %v2235_v43, %v467_v57 }
 0x1f3   :  { %v1071_v23 = vadd.f32 %v1007_v20, %v874_v21  ;;  %1411 = vmatmul.msk.f32.gmra.mxu2 %vm576_vm1, %v545_v18  ;;  %v473_v16 = vpop.f32.mrf.mxu3  ;;  %v1014_v21 = vld [vmem:[%s2635_s2 + $0x120] sm:$0xff] }
 0x1f5   :  { %v1199_v25 = vadd.f32 %v1135_v22, %v1071_v23  ;;  %v553_v22 = vmax.f32 %v468_v19, 0.0 }
 0x1f7   :  { %1263 = vst.msk [vmem:[%s2637_s7 + $0xe8] sm:$0xff] %vm98_vm0, %v1199_v25 }
 0x1f8   :  { %v876_v29 = vpop.f32.mrf.mxu1 }
 0x1f9   :  { %v877_v31 = vadd.f32 %v1706_v34, %v876_v29  ;;  %v471_v29 = vadd.f32 %v2235_v43, %v470_v4  ;;  %v2367_v4 = vld [vmem:[%s2634_s6] ss:$0 sm:$0xff] }
 0x1fb   :  { %v1072_v33 = vadd.f32 %v1008_v30, %v877_v31  ;;  %1412 = vmatmul.msk.f32.gmra.mxu2 %vm576_vm1, %v546_v27  ;;  %v476_v26 = vpop.f32.mrf.mxu3  ;;  %v1015_v31 = vld [vmem:[%s2635_s2 + $0x128] sm:$0xff] }
 0x1fc   :  { %v477_v47 = vadd.f32 %v2235_v43, %v476_v26 }
 0x1fd   :  { %v1200_v36 = vadd.f32 %v1136_v32, %v1072_v33  ;;  %v554_v32 = vmax.f32 %v471_v29, 0.0 }
 0x1ff   :  { %1264 = vst.msk [vmem:[%s2637_s7 + $0xf0] sm:$0xff] %vm98_vm0, %v1200_v36 }
 0x200   :  { %v879_v38 = vpop.f32.mrf.mxu1 }
 0x201   :  { %v880_v41 = vadd.f32 %v1706_v34, %v879_v38  ;;  %v474_v38 = vadd.f32 %v2235_v43, %v473_v16 }
 0x203   :  { %v1073_v28 = vadd.f32 %v1009_v39, %v880_v41  ;;  %1413 = vmatmul.msk.f32.gmra.mxu2 %vm576_vm1, %v547_v37  ;;  %v479_v39 = vpop.f32.mrf.mxu3  ;;  %v1016_v41 = vld [vmem:[%s2635_s2 + $0x130] sm:$0xff] }
 0x204   :  { %v480_v56 = vadd.f32 %v2235_v43, %v479_v39 }
 0x205   :  { %v1201_v45 = vadd.f32 %v1137_v42, %v1073_v28  ;;  %v555_v42 = vmax.f32 %v474_v38, 0.0 }
 0x207   :  { %1265 = vst.msk [vmem:[%s2637_s7 + $0xf8] sm:$0xff] %vm98_vm0, %v1201_v45 }
 0x20b   :  { %1414 = vmatmul.msk.f32.gmra.mxu2 %vm576_vm1, %v548_v46 }
 0x20e   :  { %v882_v49 = vpop.f32.mrf.mxu2 }
 0x20f   :  { %v883_v52 = vadd.f32 %v1706_v34, %v882_v49  ;;  %v1017_v49 = vld [vmem:[%s2635_s2 + $0x138] sm:$0xff] }
 0x211   :  { %v1074_v54 = vadd.f32 %v1010_v50, %v883_v52  ;;  %v482_v50 = vpop.f32.mrf.mxu3 }
 0x212   :  { %v483_v1 = vadd.f32 %v2235_v43, %v482_v50 }
 0x213   :  { %v1202_v55 = vadd.f32 %v1138_v53, %v1074_v54  ;;  %1415 = vmatmul.msk.f32.gmra.mxu2 %vm576_vm1, %v549_v51  ;;  %v556_v51 = vmax.f32 %v477_v47, 0.0  ;;  %v1145_v53 = vld [vmem:[%s2636_s1 + $0x138] sm:$0xff] }
 0x215   :  { %1266 = vst.msk [vmem:[%s2637_s7 + $0x100] sm:$0xff] %vm98_vm0, %v1202_v55 }
 0x216   :  { %v885_v58 = vpop.f32.mrf.mxu2 }
 0x217   :  { %v886_v61 = vadd.f32 %v1706_v34, %v885_v58  ;;  %v1018_v58 = vld [vmem:[%s2635_s2 + $0x140] sm:$0xff] }
 0x219   :  { %v1075_v63 = vadd.f32 %v1011_v59, %v886_v61  ;;  %v557_v59 = vmax.f32 %v480_v56, 0.0  ;;  %v1146_v61 = vld [vmem:[%s2636_s1 + $0x140] sm:$0xff] }
 0x21b   :  { %v1203_v0 = vadd.f32 %v1139_v62, %v1075_v63  ;;  %1416 = vmatmul.msk.f32.gmra.mxu2 %vm576_vm1, %v550_v60  ;;  %v485_v62 = vpop.f32.mrf.mxu3 }
 0x21c   :  { %v486_v10 = vadd.f32 %v2235_v43, %v485_v62 }
 0x21d   :  { %1267 = vst.msk [vmem:[%s2637_s7 + $0x108] sm:$0xff] %vm98_vm0, %v1203_v0 }
 0x21e   :  { %v888_v2 = vpop.f32.mrf.mxu2 }
 0x21f   :  { %v889_v6 = vadd.f32 %v1706_v34, %v888_v2 }
 0x221   :  { %v1076_v8 = vadd.f32 %v1012_v3, %v889_v6  ;;  %v558_v3 = vmax.f32 %v483_v1, 0.0  ;;  %v1147_v6 = vld [vmem:[%s2636_s1 + $0x148] sm:$0xff] }
 0x223   :  { %v1204_v9 = vadd.f32 %v1140_v7, %v1076_v8  ;;  %1417 = vmatmul.msk.f32.gmra.mxu2 %vm576_vm1, %v551_v5  ;;  %v488_v8 = vpop.f32.mrf.mxu3 }
 0x225   :  { %1268 = vst.msk [vmem:[%s2637_s7 + $0x110] sm:$0xff] %vm98_vm0, %v1204_v9 }
 0x226   :  { %v891_v11 = vpop.f32.mrf.mxu2 }
 0x227   :  { %v892_v14 = vadd.f32 %v1706_v34, %v891_v11 }
 0x229   :  { %v1077_v17 = vadd.f32 %v1013_v12, %v892_v14  ;;  %v1020_v12 = vld [vmem:[%s2635_s2 + $0x150] sm:$0xff] }
 0x22b   :  { %v1205_v18 = vadd.f32 %v1141_v15, %v1077_v17  ;;  %1418 = vmatmul.msk.f32.gmra.mxu2 %vm576_vm1, %v552_v13  ;;  %v559_v13 = vmax.f32 %v486_v10, 0.0  ;;  %v1148_v15 = vld [vmem:[%s2636_s1 + $0x150] sm:$0xff]  ;;  %v491_v19 = vpop.f32.mrf.mxu3 }
 0x22d   :  { %1269 = vst.msk [vmem:[%s2637_s7 + $0x118] sm:$0xff] %vm98_vm0, %v1205_v18  ;;  %v489_v18 = vadd.f32 %v2235_v43, %v488_v8 }
 0x22e   :  { %v894_v20 = vpop.f32.mrf.mxu2 }
 0x22f   :  { %v895_v23 = vadd.f32 %v1706_v34, %v894_v20 }
 0x231   :  { %v1078_v25 = vadd.f32 %v1014_v21, %v895_v23  ;;  %v1021_v21 = vld [vmem:[%s2635_s2 + $0x158] sm:$0xff] }
 0x233   :  { %v1206_v27 = vadd.f32 %v1142_v24, %v1078_v25  ;;  %1419 = vmatmul.msk.f32.gmra.mxu2 %vm576_vm1, %v553_v22  ;;  %v560_v22 = vmax.f32 %v489_v18, 0.0  ;;  %v1149_v24 = vld [vmem:[%s2636_s1 + $0x158] sm:$0xff] }
 0x235   :  { %1270 = vst.msk [vmem:[%s2637_s7 + $0x120] sm:$0xff] %vm98_vm0, %v1206_v27  ;;  %v492_v27 = vadd.f32 %v2235_v43, %v491_v19 }
 0x236   :  { %v897_v30 = vpop.f32.mrf.mxu2 }
 0x237   :  { %v898_v33 = vadd.f32 %v1706_v34, %v897_v30  ;;  %v1022_v30 = vld [vmem:[%s2635_s2 + $0x160] sm:$0xff] }
 0x239   :  { %v1079_v36 = vadd.f32 %v1015_v31, %v898_v33  ;;  %v494_v31 = vpop.f32.mrf.mxu3 }
 0x23a   :  { %v495_v38 = vadd.f32 %v2235_v43, %v494_v31 }
 0x23b   :  { %v1207_v37 = vadd.f32 %v1143_v35, %v1079_v36  ;;  %1420 = vmatmul.msk.f32.gmra.mxu2 %vm576_vm1, %v554_v32  ;;  %v561_v32 = vmax.f32 %v492_v27, 0.0  ;;  %v1150_v35 = vld [vmem:[%s2636_s1 + $0x160] sm:$0xff]  ;;  %v1031_v27 = vld [vmem:[%s2635_s2 + $0x1a8] sm:$0xff] }
 0x23d   :  { %1271 = vst.msk [vmem:[%s2637_s7 + $0x128] sm:$0xff] %vm98_vm0, %v1207_v37 }
 0x23e   :  { %v900_v40 = vpop.f32.mrf.mxu2 }
 0x23f   :  { %v901_v28 = vadd.f32 %v1706_v34, %v900_v40  ;;  %v1023_v40 = vld [vmem:[%s2635_s2 + $0x168] sm:$0xff] }
 0x241   :  { %v1080_v45 = vadd.f32 %v1016_v41, %v901_v28  ;;  %v562_v41 = vmax.f32 %v495_v38, 0.0  ;;  %v1151_v28 = vld [vmem:[%s2636_s1 + $0x168] sm:$0xff] }
 0x243   :  { %v1208_v46 = vadd.f32 %v1144_v44, %v1080_v45  ;;  %1421 = vmatmul.msk.f32.gmra.mxu2 %vm576_vm1, %v555_v42  ;;  %v497_v44 = vpop.f32.mrf.mxu3 }
 0x244   :  { %v498_v47 = vadd.f32 %v2235_v43, %v497_v44 }
 0x245   :  { %1272 = vst.msk [vmem:[%s2637_s7 + $0x130] sm:$0xff] %vm98_vm0, %v1208_v46 }
 0x246   :  { %v903_v48 = vpop.f32.mrf.mxu2  ;;  %v563_v50 = vmax.f32 %v498_v47, 0.0  ;;  %v1034_v47 = vld [vmem:[%s2635_s2 + $0x1c0] sm:$0xff] }
 0x247   :  { %v904_v52 = vadd.f32 %v1706_v34, %v903_v48 }
 0x249   :  { %v1081_v54 = vadd.f32 %v1017_v49, %v904_v52  ;;  %v1024_v49 = vld [vmem:[%s2635_s2 + $0x170] sm:$0xff] }
 0x24a   :  { %v1152_v52 = vld [vmem:[%s2636_s1 + $0x170] sm:$0xff] }
 0x24b   :  { %v1209_v55 = vadd.f32 %v1145_v53, %v1081_v54  ;;  %1422 = vmatmul.msk.f32.gmra.mxu2 %vm576_vm1, %v556_v51 }
 0x24d   :  { %1273 = vst.msk [vmem:[%s2637_s7 + $0x138] sm:$0xff] %vm98_vm0, %v1209_v55  ;;  %v1025_v55 = vld [vmem:[%s2635_s2 + $0x178] sm:$0xff] }
 0x24e   :  { %v906_v57 = vpop.f32.mrf.mxu2 }
 0x24f   :  { %v907_v60 = vadd.f32 %v1706_v34, %v906_v57  ;;  %v1019_v34 = vld [vmem:[%s2635_s2 + $0x148] sm:$0xff]  ;;  %v1153_v57 = vld [vmem:[%s2636_s1 + $0x178] sm:$0xff] }
 0x251   :  { %v1082_v63 = vadd.f32 %v1018_v58, %v907_v60 }
 0x253   :  { %v1210_v0 = vadd.f32 %v1146_v61, %v1082_v63  ;;  %1423 = vmatmul.msk.f32.gmra.mxu2 %vm576_vm1, %v557_v59  ;;  %v1026_v61 = vld [vmem:[%s2635_s2 + $0x180] sm:$0xff] }
 0x254   :  { %v1154_v63 = vld [vmem:[%s2636_s1 + $0x180] sm:$0xff] }
 0x255   :  { %1274 = vst.msk [vmem:[%s2637_s7 + $0x140] sm:$0xff] %vm98_vm0, %v1210_v0 }
 0x256   :  { %v909_v2 = vpop.f32.mrf.mxu2 }
 0x257   :  { %v910_v5 = vadd.f32 %v2367_v4, %v909_v2 }
 0x259   :  { %v1083_v7 = vadd.f32 %v1019_v34, %v910_v5  ;;  %v1027_v34 = vld [vmem:[%s2635_s2 + $0x188] sm:$0xff] }
 0x25a   :  { %v1155_v5 = vld [vmem:[%s2636_s1 + $0x188] sm:$0xff] }
 0x25b   :  { %v1211_v9 = vadd.f32 %v1147_v6, %v1083_v7  ;;  %1424 = vmatmul.msk.f32.gmra.mxu2 %vm576_vm1, %v558_v3 }
 0x25d   :  { %1275 = vst.msk [vmem:[%s2637_s7 + $0x148] sm:$0xff] %vm98_vm0, %v1211_v9  ;;  %v1028_v9 = vld [vmem:[%s2635_s2 + $0x190] sm:$0xff] }
 0x25e   :  { %v912_v11 = vpop.f32.mrf.mxu2 }
 0x25f   :  { %v913_v14 = vadd.f32 %v2367_v4, %v912_v11  ;;  %v1156_v11 = vld [vmem:[%s2636_s1 + $0x190] sm:$0xff] }
 0x261   :  { %v1084_v16 = vadd.f32 %v1020_v12, %v913_v14 }
 0x263   :  { %v1212_v17 = vadd.f32 %v1148_v15, %v1084_v16  ;;  %1425 = vmatmul.msk.f32.gmra.mxu2 %vm576_vm1, %v559_v13  ;;  %v1029_v15 = vld [vmem:[%s2635_s2 + $0x198] sm:$0xff] }
 0x265   :  { %1276 = vst.msk [vmem:[%s2637_s7 + $0x150] sm:$0xff] %vm98_vm0, %v1212_v17  ;;  %v1157_v17 = vld [vmem:[%s2636_s1 + $0x198] sm:$0xff] }
 0x266   :  { %v915_v20 = vpop.f32.mrf.mxu2 }
 0x267   :  { %v916_v23 = vadd.f32 %v2367_v4, %v915_v20 }
 0x269   :  { %v1085_v25 = vadd.f32 %v1021_v21, %v916_v23  ;;  %v1030_v21 = vld [vmem:[%s2635_s2 + $0x1a0] sm:$0xff] }
 0x26a   :  { %v1158_v23 = vld [vmem:[%s2636_s1 + $0x1a0] sm:$0xff] }
 0x26b   :  { %v1213_v26 = vadd.f32 %v1149_v24, %v1085_v25  ;;  %1426 = vmatmul.msk.f32.gmra.mxu2 %vm576_vm1, %v560_v22 }
 0x26d   :  { %1277 = vst.msk [vmem:[%s2637_s7 + $0x158] sm:$0xff] %vm98_vm0, %v1213_v26 }
 0x26e   :  { %v918_v29 = vpop.f32.mrf.mxu2 }
 0x26f   :  { %v919_v33 = vadd.f32 %v2367_v4, %v918_v29 }
 0x271   :  { %v1086_v36 = vadd.f32 %v1022_v30, %v919_v33  ;;  %v1159_v30 = vld [vmem:[%s2636_s1 + $0x1a8] sm:$0xff] }
 0x273   :  { %v1214_v37 = vadd.f32 %v1150_v35, %v1086_v36  ;;  %1427 = vmatmul.msk.f32.gmra.mxu2 %vm576_vm1, %v561_v32  ;;  %v1032_v35 = vld [vmem:[%s2635_s2 + $0x1b0] sm:$0xff] }
 0x275   :  { %1278 = vst.msk [vmem:[%s2637_s7 + $0x160] sm:$0xff] %vm98_vm0, %v1214_v37  ;;  %v1160_v37 = vld [vmem:[%s2636_s1 + $0x1b0] sm:$0xff] }
 0x276   :  { %v921_v39 = vpop.f32.mrf.mxu2 }
 0x277   :  { %v922_v42 = vadd.f32 %v2367_v4, %v921_v39 }
 0x279   :  { %v1087_v45 = vadd.f32 %v1023_v40, %v922_v42 }
 0x27b   :  { %v1215_v46 = vadd.f32 %v1151_v28, %v1087_v45  ;;  %1428 = vmatmul.msk.f32.gmra.mxu2 %vm576_vm1, %v562_v41  ;;  %v1033_v41 = vld [vmem:[%s2635_s2 + $0x1b8] sm:$0xff] }
 0x27c   :  { %v1161_v28 = vld [vmem:[%s2636_s1 + $0x1b8] sm:$0xff] }
 0x27d   :  { %1279 = vst.msk [vmem:[%s2637_s7 + $0x168] sm:$0xff] %vm98_vm0, %v1215_v46 }
 0x27e   :  { %v924_v48 = vpop.f32.mrf.mxu2 }
 0x27f   :  { %v925_v51 = vadd.f32 %v2367_v4, %v924_v48 }
 0x281   :  { %v1088_v53 = vadd.f32 %v1024_v49, %v925_v51  ;;  %v1162_v49 = vld [vmem:[%s2636_s1 + $0x1c0] sm:$0xff] }
 0x283   :  { %v1216_v54 = vadd.f32 %v1152_v52, %v1088_v53  ;;  %1429 = vmatmul.msk.f32.gmra.mxu2 %vm576_vm1, %v563_v50  ;;  %v1035_v53 = vld [vmem:[%s2635_s2 + $0x1c8] sm:$0xff] }
 0x285   :  { %1280 = vst.msk [vmem:[%s2637_s7 + $0x170] sm:$0xff] %vm98_vm0, %v1216_v54 }
 0x286   :  { %v927_v43 = vpop.f32.mrf.mxu2 }
 0x287   :  { %v928_v56 = vadd.f32 %v2367_v4, %v927_v43  ;;  %v1163_v43 = vld [vmem:[%s2636_s1 + $0x1c8] sm:$0xff] }
 0x289   :  { %v1089_v58 = vadd.f32 %v1025_v55, %v928_v56 }
 0x28b   :  { %v1217_v59 = vadd.f32 %v1153_v57, %v1089_v58  ;;  %v1036_v58 = vld [vmem:[%s2635_s2 + $0x1d0] sm:$0xff] }
 0x28d   :  { %1281 = vst.msk [vmem:[%s2637_s7 + $0x178] sm:$0xff] %vm98_vm0, %v1217_v59 }
 0x28e   :  { %v930_v60 = vpop.f32.mrf.mxu2 }
 0x28f   :  { %v931_v62 = vadd.f32 %v2367_v4, %v930_v60  ;;  %v1164_v60 = vld [vmem:[%s2636_s1 + $0x1d0] sm:$0xff] }
 0x291   :  { %v1090_v0 = vadd.f32 %v1026_v61, %v931_v62 }
 0x293   :  { %v1218_v1 = vadd.f32 %v1154_v63, %v1090_v0  ;;  %v1037_v0 = vld [vmem:[%s2635_s2 + $0x1d8] sm:$0xff] }
 0x295   :  { %1282 = vst.msk [vmem:[%s2637_s7 + $0x180] sm:$0xff] %vm98_vm0, %v1218_v1 }
 0x296   :  { %v933_v2 = vpop.f32.mrf.mxu2 }
 0x297   :  { %v934_v3 = vadd.f32 %v2367_v4, %v933_v2  ;;  %v1165_v2 = vld [vmem:[%s2636_s1 + $0x1d8] sm:$0xff] }
 0x299   :  { %v1091_v6 = vadd.f32 %v1027_v34, %v934_v3 }
 0x29b   :  { %v1219_v7 = vadd.f32 %v1155_v5, %v1091_v6  ;;  %v1038_v6 = vld [vmem:[%s2635_s2 + $0x1e0] sm:$0xff] }
 0x29d   :  { %1283 = vst.msk [vmem:[%s2637_s7 + $0x188] sm:$0xff] %vm98_vm0, %v1219_v7 }
 0x29e   :  { %v936_v8 = vpop.f32.mrf.mxu2 }
 0x29f   :  { %v937_v10 = vadd.f32 %v2367_v4, %v936_v8  ;;  %v1166_v8 = vld [vmem:[%s2636_s1 + $0x1e0] sm:$0xff] }
 0x2a1   :  { %v1092_v12 = vadd.f32 %v1028_v9, %v937_v10 }
 0x2a3   :  { %v1220_v13 = vadd.f32 %v1156_v11, %v1092_v12  ;;  %v1039_v12 = vld [vmem:[%s2635_s2 + $0x1e8] sm:$0xff] }
 0x2a5   :  { %1284 = vst.msk [vmem:[%s2637_s7 + $0x190] sm:$0xff] %vm98_vm0, %v1220_v13 }
 0x2a6   :  { %v939_v14 = vpop.f32.mrf.mxu2 }
 0x2a7   :  { %v940_v16 = vadd.f32 %v2367_v4, %v939_v14  ;;  %v1167_v14 = vld [vmem:[%s2636_s1 + $0x1e8] sm:$0xff] }
 0x2a9   :  { %v1093_v18 = vadd.f32 %v1029_v15, %v940_v16 }
 0x2ab   :  { %v1221_v19 = vadd.f32 %v1157_v17, %v1093_v18  ;;  %v1040_v18 = vld [vmem:[%s2635_s2 + $0x1f0] sm:$0xff] }
 0x2ad   :  { %1285 = vst.msk [vmem:[%s2637_s7 + $0x198] sm:$0xff] %vm98_vm0, %v1221_v19 }
 0x2ae   :  { %v942_v20 = vpop.f32.mrf.mxu2 }
 0x2af   :  { %v943_v22 = vadd.f32 %v2367_v4, %v942_v20  ;;  %v1168_v20 = vld [vmem:[%s2636_s1 + $0x1f0] sm:$0xff] }
 0x2b1   :  { %v1094_v24 = vadd.f32 %v1030_v21, %v943_v22 }
 0x2b3   :  { %v1222_v25 = vadd.f32 %v1158_v23, %v1094_v24  ;;  %v1041_v24 = vld [vmem:[%s2635_s2 + $0x1f8] sm:$0xff] }
 0x2b5   :  { %1286 = vst.msk [vmem:[%s2637_s7 + $0x1a0] sm:$0xff] %vm98_vm0, %v1222_v25 }
 0x2b6   :  { %v945_v26 = vpop.f32.mrf.mxu2 }
 0x2b7   :  { %v946_v29 = vadd.f32 %v2367_v4, %v945_v26  ;;  %v1169_v26 = vld [vmem:[%s2636_s1 + $0x1f8] sm:$0xff] }
 0x2b9   :  { %v1095_v31 = vadd.f32 %v1031_v27, %v946_v29 }
 0x2bb   :  { %v1223_v32 = vadd.f32 %v1159_v30, %v1095_v31 }
 0x2bd   :  { %1287 = vst.msk [vmem:[%s2637_s7 + $0x1a8] sm:$0xff] %vm98_vm0, %v1223_v32 }
 0x2be   :  { %v948_v33 = vpop.f32.mrf.mxu2 }
 0x2bf   :  { %v949_v36 = vadd.f32 %v2367_v4, %v948_v33 }
 0x2c1   :  { %v1096_v38 = vadd.f32 %v1032_v35, %v949_v36 }
 0x2c3   :  { %v1224_v39 = vadd.f32 %v1160_v37, %v1096_v38 }
 0x2c5   :  { %1288 = vst.msk [vmem:[%s2637_s7 + $0x1b0] sm:$0xff] %vm98_vm0, %v1224_v39 }
 0x2c6   :  { %v951_v40 = vpop.f32.mrf.mxu2 }
 0x2c7   :  { %v952_v42 = vadd.f32 %v2367_v4, %v951_v40 }
 0x2c9   :  { %v1097_v44 = vadd.f32 %v1033_v41, %v952_v42 }
 0x2cb   :  { %v1225_v45 = vadd.f32 %v1161_v28, %v1097_v44 }
 0x2cd   :  { %1289 = vst.msk [vmem:[%s2637_s7 + $0x1b8] sm:$0xff] %vm98_vm0, %v1225_v45 }
 0x2ce   :  { %v954_v46 = vpop.f32.mrf.mxu2 }
 0x2cf   :  { %v955_v48 = vadd.f32 %v2367_v4, %v954_v46 }
 0x2d1   :  { %v1098_v50 = vadd.f32 %v1034_v47, %v955_v48 }
 0x2d3   :  { %v1226_v51 = vadd.f32 %v1162_v49, %v1098_v50 }
 0x2d5   :  { %1290 = vst.msk [vmem:[%s2637_s7 + $0x1c0] sm:$0xff] %vm98_vm0, %v1226_v51 }
 0x2d6   :  { %v957_v52 = vpop.f32.mrf.mxu2 }
 0x2d7   :  { %v958_v54 = vadd.f32 %v2367_v4, %v957_v52 }
 0x2d9   :  { %v1099_v55 = vadd.f32 %v1035_v53, %v958_v54 }
 0x2db   :  { %v1227_v56 = vadd.f32 %v1163_v43, %v1099_v55 }
 0x2dd   :  { %1291 = vst.msk [vmem:[%s2637_s7 + $0x1c8] sm:$0xff] %vm98_vm0, %v1227_v56 }
 0x2de   :  { %v960_v57 = vpop.f32.mrf.mxu2 }
 0x2df   :  { %v961_v59 = vadd.f32 %v2367_v4, %v960_v57 }
 0x2e1   :  { %v1100_v61 = vadd.f32 %v1036_v58, %v961_v59 }
 0x2e3   :  { %v1228_v62 = vadd.f32 %v1164_v60, %v1100_v61 }
 0x2e5   :  { %1292 = vst.msk [vmem:[%s2637_s7 + $0x1d0] sm:$0xff] %vm98_vm0, %v1228_v62 }
 0x2e6   :  { %v963_v63 = vpop.f32.mrf.mxu2 }
 0x2e7   :  { %v964_v1 = vadd.f32 %v2367_v4, %v963_v63 }
 0x2e9   :  { %v1101_v34 = vadd.f32 %v1037_v0, %v964_v1 }
 0x2eb   :  { %v1229_v3 = vadd.f32 %v1165_v2, %v1101_v34 }
 0x2ed   :  { %1293 = vst.msk [vmem:[%s2637_s7 + $0x1d8] sm:$0xff] %vm98_vm0, %v1229_v3 }
 0x2ee   :  { %v966_v5 = vpop.f32.mrf.mxu2 }
 0x2ef   :  { %v967_v7 = vadd.f32 %v2367_v4, %v966_v5 }
 0x2f1   :  { %v1102_v9 = vadd.f32 %v1038_v6, %v967_v7 }
 0x2f3   :  { %v1230_v10 = vadd.f32 %v1166_v8, %v1102_v9 }
 0x2f5   :  { %1294 = vst.msk [vmem:[%s2637_s7 + $0x1e0] sm:$0xff] %vm98_vm0, %v1230_v10 }
 0x2f6   :  { %v969_v11 = vpop.f32.mrf.mxu2 }
 0x2f7   :  { %v970_v13 = vadd.f32 %v2367_v4, %v969_v11 }
 0x2f9   :  { %v1103_v15 = vadd.f32 %v1039_v12, %v970_v13 }
 0x2fb   :  { %v1231_v16 = vadd.f32 %v1167_v14, %v1103_v15 }
 0x2fd   :  { %1295 = vst.msk [vmem:[%s2637_s7 + $0x1e8] sm:$0xff] %vm98_vm0, %v1231_v16 }
 0x2fe   :  { %v972_v17 = vpop.f32.mrf.mxu2 }
 0x2ff   :  { %v973_v19 = vadd.f32 %v2367_v4, %v972_v17 }
 0x301   :  { %v1104_v21 = vadd.f32 %v1040_v18, %v973_v19 }
 0x303   :  { %v1232_v22 = vadd.f32 %v1168_v20, %v1104_v21 }
 0x305   :  { %1296 = vst.msk [vmem:[%s2637_s7 + $0x1f0] sm:$0xff] %vm98_vm0, %v1232_v22 }
 0x306   :  { %v975_v23 = vpop.f32.mrf.mxu2 }
 0x307   :  { %v976_v25 = vadd.f32 %v2367_v4, %v975_v23 }
 0x309   :  { %v1105_v27 = vadd.f32 %v1041_v24, %v976_v25 }
 0x30b   :  { %v1233_v29 = vadd.f32 %v1169_v26, %v1105_v27 }
 0x30d   :  { %1297 = vst.msk [vmem:[%s2637_s7 + $0x1f8] sm:$0xff] %vm98_vm0, %v1233_v29 }

// kernel: fno_forward.26
= control target key start
LH: loop header
LB: loop body
LE: loop exit
PB: predicated region body
PF: predicated region fallthrough
CT: control target
= control target key end

     0   :  { %vm36_vm0 = vcmask 1041408   ;;  %vm32_vm1 = vcmask 15360   ;;  %vm60_vm2 = vcmask 195584   ;;  %vm97_vm3 = vcmask 261120   ;;  %s348_s3 = inlined_call_operand.vmem [shape: f32[2,32], index: 3, kind: input, shape index: {}]   ;;  %s349_s1 = inlined_call_operand.vmem [shape: f32[2,24,32], index: 1, kind: input, shape index: {}]   ;;  %s350_s2 = inlined_call_operand.vmem [shape: f32[2,8,2], index: 2, kind: input, shape index: {}]   ;;  %s351_s0 = inlined_call_operand.vmem [shape: f32[2,8,24], index: 0, kind: input, shape index: {}]   ;;  %s352_s4 = inlined_call_operand.vmem [shape: f32[1,32], index: 4, kind: input, shape index: {}]   ;;  %s353_s6 = inlined_call_operand.vmem [shape: f32[1,128], index: 6, kind: input, shape index: {}]   ;;  %s354_s5 = inlined_call_operand.vmem [shape: f32[32,128], index: 5, kind: input, shape index: {}]   ;;  %s355_s7 = inlined_call_operand.vmem [shape: f32[2,8,128], index: 7, kind: output, shape index: {}]  }
   0x1   :  { %v31_v0 = vld [vmem:[%s348_s3] sm:$0x3]  ;;  %v29_v1 = vld [vmem:[%s349_s1 + $0x10] sm:$0xff]  ;;  %v229_v3 = vld [vmem:[%s349_s1 + $0x28] sm:$0xff] }
   0x2   :  { %v30_v2 = vld [vmem:[%s350_s2] sm:$0xff]  ;;  %222 = vmatpush.msk.msra.mxu0 %vm36_vm0, %v31_v0  ;;  %77 = vmatpush.msra.mxu1 %v29_v1  ;;  %v28_v4 = vld [vmem:[%s349_s1 + $0x8] sm:$0xff]  ;;  %v227_v10 = vld [vmem:[%s349_s1 + $0x18] sm:$0xff] }
   0x3   :  { %v130_v5 = vld [vmem:[%s348_s3] sm:$0x3]  ;;  %223 = vmatmul.msk.f32.vlgmr.msra.gmra.mxu0 %vm32_vm1, %v30_v2  ;;  %v230_v6 = vld [vmem:[%s350_s2 + $0x8] sm:$0xff]  ;;  %v92_v12 = vld [vmem:[%s354_s5 + $0x18] sm:$0xff] }
   0x4   :  { %231 = vmatpush.msk.msra.mxu3 %vm36_vm0, %v130_v5  ;;  %v27_v7 = vld [vmem:[%s349_s1] sm:$0xff]  ;;  %173 = vmatpush.msrb.mxu0 %v229_v3  ;;  %v226_v11 = vld [vmem:[%s351_s0 + $0x8] sm:$0xff]  ;;  %v91_v13 = vld [vmem:[%s354_s5 + $0x10] sm:$0xff] }
   0x5   :  { %v228_v8 = vld [vmem:[%s349_s1 + $0x20] sm:$0xff]  ;;  %78 = vmatpush.msra.mxu1 %v28_v4  ;;  %232 = vmatmul.msk.f32.vlgmr.msra.gmra.mxu3 %vm32_vm1, %v230_v6  ;;  %v90_v14 = vld [vmem:[%s354_s5 + $0x8] sm:$0xff] }
   0x6   :  { %v26_v9 = vld [vmem:[%s351_s0] sm:$0xff]  ;;  %174 = vmatpush.msrb.mxu0 %v228_v8  ;;  %113 = vmatpush.msra.mxu2 %v92_v12 }
   0x7   :  { %79 = vmatpush.msra.mxu1 %v27_v7  ;;  %208 = vmatpush.msrb.mxu3 %v92_v12  ;;  %v89_v15 = vld [vmem:[%s354_s5] sm:$0xff] }
   0x8   :  { %224 = vmatmul.msk.f32.vlgmr.msra.gmra.mxu1 %vm60_vm2, %v26_v9  ;;  %175 = vmatpush.msrb.mxu0 %v227_v10  ;;  %v236_v17 = vld [vmem:[%s352_s4] ss:$0 sm:$0xff] }
   0x9   :  { %114 = vmatpush.msra.mxu2 %v91_v13  ;;  %209 = vmatpush.msrb.mxu3 %v91_v13  ;;  %v237_v21 = vld [vmem:[%s352_s4] ss:$0 sm:$0xff] }
   0xa   :  { %v238_v26 = vld [vmem:[%s353_s6] ss:$0 sm:$0xff] }
   0xb   :  { %233 = vmatmul.msk.f32.vlgmr.msrb.gmra.mxu0 %vm60_vm2, %v226_v11  ;;  %115 = vmatpush.msra.mxu2 %v90_v14  ;;  %v239_v29 = vld [vmem:[%s353_s6] ss:$0 sm:$0xff] }
   0xc   :  { %210 = vmatpush.msrb.mxu3 %v90_v14 }
   0xd   :  { %116 = vmatpush.msra.mxu2 %v89_v15 }
   0xe   :  { %211 = vmatpush.msrb.mxu3 %v89_v15 }
  0x80   :  { %v57_v16 = vpop.f32.mrf.mxu0 }
  0x85   :  { %v81_v18 = vpop.f32.mrf.mxu1 }
  0x86   :  { %v82_v19 = vadd.f32 %v81_v18, %v57_v16 }
  0x88   :  { %v88_v20 = vadd.f32 %v236_v17, %v82_v19  ;;  %v154_v22 = vpop.f32.mrf.mxu3  ;;  %v177_v23 = vpop.f32.mrf.mxu0 }
  0x89   :  { %v178_v24 = vadd.f32 %v177_v23, %v154_v22 }
  0x8a   :  { %225 = vmatmul.msk.f32.vlgmr.msra.gmra.mxu2 %vm97_vm3, %v88_v20 }
  0x8b   :  { %v184_v25 = vadd.f32 %v237_v21, %v178_v24 }
  0x8d   :  { %234 = vmatmul.msk.f32.vlgmr.msrb.gmra.mxu3 %vm97_vm3, %v184_v25 }
 0x10d   :  { %v118_v27 = vpop.f32.mrf.mxu2 }
 0x10e   :  { %v119_v28 = vadd.f32 %v238_v26, %v118_v27 }
 0x110   :  { %121 = vst [vmem:[%s355_s7] sm:$0xff] %v119_v28  ;;  %v213_v30 = vpop.f32.mrf.mxu3 }
 0x111   :  { %v214_v31 = vadd.f32 %v239_v29, %v213_v30 }
 0x113   :  { %235 = vst [vmem:[%s355_s7 + $0x8] sm:$0xff] %v214_v31 }

// kernel: fno_forward.25
= control target key start
LH: loop header
LB: loop body
LE: loop exit
PB: predicated region body
PF: predicated region fallthrough
CT: control target
= control target key end

     0   :  { %vm467_vm0 = vcmask 1041408   ;;  %vm469_vm1 = vcmask 1043456   ;;  %s2171_s1 = inlined_call_operand.vmem [shape: f32[512,384], index: 1, kind: input, shape index: {}]   ;;  %s2172_s0 = inlined_call_operand.vmem [shape: f32[2,512], index: 0, kind: input, shape index: {}]   ;;  %s2173_s2 = inlined_call_operand.vmem [shape: f32[2,512], index: 2, kind: input, shape index: {}]   ;;  %s2174_s3 = inlined_call_operand.vmem [shape: f32[512,384], index: 3, kind: input, shape index: {}]   ;;  %s2175_s4 = inlined_call_operand.vmem [shape: f32[2,384], index: 4, kind: output, shape index: {0}]   ;;  %s2176_s5 = inlined_call_operand.vmem [shape: f32[2,384], index: 5, kind: output, shape index: {1}]  }
   0x1   :  { %v161_v0 = vld [vmem:[%s2171_s1 + $0x468] sm:$0xff]  ;;  %v158_v1 = vld [vmem:[%s2171_s1 + $0x450] sm:$0xff]  ;;  %v155_v5 = vld [vmem:[%s2171_s1 + $0x438] sm:$0xff] }
   0x2   :  { %v209_v2 = vld [vmem:[%s2171_s1 + $0x5e8] sm:$0xff]  ;;  %262 = vmatpush.msra.mxu2 %v161_v0  ;;  %v206_v6 = vld [vmem:[%s2171_s1 + $0x5d0] sm:$0xff]  ;;  %v203_v9 = vld [vmem:[%s2171_s1 + $0x5b8] sm:$0xff] }
   0x3   :  { %282 = vmatpush.msra.mxu3 %v209_v2  ;;  %v65_v3 = vld [vmem:[%s2171_s1 + $0x168] sm:$0xff]  ;;  %v62_v7 = vld [vmem:[%s2171_s1 + $0x150] sm:$0xff]  ;;  %v59_v10 = vld [vmem:[%s2171_s1 + $0x138] sm:$0xff] }
   0x4   :  { %v113_v4 = vld [vmem:[%s2171_s1 + $0x2e8] sm:$0xff]  ;;  %222 = vmatpush.msra.mxu0 %v65_v3  ;;  %v110_v8 = vld [vmem:[%s2171_s1 + $0x2d0] sm:$0xff]  ;;  %263 = vmatpush.msra.mxu2 %v158_v1  ;;  %v152_v11 = vld [vmem:[%s2171_s1 + $0x420] sm:$0xff] }
   0x5   :  { %242 = vmatpush.msra.mxu1 %v113_v4  ;;  %283 = vmatpush.msra.mxu3 %v206_v6  ;;  %v107_v12 = vld [vmem:[%s2171_s1 + $0x2b8] sm:$0xff]  ;;  %v200_v13 = vld [vmem:[%s2171_s1 + $0x5a0] sm:$0xff]  ;;  %v149_v16 = vld [vmem:[%s2171_s1 + $0x408] sm:$0xff] }
   0x6   :  { %223 = vmatpush.msra.mxu0 %v62_v7  ;;  %264 = vmatpush.msra.mxu2 %v155_v5  ;;  %v56_v14 = vld [vmem:[%s2171_s1 + $0x120] sm:$0xff]  ;;  %v197_v17 = vld [vmem:[%s2171_s1 + $0x588] sm:$0xff]  ;;  %v146_v20 = vld [vmem:[%s2171_s1 + $0x3f0] sm:$0xff] }
   0x7   :  { %243 = vmatpush.msra.mxu1 %v110_v8  ;;  %284 = vmatpush.msra.mxu3 %v203_v9  ;;  %v104_v15 = vld [vmem:[%s2171_s1 + $0x2a0] sm:$0xff]  ;;  %v53_v18 = vld [vmem:[%s2171_s1 + $0x108] sm:$0xff]  ;;  %v194_v21 = vld [vmem:[%s2171_s1 + $0x570] sm:$0xff] }
   0x8   :  { %224 = vmatpush.msra.mxu0 %v59_v10  ;;  %265 = vmatpush.msra.mxu2 %v152_v11  ;;  %v101_v19 = vld [vmem:[%s2171_s1 + $0x288] sm:$0xff]  ;;  %v50_v22 = vld [vmem:[%s2171_s1 + $0xf0] sm:$0xff]  ;;  %v143_v24 = vld [vmem:[%s2171_s1 + $0x3d8] sm:$0xff] }
   0x9   :  { %244 = vmatpush.msra.mxu1 %v107_v12  ;;  %285 = vmatpush.msra.mxu3 %v200_v13  ;;  %v98_v23 = vld [vmem:[%s2171_s1 + $0x270] sm:$0xff]  ;;  %v191_v25 = vld [vmem:[%s2171_s1 + $0x558] sm:$0xff]  ;;  %v140_v28 = vld [vmem:[%s2171_s1 + $0x3c0] sm:$0xff] }
   0xa   :  { %225 = vmatpush.msra.mxu0 %v56_v14  ;;  %266 = vmatpush.msra.mxu2 %v149_v16  ;;  %v47_v26 = vld [vmem:[%s2171_s1 + $0xd8] sm:$0xff]  ;;  %v188_v29 = vld [vmem:[%s2171_s1 + $0x540] sm:$0xff]  ;;  %v137_v32 = vld [vmem:[%s2171_s1 + $0x3a8] sm:$0xff] }
   0xb   :  { %245 = vmatpush.msra.mxu1 %v104_v15  ;;  %286 = vmatpush.msra.mxu3 %v197_v17  ;;  %v95_v27 = vld [vmem:[%s2171_s1 + $0x258] sm:$0xff]  ;;  %v44_v30 = vld [vmem:[%s2171_s1 + $0xc0] sm:$0xff]  ;;  %v185_v33 = vld [vmem:[%s2171_s1 + $0x528] sm:$0xff] }
   0xc   :  { %226 = vmatpush.msra.mxu0 %v53_v18  ;;  %267 = vmatpush.msra.mxu2 %v146_v20  ;;  %v92_v31 = vld [vmem:[%s2171_s1 + $0x240] sm:$0xff]  ;;  %v41_v34 = vld [vmem:[%s2171_s1 + $0xa8] sm:$0xff]  ;;  %v134_v36 = vld [vmem:[%s2171_s1 + $0x390] sm:$0xff] }
   0xd   :  { %246 = vmatpush.msra.mxu1 %v101_v19  ;;  %287 = vmatpush.msra.mxu3 %v194_v21  ;;  %v89_v35 = vld [vmem:[%s2171_s1 + $0x228] sm:$0xff]  ;;  %v182_v37 = vld [vmem:[%s2171_s1 + $0x510] sm:$0xff]  ;;  %v131_v40 = vld [vmem:[%s2171_s1 + $0x378] sm:$0xff] }
   0xe   :  { %227 = vmatpush.msra.mxu0 %v50_v22  ;;  %268 = vmatpush.msra.mxu2 %v143_v24  ;;  %v38_v38 = vld [vmem:[%s2171_s1 + $0x90] sm:$0xff]  ;;  %v179_v41 = vld [vmem:[%s2171_s1 + $0x4f8] sm:$0xff]  ;;  %v128_v44 = vld [vmem:[%s2171_s1 + $0x360] sm:$0xff] }
   0xf   :  { %247 = vmatpush.msra.mxu1 %v98_v23  ;;  %288 = vmatpush.msra.mxu3 %v191_v25  ;;  %v86_v39 = vld [vmem:[%s2171_s1 + $0x210] sm:$0xff]  ;;  %v35_v42 = vld [vmem:[%s2171_s1 + $0x78] sm:$0xff]  ;;  %v176_v45 = vld [vmem:[%s2171_s1 + $0x4e0] sm:$0xff] }
  0x10   :  { %228 = vmatpush.msra.mxu0 %v47_v26  ;;  %269 = vmatpush.msra.mxu2 %v140_v28  ;;  %v83_v43 = vld [vmem:[%s2171_s1 + $0x1f8] sm:$0xff]  ;;  %v32_v46 = vld [vmem:[%s2171_s1 + $0x60] sm:$0xff]  ;;  %v125_v48 = vld [vmem:[%s2171_s1 + $0x348] sm:$0xff] }
  0x11   :  { %248 = vmatpush.msra.mxu1 %v95_v27  ;;  %289 = vmatpush.msra.mxu3 %v188_v29  ;;  %v80_v47 = vld [vmem:[%s2171_s1 + $0x1e0] sm:$0xff]  ;;  %v173_v49 = vld [vmem:[%s2171_s1 + $0x4c8] sm:$0xff]  ;;  %v122_v52 = vld [vmem:[%s2171_s1 + $0x330] sm:$0xff] }
  0x12   :  { %229 = vmatpush.msra.mxu0 %v44_v30  ;;  %270 = vmatpush.msra.mxu2 %v137_v32  ;;  %v29_v50 = vld [vmem:[%s2171_s1 + $0x48] sm:$0xff]  ;;  %v170_v53 = vld [vmem:[%s2171_s1 + $0x4b0] sm:$0xff]  ;;  %v119_v56 = vld [vmem:[%s2171_s1 + $0x318] sm:$0xff] }
  0x13   :  { %249 = vmatpush.msra.mxu1 %v92_v31  ;;  %290 = vmatpush.msra.mxu3 %v185_v33  ;;  %v77_v51 = vld [vmem:[%s2171_s1 + $0x1c8] sm:$0xff]  ;;  %v26_v54 = vld [vmem:[%s2171_s1 + $0x30] sm:$0xff]  ;;  %v167_v57 = vld [vmem:[%s2171_s1 + $0x498] sm:$0xff] }
  0x14   :  { %230 = vmatpush.msra.mxu0 %v41_v34  ;;  %271 = vmatpush.msra.mxu2 %v134_v36  ;;  %v74_v55 = vld [vmem:[%s2171_s1 + $0x1b0] sm:$0xff]  ;;  %v23_v58 = vld [vmem:[%s2171_s1 + $0x18] sm:$0xff]  ;;  %v116_v60 = vld [vmem:[%s2171_s1 + $0x300] sm:$0xff] }
  0x15   :  { %250 = vmatpush.msra.mxu1 %v89_v35  ;;  %291 = vmatpush.msra.mxu3 %v182_v37  ;;  %v71_v59 = vld [vmem:[%s2171_s1 + $0x198] sm:$0xff]  ;;  %v164_v61 = vld [vmem:[%s2171_s1 + $0x480] sm:$0xff]  ;;  %v162_v62 = vld [vmem:[%s2171_s1 + $0x470] sm:$0xff] }
  0x16   :  { %231 = vmatpush.msra.mxu0 %v38_v38  ;;  %272 = vmatpush.msra.mxu2 %v131_v40  ;;  %v210_v63 = vld [vmem:[%s2171_s1 + $0x5f0] sm:$0xff]  ;;  %v20_v0 = vld [vmem:[%s2171_s1] sm:$0xff]  ;;  %v159_v2 = vld [vmem:[%s2171_s1 + $0x458] sm:$0xff] }
  0x17   :  { %251 = vmatpush.msra.mxu1 %v86_v39  ;;  %292 = vmatpush.msra.mxu3 %v179_v41  ;;  %v68_v1 = vld [vmem:[%s2171_s1 + $0x180] sm:$0xff]  ;;  %v66_v3 = vld [vmem:[%s2171_s1 + $0x170] sm:$0xff]  ;;  %v207_v5 = vld [vmem:[%s2171_s1 + $0x5d8] sm:$0xff] }
  0x18   :  { %232 = vmatpush.msra.mxu0 %v35_v42  ;;  %273 = vmatpush.msra.mxu2 %v128_v44  ;;  %v114_v4 = vld [vmem:[%s2171_s1 + $0x2f0] sm:$0xff]  ;;  %v156_v6 = vld [vmem:[%s2171_s1 + $0x440] sm:$0xff]  ;;  %v63_v7 = vld [vmem:[%s2171_s1 + $0x158] sm:$0xff] }
  0x19   :  { %252 = vmatpush.msra.mxu1 %v83_v43  ;;  %293 = vmatpush.msra.mxu3 %v176_v45  ;;  %v111_v8 = vld [vmem:[%s2171_s1 + $0x2d8] sm:$0xff]  ;;  %v204_v9 = vld [vmem:[%s2171_s1 + $0x5c0] sm:$0xff]  ;;  %v153_v10 = vld [vmem:[%s2171_s1 + $0x428] sm:$0xff] }
  0x1a   :  { %233 = vmatpush.msra.mxu0 %v32_v46  ;;  %274 = vmatpush.msra.mxu2 %v125_v48  ;;  %v60_v11 = vld [vmem:[%s2171_s1 + $0x140] sm:$0xff]  ;;  %v201_v14 = vld [vmem:[%s2171_s1 + $0x5a8] sm:$0xff]  ;;  %v150_v15 = vld [vmem:[%s2171_s1 + $0x410] sm:$0xff] }
  0x1b   :  { %253 = vmatpush.msra.mxu1 %v80_v47  ;;  %294 = vmatpush.msra.mxu3 %v173_v49  ;;  %v19_v12 = vld [vmem:[%s2172_s0] sm:$0xff]  ;;  %v57_v16 = vld [vmem:[%s2171_s1 + $0x128] sm:$0xff]  ;;  %v147_v18 = vld [vmem:[%s2171_s1 + $0x3f8] sm:$0xff] }
  0x1c   :  { %234 = vmatpush.msra.mxu0 %v29_v50  ;;  %275 = vmatpush.msra.mxu2 %v122_v52  ;;  %v108_v13 = vld [vmem:[%s2171_s1 + $0x2c0] sm:$0xff]  ;;  %213 = vst [vmem:[#allocation1] ss:$4 sm:$0xff] %v19_v12  ;;  %v105_v17 = vld [vmem:[%s2171_s1 + $0x2a8] sm:$0xff]  ;;  %v198_v19 = vld [vmem:[%s2171_s1 + $0x590] sm:$0xff] }
  0x1d   :  { %254 = vmatpush.msra.mxu1 %v77_v51  ;;  %295 = vmatpush.msra.mxu3 %v170_v53  ;;  %v54_v20 = vld [vmem:[%s2171_s1 + $0x110] sm:$0xff]  ;;  %v144_v22 = vld [vmem:[%s2171_s1 + $0x3e0] sm:$0xff]  ;;  %v195_v23 = vld [vmem:[%s2171_s1 + $0x578] sm:$0xff] }
  0x1e   :  { %235 = vmatpush.msra.mxu0 %v26_v54  ;;  %276 = vmatpush.msra.mxu2 %v119_v56  ;;  %v102_v21 = vld [vmem:[%s2171_s1 + $0x290] sm:$0xff]  ;;  %v51_v24 = vld [vmem:[%s2171_s1 + $0xf8] sm:$0xff]  ;;  %v141_v26 = vld [vmem:[%s2171_s1 + $0x3c8] sm:$0xff] }
  0x1f   :  { %255 = vmatpush.msra.mxu1 %v74_v55  ;;  %296 = vmatpush.msra.mxu3 %v167_v57  ;;  %v99_v25 = vld [vmem:[%s2171_s1 + $0x278] sm:$0xff]  ;;  %v192_v27 = vld [vmem:[%s2171_s1 + $0x560] sm:$0xff]  ;;  %v189_v30 = vld [vmem:[%s2171_s1 + $0x548] sm:$0xff] }
  0x20   :  { %236 = vmatpush.msra.mxu0 %v23_v58  ;;  %277 = vmatpush.msra.mxu2 %v116_v60  ;;  %v48_v28 = vld [vmem:[%s2171_s1 + $0xe0] sm:$0xff]  ;;  %v138_v36 = vld [vmem:[%s2171_s1 + $0x3b0] sm:$0xff]  ;;  %v45_v37 = vld [vmem:[%s2171_s1 + $0xc8] sm:$0xff] }
  0x21   :  { %256 = vmatpush.msra.mxu1 %v71_v59  ;;  %297 = vmatpush.msra.mxu3 %v164_v61  ;;  %v96_v29 = vld [vmem:[%s2171_s1 + $0x260] sm:$0xff]  ;;  %v93_v38 = vld [vmem:[%s2171_s1 + $0x248] sm:$0xff]  ;;  %v186_v39 = vld [vmem:[%s2171_s1 + $0x530] sm:$0xff] }
  0x22   :  { %342 = vmatpush.msrb.mxu2 %v162_v62  ;;  %237 = vmatpush.msra.mxu0 %v20_v0  ;;  %v473_v31 = vld [vmem:[%s2173_s2] sm:$0xff]  ;;  %v135_v40 = vld [vmem:[%s2171_s1 + $0x398] sm:$0xff]  ;;  %v42_v41 = vld [vmem:[%s2171_s1 + $0xb0] sm:$0xff] }
  0x23   :  { %362 = vmatpush.msrb.mxu3 %v210_v63  ;;  %257 = vmatpush.msra.mxu1 %v68_v1  ;;  %v1251_v32 = vld.sshfl [vmem:[#allocation1 + $0x10] sm:$0xff pattern:$0x73625140]  ;;  %v1253_v33 = vld.sshfl [vmem:[#allocation1 + $0x18] sm:$0xff pattern:$0x73625140] }
  0x24   :  { %343 = vmatpush.msrb.mxu2 %v159_v2  ;;  %302 = vmatpush.msrb.mxu0 %v66_v3  ;;  %v1255_v34 = vld.sshfl [vmem:[#allocation1] sm:$0xff pattern:$0x73625140]  ;;  %v1257_v35 = vld.sshfl [vmem:[#allocation1 + $0x8] sm:$0xff pattern:$0x73625140] }
  0x25   :  { %322 = vmatpush.msrb.mxu1 %v114_v4  ;;  %363 = vmatpush.msrb.mxu3 %v207_v5  ;;  %667 = vst [vmem:[#allocation1] ss:$4 sm:$0xff] %v473_v31  ;;  %v90_v42 = vld [vmem:[%s2171_s1 + $0x230] sm:$0xff]  ;;  %v183_v43 = vld [vmem:[%s2171_s1 + $0x518] sm:$0xff]  ;;  %v132_v44 = vld [vmem:[%s2171_s1 + $0x380] sm:$0xff] }
  0x26   :  { %344 = vmatpush.msrb.mxu2 %v156_v6  ;;  %303 = vmatpush.msrb.mxu0 %v63_v7  ;;  %v39_v45 = vld [vmem:[%s2171_s1 + $0x98] sm:$0xff]  ;;  %v180_v47 = vld [vmem:[%s2171_s1 + $0x500] sm:$0xff]  ;;  %v129_v48 = vld [vmem:[%s2171_s1 + $0x368] sm:$0xff] }
  0x27   :  { %323 = vmatpush.msrb.mxu1 %v111_v8  ;;  %364 = vmatpush.msrb.mxu3 %v204_v9  ;;  %v87_v46 = vld [vmem:[%s2171_s1 + $0x218] sm:$0xff]  ;;  %v36_v49 = vld [vmem:[%s2171_s1 + $0x80] sm:$0xff]  ;;  %v126_v51 = vld [vmem:[%s2171_s1 + $0x350] sm:$0xff] }
  0x28   :  { %345 = vmatpush.msrb.mxu2 %v153_v10  ;;  %304 = vmatpush.msrb.mxu0 %v60_v11  ;;  %v84_v50 = vld [vmem:[%s2171_s1 + $0x200] sm:$0xff]  ;;  %v177_v52 = vld [vmem:[%s2171_s1 + $0x4e8] sm:$0xff]  ;;  %v123_v55 = vld [vmem:[%s2171_s1 + $0x338] sm:$0xff] }
  0x29   :  { %324 = vmatpush.msrb.mxu1 %v108_v13  ;;  %365 = vmatpush.msrb.mxu3 %v201_v14  ;;  %v33_v53 = vld [vmem:[%s2171_s1 + $0x68] sm:$0xff]  ;;  %v174_v56 = vld [vmem:[%s2171_s1 + $0x4d0] sm:$0xff]  ;;  %v120_v59 = vld [vmem:[%s2171_s1 + $0x320] sm:$0xff] }
  0x2a   :  { %346 = vmatpush.msrb.mxu2 %v150_v15  ;;  %305 = vmatpush.msrb.mxu0 %v57_v16  ;;  %v81_v54 = vld [vmem:[%s2171_s1 + $0x1e8] sm:$0xff]  ;;  %v30_v57 = vld [vmem:[%s2171_s1 + $0x50] sm:$0xff]  ;;  %v171_v60 = vld [vmem:[%s2171_s1 + $0x4b8] sm:$0xff] }
  0x2b   :  { %325 = vmatpush.msrb.mxu1 %v105_v17  ;;  %366 = vmatpush.msrb.mxu3 %v198_v19  ;;  %v78_v58 = vld [vmem:[%s2171_s1 + $0x1d0] sm:$0xff]  ;;  %v27_v61 = vld [vmem:[%s2171_s1 + $0x38] sm:$0xff]  ;;  %v117_v63 = vld [vmem:[%s2171_s1 + $0x308] sm:$0xff] }
  0x2c   :  { %347 = vmatpush.msrb.mxu2 %v147_v18  ;;  %306 = vmatpush.msrb.mxu0 %v54_v20  ;;  %v75_v62 = vld [vmem:[%s2171_s1 + $0x1b8] sm:$0xff]  ;;  %v168_v0 = vld [vmem:[%s2171_s1 + $0x4a0] sm:$0xff]  ;;  %v165_v4 = vld [vmem:[%s2171_s1 + $0x488] sm:$0xff] }
  0x2d   :  { %326 = vmatpush.msrb.mxu1 %v102_v21  ;;  %367 = vmatpush.msrb.mxu3 %v195_v23  ;;  %v163_v1 = vld [vmem:[%s2171_s1 + $0x478] sm:$0xff]  ;;  %v24_v2 = vld [vmem:[%s2171_s1 + $0x20] sm:$0xff]  ;;  %v21_v7 = vld [vmem:[%s2171_s1 + $0x8] sm:$0xff] }
  0x2e   :  { %348 = vmatpush.msrb.mxu2 %v144_v22  ;;  %307 = vmatpush.msrb.mxu0 %v51_v24  ;;  %v72_v3 = vld [vmem:[%s2171_s1 + $0x1a0] sm:$0xff]  ;;  %v211_v6 = vld [vmem:[%s2171_s1 + $0x5f8] sm:$0xff]  ;;  %v69_v8 = vld [vmem:[%s2171_s1 + $0x188] sm:$0xff] }
  0x2f   :  { %327 = vmatpush.msrb.mxu1 %v99_v25  ;;  %368 = vmatpush.msrb.mxu3 %v192_v27  ;;  %v160_v5 = vld [vmem:[%s2171_s1 + $0x460] sm:$0xff]  ;;  %v67_v9 = vld [vmem:[%s2171_s1 + $0x178] sm:$0xff]  ;;  %v157_v11 = vld [vmem:[%s2171_s1 + $0x448] sm:$0xff] }
  0x30   :  { %349 = vmatpush.msrb.mxu2 %v141_v26  ;;  %308 = vmatpush.msrb.mxu0 %v48_v28  ;;  %v115_v10 = vld [vmem:[%s2171_s1 + $0x2f8] sm:$0xff]  ;;  %v208_v12 = vld [vmem:[%s2171_s1 + $0x5e0] sm:$0xff]  ;;  %v154_v15 = vld [vmem:[%s2171_s1 + $0x430] sm:$0xff] }
  0x31   :  { %328 = vmatpush.msrb.mxu1 %v96_v29  ;;  %369 = vmatpush.msrb.mxu3 %v189_v30  ;;  %v64_v13 = vld [vmem:[%s2171_s1 + $0x160] sm:$0xff]  ;;  %v205_v16 = vld [vmem:[%s2171_s1 + $0x5c8] sm:$0xff]  ;;  %v151_v19 = vld [vmem:[%s2171_s1 + $0x418] sm:$0xff] }
  0x32   :  { %350 = vmatpush.msrb.mxu2 %v138_v36  ;;  %309 = vmatpush.msrb.mxu0 %v45_v37  ;;  %v112_v14 = vld [vmem:[%s2171_s1 + $0x2e0] sm:$0xff]  ;;  %v61_v17 = vld [vmem:[%s2171_s1 + $0x148] sm:$0xff]  ;;  %v202_v20 = vld [vmem:[%s2171_s1 + $0x5b0] sm:$0xff] }
  0x33   :  { %329 = vmatpush.msrb.mxu1 %v93_v38  ;;  %370 = vmatpush.msrb.mxu3 %v186_v39  ;;  %v109_v18 = vld [vmem:[%s2171_s1 + $0x2c8] sm:$0xff]  ;;  %v58_v21 = vld [vmem:[%s2171_s1 + $0x130] sm:$0xff]  ;;  %v148_v23 = vld [vmem:[%s2171_s1 + $0x400] sm:$0xff] }
  0x34   :  { %351 = vmatpush.msrb.mxu2 %v135_v40  ;;  %310 = vmatpush.msrb.mxu0 %v42_v41  ;;  %v106_v22 = vld [vmem:[%s2171_s1 + $0x2b0] sm:$0xff]  ;;  %v199_v24 = vld [vmem:[%s2171_s1 + $0x598] sm:$0xff]  ;;  %v145_v27 = vld [vmem:[%s2171_s1 + $0x3e8] sm:$0xff] }
  0x35   :  { %330 = vmatpush.msrb.mxu1 %v90_v42  ;;  %371 = vmatpush.msrb.mxu3 %v183_v43  ;;  %v55_v25 = vld [vmem:[%s2171_s1 + $0x118] sm:$0xff]  ;;  %v196_v28 = vld [vmem:[%s2171_s1 + $0x580] sm:$0xff]  ;;  %v142_v31 = vld [vmem:[%s2171_s1 + $0x3d0] sm:$0xff] }
  0x36   :  { %352 = vmatpush.msrb.mxu2 %v132_v44  ;;  %311 = vmatpush.msrb.mxu0 %v39_v45  ;;  %v103_v26 = vld [vmem:[%s2171_s1 + $0x298] sm:$0xff]  ;;  %v52_v29 = vld [vmem:[%s2171_s1 + $0x100] sm:$0xff]  ;;  %v193_v36 = vld [vmem:[%s2171_s1 + $0x568] sm:$0xff] }
  0x37   :  { %331 = vmatpush.msrb.mxu1 %v87_v46  ;;  %372 = vmatpush.msrb.mxu3 %v180_v47  ;;  %v100_v30 = vld [vmem:[%s2171_s1 + $0x280] sm:$0xff]  ;;  %v49_v37 = vld [vmem:[%s2171_s1 + $0xe8] sm:$0xff]  ;;  %v139_v39 = vld [vmem:[%s2171_s1 + $0x3b8] sm:$0xff] }
  0x38   :  { %353 = vmatpush.msrb.mxu2 %v129_v48  ;;  %312 = vmatpush.msrb.mxu0 %v36_v49  ;;  %v97_v38 = vld [vmem:[%s2171_s1 + $0x268] sm:$0xff]  ;;  %v190_v40 = vld [vmem:[%s2171_s1 + $0x550] sm:$0xff]  ;;  %v136_v43 = vld [vmem:[%s2171_s1 + $0x3a0] sm:$0xff] }
  0x39   :  { %278 = vmatmul.f32.vlgmr.msra.gmra.mxu2 %v1251_v32  ;;  %332 = vmatpush.msrb.mxu1 %v84_v50  ;;  %v46_v41 = vld [vmem:[%s2171_s1 + $0xd0] sm:$0xff]  ;;  %v187_v44 = vld [vmem:[%s2171_s1 + $0x538] sm:$0xff]  ;;  %v133_v47 = vld [vmem:[%s2171_s1 + $0x388] sm:$0xff] }
  0x3a   :  { %354 = vmatpush.msrb.mxu2 %v126_v51  ;;  %373 = vmatpush.msrb.mxu3 %v177_v52  ;;  %v94_v42 = vld [vmem:[%s2171_s1 + $0x250] sm:$0xff]  ;;  %v43_v45 = vld [vmem:[%s2171_s1 + $0xb8] sm:$0xff]  ;;  %v184_v48 = vld [vmem:[%s2171_s1 + $0x520] sm:$0xff] }
  0x3b   :  { %298 = vmatmul.f32.vlgmr.msra.gmra.mxu3 %v1253_v33  ;;  %313 = vmatpush.msrb.mxu0 %v33_v53  ;;  %v91_v46 = vld [vmem:[%s2171_s1 + $0x238] sm:$0xff]  ;;  %v40_v49 = vld [vmem:[%s2171_s1 + $0xa0] sm:$0xff]  ;;  %v130_v51 = vld [vmem:[%s2171_s1 + $0x370] sm:$0xff] }
  0x3c   :  { %333 = vmatpush.msrb.mxu1 %v81_v54  ;;  %355 = vmatpush.msrb.mxu2 %v123_v55  ;;  %v88_v50 = vld [vmem:[%s2171_s1 + $0x220] sm:$0xff]  ;;  %v181_v52 = vld [vmem:[%s2171_s1 + $0x508] sm:$0xff]  ;;  %v127_v55 = vld [vmem:[%s2171_s1 + $0x358] sm:$0xff] }
  0x3d   :  { %374 = vmatpush.msrb.mxu3 %v174_v56  ;;  %238 = vmatmul.f32.vlgmr.msra.gmra.mxu0 %v1255_v34  ;;  %v37_v53 = vld [vmem:[%s2171_s1 + $0x88] sm:$0xff]  ;;  %v178_v56 = vld [vmem:[%s2171_s1 + $0x4f0] sm:$0xff] }
  0x3e   :  { %258 = vmatmul.f32.vlgmr.msra.gmra.mxu1 %v1257_v35  ;;  %314 = vmatpush.msrb.mxu0 %v30_v57  ;;  %v85_v54 = vld [vmem:[%s2171_s1 + $0x208] sm:$0xff]  ;;  %v34_v57 = vld [vmem:[%s2171_s1 + $0x70] sm:$0xff] }
  0x3f   :  { %334 = vmatpush.msrb.mxu1 %v78_v58  ;;  %356 = vmatpush.msrb.mxu2 %v120_v59  ;;  %v82_v58 = vld [vmem:[%s2171_s1 + $0x1f0] sm:$0xff]  ;;  %v124_v59 = vld [vmem:[%s2171_s1 + $0x340] sm:$0xff] }
  0x40   :  { %375 = vmatpush.msrb.mxu3 %v171_v60  ;;  %315 = vmatpush.msrb.mxu0 %v27_v61  ;;  %v175_v60 = vld [vmem:[%s2171_s1 + $0x4d8] sm:$0xff] }
  0x41   :  { %335 = vmatpush.msrb.mxu1 %v75_v62  ;;  %357 = vmatpush.msrb.mxu2 %v117_v63  ;;  %v31_v61 = vld [vmem:[%s2171_s1 + $0x58] sm:$0xff]  ;;  %v121_v63 = vld [vmem:[%s2171_s1 + $0x328] sm:$0xff] }
  0x42   :  { %376 = vmatpush.msrb.mxu3 %v168_v0  ;;  %358 = vmatmul.f32.vlgmr.msrb.gmra.mxu2 %v1251_v32  ;;  %v79_v62 = vld [vmem:[%s2171_s1 + $0x1d8] sm:$0xff]  ;;  %v172_v0 = vld [vmem:[%s2171_s1 + $0x4c0] sm:$0xff] }
  0x43   :  { %422 = vmatpush.msra.mxu2 %v163_v1  ;;  %316 = vmatpush.msrb.mxu0 %v24_v2  ;;  %v28_v1 = vld [vmem:[%s2171_s1 + $0x40] sm:$0xff] }
  0x44   :  { %336 = vmatpush.msrb.mxu1 %v72_v3  ;;  %377 = vmatpush.msrb.mxu3 %v165_v4  ;;  %v76_v2 = vld [vmem:[%s2171_s1 + $0x1c0] sm:$0xff]  ;;  %v118_v3 = vld [vmem:[%s2171_s1 + $0x310] sm:$0xff]  ;;  %v169_v4 = vld [vmem:[%s2171_s1 + $0x4a8] sm:$0xff] }
  0x45   :  { %378 = vmatmul.f32.vlgmr.msrb.gmra.mxu3 %v1253_v33  ;;  %423 = vmatpush.msra.mxu2 %v160_v5  ;;  %v615_v5 = vld [vmem:[%s2174_s3 + $0x468] sm:$0xff] }
  0x46   :  { %442 = vmatpush.msra.mxu3 %v211_v6  ;;  %317 = vmatpush.msrb.mxu0 %v21_v7  ;;  %v25_v6 = vld [vmem:[%s2171_s1 + $0x28] sm:$0xff] }
  0x47   :  { %337 = vmatpush.msrb.mxu1 %v69_v8  ;;  %318 = vmatmul.f32.vlgmr.msrb.gmra.mxu0 %v1255_v34  ;;  %v73_v7 = vld [vmem:[%s2171_s1 + $0x1a8] sm:$0xff]  ;;  %v166_v8 = vld [vmem:[%s2171_s1 + $0x490] sm:$0xff] }
  0x48   :  { %338 = vmatmul.f32.vlgmr.msrb.gmra.mxu1 %v1257_v35  ;;  %382 = vmatpush.msra.mxu0 %v67_v9  ;;  %v612_v9 = vld [vmem:[%s2174_s3 + $0x450] sm:$0xff] }
  0x49   :  { %402 = vmatpush.msra.mxu1 %v115_v10  ;;  %424 = vmatpush.msra.mxu2 %v157_v11  ;;  %v663_v10 = vld [vmem:[%s2174_s3 + $0x5e8] sm:$0xff]  ;;  %v22_v11 = vld [vmem:[%s2171_s1 + $0x10] sm:$0xff] }
  0x4a   :  { %443 = vmatpush.msra.mxu3 %v208_v12  ;;  %383 = vmatpush.msra.mxu0 %v64_v13  ;;  %v519_v12 = vld [vmem:[%s2174_s3 + $0x168] sm:$0xff] }
  0x4b   :  { %403 = vmatpush.msra.mxu1 %v112_v14  ;;  %425 = vmatpush.msra.mxu2 %v154_v15  ;;  %v567_v13 = vld [vmem:[%s2174_s3 + $0x2e8] sm:$0xff]  ;;  %v609_v14 = vld [vmem:[%s2174_s3 + $0x438] sm:$0xff]  ;;  %v516_v15 = vld [vmem:[%s2174_s3 + $0x150] sm:$0xff] }
  0x4c   :  { %444 = vmatpush.msra.mxu3 %v205_v16  ;;  %384 = vmatpush.msra.mxu0 %v61_v17  ;;  %v564_v16 = vld [vmem:[%s2174_s3 + $0x2d0] sm:$0xff]  ;;  %v606_v17 = vld [vmem:[%s2174_s3 + $0x420] sm:$0xff] }
  0x4d   :  { %404 = vmatpush.msra.mxu1 %v109_v18  ;;  %426 = vmatpush.msra.mxu2 %v151_v19  ;;  %v513_v18 = vld [vmem:[%s2174_s3 + $0x138] sm:$0xff]  ;;  %v603_v19 = vld [vmem:[%s2174_s3 + $0x408] sm:$0xff] }
  0x4e   :  { %445 = vmatpush.msra.mxu3 %v202_v20  ;;  %385 = vmatpush.msra.mxu0 %v58_v21  ;;  %v654_v20 = vld [vmem:[%s2174_s3 + $0x5a0] sm:$0xff] }
  0x4f   :  { %405 = vmatpush.msra.mxu1 %v106_v22  ;;  %427 = vmatpush.msra.mxu2 %v148_v23  ;;  %v510_v21 = vld [vmem:[%s2174_s3 + $0x120] sm:$0xff]  ;;  %v600_v23 = vld [vmem:[%s2174_s3 + $0x3f0] sm:$0xff] }
  0x50   :  { %446 = vmatpush.msra.mxu3 %v199_v24  ;;  %386 = vmatpush.msra.mxu0 %v55_v25  ;;  %v558_v22 = vld [vmem:[%s2174_s3 + $0x2a0] sm:$0xff]  ;;  %v651_v24 = vld [vmem:[%s2174_s3 + $0x588] sm:$0xff] }
  0x51   :  { %406 = vmatpush.msra.mxu1 %v103_v26  ;;  %428 = vmatpush.msra.mxu2 %v145_v27  ;;  %v507_v25 = vld [vmem:[%s2174_s3 + $0x108] sm:$0xff]  ;;  %v597_v27 = vld [vmem:[%s2174_s3 + $0x3d8] sm:$0xff] }
  0x52   :  { %447 = vmatpush.msra.mxu3 %v196_v28  ;;  %387 = vmatpush.msra.mxu0 %v52_v29  ;;  %v555_v26 = vld [vmem:[%s2174_s3 + $0x288] sm:$0xff]  ;;  %v648_v28 = vld [vmem:[%s2174_s3 + $0x570] sm:$0xff] }
  0x53   :  { %407 = vmatpush.msra.mxu1 %v100_v30  ;;  %429 = vmatpush.msra.mxu2 %v142_v31  ;;  %v504_v29 = vld [vmem:[%s2174_s3 + $0xf0] sm:$0xff]  ;;  %v594_v31 = vld [vmem:[%s2174_s3 + $0x3c0] sm:$0xff] }
  0x54   :  { %448 = vmatpush.msra.mxu3 %v193_v36  ;;  %388 = vmatpush.msra.mxu0 %v49_v37  ;;  %v552_v30 = vld [vmem:[%s2174_s3 + $0x270] sm:$0xff]  ;;  %v645_v36 = vld [vmem:[%s2174_s3 + $0x558] sm:$0xff] }
  0x55   :  { %408 = vmatpush.msra.mxu1 %v97_v38  ;;  %430 = vmatpush.msra.mxu2 %v139_v39  ;;  %v501_v37 = vld [vmem:[%s2174_s3 + $0xd8] sm:$0xff]  ;;  %v591_v39 = vld [vmem:[%s2174_s3 + $0x3a8] sm:$0xff] }
  0x56   :  { %449 = vmatpush.msra.mxu3 %v190_v40  ;;  %389 = vmatpush.msra.mxu0 %v46_v41  ;;  %v549_v38 = vld [vmem:[%s2174_s3 + $0x258] sm:$0xff]  ;;  %v642_v40 = vld [vmem:[%s2174_s3 + $0x540] sm:$0xff] }
  0x57   :  { %409 = vmatpush.msra.mxu1 %v94_v42  ;;  %431 = vmatpush.msra.mxu2 %v136_v43  ;;  %v498_v41 = vld [vmem:[%s2174_s3 + $0xc0] sm:$0xff]  ;;  %v588_v43 = vld [vmem:[%s2174_s3 + $0x390] sm:$0xff] }
  0x58   :  { %450 = vmatpush.msra.mxu3 %v187_v44  ;;  %390 = vmatpush.msra.mxu0 %v43_v45  ;;  %v546_v42 = vld [vmem:[%s2174_s3 + $0x240] sm:$0xff]  ;;  %v639_v44 = vld [vmem:[%s2174_s3 + $0x528] sm:$0xff] }
  0x59   :  { %410 = vmatpush.msra.mxu1 %v91_v46  ;;  %432 = vmatpush.msra.mxu2 %v133_v47  ;;  %v495_v45 = vld [vmem:[%s2174_s3 + $0xa8] sm:$0xff]  ;;  %v585_v47 = vld [vmem:[%s2174_s3 + $0x378] sm:$0xff] }
  0x5a   :  { %451 = vmatpush.msra.mxu3 %v184_v48  ;;  %391 = vmatpush.msra.mxu0 %v40_v49  ;;  %v543_v46 = vld [vmem:[%s2174_s3 + $0x228] sm:$0xff]  ;;  %v636_v48 = vld [vmem:[%s2174_s3 + $0x510] sm:$0xff] }
  0x5b   :  { %411 = vmatpush.msra.mxu1 %v88_v50  ;;  %433 = vmatpush.msra.mxu2 %v130_v51  ;;  %v492_v49 = vld [vmem:[%s2174_s3 + $0x90] sm:$0xff]  ;;  %v582_v51 = vld [vmem:[%s2174_s3 + $0x360] sm:$0xff] }
  0x5c   :  { %452 = vmatpush.msra.mxu3 %v181_v52  ;;  %392 = vmatpush.msra.mxu0 %v37_v53  ;;  %v540_v50 = vld [vmem:[%s2174_s3 + $0x210] sm:$0xff]  ;;  %v633_v52 = vld [vmem:[%s2174_s3 + $0x4f8] sm:$0xff] }
  0x5d   :  { %412 = vmatpush.msra.mxu1 %v85_v54  ;;  %434 = vmatpush.msra.mxu2 %v127_v55  ;;  %v489_v53 = vld [vmem:[%s2174_s3 + $0x78] sm:$0xff]  ;;  %v579_v55 = vld [vmem:[%s2174_s3 + $0x348] sm:$0xff] }
  0x5e   :  { %453 = vmatpush.msra.mxu3 %v178_v56  ;;  %393 = vmatpush.msra.mxu0 %v34_v57  ;;  %v537_v54 = vld [vmem:[%s2174_s3 + $0x1f8] sm:$0xff]  ;;  %v630_v56 = vld [vmem:[%s2174_s3 + $0x4e0] sm:$0xff] }
  0x5f   :  { %413 = vmatpush.msra.mxu1 %v82_v58  ;;  %435 = vmatpush.msra.mxu2 %v124_v59  ;;  %v486_v57 = vld [vmem:[%s2174_s3 + $0x60] sm:$0xff]  ;;  %v576_v59 = vld [vmem:[%s2174_s3 + $0x330] sm:$0xff] }
  0x60   :  { %454 = vmatpush.msra.mxu3 %v175_v60  ;;  %394 = vmatpush.msra.mxu0 %v31_v61  ;;  %v534_v58 = vld [vmem:[%s2174_s3 + $0x1e0] sm:$0xff]  ;;  %v627_v60 = vld [vmem:[%s2174_s3 + $0x4c8] sm:$0xff] }
  0x61   :  { %414 = vmatpush.msra.mxu1 %v79_v62  ;;  %436 = vmatpush.msra.mxu2 %v121_v63  ;;  %v483_v61 = vld [vmem:[%s2174_s3 + $0x48] sm:$0xff]  ;;  %v573_v63 = vld [vmem:[%s2174_s3 + $0x318] sm:$0xff] }
  0x62   :  { %455 = vmatpush.msra.mxu3 %v172_v0  ;;  %395 = vmatpush.msra.mxu0 %v28_v1  ;;  %v531_v62 = vld [vmem:[%s2174_s3 + $0x1c8] sm:$0xff]  ;;  %v624_v0 = vld [vmem:[%s2174_s3 + $0x4b0] sm:$0xff] }
  0x63   :  { %415 = vmatpush.msra.mxu1 %v76_v2  ;;  %437 = vmatpush.msra.mxu2 %v118_v3  ;;  %v480_v1 = vld [vmem:[%s2174_s3 + $0x30] sm:$0xff]  ;;  %v570_v3 = vld [vmem:[%s2174_s3 + $0x300] sm:$0xff] }
  0x64   :  { %456 = vmatpush.msra.mxu3 %v169_v4  ;;  %438 = vmatmul.f32.vlgmr.msra.gmra.mxu2 %v1251_v32  ;;  %v70_v32 = vld [vmem:[%s2171_s1 + $0x190] sm:$0xff]  ;;  %v621_v4 = vld [vmem:[%s2174_s3 + $0x498] sm:$0xff] }
  0x65   :  { %716 = vmatpush.msrb.mxu2 %v615_v5  ;;  %396 = vmatpush.msra.mxu0 %v25_v6  ;;  %v528_v2 = vld [vmem:[%s2174_s3 + $0x1b0] sm:$0xff]  ;;  %v477_v6 = vld [vmem:[%s2174_s3 + $0x18] sm:$0xff] }
  0x66   :  { %416 = vmatpush.msra.mxu1 %v73_v7  ;;  %457 = vmatpush.msra.mxu3 %v166_v8  ;;  %v616_v5 = vld [vmem:[%s2174_s3 + $0x470] sm:$0xff]  ;;  %v525_v7 = vld [vmem:[%s2174_s3 + $0x198] sm:$0xff]  ;;  %v618_v8 = vld [vmem:[%s2174_s3 + $0x480] sm:$0xff] }
  0x67   :  { %458 = vmatmul.f32.vlgmr.msra.gmra.mxu3 %v1253_v33  ;;  %717 = vmatpush.msrb.mxu2 %v612_v9  ;;  %v660_v33 = vld [vmem:[%s2174_s3 + $0x5d0] sm:$0xff]  ;;  %v613_v9 = vld [vmem:[%s2174_s3 + $0x458] sm:$0xff] }
  0x68   :  { %736 = vmatpush.msrb.mxu3 %v663_v10  ;;  %397 = vmatpush.msra.mxu0 %v22_v11  ;;  %v664_v10 = vld [vmem:[%s2174_s3 + $0x5f0] sm:$0xff]  ;;  %v474_v11 = vld [vmem:[%s2174_s3] sm:$0xff] }
  0x69   :  { %417 = vmatpush.msra.mxu1 %v70_v32  ;;  %398 = vmatmul.f32.vlgmr.msra.gmra.mxu0 %v1255_v34  ;;  %v657_v34 = vld [vmem:[%s2174_s3 + $0x5b8] sm:$0xff]  ;;  %v522_v32 = vld [vmem:[%s2174_s3 + $0x180] sm:$0xff] }
  0x6a   :  { %418 = vmatmul.f32.vlgmr.msra.gmra.mxu1 %v1257_v35  ;;  %676 = vmatpush.msrb.mxu0 %v519_v12  ;;  %v561_v35 = vld [vmem:[%s2174_s3 + $0x2b8] sm:$0xff]  ;;  %v520_v12 = vld [vmem:[%s2174_s3 + $0x170] sm:$0xff] }
  0x6b   :  { %696 = vmatpush.msrb.mxu1 %v567_v13  ;;  %718 = vmatpush.msrb.mxu2 %v609_v14  ;;  %v568_v13 = vld [vmem:[%s2174_s3 + $0x2f0] sm:$0xff]  ;;  %v610_v14 = vld [vmem:[%s2174_s3 + $0x440] sm:$0xff] }
  0x6c   :  { %737 = vmatpush.msrb.mxu3 %v660_v33  ;;  %677 = vmatpush.msrb.mxu0 %v516_v15  ;;  %v661_v33 = vld [vmem:[%s2174_s3 + $0x5d8] sm:$0xff] }
  0x6d   :  { %697 = vmatpush.msrb.mxu1 %v564_v16  ;;  %719 = vmatpush.msrb.mxu2 %v606_v17  ;;  %v517_v15 = vld [vmem:[%s2174_s3 + $0x158] sm:$0xff]  ;;  %v607_v17 = vld [vmem:[%s2174_s3 + $0x428] sm:$0xff] }
  0x6e   :  { %738 = vmatpush.msrb.mxu3 %v657_v34  ;;  %678 = vmatpush.msrb.mxu0 %v513_v18  ;;  %v565_v16 = vld [vmem:[%s2174_s3 + $0x2d8] sm:$0xff]  ;;  %v658_v34 = vld [vmem:[%s2174_s3 + $0x5c0] sm:$0xff] }
  0x6f   :  { %698 = vmatpush.msrb.mxu1 %v561_v35  ;;  %720 = vmatpush.msrb.mxu2 %v603_v19  ;;  %v514_v18 = vld [vmem:[%s2174_s3 + $0x140] sm:$0xff]  ;;  %v604_v19 = vld [vmem:[%s2174_s3 + $0x410] sm:$0xff] }
  0x70   :  { %739 = vmatpush.msrb.mxu3 %v654_v20  ;;  %679 = vmatpush.msrb.mxu0 %v510_v21  ;;  %v562_v35 = vld [vmem:[%s2174_s3 + $0x2c0] sm:$0xff]  ;;  %v655_v20 = vld [vmem:[%s2174_s3 + $0x5a8] sm:$0xff] }
  0x71   :  { %699 = vmatpush.msrb.mxu1 %v558_v22  ;;  %721 = vmatpush.msrb.mxu2 %v600_v23  ;;  %v511_v21 = vld [vmem:[%s2174_s3 + $0x128] sm:$0xff]  ;;  %v601_v23 = vld [vmem:[%s2174_s3 + $0x3f8] sm:$0xff] }
  0x72   :  { %740 = vmatpush.msrb.mxu3 %v651_v24  ;;  %680 = vmatpush.msrb.mxu0 %v507_v25  ;;  %v559_v22 = vld [vmem:[%s2174_s3 + $0x2a8] sm:$0xff]  ;;  %v652_v24 = vld [vmem:[%s2174_s3 + $0x590] sm:$0xff] }
  0x73   :  { %700 = vmatpush.msrb.mxu1 %v555_v26  ;;  %722 = vmatpush.msrb.mxu2 %v597_v27  ;;  %v508_v25 = vld [vmem:[%s2174_s3 + $0x110] sm:$0xff]  ;;  %v598_v27 = vld [vmem:[%s2174_s3 + $0x3e0] sm:$0xff] }
  0x74   :  { %741 = vmatpush.msrb.mxu3 %v648_v28  ;;  %681 = vmatpush.msrb.mxu0 %v504_v29  ;;  %v556_v26 = vld [vmem:[%s2174_s3 + $0x290] sm:$0xff]  ;;  %v649_v28 = vld [vmem:[%s2174_s3 + $0x578] sm:$0xff] }
  0x75   :  { %701 = vmatpush.msrb.mxu1 %v552_v30  ;;  %723 = vmatpush.msrb.mxu2 %v594_v31  ;;  %v505_v29 = vld [vmem:[%s2174_s3 + $0xf8] sm:$0xff]  ;;  %v595_v31 = vld [vmem:[%s2174_s3 + $0x3c8] sm:$0xff] }
  0x76   :  { %742 = vmatpush.msrb.mxu3 %v645_v36  ;;  %682 = vmatpush.msrb.mxu0 %v501_v37  ;;  %v553_v30 = vld [vmem:[%s2174_s3 + $0x278] sm:$0xff]  ;;  %v646_v36 = vld [vmem:[%s2174_s3 + $0x560] sm:$0xff] }
  0x77   :  { %702 = vmatpush.msrb.mxu1 %v549_v38  ;;  %724 = vmatpush.msrb.mxu2 %v591_v39  ;;  %v502_v37 = vld [vmem:[%s2174_s3 + $0xe0] sm:$0xff]  ;;  %v592_v39 = vld [vmem:[%s2174_s3 + $0x3b0] sm:$0xff] }
  0x78   :  { %743 = vmatpush.msrb.mxu3 %v642_v40  ;;  %683 = vmatpush.msrb.mxu0 %v498_v41  ;;  %v550_v38 = vld [vmem:[%s2174_s3 + $0x260] sm:$0xff]  ;;  %v643_v40 = vld [vmem:[%s2174_s3 + $0x548] sm:$0xff] }
  0x79   :  { %703 = vmatpush.msrb.mxu1 %v546_v42  ;;  %725 = vmatpush.msrb.mxu2 %v588_v43  ;;  %v499_v41 = vld [vmem:[%s2174_s3 + $0xc8] sm:$0xff]  ;;  %v589_v43 = vld [vmem:[%s2174_s3 + $0x398] sm:$0xff] }
  0x7a   :  { %744 = vmatpush.msrb.mxu3 %v639_v44  ;;  %684 = vmatpush.msrb.mxu0 %v495_v45  ;;  %v547_v42 = vld [vmem:[%s2174_s3 + $0x248] sm:$0xff]  ;;  %v640_v44 = vld [vmem:[%s2174_s3 + $0x530] sm:$0xff] }
  0x7b   :  { %704 = vmatpush.msrb.mxu1 %v543_v46  ;;  %726 = vmatpush.msrb.mxu2 %v585_v47  ;;  %v496_v45 = vld [vmem:[%s2174_s3 + $0xb0] sm:$0xff]  ;;  %v586_v47 = vld [vmem:[%s2174_s3 + $0x380] sm:$0xff] }
  0x7c   :  { %745 = vmatpush.msrb.mxu3 %v636_v48  ;;  %685 = vmatpush.msrb.mxu0 %v492_v49  ;;  %v544_v46 = vld [vmem:[%s2174_s3 + $0x230] sm:$0xff]  ;;  %v637_v48 = vld [vmem:[%s2174_s3 + $0x518] sm:$0xff] }
  0x7d   :  { %705 = vmatpush.msrb.mxu1 %v540_v50  ;;  %727 = vmatpush.msrb.mxu2 %v582_v51  ;;  %v493_v49 = vld [vmem:[%s2174_s3 + $0x98] sm:$0xff]  ;;  %v583_v51 = vld [vmem:[%s2174_s3 + $0x368] sm:$0xff] }
  0x7e   :  { %746 = vmatpush.msrb.mxu3 %v633_v52  ;;  %686 = vmatpush.msrb.mxu0 %v489_v53  ;;  %v541_v50 = vld [vmem:[%s2174_s3 + $0x218] sm:$0xff]  ;;  %v634_v52 = vld [vmem:[%s2174_s3 + $0x500] sm:$0xff]  ;;  %v1886_v53 = vld.sshfl [vmem:[#allocation1 + $0x10] sm:$0xff pattern:$0x73625140] }
  0x7f   :  { %706 = vmatpush.msrb.mxu1 %v537_v54  ;;  %728 = vmatpush.msrb.mxu2 %v579_v55  ;;  %v490_v54 = vld [vmem:[%s2174_s3 + $0x80] sm:$0xff] }
  0x80   :  { %747 = vmatpush.msrb.mxu3 %v630_v56  ;;  %687 = vmatpush.msrb.mxu0 %v486_v57  ;;  %v538_v55 = vld [vmem:[%s2174_s3 + $0x200] sm:$0xff]  ;;  %v580_v56 = vld [vmem:[%s2174_s3 + $0x350] sm:$0xff]  ;;  %v631_v57 = vld [vmem:[%s2174_s3 + $0x4e8] sm:$0xff] }
  0x81   :  { %707 = vmatpush.msrb.mxu1 %v534_v58  ;;  %729 = vmatpush.msrb.mxu2 %v576_v59  ;;  %v1901_v58 = vld.sshfl [vmem:[#allocation1 + $0x18] sm:$0xff pattern:$0x73625140]  ;;  %v487_v59 = vld [vmem:[%s2174_s3 + $0x68] sm:$0xff] }
  0x82   :  { %748 = vmatpush.msrb.mxu3 %v627_v60  ;;  %688 = vmatpush.msrb.mxu0 %v483_v61  ;;  %v535_v60 = vld [vmem:[%s2174_s3 + $0x1e8] sm:$0xff]  ;;  %v577_v61 = vld [vmem:[%s2174_s3 + $0x338] sm:$0xff] }
  0x83   :  { %708 = vmatpush.msrb.mxu1 %v531_v62  ;;  %730 = vmatpush.msrb.mxu2 %v573_v63  ;;  %v628_v62 = vld [vmem:[%s2174_s3 + $0x4d0] sm:$0xff]  ;;  %v1915_v63 = vld.sshfl [vmem:[#allocation1] sm:$0xff pattern:$0x73625140] }
  0x84   :  { %749 = vmatpush.msrb.mxu3 %v624_v0  ;;  %689 = vmatpush.msrb.mxu0 %v480_v1  ;;  %v1918_v0 = vld.sshfl [vmem:[#allocation1 + $0x8] sm:$0xff pattern:$0x73625140]  ;;  %v484_v1 = vld [vmem:[%s2174_s3 + $0x50] sm:$0xff] }
  0x85   :  { %709 = vmatpush.msrb.mxu1 %v528_v2  ;;  %731 = vmatpush.msrb.mxu2 %v570_v3  ;;  %v532_v2 = vld [vmem:[%s2174_s3 + $0x1d0] sm:$0xff]  ;;  %v574_v3 = vld [vmem:[%s2174_s3 + $0x320] sm:$0xff] }
  0x86   :  { %750 = vmatpush.msrb.mxu3 %v621_v4  ;;  %690 = vmatpush.msrb.mxu0 %v477_v6  ;;  %v625_v4 = vld [vmem:[%s2174_s3 + $0x4b8] sm:$0xff] }
  0x87   :  { %796 = vmatpush.msra.mxu2 %v616_v5  ;;  %710 = vmatpush.msrb.mxu1 %v525_v7  ;;  %v481_v5 = vld [vmem:[%s2174_s3 + $0x38] sm:$0xff]  ;;  %v571_v7 = vld [vmem:[%s2174_s3 + $0x308] sm:$0xff] }
  0x88   :  { %751 = vmatpush.msrb.mxu3 %v618_v8  ;;  %691 = vmatpush.msrb.mxu0 %v474_v11  ;;  %v529_v6 = vld [vmem:[%s2174_s3 + $0x1b8] sm:$0xff]  ;;  %v622_v8 = vld [vmem:[%s2174_s3 + $0x4a0] sm:$0xff] }
  0x89   :  { %797 = vmatpush.msra.mxu2 %v613_v9  ;;  %711 = vmatpush.msrb.mxu1 %v522_v32  ;;  %v617_v9 = vld [vmem:[%s2174_s3 + $0x478] sm:$0xff]  ;;  %v526_v11 = vld [vmem:[%s2174_s3 + $0x1a0] sm:$0xff]  ;;  %v619_v32 = vld [vmem:[%s2174_s3 + $0x488] sm:$0xff] }
  0x8a   :  { %816 = vmatpush.msra.mxu3 %v664_v10  ;;  %756 = vmatpush.msra.mxu0 %v520_v12  ;;  %v478_v10 = vld [vmem:[%s2174_s3 + $0x20] sm:$0xff] }
  0x8b   :  { %776 = vmatpush.msra.mxu1 %v568_v13  ;;  %798 = vmatpush.msra.mxu2 %v610_v14  ;;  %v614_v12 = vld [vmem:[%s2174_s3 + $0x460] sm:$0xff]  ;;  %v665_v13 = vld [vmem:[%s2174_s3 + $0x5f8] sm:$0xff]  ;;  %v475_v14 = vld [vmem:[%s2174_s3 + $0x8] sm:$0xff] }
  0x8c   :  { %817 = vmatpush.msra.mxu3 %v661_v33  ;;  %757 = vmatpush.msra.mxu0 %v517_v15  ;;  %v523_v33 = vld [vmem:[%s2174_s3 + $0x188] sm:$0xff]  ;;  %v521_v15 = vld [vmem:[%s2174_s3 + $0x178] sm:$0xff] }
  0x8d   :  { %777 = vmatpush.msra.mxu1 %v565_v16  ;;  %799 = vmatpush.msra.mxu2 %v607_v17  ;;  %v569_v16 = vld [vmem:[%s2174_s3 + $0x2f8] sm:$0xff]  ;;  %v611_v17 = vld [vmem:[%s2174_s3 + $0x448] sm:$0xff] }
  0x8e   :  { %818 = vmatpush.msra.mxu3 %v658_v34  ;;  %758 = vmatpush.msra.mxu0 %v514_v18  ;;  %v662_v34 = vld [vmem:[%s2174_s3 + $0x5e0] sm:$0xff] }
  0x8f   :  { %778 = vmatpush.msra.mxu1 %v562_v35  ;;  %800 = vmatpush.msra.mxu2 %v604_v19  ;;  %v518_v18 = vld [vmem:[%s2174_s3 + $0x160] sm:$0xff]  ;;  %v608_v19 = vld [vmem:[%s2174_s3 + $0x430] sm:$0xff] }
  0x90   :  { %819 = vmatpush.msra.mxu3 %v655_v20  ;;  %759 = vmatpush.msra.mxu0 %v511_v21  ;;  %v566_v35 = vld [vmem:[%s2174_s3 + $0x2e0] sm:$0xff]  ;;  %v659_v20 = vld [vmem:[%s2174_s3 + $0x5c8] sm:$0xff] }
  0x91   :  { %779 = vmatpush.msra.mxu1 %v559_v22  ;;  %801 = vmatpush.msra.mxu2 %v601_v23  ;;  %v515_v21 = vld [vmem:[%s2174_s3 + $0x148] sm:$0xff]  ;;  %v605_v23 = vld [vmem:[%s2174_s3 + $0x418] sm:$0xff] }
  0x92   :  { %820 = vmatpush.msra.mxu3 %v652_v24  ;;  %760 = vmatpush.msra.mxu0 %v508_v25  ;;  %v563_v22 = vld [vmem:[%s2174_s3 + $0x2c8] sm:$0xff]  ;;  %v656_v24 = vld [vmem:[%s2174_s3 + $0x5b0] sm:$0xff] }
  0x93   :  { %780 = vmatpush.msra.mxu1 %v556_v26  ;;  %802 = vmatpush.msra.mxu2 %v598_v27  ;;  %v512_v25 = vld [vmem:[%s2174_s3 + $0x130] sm:$0xff]  ;;  %v602_v27 = vld [vmem:[%s2174_s3 + $0x400] sm:$0xff] }
  0x94   :  { %821 = vmatpush.msra.mxu3 %v649_v28  ;;  %761 = vmatpush.msra.mxu0 %v505_v29  ;;  %v560_v26 = vld [vmem:[%s2174_s3 + $0x2b0] sm:$0xff]  ;;  %v653_v28 = vld [vmem:[%s2174_s3 + $0x598] sm:$0xff] }
  0x95   :  { %781 = vmatpush.msra.mxu1 %v553_v30  ;;  %803 = vmatpush.msra.mxu2 %v595_v31  ;;  %v509_v29 = vld [vmem:[%s2174_s3 + $0x118] sm:$0xff]  ;;  %v599_v31 = vld [vmem:[%s2174_s3 + $0x3e8] sm:$0xff] }
  0x96   :  { %822 = vmatpush.msra.mxu3 %v646_v36  ;;  %762 = vmatpush.msra.mxu0 %v502_v37  ;;  %v557_v30 = vld [vmem:[%s2174_s3 + $0x298] sm:$0xff]  ;;  %v650_v36 = vld [vmem:[%s2174_s3 + $0x580] sm:$0xff] }
  0x97   :  { %782 = vmatpush.msra.mxu1 %v550_v38  ;;  %804 = vmatpush.msra.mxu2 %v592_v39  ;;  %v506_v37 = vld [vmem:[%s2174_s3 + $0x100] sm:$0xff]  ;;  %v596_v39 = vld [vmem:[%s2174_s3 + $0x3d0] sm:$0xff] }
  0x98   :  { %823 = vmatpush.msra.mxu3 %v643_v40  ;;  %763 = vmatpush.msra.mxu0 %v499_v41  ;;  %v554_v38 = vld [vmem:[%s2174_s3 + $0x280] sm:$0xff]  ;;  %v647_v40 = vld [vmem:[%s2174_s3 + $0x568] sm:$0xff] }
  0x99   :  { %783 = vmatpush.msra.mxu1 %v547_v42  ;;  %805 = vmatpush.msra.mxu2 %v589_v43  ;;  %v503_v41 = vld [vmem:[%s2174_s3 + $0xe8] sm:$0xff]  ;;  %v593_v43 = vld [vmem:[%s2174_s3 + $0x3b8] sm:$0xff] }
  0x9a   :  { %824 = vmatpush.msra.mxu3 %v640_v44  ;;  %764 = vmatpush.msra.mxu0 %v496_v45  ;;  %v551_v42 = vld [vmem:[%s2174_s3 + $0x268] sm:$0xff]  ;;  %v644_v44 = vld [vmem:[%s2174_s3 + $0x550] sm:$0xff] }
  0x9b   :  { %784 = vmatpush.msra.mxu1 %v544_v46  ;;  %806 = vmatpush.msra.mxu2 %v586_v47  ;;  %v500_v45 = vld [vmem:[%s2174_s3 + $0xd0] sm:$0xff]  ;;  %v590_v47 = vld [vmem:[%s2174_s3 + $0x3a0] sm:$0xff] }
  0x9c   :  { %825 = vmatpush.msra.mxu3 %v637_v48  ;;  %765 = vmatpush.msra.mxu0 %v493_v49  ;;  %v548_v46 = vld [vmem:[%s2174_s3 + $0x250] sm:$0xff]  ;;  %v641_v48 = vld [vmem:[%s2174_s3 + $0x538] sm:$0xff] }
  0x9d   :  { %785 = vmatpush.msra.mxu1 %v541_v50  ;;  %807 = vmatpush.msra.mxu2 %v583_v51  ;;  %v497_v49 = vld [vmem:[%s2174_s3 + $0xb8] sm:$0xff]  ;;  %v587_v51 = vld [vmem:[%s2174_s3 + $0x388] sm:$0xff] }
  0x9e   :  { %826 = vmatpush.msra.mxu3 %v634_v52  ;;  %732 = vmatmul.f32.vlgmr.msrb.gmra.mxu2 %v1886_v53  ;;  %v545_v50 = vld [vmem:[%s2174_s3 + $0x238] sm:$0xff]  ;;  %v638_v52 = vld [vmem:[%s2174_s3 + $0x520] sm:$0xff] }
  0x9f   :  { %766 = vmatpush.msra.mxu0 %v490_v54  ;;  %786 = vmatpush.msra.mxu1 %v538_v55  ;;  %v494_v54 = vld [vmem:[%s2174_s3 + $0xa0] sm:$0xff] }
  0xa0   :  { %808 = vmatpush.msra.mxu2 %v580_v56  ;;  %827 = vmatpush.msra.mxu3 %v631_v57  ;;  %v542_v55 = vld [vmem:[%s2174_s3 + $0x220] sm:$0xff]  ;;  %v584_v56 = vld [vmem:[%s2174_s3 + $0x370] sm:$0xff]  ;;  %v635_v57 = vld [vmem:[%s2174_s3 + $0x508] sm:$0xff] }
  0xa1   :  { %752 = vmatmul.f32.vlgmr.msrb.gmra.mxu3 %v1901_v58  ;;  %767 = vmatpush.msra.mxu0 %v487_v59  ;;  %v491_v59 = vld [vmem:[%s2174_s3 + $0x88] sm:$0xff] }
  0xa2   :  { %787 = vmatpush.msra.mxu1 %v535_v60  ;;  %809 = vmatpush.msra.mxu2 %v577_v61  ;;  %v539_v60 = vld [vmem:[%s2174_s3 + $0x208] sm:$0xff]  ;;  %v581_v61 = vld [vmem:[%s2174_s3 + $0x358] sm:$0xff] }
  0xa3   :  { %828 = vmatpush.msra.mxu3 %v628_v62  ;;  %692 = vmatmul.f32.vlgmr.msrb.gmra.mxu0 %v1915_v63  ;;  %v632_v62 = vld [vmem:[%s2174_s3 + $0x4f0] sm:$0xff] }
  0xa4   :  { %712 = vmatmul.f32.vlgmr.msrb.gmra.mxu1 %v1918_v0  ;;  %768 = vmatpush.msra.mxu0 %v484_v1  ;;  %v488_v1 = vld [vmem:[%s2174_s3 + $0x70] sm:$0xff] }
  0xa5   :  { %788 = vmatpush.msra.mxu1 %v532_v2  ;;  %810 = vmatpush.msra.mxu2 %v574_v3  ;;  %v536_v2 = vld [vmem:[%s2174_s3 + $0x1f0] sm:$0xff]  ;;  %v578_v3 = vld [vmem:[%s2174_s3 + $0x340] sm:$0xff] }
  0xa6   :  { %829 = vmatpush.msra.mxu3 %v625_v4  ;;  %769 = vmatpush.msra.mxu0 %v481_v5  ;;  %v629_v4 = vld [vmem:[%s2174_s3 + $0x4d8] sm:$0xff] }
  0xa7   :  { %789 = vmatpush.msra.mxu1 %v529_v6  ;;  %811 = vmatpush.msra.mxu2 %v571_v7  ;;  %v485_v5 = vld [vmem:[%s2174_s3 + $0x58] sm:$0xff]  ;;  %v575_v7 = vld [vmem:[%s2174_s3 + $0x328] sm:$0xff] }
  0xa8   :  { %830 = vmatpush.msra.mxu3 %v622_v8  ;;  %812 = vmatmul.f32.vlgmr.msra.gmra.mxu2 %v1886_v53  ;;  %v533_v6 = vld [vmem:[%s2174_s3 + $0x1d8] sm:$0xff]  ;;  %v626_v8 = vld [vmem:[%s2174_s3 + $0x4c0] sm:$0xff] }
  0xa9   :  { %876 = vmatpush.msrb.mxu2 %v617_v9  ;;  %770 = vmatpush.msra.mxu0 %v478_v10  ;;  %v482_v9 = vld [vmem:[%s2174_s3 + $0x40] sm:$0xff] }
  0xaa   :  { %790 = vmatpush.msra.mxu1 %v526_v11  ;;  %831 = vmatpush.msra.mxu3 %v619_v32  ;;  %v530_v10 = vld [vmem:[%s2174_s3 + $0x1c0] sm:$0xff]  ;;  %v572_v11 = vld [vmem:[%s2174_s3 + $0x310] sm:$0xff]  ;;  %v623_v32 = vld [vmem:[%s2174_s3 + $0x4a8] sm:$0xff] }
  0xab   :  { %832 = vmatmul.f32.vlgmr.msra.gmra.mxu3 %v1901_v58  ;;  %877 = vmatpush.msrb.mxu2 %v614_v12  ;;  %v479_v12 = vld [vmem:[%s2174_s3 + $0x28] sm:$0xff] }
  0xac   :  { %896 = vmatpush.msrb.mxu3 %v665_v13  ;;  %771 = vmatpush.msra.mxu0 %v475_v14  ;;  %v527_v13 = vld [vmem:[%s2174_s3 + $0x1a8] sm:$0xff]  ;;  %v620_v14 = vld [vmem:[%s2174_s3 + $0x490] sm:$0xff] }
  0xad   :  { %791 = vmatpush.msra.mxu1 %v523_v33  ;;  %772 = vmatmul.f32.vlgmr.msra.gmra.mxu0 %v1915_v63  ;;  %v476_v33 = vld [vmem:[%s2174_s3 + $0x10] sm:$0xff] }
  0xae   :  { %792 = vmatmul.f32.vlgmr.msra.gmra.mxu1 %v1918_v0  ;;  %836 = vmatpush.msrb.mxu0 %v521_v15  ;;  %v524_v15 = vld [vmem:[%s2174_s3 + $0x190] sm:$0xff] }
  0xaf   :  { %856 = vmatpush.msrb.mxu1 %v569_v16  ;;  %878 = vmatpush.msrb.mxu2 %v611_v17 }
  0xb0   :  { %897 = vmatpush.msrb.mxu3 %v662_v34  ;;  %837 = vmatpush.msrb.mxu0 %v518_v18 }
  0xb1   :  { %857 = vmatpush.msrb.mxu1 %v566_v35  ;;  %879 = vmatpush.msrb.mxu2 %v608_v19 }
  0xb2   :  { %898 = vmatpush.msrb.mxu3 %v659_v20  ;;  %838 = vmatpush.msrb.mxu0 %v515_v21 }
  0xb3   :  { %858 = vmatpush.msrb.mxu1 %v563_v22  ;;  %880 = vmatpush.msrb.mxu2 %v605_v23 }
  0xb4   :  { %899 = vmatpush.msrb.mxu3 %v656_v24  ;;  %839 = vmatpush.msrb.mxu0 %v512_v25 }
  0xb5   :  { %859 = vmatpush.msrb.mxu1 %v560_v26  ;;  %881 = vmatpush.msrb.mxu2 %v602_v27 }
  0xb6   :  { %900 = vmatpush.msrb.mxu3 %v653_v28  ;;  %840 = vmatpush.msrb.mxu0 %v509_v29 }
  0xb7   :  { %860 = vmatpush.msrb.mxu1 %v557_v30  ;;  %882 = vmatpush.msrb.mxu2 %v599_v31 }
  0xb8   :  { %901 = vmatpush.msrb.mxu3 %v650_v36  ;;  %841 = vmatpush.msrb.mxu0 %v506_v37 }
  0xb9   :  { %861 = vmatpush.msrb.mxu1 %v554_v38  ;;  %883 = vmatpush.msrb.mxu2 %v596_v39 }
  0xba   :  { %902 = vmatpush.msrb.mxu3 %v647_v40  ;;  %842 = vmatpush.msrb.mxu0 %v503_v41 }
  0xbb   :  { %862 = vmatpush.msrb.mxu1 %v551_v42  ;;  %884 = vmatpush.msrb.mxu2 %v593_v43  ;;  %v259_v16 = vpop.f32.mrf.mxu1 }
  0xbc   :  { %903 = vmatpush.msrb.mxu3 %v644_v44  ;;  %843 = vmatpush.msrb.mxu0 %v500_v45  ;;  %v279_v17 = vpop.f32.mrf.mxu2 }
  0xbd   :  { %863 = vmatpush.msrb.mxu1 %v548_v46  ;;  %885 = vmatpush.msrb.mxu2 %v590_v47 }
  0xbe   :  { %904 = vmatpush.msrb.mxu3 %v641_v48  ;;  %844 = vmatpush.msrb.mxu0 %v497_v49  ;;  %v299_v34 = vpop.f32.mrf.mxu3 }
  0xbf   :  { %864 = vmatpush.msrb.mxu1 %v545_v50  ;;  %886 = vmatpush.msrb.mxu2 %v587_v51 }
  0xc0   :  { %905 = vmatpush.msrb.mxu3 %v638_v52  ;;  %845 = vmatpush.msrb.mxu0 %v494_v54 }
  0xc1   :  { %865 = vmatpush.msrb.mxu1 %v542_v55  ;;  %887 = vmatpush.msrb.mxu2 %v584_v56 }
  0xc2   :  { %906 = vmatpush.msrb.mxu3 %v635_v57  ;;  %846 = vmatpush.msrb.mxu0 %v491_v59 }
  0xc3   :  { %866 = vmatpush.msrb.mxu1 %v539_v60  ;;  %888 = vmatpush.msrb.mxu2 %v581_v61 }
  0xc4   :  { %907 = vmatpush.msrb.mxu3 %v632_v62  ;;  %847 = vmatpush.msrb.mxu0 %v488_v1 }
  0xc5   :  { %867 = vmatpush.msrb.mxu1 %v536_v2  ;;  %889 = vmatpush.msrb.mxu2 %v578_v3  ;;  %v339_v35 = vpop.f32.mrf.mxu1  ;;  %v359_v20 = vpop.f32.mrf.mxu2 }
  0xc6   :  { %908 = vmatpush.msrb.mxu3 %v629_v4  ;;  %848 = vmatpush.msrb.mxu0 %v485_v5 }
  0xc7   :  { %868 = vmatpush.msrb.mxu1 %v533_v6  ;;  %890 = vmatpush.msrb.mxu2 %v575_v7 }
  0xc8   :  { %909 = vmatpush.msrb.mxu3 %v626_v8  ;;  %849 = vmatpush.msrb.mxu0 %v482_v9  ;;  %v379_v21 = vpop.f32.mrf.mxu3 }
  0xc9   :  { %869 = vmatpush.msrb.mxu1 %v530_v10  ;;  %891 = vmatpush.msrb.mxu2 %v572_v11 }
  0xca   :  { %910 = vmatpush.msrb.mxu3 %v623_v32  ;;  %892 = vmatmul.f32.vlgmr.msrb.gmra.mxu2 %v1886_v53  ;;  %v239_v53 = vpop.f32.mrf.mxu0 }
  0xcb   :  { %850 = vmatpush.msrb.mxu0 %v479_v12  ;;  %870 = vmatpush.msrb.mxu1 %v527_v13  ;;  %v260_v23 = vadd.f32 %v259_v16, %v239_v53 }
  0xcc   :  { %911 = vmatpush.msrb.mxu3 %v620_v14 }
  0xcd   :  { %912 = vmatmul.f32.vlgmr.msrb.gmra.mxu3 %v1901_v58  ;;  %851 = vmatpush.msrb.mxu0 %v476_v33  ;;  %v280_v28 = vadd.f32 %v279_v17, %v260_v23 }
  0xce   :  { %871 = vmatpush.msrb.mxu1 %v524_v15  ;;  %852 = vmatmul.f32.vlgmr.msrb.gmra.mxu0 %v1915_v63 }
  0xcf   :  { %872 = vmatmul.f32.vlgmr.msrb.gmra.mxu1 %v1918_v0  ;;  %v300_v31 = vadd.f32 %v299_v34, %v280_v28 }
  0xd2   :  { %v319_v18 = vpop.f32.mrf.mxu0 }
  0xd3   :  { %v340_v19 = vadd.f32 %v339_v35, %v319_v18 }
  0xd5   :  { %v360_v22 = vadd.f32 %v359_v20, %v340_v19 }
  0xd7   :  { %v380_v25 = vadd.f32 %v379_v21, %v360_v22 }
  0xd9   :  { %v465_v0 = vrot.slane %v380_v25, 6 }
  0xdb   :  { %v468_v37 = vsel %vm467_vm0, %v300_v31, %v465_v0 }
  0xe6   :  { %v399_v24 = vpop.f32.mrf.mxu0 }
  0xe7   :  { %v419_v58 = vpop.f32.mrf.mxu1  ;;  %v439_v26 = vpop.f32.mrf.mxu2 }
  0xe8   :  { %v420_v27 = vadd.f32 %v419_v58, %v399_v24 }
  0xea   :  { %v440_v63 = vadd.f32 %v439_v26, %v420_v27  ;;  %v459_v29 = vpop.f32.mrf.mxu3 }
  0xec   :  { %v460_v30 = vadd.f32 %v459_v29, %v440_v63 }
  0xee   :  { %v466_v36 = vrot.slane %v460_v30, 4 }
  0xf0   :  { %v470_v38 = vsel %vm469_vm1, %v468_v37, %v466_v36 }
  0xf1   :  { %472 = vst [vmem:[%s2175_s4] sm:$0x3f] %v470_v38 }
 0x120   :  { %v693_v39 = vpop.f32.mrf.mxu0 }
 0x121   :  { %v713_v40 = vpop.f32.mrf.mxu1  ;;  %v733_v41 = vpop.f32.mrf.mxu2 }
 0x122   :  { %v714_v49 = vadd.f32 %v713_v40, %v693_v39 }
 0x124   :  { %v753_v42 = vpop.f32.mrf.mxu3  ;;  %v734_v56 = vadd.f32 %v733_v41, %v714_v49 }
 0x126   :  { %v754_v62 = vadd.f32 %v753_v42, %v734_v56 }
 0x12a   :  { %v773_v43 = vpop.f32.mrf.mxu0 }
 0x12b   :  { %v793_v44 = vpop.f32.mrf.mxu1  ;;  %v813_v46 = vpop.f32.mrf.mxu2 }
 0x12c   :  { %v794_v45 = vadd.f32 %v793_v44, %v773_v43 }
 0x12e   :  { %v814_v47 = vadd.f32 %v813_v46, %v794_v45  ;;  %v833_v48 = vpop.f32.mrf.mxu3 }
 0x130   :  { %v834_v51 = vadd.f32 %v833_v48, %v814_v47 }
 0x132   :  { %v919_v59 = vrot.slane %v834_v51, 6 }
 0x134   :  { %v921_v2 = vsel %vm467_vm0, %v754_v62, %v919_v59 }
 0x14b   :  { %v853_v50 = vpop.f32.mrf.mxu0 }
 0x14c   :  { %v873_v52 = vpop.f32.mrf.mxu1 }
 0x14d   :  { %v874_v54 = vadd.f32 %v873_v52, %v853_v50  ;;  %v893_v55 = vpop.f32.mrf.mxu2 }
 0x14f   :  { %v894_v57 = vadd.f32 %v893_v55, %v874_v54 }
 0x150   :  { %v913_v60 = vpop.f32.mrf.mxu3 }
 0x151   :  { %v914_v61 = vadd.f32 %v913_v60, %v894_v57 }
 0x153   :  { %v920_v1 = vrot.slane %v914_v61, 4 }
 0x155   :  { %v922_v3 = vsel %vm469_vm1, %v921_v2, %v920_v1 }
 0x156   :  { %924 = vst [vmem:[%s2176_s5] sm:$0x3f] %v922_v3 }

// kernel: fno_forward.27
= control target key start
LH: loop header
LB: loop body
LE: loop exit
PB: predicated region body
PF: predicated region fallthrough
CT: control target
= control target key end

     0   :  { %vm61_vm0 = vcmask 7168   ;;  %s168_s1 = inlined_call_operand.vmem [shape: f32[128,1], index: 1, kind: input, shape index: {}]   ;;  %s169_s2 = inlined_call_operand.<no memory space> [shape: f32[1,1], index: 2, kind: input, shape index: {}]   ;;  %s170_s0 = inlined_call_operand.vmem [shape: f32[16,128], index: 0, kind: input, shape index: {}]   ;;  %s171_s3 = inlined_call_operand.vmem [shape: f32[16,1], index: 3, kind: output, shape index: {}]  }
   0x1   :  { %v33_v0 = vld [vmem:[%s168_s1 + $0x78] sm:$0xff]  ;;  %v32_v1 = vld [vmem:[%s168_s1 + $0x70] sm:$0xff]  ;;  %v8_v2 = vstv %s169_s2  ;;  %v31_v3 = vld [vmem:[%s168_s1 + $0x68] sm:$0xff] }
   0x2   :  { %38 = vmatpush.msra.mxu0 %v33_v0  ;;  %68 = vmatpush.msra.mxu1 %v33_v0  ;;  %9 = vst [vmem:[#allocation2] sm:$0x1] %v8_v2  ;;  %v30_v4 = vld [vmem:[%s168_s1 + $0x60] sm:$0xff]  ;;  %v29_v5 = vld [vmem:[%s168_s1 + $0x58] sm:$0xff]  ;;  %v28_v6 = vld [vmem:[%s168_s1 + $0x50] sm:$0xff] }
   0x3   :  { %v27_v7 = vld [vmem:[%s168_s1 + $0x48] sm:$0xff]  ;;  %v26_v8 = vld [vmem:[%s168_s1 + $0x40] sm:$0xff]  ;;  %v25_v9 = vld [vmem:[%s168_s1 + $0x38] sm:$0xff] }
   0x4   :  { %39 = vmatpush.msra.mxu0 %v32_v1  ;;  %69 = vmatpush.msra.mxu1 %v32_v1  ;;  %v24_v10 = vld [vmem:[%s168_s1 + $0x30] sm:$0xff]  ;;  %v23_v11 = vld [vmem:[%s168_s1 + $0x28] sm:$0xff]  ;;  %v22_v12 = vld [vmem:[%s168_s1 + $0x20] sm:$0xff] }
   0x5   :  { %v21_v13 = vld [vmem:[%s168_s1 + $0x18] sm:$0xff]  ;;  %v20_v14 = vld [vmem:[%s168_s1 + $0x10] sm:$0xff]  ;;  %v19_v15 = vld [vmem:[%s168_s1 + $0x8] sm:$0xff] }
   0x6   :  { %40 = vmatpush.msra.mxu0 %v31_v3  ;;  %70 = vmatpush.msra.mxu1 %v31_v3  ;;  %v18_v16 = vld [vmem:[%s168_s1] sm:$0xff]  ;;  %v17_v18 = vld [vmem:[%s170_s0 + $0x8] sm:$0xff] }
   0x7   :  { %v16_v17 = vld [vmem:[%s170_s0] sm:$0xff] }
   0x8   :  { %41 = vmatpush.msra.mxu0 %v30_v4  ;;  %71 = vmatpush.msra.mxu1 %v30_v4 }
   0x9   :  { %v84_v19 = vld [vmem:[#allocation2] ss:$0 sm:$0xff] }
   0xa   :  { %42 = vmatpush.msra.mxu0 %v29_v5  ;;  %72 = vmatpush.msra.mxu1 %v29_v5 }
   0xc   :  { %43 = vmatpush.msra.mxu0 %v28_v6  ;;  %73 = vmatpush.msra.mxu1 %v28_v6 }
   0xe   :  { %44 = vmatpush.msra.mxu0 %v27_v7  ;;  %74 = vmatpush.msra.mxu1 %v27_v7 }
  0x10   :  { %45 = vmatpush.msra.mxu0 %v26_v8  ;;  %75 = vmatpush.msra.mxu1 %v26_v8 }
  0x12   :  { %46 = vmatpush.msra.mxu0 %v25_v9  ;;  %76 = vmatpush.msra.mxu1 %v25_v9 }
  0x14   :  { %47 = vmatpush.msra.mxu0 %v24_v10  ;;  %77 = vmatpush.msra.mxu1 %v24_v10 }
  0x16   :  { %48 = vmatpush.msra.mxu0 %v23_v11  ;;  %78 = vmatpush.msra.mxu1 %v23_v11 }
  0x18   :  { %49 = vmatpush.msra.mxu0 %v22_v12  ;;  %79 = vmatpush.msra.mxu1 %v22_v12 }
  0x1a   :  { %50 = vmatpush.msra.mxu0 %v21_v13  ;;  %80 = vmatpush.msra.mxu1 %v21_v13 }
  0x1c   :  { %51 = vmatpush.msra.mxu0 %v20_v14  ;;  %81 = vmatpush.msra.mxu1 %v20_v14 }
  0x1e   :  { %52 = vmatpush.msra.mxu0 %v19_v15  ;;  %82 = vmatpush.msra.mxu1 %v19_v15 }
  0x20   :  { %53 = vmatpush.msra.mxu0 %v18_v16  ;;  %83 = vmatpush.msra.mxu1 %v18_v16 }
  0x21   :  { %54 = vmatmul.f32.vlgmr.msra.gmra.mxu0 %v16_v17  ;;  %57 = vmatmul.f32.vlgmr.msra.gmra.mxu1 %v17_v18 }
  0x9e   :  { %v55_v20 = vpop.f32.mrf.mxu0  ;;  %v58_v21 = vpop.f32.mrf.mxu1 }
  0x9f   :  { %v56_v22 = vadd.f32 %v84_v19, %v55_v20  ;;  %v59_v23 = vadd.f32 %v84_v19, %v58_v21 }
  0xa1   :  { %62 = vst.msk [vmem:[%s171_s3] sm:$0xff] %vm61_vm0, %v56_v22 }
  0xa2   :  { %63 = vst.msk [vmem:[%s171_s3 + $0x8] sm:$0xff] %vm61_vm0, %v59_v23 }

</bundles_post_ra>
